<compile_context>
chip_gen: v7x
topology: tpu7x:2x2x1
jax: 0.10.0
libtpu: 0.0.40
codegen_flags: <defaults>
</compile_context>

<pallas_src>
import functools

import jax
import jax.numpy as jnp
import numpy as np
from jax.experimental import pallas as pl
from jax.experimental.pallas import tpu as pltpu


# ----------------------------- Fused Pallas kernel -----------------------------

def _fused_cross_attn_cls_kernel(
    v_ref, l_ref,
    wq_ref, bq_ref,
    wl_ref, bl_ref,
    wf_ref, cf_ref, boc_ref,
    o_ref,
    *, num_heads, head_dim,
):
    x = v_ref[0]                       # (T, v_dim) bf16  vision tokens (this batch)
    t0 = l_ref[0][0:1, :]              # (1, l_dim) bf16  text token 0 — the only one reaching the output

    # q projection (1/sqrt(head_dim) pre-folded) and k projection of text token 0.
    q = (jnp.dot(x, wq_ref[...], preferred_element_type=jnp.float32)
         + bq_ref[...]).astype(jnp.bfloat16)                              # (T, E)
    k0 = (jnp.dot(t0, wl_ref[...], preferred_element_type=jnp.float32)
          + bl_ref[...]).astype(jnp.bfloat16)                             # (1, E)

    # Folded value path: values_v_proj -> out_l_proj -> cls_head collapsed host-side
    # into w_f (v_dim, H) (lane-padded to 128).  vf[t, h] = value_h(v_t) . w_out_cls_h
    vf = (jnp.dot(x, wf_ref[...], preferred_element_type=jnp.float32)
          + cf_ref[...])                                                  # (T, 128) f32

    dn = (((1,), (1,)), ((), ()))      # contract last dims, no batch dims
    probs = []
    for h in range(num_heads):         # head_dim == 128 -> lane-aligned static slices
        sl = slice(h * head_dim, (h + 1) * head_dim)
        s = jax.lax.dot_general(k0[:, sl], q[:, sl], dn,
                                preferred_element_type=jnp.float32)       # (1, T)
        s = jnp.clip(s, -50000.0, 50000.0)        # under/overflow clamps
        m = jnp.max(s, axis=-1, keepdims=True)
        p = jnp.exp(s - m)
        p = p * pl.reciprocal(jnp.sum(p, axis=-1, keepdims=True), approx=True)
        # TODO(synk): F.dropout(p=0.1) skipped (eval-mode identity semantics).
        probs.append(p)
    pmat = jnp.concatenate(probs, axis=0)                                 # (H, T) f32

    # cls = sum_h  p_h . vf[:, h]  =  trace(P @ Vf)  (only first H lanes of Vf are non-zero)
    d = jnp.dot(pmat, vf, preferred_element_type=jnp.float32)             # (H, 128) f32
    ii = jax.lax.broadcasted_iota(jnp.int32, d.shape, 0)
    jj = jax.lax.broadcasted_iota(jnp.int32, d.shape, 1)
    diag = jnp.where(ii == jj, d, 0.0)
    cls = jnp.sum(diag, axis=1, keepdims=True)                            # (H, 1)
    cls = jnp.sum(cls, axis=0, keepdims=True) + boc_ref[...]              # (1, 1)
    o_ref[0] = jnp.broadcast_to(jax.nn.sigmoid(cls), (1, 128))


def fused_forward(vis_feat, last_hidden_state, params, *, num_heads, head_dim):
    B, T, v_dim = vis_feat.shape
    _, S, l_dim = last_hidden_state.shape
    E = num_heads * head_dim

    kernel = functools.partial(_fused_cross_attn_cls_kernel,
                               num_heads=num_heads, head_dim=head_dim)
    out = pl.pallas_call(
        kernel,
        out_shape=jax.ShapeDtypeStruct((B, 1, 128), jnp.float32),
        grid=(B,),
        in_specs=[
            pl.BlockSpec((1, T, v_dim), lambda b: (b, 0, 0)),   # vis_feat  (bf16)
            pl.BlockSpec((1, S, l_dim), lambda b: (b, 0, 0)),   # text      (bf16)
            pl.BlockSpec((v_dim, E), lambda b: (0, 0)),         # w_q       (bf16, scale folded)
            pl.BlockSpec((1, E), lambda b: (0, 0)),             # b_q       (f32)
            pl.BlockSpec((l_dim, E), lambda b: (0, 0)),         # w_l       (bf16)
            pl.BlockSpec((1, E), lambda b: (0, 0)),             # b_l       (f32)
            pl.BlockSpec((v_dim, 128), lambda b: (0, 0)),       # w_f       (bf16, folded value/out/cls)
            pl.BlockSpec((1, 128), lambda b: (0, 0)),           # c_f       (f32)
            pl.BlockSpec((1, 1), lambda b: (0, 0)),             # b_oc      (f32)
        ],
        out_specs=pl.BlockSpec((1, 1, 128), lambda b: (b, 0, 0)),
        compiler_params=pltpu.CompilerParams(
            dimension_semantics=("parallel",)),
    )(vis_feat, last_hidden_state,
      params["w_q"], params["b_q"], params["w_l"], params["b_l"],
      params["w_f"], params["c_f"], params["b_oc"])
    return out[:, 0, 0]                                          # (B,)


# ----------------------------- Model wrapper -----------------------------

def _xavier_uniform(key, fan_in, fan_out):
    # torch weight is (out, in); stored transposed as (in, out) for x @ W.
    bound = (6.0 / (fan_in + fan_out)) ** 0.5
    return jax.random.uniform(key, (fan_in, fan_out), jnp.float32, -bound, bound)


class CustomModelPallas:
    def __init__(self, key, *, v_dim=1024, l_dim=768, embed_dim=1024, num_heads=8):
        # TODO(synk): timm ViT-L/14 dinov2 backbone and chinese-roberta BERT are
        # pretrained checkpoints with no in-script equivalent; their outputs are
        # taken as model inputs (vis_feat, last_hidden_state).
        self.v_dim, self.l_dim = v_dim, l_dim
        self.embed_dim, self.num_heads = embed_dim, num_heads
        self.head_dim = embed_dim // num_heads
        assert self.head_dim * num_heads == embed_dim
        H, D, E = num_heads, self.head_dim, embed_dim
        scale = D ** (-0.5)

        k1, k2, k3, k4, k5, k6 = jax.random.split(key, 6)
        w_v = _xavier_uniform(k1, v_dim, E)
        w_l = _xavier_uniform(k2, l_dim, E)
        w_vv = _xavier_uniform(k3, v_dim, E)
        w_out = _xavier_uniform(k4, E, l_dim)
        b_v = jnp.zeros((E,), jnp.float32)
        b_l = jnp.zeros((E,), jnp.float32)
        b_vv = jnp.zeros((E,), jnp.float32)
        b_out = jnp.zeros((l_dim,), jnp.float32)
        bound = 1.0 / (l_dim ** 0.5)     # torch default init for nn.Linear(768, 1)
        w_cls = jax.random.uniform(k5, (l_dim,), jnp.float32, -bound, bound)
        b_cls = jax.random.uniform(k6, (1,), jnp.float32, -bound, bound)

        # ---- Constant folding (exact linear algebra, input-independent) ----
        # cls = sum_{h,t} softmax_t(q_h . k0_h)[t] * (v_t @ w_f[:, h] + c_f[h]) + b_oc
        # with  w_oc = w_out @ w_cls,  w_f[:, h] = w_vv[:, hD:(h+1)D] @ w_oc[hD:(h+1)D].
        w_oc = w_out @ w_cls                                              # (E,)
        w_f = jnp.einsum("ehd,hd->eh", w_vv.reshape(v_dim, H, D),
                         w_oc.reshape(H, D))                              # (v_dim, H)
        c_f = jnp.einsum("hd,hd->h", b_vv.reshape(H, D), w_oc.reshape(H, D))
        b_oc = jnp.dot(b_out, w_cls) + b_cls[0]                           # scalar

        w_f_pad = jnp.zeros((v_dim, 128), jnp.float32).at[:, :H].set(w_f)
        c_f_pad = jnp.zeros((1, 128), jnp.float32).at[0, :H].set(c_f)

        self.params = dict(
            # 1/sqrt(head_dim) scale folded into the q projection.
            w_q=(w_v * scale).astype(jnp.bfloat16),
            b_q=(b_v * scale).reshape(1, E),
            w_l=w_l.astype(jnp.bfloat16),
            b_l=b_l.reshape(1, E),
            w_f=w_f_pad.astype(jnp.bfloat16),          # (v_dim, 128)
            c_f=c_f_pad,                               # (1, 128) f32
            b_oc=b_oc.reshape(1, 1),                   # (1, 1)  f32
            # f32 originals of the folded path, kept only for the pure-JAX reference:
            ref_w_vv=w_vv, ref_b_vv=b_vv,
            ref_w_out=w_out, ref_b_out=b_out,
            ref_w_cls=w_cls, ref_b_cls=b_cls,
        )

    def __call__(self, vis_feat, last_hidden_state):
        return fused_forward(vis_feat.astype(jnp.bfloat16),
                             last_hidden_state.astype(jnp.bfloat16),
                             self.params,
                             num_heads=self.num_heads, head_dim=self.head_dim)


# ----------------------------- Pure JAX reference -----------------------------
# Implements the ORIGINAL module structure (full S, un-folded value/out/cls linears)
# to validate that the token-0 pruning and the constant folding preserve semantics.

def _reference(model, vis_feat, last_hidden_state):
    p = model.params
    H, D, E = model.num_heads, model.head_dim, model.embed_dim
    v = vis_feat.astype(jnp.float32)
    l = last_hidden_state.astype(jnp.float32)
    B, T, _ = v.shape
    S = l.shape[1]

    q = v @ p["w_q"].astype(jnp.float32) + p["b_q"]      # scale already folded (same weights as kernel)
    k = l @ p["w_l"].astype(jnp.float32) + p["b_l"]
    vv = v @ p["ref_w_vv"] + p["ref_b_vv"]

    sh = lambda x, s: x.reshape(B, s, H, D).transpose(0, 2, 1, 3)
    qh, kh, vh = sh(q, T), sh(k, S), sh(vv, T)
    aw = jnp.einsum("bhtd,bhsd->bhts", qh, kh)
    aw = jnp.clip(aw, -50000.0, 50000.0)
    probs = jax.nn.softmax(jnp.swapaxes(aw, -1, -2), axis=-1)        # (B,H,S,T)
    out = jnp.einsum("bhst,bhtd->bhsd", probs, vh)
    out = out.transpose(0, 2, 1, 3).reshape(B, S, E)
    fused = out @ p["ref_w_out"] + p["ref_b_out"]
    cls = fused[:, 0, :] @ p["ref_w_cls"] + p["ref_b_cls"][0]
    return jax.nn.sigmoid(cls)                                       # (B,)


# ----------------------------- Main -----------------------------

if __name__ == "__main__":
    key = jax.random.PRNGKey(0)
    k_model, k_v, k_l = jax.random.split(key, 3)

    B, T, S = 2, 64, 16          # batch, vision tokens, text tokens
    vis_feat = jax.random.normal(k_v, (B, T, 1024), jnp.float32).astype(jnp.bfloat16)
    last_hidden_state = jax.random.normal(k_l, (B, S, 768), jnp.float32).astype(jnp.bfloat16)

    model = CustomModelPallas(k_model)
    out = jax.block_until_ready(model(vis_feat, last_hidden_state))
    assert out.shape == (B,), out.shape

    ref = _reference(model, vis_feat, last_hidden_state)
    np.testing.assert_allclose(np.asarray(out), np.asarray(ref), atol=2e-2, rtol=2e-2)

    print("KERNEL_OK")
</pallas_src>

<mosaic_0001>
module attributes {stable_mosaic.version = 11 : i64} {
  func.func @_fused_cross_attn_cls_kernel(%arg0: i32, %arg1: memref<1x64x1024xbf16, #tpu.memory_space<vmem>>, %arg2: memref<1x16x768xbf16, #tpu.memory_space<vmem>>, %arg3: memref<1024x1024xbf16, #tpu.memory_space<vmem>>, %arg4: memref<1x1024xf32, #tpu.memory_space<vmem>>, %arg5: memref<768x1024xbf16, #tpu.memory_space<vmem>>, %arg6: memref<1x1024xf32, #tpu.memory_space<vmem>>, %arg7: memref<1024x128xbf16, #tpu.memory_space<vmem>>, %arg8: memref<1x128xf32, #tpu.memory_space<vmem>>, %arg9: memref<1x1xf32, #tpu.memory_space<vmem>>, %arg10: memref<1x1x128xf32, #tpu.memory_space<vmem>>) attributes {dimension_semantics = [#tpu.dimension_semantics<parallel>], iteration_bounds = array<i64: 2>, scalar_prefetch = 0 : i64, scratch_operands = 0 : i64, tpu.core_type = #tpu.core_type<tc>, window_params = [{transform_indices = @transform_0, window_bounds = array<i64: 1, 64, 1024>}, {transform_indices = @transform_1, window_bounds = array<i64: 1, 16, 768>}, {pipeline_mode = #tpu.pipeline_mode<synchronous>, transform_indices = @transform_2, window_bounds = array<i64: 1024, 1024>}, {pipeline_mode = #tpu.pipeline_mode<synchronous>, transform_indices = @transform_3, window_bounds = array<i64: 1, 1024>}, {pipeline_mode = #tpu.pipeline_mode<synchronous>, transform_indices = @transform_4, window_bounds = array<i64: 768, 1024>}, {pipeline_mode = #tpu.pipeline_mode<synchronous>, transform_indices = @transform_5, window_bounds = array<i64: 1, 1024>}, {pipeline_mode = #tpu.pipeline_mode<synchronous>, transform_indices = @transform_6, window_bounds = array<i64: 1024, 128>}, {pipeline_mode = #tpu.pipeline_mode<synchronous>, transform_indices = @transform_7, window_bounds = array<i64: 1, 128>}, {pipeline_mode = #tpu.pipeline_mode<synchronous>, transform_indices = @transform_8, window_bounds = array<i64: 1, 1>}, {transform_indices = @transform_9, window_bounds = array<i64: 1, 1, 128>}]} {
    %c0 = arith.constant 0 : index
    %c0_0 = arith.constant 0 : index
    %c0_1 = arith.constant 0 : index
    %0 = vector.load %arg1[%c0, %c0_0, %c0_1] : memref<1x64x1024xbf16, #tpu.memory_space<vmem>>, vector<1x64x1024xbf16>
    %1 = vector.shape_cast %0 : vector<1x64x1024xbf16> to vector<64x1024xbf16>
    %c0_2 = arith.constant 0 : index
    %c0_3 = arith.constant 0 : index
    %c0_4 = arith.constant 0 : index
    %2 = vector.load %arg2[%c0_2, %c0_3, %c0_4] : memref<1x16x768xbf16, #tpu.memory_space<vmem>>, vector<1x16x768xbf16>
    %3 = vector.shape_cast %2 : vector<1x16x768xbf16> to vector<16x768xbf16>
    %4 = vector.extract_strided_slice %3 {offsets = [0, 0], sizes = [1, 768], strides = [1, 1]} : vector<16x768xbf16> to vector<1x768xbf16>
    %c0_5 = arith.constant 0 : index
    %c0_6 = arith.constant 0 : index
    %5 = vector.load %arg3[%c0_5, %c0_6] : memref<1024x1024xbf16, #tpu.memory_space<vmem>>, vector<1024x1024xbf16>
    %cst = arith.constant dense<0.000000e+00> : vector<64x1024xf32>
    %6 = tpu.matmul %1, %5, %cst {dimension_numbers = #tpu.dot_dimension_numbers<[1], [0], [0], [1], [0, 0, 1, 1], [], []>} : vector<64x1024xbf16>, vector<1024x1024xbf16>, vector<64x1024xf32> -> vector<64x1024xf32>
    %c0_7 = arith.constant 0 : index
    %c0_8 = arith.constant 0 : index
    %7 = vector.load %arg4[%c0_7, %c0_8] : memref<1x1024xf32, #tpu.memory_space<vmem>>, vector<1x1024xf32>
    %8 = vector.broadcast %7 : vector<1x1024xf32> to vector<64x1024xf32>
    %9 = arith.addf %6, %8 : vector<64x1024xf32>
    %10 = arith.truncf %9 : vector<64x1024xf32> to vector<64x1024xbf16>
    %c0_9 = arith.constant 0 : index
    %c0_10 = arith.constant 0 : index
    %11 = vector.load %arg5[%c0_9, %c0_10] : memref<768x1024xbf16, #tpu.memory_space<vmem>>, vector<768x1024xbf16>
    %cst_11 = arith.constant dense<0.000000e+00> : vector<1x1024xf32>
    %12 = tpu.matmul %4, %11, %cst_11 {dimension_numbers = #tpu.dot_dimension_numbers<[1], [0], [0], [1], [0, 0, 1, 1], [], []>} : vector<1x768xbf16>, vector<768x1024xbf16>, vector<1x1024xf32> -> vector<1x1024xf32>
    %c0_12 = arith.constant 0 : index
    %c0_13 = arith.constant 0 : index
    %13 = vector.load %arg6[%c0_12, %c0_13] : memref<1x1024xf32, #tpu.memory_space<vmem>>, vector<1x1024xf32>
    %14 = arith.addf %12, %13 : vector<1x1024xf32>
    %15 = arith.truncf %14 : vector<1x1024xf32> to vector<1x1024xbf16>
    %c0_14 = arith.constant 0 : index
    %c0_15 = arith.constant 0 : index
    %16 = vector.load %arg7[%c0_14, %c0_15] : memref<1024x128xbf16, #tpu.memory_space<vmem>>, vector<1024x128xbf16>
    %cst_16 = arith.constant dense<0.000000e+00> : vector<64x128xf32>
    %17 = tpu.matmul %1, %16, %cst_16 {dimension_numbers = #tpu.dot_dimension_numbers<[1], [0], [0], [1], [0, 0, 1, 1], [], []>} : vector<64x1024xbf16>, vector<1024x128xbf16>, vector<64x128xf32> -> vector<64x128xf32>
    %c0_17 = arith.constant 0 : index
    %c0_18 = arith.constant 0 : index
    %18 = vector.load %arg8[%c0_17, %c0_18] : memref<1x128xf32, #tpu.memory_space<vmem>>, vector<1x128xf32>
    %19 = vector.broadcast %18 : vector<1x128xf32> to vector<64x128xf32>
    %20 = arith.addf %17, %19 : vector<64x128xf32>
    %21 = vector.extract_strided_slice %15 {offsets = [0, 0], sizes = [1, 128], strides = [1, 1]} : vector<1x1024xbf16> to vector<1x128xbf16>
    %22 = vector.extract_strided_slice %10 {offsets = [0, 0], sizes = [64, 128], strides = [1, 1]} : vector<64x1024xbf16> to vector<64x128xbf16>
    %cst_19 = arith.constant dense<0.000000e+00> : vector<1x64xf32>
    %23 = tpu.matmul %21, %22, %cst_19 {dimension_numbers = #tpu.dot_dimension_numbers<[1], [1], [0], [0], [0, 0, 1, 0], [], []>} : vector<1x128xbf16>, vector<64x128xbf16>, vector<1x64xf32> -> vector<1x64xf32>
    %cst_20 = arith.constant -5.000000e+04 : f32
    %cst_21 = arith.constant 5.000000e+04 : f32
    %24 = vector.broadcast %cst_20 : f32 to vector<1x64xf32>
    %25 = arith.maximumf %24, %23 : vector<1x64xf32>
    %26 = vector.broadcast %cst_21 : f32 to vector<1x64xf32>
    %27 = arith.minimumf %26, %25 : vector<1x64xf32>
    %cst_22 = arith.constant dense<0xFF800000> : vector<1xf32>
    %28 = vector.multi_reduction <maximumf>, %27, %cst_22 [1] : vector<1x64xf32> to vector<1xf32>
    %29 = vector.shape_cast %28 : vector<1xf32> to vector<1x1xf32>
    %30 = vector.broadcast %29 : vector<1x1xf32> to vector<1x64xf32>
    %31 = arith.subf %27, %30 : vector<1x64xf32>
    %32 = math.exp %31 : vector<1x64xf32>
    %cst_23 = arith.constant dense<0.000000e+00> : vector<1xf32>
    %33 = vector.multi_reduction <add>, %32, %cst_23 [1] : vector<1x64xf32> to vector<1xf32>
    %34 = vector.shape_cast %33 : vector<1xf32> to vector<1x1xf32>
    %35 = tpu.reciprocal %34 {approx = true} : vector<1x1xf32> -> vector<1x1xf32>
    %36 = vector.broadcast %35 : vector<1x1xf32> to vector<1x64xf32>
    %37 = arith.mulf %32, %36 : vector<1x64xf32>
    %38 = vector.extract_strided_slice %15 {offsets = [0, 128], sizes = [1, 128], strides = [1, 1]} : vector<1x1024xbf16> to vector<1x128xbf16>
    %39 = vector.extract_strided_slice %10 {offsets = [0, 128], sizes = [64, 128], strides = [1, 1]} : vector<64x1024xbf16> to vector<64x128xbf16>
    %cst_24 = arith.constant dense<0.000000e+00> : vector<1x64xf32>
    %40 = tpu.matmul %38, %39, %cst_24 {dimension_numbers = #tpu.dot_dimension_numbers<[1], [1], [0], [0], [0, 0, 1, 0], [], []>} : vector<1x128xbf16>, vector<64x128xbf16>, vector<1x64xf32> -> vector<1x64xf32>
    %cst_25 = arith.constant -5.000000e+04 : f32
    %cst_26 = arith.constant 5.000000e+04 : f32
    %41 = vector.broadcast %cst_25 : f32 to vector<1x64xf32>
    %42 = arith.maximumf %41, %40 : vector<1x64xf32>
    %43 = vector.broadcast %cst_26 : f32 to vector<1x64xf32>
    %44 = arith.minimumf %43, %42 : vector<1x64xf32>
    %cst_27 = arith.constant dense<0xFF800000> : vector<1xf32>
    %45 = vector.multi_reduction <maximumf>, %44, %cst_27 [1] : vector<1x64xf32> to vector<1xf32>
    %46 = vector.shape_cast %45 : vector<1xf32> to vector<1x1xf32>
    %47 = vector.broadcast %46 : vector<1x1xf32> to vector<1x64xf32>
    %48 = arith.subf %44, %47 : vector<1x64xf32>
    %49 = math.exp %48 : vector<1x64xf32>
    %cst_28 = arith.constant dense<0.000000e+00> : vector<1xf32>
    %50 = vector.multi_reduction <add>, %49, %cst_28 [1] : vector<1x64xf32> to vector<1xf32>
    %51 = vector.shape_cast %50 : vector<1xf32> to vector<1x1xf32>
    %52 = tpu.reciprocal %51 {approx = true} : vector<1x1xf32> -> vector<1x1xf32>
    %53 = vector.broadcast %52 : vector<1x1xf32> to vector<1x64xf32>
    %54 = arith.mulf %49, %53 : vector<1x64xf32>
    %55 = vector.extract_strided_slice %15 {offsets = [0, 256], sizes = [1, 128], strides = [1, 1]} : vector<1x1024xbf16> to vector<1x128xbf16>
    %56 = vector.extract_strided_slice %10 {offsets = [0, 256], sizes = [64, 128], strides = [1, 1]} : vector<64x1024xbf16> to vector<64x128xbf16>
    %cst_29 = arith.constant dense<0.000000e+00> : vector<1x64xf32>
    %57 = tpu.matmul %55, %56, %cst_29 {dimension_numbers = #tpu.dot_dimension_numbers<[1], [1], [0], [0], [0, 0, 1, 0], [], []>} : vector<1x128xbf16>, vector<64x128xbf16>, vector<1x64xf32> -> vector<1x64xf32>
    %cst_30 = arith.constant -5.000000e+04 : f32
    %cst_31 = arith.constant 5.000000e+04 : f32
    %58 = vector.broadcast %cst_30 : f32 to vector<1x64xf32>
    %59 = arith.maximumf %58, %57 : vector<1x64xf32>
    %60 = vector.broadcast %cst_31 : f32 to vector<1x64xf32>
    %61 = arith.minimumf %60, %59 : vector<1x64xf32>
    %cst_32 = arith.constant dense<0xFF800000> : vector<1xf32>
    %62 = vector.multi_reduction <maximumf>, %61, %cst_32 [1] : vector<1x64xf32> to vector<1xf32>
    %63 = vector.shape_cast %62 : vector<1xf32> to vector<1x1xf32>
    %64 = vector.broadcast %63 : vector<1x1xf32> to vector<1x64xf32>
    %65 = arith.subf %61, %64 : vector<1x64xf32>
    %66 = math.exp %65 : vector<1x64xf32>
    %cst_33 = arith.constant dense<0.000000e+00> : vector<1xf32>
    %67 = vector.multi_reduction <add>, %66, %cst_33 [1] : vector<1x64xf32> to vector<1xf32>
    %68 = vector.shape_cast %67 : vector<1xf32> to vector<1x1xf32>
    %69 = tpu.reciprocal %68 {approx = true} : vector<1x1xf32> -> vector<1x1xf32>
    %70 = vector.broadcast %69 : vector<1x1xf32> to vector<1x64xf32>
    %71 = arith.mulf %66, %70 : vector<1x64xf32>
    %72 = vector.extract_strided_slice %15 {offsets = [0, 384], sizes = [1, 128], strides = [1, 1]} : vector<1x1024xbf16> to vector<1x128xbf16>
    %73 = vector.extract_strided_slice %10 {offsets = [0, 384], sizes = [64, 128], strides = [1, 1]} : vector<64x1024xbf16> to vector<64x128xbf16>
    %cst_34 = arith.constant dense<0.000000e+00> : vector<1x64xf32>
    %74 = tpu.matmul %72, %73, %cst_34 {dimension_numbers = #tpu.dot_dimension_numbers<[1], [1], [0], [0], [0, 0, 1, 0], [], []>} : vector<1x128xbf16>, vector<64x128xbf16>, vector<1x64xf32> -> vector<1x64xf32>
    %cst_35 = arith.constant -5.000000e+04 : f32
    %cst_36 = arith.constant 5.000000e+04 : f32
    %75 = vector.broadcast %cst_35 : f32 to vector<1x64xf32>
    %76 = arith.maximumf %75, %74 : vector<1x64xf32>
    %77 = vector.broadcast %cst_36 : f32 to vector<1x64xf32>
    %78 = arith.minimumf %77, %76 : vector<1x64xf32>
    %cst_37 = arith.constant dense<0xFF800000> : vector<1xf32>
    %79 = vector.multi_reduction <maximumf>, %78, %cst_37 [1] : vector<1x64xf32> to vector<1xf32>
    %80 = vector.shape_cast %79 : vector<1xf32> to vector<1x1xf32>
    %81 = vector.broadcast %80 : vector<1x1xf32> to vector<1x64xf32>
    %82 = arith.subf %78, %81 : vector<1x64xf32>
    %83 = math.exp %82 : vector<1x64xf32>
    %cst_38 = arith.constant dense<0.000000e+00> : vector<1xf32>
    %84 = vector.multi_reduction <add>, %83, %cst_38 [1] : vector<1x64xf32> to vector<1xf32>
    %85 = vector.shape_cast %84 : vector<1xf32> to vector<1x1xf32>
    %86 = tpu.reciprocal %85 {approx = true} : vector<1x1xf32> -> vector<1x1xf32>
    %87 = vector.broadcast %86 : vector<1x1xf32> to vector<1x64xf32>
    %88 = arith.mulf %83, %87 : vector<1x64xf32>
    %89 = vector.extract_strided_slice %15 {offsets = [0, 512], sizes = [1, 128], strides = [1, 1]} : vector<1x1024xbf16> to vector<1x128xbf16>
    %90 = vector.extract_strided_slice %10 {offsets = [0, 512], sizes = [64, 128], strides = [1, 1]} : vector<64x1024xbf16> to vector<64x128xbf16>
    %cst_39 = arith.constant dense<0.000000e+00> : vector<1x64xf32>
    %91 = tpu.matmul %89, %90, %cst_39 {dimension_numbers = #tpu.dot_dimension_numbers<[1], [1], [0], [0], [0, 0, 1, 0], [], []>} : vector<1x128xbf16>, vector<64x128xbf16>, vector<1x64xf32> -> vector<1x64xf32>
    %cst_40 = arith.constant -5.000000e+04 : f32
    %cst_41 = arith.constant 5.000000e+04 : f32
    %92 = vector.broadcast %cst_40 : f32 to vector<1x64xf32>
    %93 = arith.maximumf %92, %91 : vector<1x64xf32>
    %94 = vector.broadcast %cst_41 : f32 to vector<1x64xf32>
    %95 = arith.minimumf %94, %93 : vector<1x64xf32>
    %cst_42 = arith.constant dense<0xFF800000> : vector<1xf32>
    %96 = vector.multi_reduction <maximumf>, %95, %cst_42 [1] : vector<1x64xf32> to vector<1xf32>
    %97 = vector.shape_cast %96 : vector<1xf32> to vector<1x1xf32>
    %98 = vector.broadcast %97 : vector<1x1xf32> to vector<1x64xf32>
    %99 = arith.subf %95, %98 : vector<1x64xf32>
    %100 = math.exp %99 : vector<1x64xf32>
    %cst_43 = arith.constant dense<0.000000e+00> : vector<1xf32>
    %101 = vector.multi_reduction <add>, %100, %cst_43 [1] : vector<1x64xf32> to vector<1xf32>
    %102 = vector.shape_cast %101 : vector<1xf32> to vector<1x1xf32>
    %103 = tpu.reciprocal %102 {approx = true} : vector<1x1xf32> -> vector<1x1xf32>
    %104 = vector.broadcast %103 : vector<1x1xf32> to vector<1x64xf32>
    %105 = arith.mulf %100, %104 : vector<1x64xf32>
    %106 = vector.extract_strided_slice %15 {offsets = [0, 640], sizes = [1, 128], strides = [1, 1]} : vector<1x1024xbf16> to vector<1x128xbf16>
    %107 = vector.extract_strided_slice %10 {offsets = [0, 640], sizes = [64, 128], strides = [1, 1]} : vector<64x1024xbf16> to vector<64x128xbf16>
    %cst_44 = arith.constant dense<0.000000e+00> : vector<1x64xf32>
    %108 = tpu.matmul %106, %107, %cst_44 {dimension_numbers = #tpu.dot_dimension_numbers<[1], [1], [0], [0], [0, 0, 1, 0], [], []>} : vector<1x128xbf16>, vector<64x128xbf16>, vector<1x64xf32> -> vector<1x64xf32>
    %cst_45 = arith.constant -5.000000e+04 : f32
    %cst_46 = arith.constant 5.000000e+04 : f32
    %109 = vector.broadcast %cst_45 : f32 to vector<1x64xf32>
    %110 = arith.maximumf %109, %108 : vector<1x64xf32>
    %111 = vector.broadcast %cst_46 : f32 to vector<1x64xf32>
    %112 = arith.minimumf %111, %110 : vector<1x64xf32>
    %cst_47 = arith.constant dense<0xFF800000> : vector<1xf32>
    %113 = vector.multi_reduction <maximumf>, %112, %cst_47 [1] : vector<1x64xf32> to vector<1xf32>
    %114 = vector.shape_cast %113 : vector<1xf32> to vector<1x1xf32>
    %115 = vector.broadcast %114 : vector<1x1xf32> to vector<1x64xf32>
    %116 = arith.subf %112, %115 : vector<1x64xf32>
    %117 = math.exp %116 : vector<1x64xf32>
    %cst_48 = arith.constant dense<0.000000e+00> : vector<1xf32>
    %118 = vector.multi_reduction <add>, %117, %cst_48 [1] : vector<1x64xf32> to vector<1xf32>
    %119 = vector.shape_cast %118 : vector<1xf32> to vector<1x1xf32>
    %120 = tpu.reciprocal %119 {approx = true} : vector<1x1xf32> -> vector<1x1xf32>
    %121 = vector.broadcast %120 : vector<1x1xf32> to vector<1x64xf32>
    %122 = arith.mulf %117, %121 : vector<1x64xf32>
    %123 = vector.extract_strided_slice %15 {offsets = [0, 768], sizes = [1, 128], strides = [1, 1]} : vector<1x1024xbf16> to vector<1x128xbf16>
    %124 = vector.extract_strided_slice %10 {offsets = [0, 768], sizes = [64, 128], strides = [1, 1]} : vector<64x1024xbf16> to vector<64x128xbf16>
    %cst_49 = arith.constant dense<0.000000e+00> : vector<1x64xf32>
    %125 = tpu.matmul %123, %124, %cst_49 {dimension_numbers = #tpu.dot_dimension_numbers<[1], [1], [0], [0], [0, 0, 1, 0], [], []>} : vector<1x128xbf16>, vector<64x128xbf16>, vector<1x64xf32> -> vector<1x64xf32>
    %cst_50 = arith.constant -5.000000e+04 : f32
    %cst_51 = arith.constant 5.000000e+04 : f32
    %126 = vector.broadcast %cst_50 : f32 to vector<1x64xf32>
    %127 = arith.maximumf %126, %125 : vector<1x64xf32>
    %128 = vector.broadcast %cst_51 : f32 to vector<1x64xf32>
    %129 = arith.minimumf %128, %127 : vector<1x64xf32>
    %cst_52 = arith.constant dense<0xFF800000> : vector<1xf32>
    %130 = vector.multi_reduction <maximumf>, %129, %cst_52 [1] : vector<1x64xf32> to vector<1xf32>
    %131 = vector.shape_cast %130 : vector<1xf32> to vector<1x1xf32>
    %132 = vector.broadcast %131 : vector<1x1xf32> to vector<1x64xf32>
    %133 = arith.subf %129, %132 : vector<1x64xf32>
    %134 = math.exp %133 : vector<1x64xf32>
    %cst_53 = arith.constant dense<0.000000e+00> : vector<1xf32>
    %135 = vector.multi_reduction <add>, %134, %cst_53 [1] : vector<1x64xf32> to vector<1xf32>
    %136 = vector.shape_cast %135 : vector<1xf32> to vector<1x1xf32>
    %137 = tpu.reciprocal %136 {approx = true} : vector<1x1xf32> -> vector<1x1xf32>
    %138 = vector.broadcast %137 : vector<1x1xf32> to vector<1x64xf32>
    %139 = arith.mulf %134, %138 : vector<1x64xf32>
    %140 = vector.extract_strided_slice %15 {offsets = [0, 896], sizes = [1, 128], strides = [1, 1]} : vector<1x1024xbf16> to vector<1x128xbf16>
    %141 = vector.extract_strided_slice %10 {offsets = [0, 896], sizes = [64, 128], strides = [1, 1]} : vector<64x1024xbf16> to vector<64x128xbf16>
    %cst_54 = arith.constant dense<0.000000e+00> : vector<1x64xf32>
    %142 = tpu.matmul %140, %141, %cst_54 {dimension_numbers = #tpu.dot_dimension_numbers<[1], [1], [0], [0], [0, 0, 1, 0], [], []>} : vector<1x128xbf16>, vector<64x128xbf16>, vector<1x64xf32> -> vector<1x64xf32>
    %cst_55 = arith.constant -5.000000e+04 : f32
    %cst_56 = arith.constant 5.000000e+04 : f32
    %143 = vector.broadcast %cst_55 : f32 to vector<1x64xf32>
    %144 = arith.maximumf %143, %142 : vector<1x64xf32>
    %145 = vector.broadcast %cst_56 : f32 to vector<1x64xf32>
    %146 = arith.minimumf %145, %144 : vector<1x64xf32>
    %cst_57 = arith.constant dense<0xFF800000> : vector<1xf32>
    %147 = vector.multi_reduction <maximumf>, %146, %cst_57 [1] : vector<1x64xf32> to vector<1xf32>
    %148 = vector.shape_cast %147 : vector<1xf32> to vector<1x1xf32>
    %149 = vector.broadcast %148 : vector<1x1xf32> to vector<1x64xf32>
    %150 = arith.subf %146, %149 : vector<1x64xf32>
    %151 = math.exp %150 : vector<1x64xf32>
    %cst_58 = arith.constant dense<0.000000e+00> : vector<1xf32>
    %152 = vector.multi_reduction <add>, %151, %cst_58 [1] : vector<1x64xf32> to vector<1xf32>
    %153 = vector.shape_cast %152 : vector<1xf32> to vector<1x1xf32>
    %154 = tpu.reciprocal %153 {approx = true} : vector<1x1xf32> -> vector<1x1xf32>
    %155 = vector.broadcast %154 : vector<1x1xf32> to vector<1x64xf32>
    %156 = arith.mulf %151, %155 : vector<1x64xf32>
    %157 = tpu.concatenate %37, %54, %71, %88, %105, %122, %139, %156 in 0 : vector<1x64xf32>, vector<1x64xf32>, vector<1x64xf32>, vector<1x64xf32>, vector<1x64xf32>, vector<1x64xf32>, vector<1x64xf32>, vector<1x64xf32> -> vector<8x64xf32>
    %cst_59 = arith.constant dense<0.000000e+00> : vector<8x128xf32>
    %158 = tpu.matmul %157, %20, %cst_59 {dimension_numbers = #tpu.dot_dimension_numbers<[1], [0], [0], [1], [0, 0, 1, 1], [], []>} : vector<8x64xf32>, vector<64x128xf32>, vector<8x128xf32> -> vector<8x128xf32>
    %159 = tpu.iota {dimensions = array<i32: 0>} : vector<8x128xi32>
    %160 = tpu.iota {dimensions = array<i32: 1>} : vector<8x128xi32>
    %161 = arith.cmpi eq, %159, %160 : vector<8x128xi32>
    %cst_60 = arith.constant 0.000000e+00 : f32
    %162 = vector.broadcast %cst_60 : f32 to vector<8x128xf32>
    %163 = arith.select %161, %158, %162 : vector<8x128xi1>, vector<8x128xf32>
    %cst_61 = arith.constant dense<0.000000e+00> : vector<8xf32>
    %164 = vector.multi_reduction <add>, %163, %cst_61 [1] : vector<8x128xf32> to vector<8xf32>
    %165 = vector.shape_cast %164 : vector<8xf32> to vector<8x1xf32>
    %cst_62 = arith.constant dense<0.000000e+00> : vector<1xf32>
    %166 = vector.multi_reduction <add>, %165, %cst_62 [0] : vector<8x1xf32> to vector<1xf32>
    %167 = vector.shape_cast %166 : vector<1xf32> to vector<1x1xf32>
    %c0_63 = arith.constant 0 : index
    %c0_64 = arith.constant 0 : index
    %168 = vector.load %arg9[%c0_63, %c0_64] : memref<1x1xf32, #tpu.memory_space<vmem>>, vector<1x1xf32>
    %169 = arith.addf %167, %168 : vector<1x1xf32>
    %170 = arith.negf %169 : vector<1x1xf32>
    %171 = math.exp %170 : vector<1x1xf32>
    %cst_65 = arith.constant 1.000000e+00 : f32
    %172 = vector.broadcast %cst_65 : f32 to vector<1x1xf32>
    %173 = arith.addf %172, %171 : vector<1x1xf32>
    %174 = arith.divf %172, %173 : vector<1x1xf32>
    %175 = vector.shape_cast %174 : vector<1x1xf32> to vector<1x1xf32>
    %176 = vector.broadcast %175 : vector<1x1xf32> to vector<1x128xf32>
    %c0_66 = arith.constant 0 : index
    %c0_67 = arith.constant 0 : index
    %c0_68 = arith.constant 0 : index
    %177 = vector.load %arg10[%c0_66, %c0_67, %c0_68] : memref<1x1x128xf32, #tpu.memory_space<vmem>>, vector<1x1x128xf32>
    %178 = vector.shape_cast %177 : vector<1x1x128xf32> to vector<1x128xf32>
    %179 = vector.shape_cast %176 : vector<1x128xf32> to vector<1x1x128xf32>
    tpu.vector_store %arg10[%c0_66, %c0_67, %c0_68], %179 {strides = array<i32>} : memref<1x1x128xf32, #tpu.memory_space<vmem>>, vector<1x1x128xf32>,
    return
  }
  func.func @transform_0(%arg0: i32) -> (i32, i32, i32) {
    %c0_i32 = arith.constant 0 : i32
    %c0_i32_0 = arith.constant 0 : i32
    %c0_i32_1 = arith.constant 0 : i32
    return %arg0, %c0_i32, %c0_i32_0 : i32, i32, i32
  }
  func.func @transform_1(%arg0: i32) -> (i32, i32, i32) {
    %c0_i32 = arith.constant 0 : i32
    %c0_i32_0 = arith.constant 0 : i32
    %c0_i32_1 = arith.constant 0 : i32
    return %arg0, %c0_i32, %c0_i32_0 : i32, i32, i32
  }
  func.func @transform_2(%arg0: i32) -> (i32, i32) {
    %c0_i32 = arith.constant 0 : i32
    %c0_i32_0 = arith.constant 0 : i32
    %c0_i32_1 = arith.constant 0 : i32
    return %c0_i32, %c0_i32_0 : i32, i32
  }
  func.func @transform_3(%arg0: i32) -> (i32, i32) {
    %c0_i32 = arith.constant 0 : i32
    %c0_i32_0 = arith.constant 0 : i32
    %c0_i32_1 = arith.constant 0 : i32
    return %c0_i32, %c0_i32_0 : i32, i32
  }
  func.func @transform_4(%arg0: i32) -> (i32, i32) {
    %c0_i32 = arith.constant 0 : i32
    %c0_i32_0 = arith.constant 0 : i32
    %c0_i32_1 = arith.constant 0 : i32
    return %c0_i32, %c0_i32_0 : i32, i32
  }
  func.func @transform_5(%arg0: i32) -> (i32, i32) {
    %c0_i32 = arith.constant 0 : i32
    %c0_i32_0 = arith.constant 0 : i32
    %c0_i32_1 = arith.constant 0 : i32
    return %c0_i32, %c0_i32_0 : i32, i32
  }
  func.func @transform_6(%arg0: i32) -> (i32, i32) {
    %c0_i32 = arith.constant 0 : i32
    %c0_i32_0 = arith.constant 0 : i32
    %c0_i32_1 = arith.constant 0 : i32
    return %c0_i32, %c0_i32_0 : i32, i32
  }
  func.func @transform_7(%arg0: i32) -> (i32, i32) {
    %c0_i32 = arith.constant 0 : i32
    %c0_i32_0 = arith.constant 0 : i32
    %c0_i32_1 = arith.constant 0 : i32
    return %c0_i32, %c0_i32_0 : i32, i32
  }
  func.func @transform_8(%arg0: i32) -> (i32, i32) {
    %c0_i32 = arith.constant 0 : i32
    %c0_i32_0 = arith.constant 0 : i32
    %c0_i32_1 = arith.constant 0 : i32
    return %c0_i32, %c0_i32_0 : i32, i32
  }
  func.func @transform_9(%arg0: i32) -> (i32, i32, i32) {
    %c0_i32 = arith.constant 0 : i32
    %c0_i32_0 = arith.constant 0 : i32
    %c0_i32_1 = arith.constant 0 : i32
    return %arg0, %c0_i32, %c0_i32_0 : i32, i32, i32
  }
}

</mosaic_0001>

<bundles_post_ra>
// kernel: tpu_custom_call.1
= control target key start
LH: loop header
LB: loop body
LE: loop exit
PB: predicated region body
PF: predicated region fallthrough
CT: control target
= control target key end

     0   :  { %s12932_s0 = inlined_call_operand.hbm [shape: bf16[2,64,1024], index: 0, kind: input, shape index: {}]   ;;  %s12933_s1 = inlined_call_operand.hbm [shape: bf16[2,16,768], index: 1, kind: input, shape index: {}]   ;;  %s12934_s2 = inlined_call_operand.hbm [shape: bf16[1024,1024], index: 2, kind: input, shape index: {}]   ;;  %s12935_s3 = inlined_call_operand.hbm [shape: f32[1,1024], index: 3, kind: input, shape index: {}]   ;;  %s12936_s4 = inlined_call_operand.hbm [shape: bf16[768,1024], index: 4, kind: input, shape index: {}]   ;;  %s12937_s5 = inlined_call_operand.hbm [shape: f32[1,1024], index: 5, kind: input, shape index: {}]   ;;  %s12938_s6 = inlined_call_operand.hbm [shape: bf16[1024,128], index: 6, kind: input, shape index: {}]   ;;  %s12939_s7 = inlined_call_operand.hbm [shape: f32[1,128], index: 7, kind: input, shape index: {}]   ;;  %s12940_s8 = inlined_call_operand.<no memory space> [shape: f32[1,1], index: 8, kind: input, shape index: {}]   ;;  %s12941_s9 = inlined_call_operand.hbm [shape: f32[2,1,128], index: 9, kind: output, shape index: {}]  }
   0x1   :  { %13020 = sst [smem:[#allocation88_spill]] %s12932_s0  ;;  %v14_v0 = vstv %s12940_s8 }
   0x2   :  { %13021 = sst [smem:[#allocation89_spill]] %s12934_s2  ;;  %15 = vst [vmem:[#allocation2] sm:$0x1] %v14_v0 }
   0x3   :  { %13022 = sst [smem:[#allocation90_spill]] %s12935_s3 }
   0x4   :  { %13023 = sst [smem:[#allocation91_spill]] %s12936_s4 }
   0x5   :  { %13024 = sst [smem:[#allocation92_spill]] %s12937_s5 }
   0x6   :  { %13025 = sst [smem:[#allocation93_spill]] %s12938_s6 }
   0x7   :  { %16 = vsyncpa [#allocation4], 0 }
   0x8   :  { %18 = vsyncpa [#allocation4 + $0x1], 0 }
   0x9   :  { %19 = vsyncpa [#allocation7], 0 }
   0xa   :  { %21 = vsyncpa [#allocation7 + $0x1], 0 }
   0xb   :  { %22 = vsyncpa [#allocation10], 0 }
   0xc   :  { %23 = vsyncpa [#allocation13], 0 }
   0xd   :  { %24 = vsyncpa [#allocation16], 0 }
   0xe   :  { %25 = vsyncpa [#allocation5], 0 }
   0xf   :  { %27 = vsyncpa [#allocation5 + $0x1], 0  ;;  %s11642_s11 = smov 0   ;;  %s11644_s12 = smov 0  }
  0x10   :  { %s11646_s13 = smov 0   ;;  %s11648_s14 = smov 0  }
  0x11 LB: > { %s11570_s8 = smov [#allocation8]   ;;  %s11663_s16 = sadd.s32 4294967295, %s11568_s14   ;;  %s11568_s14 = sphi %s11648_s14, %s13226_s14   ;;  %s11564_s13 = sphi %s11646_s13, %s13225_s13   ;;  %s11560_s12 = sphi %s11644_s12, %s13224_s12   ;;  %s11556_s11 = sphi %s11642_s11, %s13223_s11  }
  0x12   : > { %s275_s15 = sshll.u32 %s11570_s8, 4  ;;  %p9355_p0 = scmp.ge.s32.totalorder %s11568_s14, 1  ;;  %s11668_s15 = int_to_ptr.vmem [resolvable:$true] %s275_s15 }
  0x13   : > { %p12944_p1 = scmp.eq.s32.totalorder %s11663_s16, 0  ;;  %p263_p2 = scmp.lt.s32.totalorder %s11568_s14, 3 }
  0x14   : > { %s11571_s18 = smov [#allocation9]   ;;  %s11572_s21 = smov [#allocation12]  }
  0x15   : > { %p11670_p3 = pnand %p9355_p0, %p263_p2  ;;  %s289_s19 = sshll.u32 %s11571_s18, 4  ;;  %s11683_s19 = int_to_ptr.vmem [resolvable:$true] %s289_s19 }
  0x16   : > { %s313_s22 = sshll.u32 %s11572_s21, 4  ;;  %s13028_s2 = sld [smem:[#allocation89_spill]]  ;;  %s11685_s22 = int_to_ptr.vmem [resolvable:$true] %s313_s22 }
  0x17   : > { %s13026_s17 = scalar_select %p11670_p3, 1, 0 }
  0x18   : > { %p11053_p5 = pneg %p11670_p3 }
  0x1a   : > { %p11679_p6 = pnand %p11053_p5, %p12944_p1 }
  0x1c   : > { %s11254_s25 = scalar_lea.hbm %s13028_s2, 65536  ;;  %p11695_p8 = pneg %p11679_p6 }
  0x1d   : > { %p11255_p7 = scmp.ne.s32.totalorder %s13028_s2, %s11254_s25  ;;  %p11261_p11 = scmp.lt.u32.totalorder %s11254_s25, %s13028_s2 }
  0x1f   : > { %p11257_p9 = pnand %p11695_p8, %p11255_p7 }
  0x21   : > { %p11258_p10 = pneg %p11257_p9 }
  0x23   : > { %p11263_p12 = pnand %p11261_p11, %p11258_p10 }
  0x25   : > { %11266 = shalt.err (!%p11263_p12)
}
  0x26   : > { %s11267_s10 = scalar_lea.vmem %s11668_s15, 65536  ;;  %p11275_p5 = scmp.lt.s32.totalorder %s11668_s15, %s11668_s15 }
  0x27   : > { %p11268_p13 = scmp.ne.s32.totalorder %s11668_s15, %s11267_s10  ;;  %p11276_p4 = scmp.lt.s32.totalorder %s11267_s10, %s11267_s10 }
  0x29   : > { %p11270_p0 = pnand %p11268_p13, %p11695_p8  ;;  %p11277_p7 = por %p11276_p4, %p11275_p5 }
  0x2b   : > { %p11271_p2 = pneg %p11270_p0 }
  0x2d   : > { %p11278_p9 = pnand %p11277_p7, %p11271_p2 }
  0x2f   : > { %11281 = shalt.err (!%p11278_p9)
}
  0x30   : > { %s12942_s8 = smov 512   ;;  %s12946_s18 = smov 32  }
  0x31   : > { %11056 = dma.hbm_to_vmem [thread:$0]  (!%p11679_p6), %s13028_s2, 65536, %s11668_s15, [#allocation7], %s12942_s8, %s12942_s8, %s12946_s18  }
  0x32   : > { %s13030_s3 = sld [smem:[#allocation90_spill]] }
  0x38   : > { %s11282_s26 = scalar_lea.hbm %s13030_s3, 128 }
  0x39   : > { %p11283_p4 = scmp.ne.s32.totalorder %s13030_s3, %s11282_s26  ;;  %p11289_p12 = scmp.lt.u32.totalorder %s11282_s26, %s13030_s3 }
  0x3b   : > { %p11285_p10 = pnand %p11283_p4, %p11695_p8 }
  0x3d   : > { %p11286_p11 = pneg %p11285_p10 }
  0x3f   : > { %p11291_p13 = pnand %p11289_p12, %p11286_p11 }
  0x41   : > { %11294 = shalt.err (!%p11291_p13)
}
  0x42   : > { %s11295_s15 = scalar_lea.vmem %s11683_s19, 128  ;;  %p11303_p7 = scmp.lt.s32.totalorder %s11683_s19, %s11683_s19 }
  0x43   : > { %p11296_p0 = scmp.ne.s32.totalorder %s11683_s19, %s11295_s15  ;;  %p11304_p9 = scmp.lt.s32.totalorder %s11295_s15, %s11295_s15 }
  0x45   : > { %p11298_p2 = pnand %p11296_p0, %p11695_p8  ;;  %p11305_p4 = por %p11304_p9, %p11303_p7 }
  0x47   : > { %p11299_p5 = pneg %p11298_p2 }
  0x49   : > { %p11306_p10 = pnand %p11305_p4, %p11299_p5 }
  0x4b   : > { %11309 = shalt.err (!%p11306_p10)
}
  0x4c   : > { %11059 = dma.hbm_to_vmem [thread:$0]  (!%p11679_p6), %s13030_s3, 128, %s11683_s19, [#allocation10]  }
  0x4d   : > { %s13031_s5 = sld [smem:[#allocation92_spill]] }
  0x53   : > { %s11310_s26 = scalar_lea.hbm %s13031_s5, 128 }
  0x54   : > { %p11311_p11 = scmp.ne.s32.totalorder %s13031_s5, %s11310_s26  ;;  %p11317_p0 = scmp.lt.u32.totalorder %s11310_s26, %s13031_s5 }
  0x56   : > { %p11313_p12 = pnand %p11311_p11, %p11695_p8 }
  0x58   : > { %p11314_p13 = pneg %p11313_p12 }
  0x5a   : > { %p11319_p2 = pnand %p11317_p0, %p11314_p13 }
  0x5c   : > { %11322 = shalt.err (!%p11319_p2)
}
  0x5d   : > { %s11323_s19 = scalar_lea.vmem %s11685_s22, 128  ;;  %p11331_p4 = scmp.lt.s32.totalorder %s11685_s22, %s11685_s22 }
  0x5e   : > { %p11324_p5 = scmp.ne.s32.totalorder %s11685_s22, %s11323_s19  ;;  %p11332_p10 = scmp.lt.s32.totalorder %s11323_s19, %s11323_s19 }
  0x60   : > { %p11326_p7 = pnand %p11324_p5, %p11695_p8  ;;  %p11333_p11 = por %p11332_p10, %p11331_p4 }
  0x62   : > { %p11327_p9 = pneg %p11326_p7 }
  0x64   : > { %p11334_p12 = pnand %p11333_p11, %p11327_p9 }
  0x66   : > { %11337 = shalt.err (!%p11334_p12)
}
  0x67   : > { %11065 = dma.hbm_to_vmem [thread:$0]  (!%p11679_p6), %s13031_s5, 128, %s11685_s22, [#allocation13]  }
  0x68   : > { %s11575_s23 = smov [#allocation11]   ;;  %s11576_s25 = smov [#allocation14]  }
  0x69   : > { %s299_s24 = sshll.u32 %s11575_s23, 4  ;;  %s323_s26 = sshll.u32 %s11576_s25, 4  ;;  %s300_s24 = int_to_ptr.vmem [resolvable:$true] %s299_s24  ;;  %s324_s26 = int_to_ptr.vmem [resolvable:$true] %s323_s26 }
  0x6a   : > { %s13032_s4 = sld [smem:[#allocation91_spill]] }
  0x70   : > { %s11338_s30 = scalar_lea.hbm %s13032_s4, 49152 }
  0x71   : > { %p11339_p13 = scmp.ne.s32.totalorder %s13032_s4, %s11338_s30  ;;  %p11345_p5 = scmp.lt.u32.totalorder %s11338_s30, %s13032_s4 }
  0x73   : > { %p11341_p0 = pnand %p11339_p13, %p11695_p8 }
  0x75   : > { %p11342_p2 = pneg %p11341_p0 }
  0x77   : > { %p11347_p7 = pnand %p11345_p5, %p11342_p2 }
  0x79   : > { %11350 = shalt.err (!%p11347_p7)
}
  0x7a   : > { %s11351_s22 = scalar_lea.vmem %s300_s24, 49152  ;;  %p11359_p11 = scmp.lt.s32.totalorder %s300_s24, %s300_s24 }
  0x7b   : > { %p11352_p9 = scmp.ne.s32.totalorder %s300_s24, %s11351_s22  ;;  %p11360_p12 = scmp.lt.s32.totalorder %s11351_s22, %s11351_s22 }
  0x7d   : > { %p11354_p4 = pnand %p11352_p9, %p11695_p8  ;;  %p11361_p1 = por %p11360_p12, %p11359_p11 }
  0x7f   : > { %p11355_p10 = pneg %p11354_p4 }
  0x81   : > { %p11362_p3 = pnand %p11361_p1, %p11355_p10 }
  0x83   : > { %11365 = shalt.err (!%p11362_p3)
}
  0x84   : > { %s13033_s21 = smov 512   ;;  %s13034_s6 = sld [smem:[#allocation93_spill]] }
  0x85   : > { %11062 = dma.hbm_to_vmem [thread:$0]  (!%p11679_p6), %s13032_s4, 49152, %s300_s24, [#allocation10], %s13033_s21, %s13033_s21, %s12946_s18  }
  0x8a   : > { %s11366_s29 = scalar_lea.hbm %s13034_s6, 8192 }
  0x8b   : > { %p11367_p1 = scmp.ne.s32.totalorder %s13034_s6, %s11366_s29  ;;  %p11373_p0 = scmp.lt.u32.totalorder %s11366_s29, %s13034_s6 }
  0x8d   : > { %p11369_p3 = pnand %p11367_p1, %p11695_p8 }
  0x8f   : > { %p11370_p13 = pneg %p11369_p3 }
  0x91   : > { %p11375_p2 = pnand %p11373_p0, %p11370_p13 }
  0x93   : > { %11378 = shalt.err (!%p11375_p2)
}
  0x94   : > { %s11379_s22 = scalar_lea.vmem %s324_s26, 8192  ;;  %p11387_p4 = scmp.lt.s32.totalorder %s324_s26, %s324_s26 }
  0x95   : > { %p11380_p5 = scmp.ne.s32.totalorder %s324_s26, %s11379_s22  ;;  %p11388_p10 = scmp.lt.s32.totalorder %s11379_s22, %s11379_s22 }
  0x97   : > { %p11382_p7 = pnand %p11380_p5, %p11695_p8  ;;  %p11389_p11 = por %p11388_p10, %p11387_p4 }
  0x99   : > { %p11383_p9 = pneg %p11382_p7 }
  0x9b   : > { %p11390_p12 = pnand %p11389_p11, %p11383_p9 }
  0x9d   : > { %11393 = shalt.err (!%p11390_p12)
}
  0x9e   : > { %s11577_s24 = smov 64   ;;  %s11578_s8 = smov 4  }
  0x9f   : > { %11068 = dma.hbm_to_vmem [thread:$0]  (!%p11679_p6), %s13034_s6, 8192, %s324_s26, [#allocation13], %s11577_s24, %s11577_s24, %s11578_s8  }
  0xa0   : > { %s11579_s27 = smov [#allocation15]   ;;  %s11394_s19 = scalar_lea.hbm %s12939_s7, 16 }
  0xa1   : > { %s337_s29 = sshll.u32 %s11579_s27, 4  ;;  %p11395_p1 = scmp.ne.s32.totalorder %s12939_s7, %s11394_s19  ;;  %s338_s29 = int_to_ptr.vmem [resolvable:$true] %s337_s29 }
  0xa2   : > { %p11401_p0 = scmp.lt.u32.totalorder %s11394_s19, %s12939_s7 }
  0xa3   : > { %p11397_p3 = pnand %p11395_p1, %p11695_p8 }
  0xa5   : > { %p11398_p13 = pneg %p11397_p3 }
  0xa7   : > { %p11403_p2 = pnand %p11401_p0, %p11398_p13 }
  0xa9   : > { %11406 = shalt.err (!%p11403_p2)
}
  0xaa   : > { %s11407_s26 = scalar_lea.vmem %s338_s29, 16  ;;  %s11414_s24 = scalar_lea.vmem %s338_s29, 32 }
  0xab   : > { %p11408_p5 = scmp.ne.s32.totalorder %s338_s29, %s11407_s26  ;;  %p11415_p4 = scmp.lt.s32.totalorder %s338_s29, %s338_s29 }
  0xac   : > { %p11416_p10 = scmp.lt.s32.totalorder %s11414_s24, %s11407_s26 }
  0xad   : > { %p11410_p7 = pnand %p11408_p5, %p11695_p8 }
  0xae   : > { %p11417_p11 = por %p11416_p10, %p11415_p4 }
  0xaf   : > { %p11411_p9 = pneg %p11410_p7 }
  0xb1   : > { %p11418_p12 = pnand %p11417_p11, %p11411_p9 }
  0xb3   : > { %11421 = shalt.err (!%p11418_p12)
}
  0xb4   : > { %11071 = dma.hbm_to_vmem [thread:$0]  (!%p11679_p6), %s12939_s7, 16, %s338_s29, [#allocation16]  }
  0xb5   : > { %s9354_s2 = sadd.s32 4294967294, %s11568_s14   ;;  %s11824_s20 = sadd.s32 1, %s11568_s14  }
  0xb6   : > { %s37_s28 = ssub.s32 %s11568_s14, %s11824_s20  ;;  %s40_s18 = sadd.s32 1, %s11564_s13 }
  0xb7   : > { %p38_p8 = scmp.eq.s32.totalorder %s37_s28, 0  ;;  %p47_p1 = scmp.ne.s32.totalorder %s11564_s13, %s11560_s12 }
  0xb8   : > { %p48_p3 = scmp.eq.s32.totalorder %s11568_s14, 0  ;;  %p53_p13 = scmp.ne.s32.totalorder %s11560_s12, %s11556_s11 }
  0xb9   : > { %s11835_s25 = scalar_select %p38_p8, %s11564_s13, %s40_s18  }
  0xba   : > { %p11837_p0 = por %p48_p3, %p47_p1  ;;  %p13036_p2 = scmp.eq.s32.totalorder %s11663_s16, 0 }
  0xbb   : > { %p250_p5 = scmp.eq.s32.totalorder %s11663_s16, 1  ;;  %p256_p7 = scmp.eq.s32.totalorder %s9354_s2, 1 }
  0xbc   : > { %p11843_p6 = por %p13036_p2, %p53_p13  ;;  %p11089_p9 = scmp.lt.s32.totalorder %s11568_s14, 2 }
  0xbd   : > { %s11850_s30 = sand.u32 1, %s11564_s13   ;;  %p11852_p4 = por %p250_p5, %p47_p1 }
  0xbe   : > { %p11856_p10 = por %p256_p7, %p53_p13  ;;  %s9363_s15 = sshll.u32 %s11850_s30, 8 }
  0xbf   : > { %s13038_s10 = scalar_select %p11852_p4, 1, 0 }
  0xc0   : > { %s13039_s19 = scalar_select %p11856_p10, 1, 0 }
  0xc1   : > { %s10387_s22 = sshll.u32 %s11568_s14, 12  ;;  %s13040_s0 = sld [smem:[#allocation88_spill]] }
  0xc2   : > { %s355_s23 = scalar_lea.vmem [#allocation3], %s9363_s15  ;;  %p11871_p11 = pnand %p11089_p9, %p11837_p0 }
  0xc3   : > { %s362_s2 = sshll.u32 %s355_s23, 4  ;;  %s11020_s3 = smul.u32 48, %s11850_s30  ;;  %s11867_s2 = int_to_ptr.vmem [resolvable:$true] %s362_s2 }
  0xc4   : > { %s352_s26 = scalar_lea.sflag [#allocation4], %s11850_s30  ;;  %p11424_p8 = pneg %p11871_p11 }
  0xc7   : > { %s11865_s8 = scalar_lea.hbm %s13040_s0, %s10387_s22  ;;  %s11427_s27 = scalar_lea.hbm %s13040_s0, 8192 }
  0xc8   : > { %s11422_s22 = scalar_lea.hbm %s11865_s8, 4096  ;;  %p11428_p13 = scmp.lt.u32.totalorder %s11865_s8, %s13040_s0 }
  0xc9   : > { %p11423_p12 = scmp.ne.s32.totalorder %s11865_s8, %s11422_s22  ;;  %p11429_p0 = scmp.lt.u32.totalorder %s11427_s27, %s11422_s22 }
  0xca   : > { %p11431_p5 = scmp.lt.u32.totalorder %s11422_s22, %s11865_s8 }
  0xcb   : > { %p11425_p1 = pnand %p11424_p8, %p11423_p12  ;;  %p11430_p2 = por %p11429_p0, %p11428_p13 }
  0xcd   : > { %p11426_p3 = pneg %p11425_p1  ;;  %p11432_p7 = por %p11431_p5, %p11430_p2 }
  0xcf   : > { %p11433_p9 = pnand %p11432_p7, %p11426_p3 }
  0xd1   : > { %11436 = shalt.err (!%p11433_p9)
}
  0xd2   : > { %s11437_s18 = scalar_lea.vmem %s11867_s2, 4096  ;;  %s11580_s15 = smov [#allocation3]  }
  0xd3   : > { %p11438_p12 = scmp.ne.s32.totalorder %s11867_s2, %s11437_s18  ;;  %s11442_s24 = sshll.u32 %s11580_s15, 4  ;;  %s11443_s24 = int_to_ptr.vmem [resolvable:$false] %s11442_s24 }
  0xd4   : > { %s11444_s4 = scalar_lea.vmem %s11443_s24, 8192  ;;  %p11445_p4 = scmp.lt.s32.totalorder %s11867_s2, %s11443_s24 }
  0xd5   : > { %p11440_p1 = pnand %p11438_p12, %p11424_p8  ;;  %p11446_p13 = scmp.lt.s32.totalorder %s11444_s4, %s11437_s18 }
  0xd7   : > { %p11441_p10 = pneg %p11440_p1  ;;  %p11447_p0 = por %p11446_p13, %p11445_p4 }
  0xd9   : > { %p11448_p2 = pnand %p11447_p0, %p11441_p10 }
  0xdb   : > { %11451 = shalt.err (!%p11448_p2)
}
  0xdc   : > { %s13042_s22 = smov 32   ;;  %s11021_s27 = smul.u32 768, %s11568_s14 }
  0xdd   : > { %11075 = dma.hbm_to_vmem [thread:$0]  (!%p11871_p11), %s11865_s8, 4096, %s11867_s2, %s352_s26, %s13033_s21, %s13033_s21, %s13042_s22  }
  0xde   : > { %s376_s18 = scalar_lea.vmem [#allocation6], %s11020_s3  ;;  %s11914_s4 = scalar_lea.hbm %s12933_s1, %s11021_s27 }
  0xdf   : > { %s383_s23 = sshll.u32 %s376_s18, 4  ;;  %s13043_s0 = sand.u32 1, %s11568_s14   ;;  %s11916_s23 = int_to_ptr.vmem [resolvable:$true] %s383_s23 }
  0xe0   : > { %s11920_s5 = scalar_lea.sflag [#allocation7], %s13043_s0  ;;  %s11452_s6 = scalar_lea.hbm %s11914_s4, 768 }
  0xe1   : > { %p11453_p4 = scmp.ne.s32.totalorder %s11914_s4, %s11452_s6  ;;  %s11457_s30 = scalar_lea.hbm %s12933_s1, 1536 }
  0xe2   : > { %p11458_p5 = scmp.lt.u32.totalorder %s11914_s4, %s12933_s1  ;;  %p11459_p7 = scmp.lt.u32.totalorder %s11457_s30, %s11452_s6 }
  0xe3   : > { %p11455_p10 = pnand %p11453_p4, %p11424_p8  ;;  %p11461_p12 = scmp.lt.u32.totalorder %s11452_s6, %s11914_s4 }
  0xe4   : > { %p11460_p9 = por %p11459_p7, %p11458_p5 }
  0xe5   : > { %p11456_p3 = pneg %p11455_p10 }
  0xe6   : > { %p11462_p1 = por %p11461_p12, %p11460_p9 }
  0xe8   : > { %p11463_p13 = pnand %p11462_p1, %p11456_p3 }
  0xea   : > { %11466 = shalt.err (!%p11463_p13)
}
  0xeb   : > { %s11467_s0 = scalar_lea.vmem %s11916_s23, 768  ;;  %s11581_s26 = smov [#allocation6]  }
  0xec   : > { %p11468_p0 = scmp.ne.s32.totalorder %s11916_s23, %s11467_s0  ;;  %s11472_s22 = sshll.u32 %s11581_s26, 4  ;;  %s11473_s22 = int_to_ptr.vmem [resolvable:$false] %s11472_s22 }
  0xed   : > { %s11474_s27 = scalar_lea.vmem %s11473_s22, 1536  ;;  %p11475_p10 = scmp.lt.s32.totalorder %s11916_s23, %s11473_s22 }
  0xee   : > { %p11470_p2 = pnand %p11468_p0, %p11424_p8  ;;  %p11476_p5 = scmp.lt.s32.totalorder %s11474_s27, %s11467_s0 }
  0xf0   : > { %p11471_p4 = pneg %p11470_p2  ;;  %p11477_p7 = por %p11476_p5, %p11475_p10 }
  0xf2   : > { %p11478_p9 = pnand %p11477_p7, %p11471_p4 }
  0xf4   : > { %11481 = shalt.err (!%p11478_p9)
}
  0xf5   : > { %s11582_s6 = smov 384   ;;  %s11583_s18 = smov 24  }
  0xf6   : > { %11078 = dma.hbm_to_vmem [thread:$0]  (!%p11871_p11), %s11914_s4, 768, %s11916_s23, %s11920_s5, %s11582_s6, %s11582_s6, %s11583_s18  }
  0xf7   : > { %p13044_p8 = scmp.ne.s32.totalorder %s13026_s17, 0 }
  0xf9   : > { %395 = sbr.rel (%p13044_p8) target bundleno = 2496 (0x9c0), region = 56 }
 0x100   : > { %s11949_s15 = sand.u32 1, %s11560_s12  }
 0x101   : > { %s9368_s24 = sshll.u32 %s11949_s15, 8  ;;  %s398_s3 = scalar_lea.sflag [#allocation4], %s11949_s15 }
 0x102   : > { %s11953_s21 = scalar_lea.vmem [#allocation3], %s9368_s24 }
 0x103   : > { %11527 = dma.done.wait (%p11843_p6), %s398_s3, 4096  }
 0x104   : > { %11529 = vsyncadd (%p11843_p6), %s398_s3, 4294963200  ;;  %s406_s5 = sand.u32 1, %s11663_s16   ;;  %s11022_s17 = smul.u32 48, %s11949_s15 }
 0x105   : > { %s407_s28 = scalar_lea.sflag [#allocation7], %s406_s5 }
 0x106   : > { %s11961_s23 = scalar_lea.vmem [#allocation6], %s11022_s17 }
 0x107   : > { %11531 = dma.done.wait (%p11843_p6), %s407_s28, 768  }
 0x108   : > { %11533 = vsyncadd (%p11843_p6), %s407_s28, 4294966528  ;;  %p13045_p11 = scmp.eq.s32.totalorder %s11663_s16, 0 }
 0x10a   : > { %11535 = dma.done.wait (%p13045_p11), [#allocation7], 65536   ;;  %p13046_p3 = pmov %p13045_p11 }
 0x10c   : > { %11537 = vsyncadd (%p13046_p3), [#allocation7], 4294901760  ;;  %p13047_p12 = pmov %p13046_p3 }
 0x10d   : > { %p13048_p1 = pmov %p13046_p3 }
 0x10e   : > { %11539 = dma.done.wait (%p13047_p12), [#allocation10], 49280  }
 0x10f   : > { %11541 = vsyncadd (%p13048_p1), [#allocation10], 4294918016  ;;  %p13049_p13 = pmov %p13048_p1 }
 0x110   : > { %p13050_p0 = pmov %p13048_p1 }
 0x111   : > { %11543 = dma.done.wait (%p13049_p13), [#allocation13], 8320  }
 0x112   : > { %11545 = vsyncadd (%p13050_p0), [#allocation13], 4294958976  ;;  %p13051_p6 = pmov %p13050_p0 }
 0x113   : > { %p13052_p2 = pmov %p13050_p0 }
 0x114   : > { %11547 = dma.done.wait (%p13051_p6), [#allocation16], 16  }
 0x115   : > { %11549 = vsyncadd (%p13052_p2), [#allocation16], 4294967280  ;;  %v509_v1 = vld [vmem:[#allocation8] sm:$0xff]  ;;  %v510_v3 = vld [vmem:[#allocation8 + $0x8] sm:$0xff]  ;;  %vm11585_vm0 = vmmov 0   ;;  %vm8671_vm1 = vcmask 516096  }
 0x116   : > { %v513_v2 = vld [vmem:[#allocation8 + $0x20] sm:$0xff]  ;;  %v514_v5 = vld [vmem:[#allocation8 + $0x28] sm:$0xff]  ;;  %vm9075_vm2 = vcmask 1040384   ;;  %vm9077_vm3 = vcmask 1041408   ;;  %vm9079_vm4 = vcmask 1042432   ;;  %vm9081_vm5 = vcmask 1043456  }
 0x117   : > { %v9408_v4 = vcombine.high %v509_v1, %v513_v2  ;;  %v9407_v6 = vcombine.low %v509_v1, %v513_v2  ;;  %v517_v7 = vld [vmem:[#allocation8 + $0x40] sm:$0xff]  ;;  %v9410_v9 = vcombine.high %v510_v3, %v514_v5  ;;  %v9409_v10 = vcombine.low %v510_v3, %v514_v5  ;;  %v518_v12 = vld [vmem:[#allocation8 + $0x48] sm:$0xff]  ;;  %s10384_s29 = sshll.u32 %s11663_s16, 4  ;;  %s472_s4 = scalar_lea.vmem [#allocation17], %s11949_s15 }
 0x118   : > { %v521_v8 = vld [vmem:[#allocation8 + $0x60] sm:$0xff]  ;;  %v522_v13 = vld [vmem:[#allocation8 + $0x68] sm:$0xff]  ;;  %vm9083_vm6 = vcmask 1044480   ;;  %vm9085_vm7 = vcmask 1045504   ;;  %vm9087_vm8 = vcmask 1046528   ;;  %vm9089_vm9 = vcmask 523264   ;;  %s12888_s0 = scalar_lea.hbm %s12941_s9, %s10384_s29 }
 0x119   : > { %v9416_v11 = vcombine.high %v517_v7, %v521_v8  ;;  %v525_v14 = vld [vmem:[#allocation8 + $0x80] sm:$0xff]  ;;  %3783 = vmatprep.subr.bf16.mxu0 %v9408_v4  ;;  %v9418_v15 = vcombine.high %v518_v12, %v522_v13  ;;  %v526_v17 = vld [vmem:[#allocation8 + $0x88] sm:$0xff]  ;;  %4075 = vmatprep.subr.bf16.mxu1 %v9410_v9  ;;  %v9415_v19 = vcombine.low %v517_v7, %v521_v8  ;;  %s9208_s30 = sshll.u32 %s472_s4, 4  ;;  %s9196_s26 = scalar_lea.sflag [#allocation5], %s11949_s15  ;;  %s12890_s30 = int_to_ptr.vmem [resolvable:$true] %s9208_s30 }
 0x11a   : > { %v529_v16 = vld [vmem:[#allocation8 + $0xa0] sm:$0xff]  ;;  %v530_v18 = vld [vmem:[#allocation8 + $0xa8] sm:$0xff]  ;;  %3784 = vmatpush1.bf16.msra.mxu0 %v9407_v6  ;;  %4076 = vmatpush1.bf16.msra.mxu1 %v9409_v10  ;;  %v9417_v20 = vcombine.low %v518_v12, %v522_v13  ;;  %s11482_s22 = scalar_lea.vmem %s12890_s30, 16  ;;  %p13220_p10 = scmp.ne.s32.totalorder %s13038_s10, 0 }
 0x11b   : > { %3785 = vmatprep.subr.bf16.mxu0 %v9416_v11  ;;  %v9424_v21 = vcombine.high %v525_v14, %v529_v16  ;;  %4077 = vmatprep.subr.bf16.mxu1 %v9418_v15  ;;  %v9426_v22 = vcombine.high %v526_v17, %v530_v18  ;;  %v533_v23 = vld [vmem:[#allocation8 + $0xc0] sm:$0xff]  ;;  %v534_v25 = vld [vmem:[#allocation8 + $0xc8] sm:$0xff]  ;;  %v9423_v27 = vcombine.low %v525_v14, %v529_v16  ;;  %p11483_p4 = scmp.ne.s32.totalorder %s12890_s30, %s11482_s22  ;;  %s11588_s16 = smov [#allocation17]  }
 0x11c   : > { %v537_v24 = vld [vmem:[#allocation8 + $0xe0] sm:$0xff]  ;;  %v538_v26 = vld [vmem:[#allocation8 + $0xe8] sm:$0xff]  ;;  %v9425_v28 = vcombine.low %v526_v17, %v530_v18  ;;  %s11486_s27 = sshll.u32 %s11588_s16, 4  ;;  %s11487_s27 = int_to_ptr.vmem [resolvable:$false] %s11486_s27 }
 0x11d   : > { %v9432_v29 = vcombine.high %v533_v23, %v537_v24  ;;  %v9434_v30 = vcombine.high %v534_v25, %v538_v26  ;;  %v541_v31 = vld [vmem:[#allocation8 + $0x100] sm:$0xff]  ;;  %v542_v33 = vld [vmem:[#allocation8 + $0x108] sm:$0xff]  ;;  %v9431_v35 = vcombine.low %v533_v23, %v537_v24  ;;  %v9433_v36 = vcombine.low %v534_v25, %v538_v26  ;;  %p11484_p5 = pnand %p11483_p4, %p13220_p10  ;;  %s11488_s6 = scalar_lea.vmem %s11487_s27, 32 }
 0x11e   : > { %3786 = vmatpush1.bf16.msra.mxu0 %v9415_v19  ;;  %4078 = vmatpush1.bf16.msra.mxu1 %v9417_v20  ;;  %v545_v32 = vld [vmem:[#allocation8 + $0x120] sm:$0xff]  ;;  %v546_v34 = vld [vmem:[#allocation8 + $0x128] sm:$0xff]  ;;  %p11489_p9 = scmp.lt.s32.totalorder %s12890_s30, %s11487_s27  ;;  %p11490_p8 = scmp.lt.s32.totalorder %s11488_s6, %s11482_s22 }
 0x11f   : > { %3787 = vmatprep.subr.bf16.mxu0 %v9424_v21  ;;  %4079 = vmatprep.subr.bf16.mxu1 %v9426_v22  ;;  %v9440_v37 = vcombine.high %v541_v31, %v545_v32  ;;  %v9442_v38 = vcombine.high %v542_v33, %v546_v34  ;;  %v549_v39 = vld [vmem:[#allocation8 + $0x140] sm:$0xff]  ;;  %v550_v41 = vld [vmem:[#allocation8 + $0x148] sm:$0xff]  ;;  %v9439_v43 = vcombine.low %v541_v31, %v545_v32  ;;  %p11485_p7 = pneg %p11484_p5 }
 0x120   : > { %v553_v40 = vld [vmem:[#allocation8 + $0x160] sm:$0xff]  ;;  %v554_v42 = vld [vmem:[#allocation8 + $0x168] sm:$0xff]  ;;  %v9441_v44 = vcombine.low %v542_v33, %v546_v34  ;;  %p11491_p11 = por %p11490_p8, %p11489_p9 }
 0x121   : > { %v9448_v45 = vcombine.high %v549_v39, %v553_v40  ;;  %v9450_v46 = vcombine.high %v550_v41, %v554_v42  ;;  %v557_v47 = vld [vmem:[#allocation8 + $0x180] sm:$0xff]  ;;  %v558_v49 = vld [vmem:[#allocation8 + $0x188] sm:$0xff]  ;;  %v9447_v51 = vcombine.low %v549_v39, %v553_v40  ;;  %v9449_v52 = vcombine.low %v550_v41, %v554_v42 }
 0x122   : > { %3788 = vmatpush1.bf16.msra.mxu0 %v9423_v27  ;;  %4080 = vmatpush1.bf16.msra.mxu1 %v9425_v28  ;;  %v561_v48 = vld [vmem:[#allocation8 + $0x1a0] sm:$0xff]  ;;  %v562_v50 = vld [vmem:[#allocation8 + $0x1a8] sm:$0xff]  ;;  %p11492_p3 = pnand %p11491_p11, %p11485_p7 }
 0x123   : > { %3789 = vmatprep.subr.bf16.mxu0 %v9432_v29  ;;  %4081 = vmatprep.subr.bf16.mxu1 %v9434_v30  ;;  %v9456_v53 = vcombine.high %v557_v47, %v561_v48  ;;  %v11984_v54 = vld [vmem:[%s11953_s21] sm:$0xff]  ;;  %v9458_v56 = vcombine.high %v558_v49, %v562_v50  ;;  %v566_v60 = vld [vmem:[#allocation8 + $0x1c8] sm:$0xff]  ;;  %v9455_v62 = vcombine.low %v557_v47, %v561_v48 }
 0x124   : > { %v11987_v55 = vld [vmem:[%s11953_s21 + $0x20] sm:$0xff]  ;;  %v570_v61 = vld [vmem:[#allocation8 + $0x1e8] sm:$0xff]  ;;  %v9457_v63 = vcombine.low %v558_v49, %v562_v50 }
 0x125   : > { %v565_v57 = vld [vmem:[#allocation8 + $0x1c0] sm:$0xff]  ;;  %v11991_v59 = vcombine.high %v11984_v54, %v11987_v55  ;;  %v9466_v1 = vcombine.high %v566_v60, %v570_v61  ;;  %v574_v4 = vld [vmem:[#allocation8 + $0x208] sm:$0xff]  ;;  %v9465_v7 = vcombine.low %v566_v60, %v570_v61 }
 0x126   : > { %3790 = vmatpush1.bf16.msra.mxu0 %v9431_v35  ;;  %4082 = vmatpush1.bf16.msra.mxu1 %v9433_v36  ;;  %v569_v58 = vld [vmem:[#allocation8 + $0x1e0] sm:$0xff]  ;;  %v578_v5 = vld [vmem:[#allocation8 + $0x228] sm:$0xff] }
 0x127   : > { %3791 = vmatprep.subr.bf16.mxu0 %v9440_v37  ;;  %4083 = vmatprep.subr.bf16.mxu1 %v9442_v38  ;;  %v9464_v0 = vcombine.high %v565_v57, %v569_v58  ;;  %v573_v2 = vld [vmem:[#allocation8 + $0x200] sm:$0xff]  ;;  %v9463_v6 = vcombine.low %v565_v57, %v569_v58  ;;  %v9474_v9 = vcombine.high %v574_v4, %v578_v5  ;;  %v582_v12 = vld [vmem:[#allocation8 + $0x248] sm:$0xff] }
 0x128   : > { %3815 = vmatprep.mubr.bf16.mxu0 %v11991_v59  ;;  %v577_v3 = vld [vmem:[#allocation8 + $0x220] sm:$0xff]  ;;  %4107 = vmatprep.mubr.bf16.mxu1 %v11991_v59  ;;  %v586_v13 = vld [vmem:[#allocation8 + $0x268] sm:$0xff]  ;;  %v9473_v15 = vcombine.low %v574_v4, %v578_v5 }
 0x129   : > { %v9472_v8 = vcombine.high %v573_v2, %v577_v3  ;;  %v581_v10 = vld [vmem:[#allocation8 + $0x240] sm:$0xff]  ;;  %v9471_v14 = vcombine.low %v573_v2, %v577_v3  ;;  %v9482_v17 = vcombine.high %v582_v12, %v586_v13  ;;  %v590_v20 = vld [vmem:[#allocation8 + $0x288] sm:$0xff]  ;;  %v9481_v23 = vcombine.low %v582_v12, %v586_v13 }
 0x12a   : > { %3792 = vmatpush1.bf16.msra.mxu0 %v9439_v43  ;;  %4084 = vmatpush1.bf16.msra.mxu1 %v9441_v44  ;;  %v585_v11 = vld [vmem:[#allocation8 + $0x260] sm:$0xff]  ;;  %v594_v21 = vld [vmem:[#allocation8 + $0x2a8] sm:$0xff] }
 0x12b   : > { %3793 = vmatprep.subr.bf16.mxu0 %v9448_v45  ;;  %4085 = vmatprep.subr.bf16.mxu1 %v9450_v46  ;;  %v9480_v16 = vcombine.high %v581_v10, %v585_v11  ;;  %v589_v18 = vld [vmem:[#allocation8 + $0x280] sm:$0xff]  ;;  %v9479_v22 = vcombine.low %v581_v10, %v585_v11  ;;  %v9490_v25 = vcombine.high %v590_v20, %v594_v21  ;;  %v598_v28 = vld [vmem:[#allocation8 + $0x2c8] sm:$0xff] }
 0x12c   : > { %v593_v19 = vld [vmem:[#allocation8 + $0x2a0] sm:$0xff]  ;;  %v602_v29 = vld [vmem:[#allocation8 + $0x2e8] sm:$0xff]  ;;  %v9489_v31 = vcombine.low %v590_v20, %v594_v21 }
 0x12d   : > { %v9488_v24 = vcombine.high %v589_v18, %v593_v19  ;;  %v597_v26 = vld [vmem:[#allocation8 + $0x2c0] sm:$0xff]  ;;  %v9487_v30 = vcombine.low %v589_v18, %v593_v19  ;;  %v9498_v33 = vcombine.high %v598_v28, %v602_v29  ;;  %v606_v36 = vld [vmem:[#allocation8 + $0x308] sm:$0xff]  ;;  %v9497_v39 = vcombine.low %v598_v28, %v602_v29 }
 0x12e   : > { %3794 = vmatpush1.bf16.msra.mxu0 %v9447_v51  ;;  %4086 = vmatpush1.bf16.msra.mxu1 %v9449_v52  ;;  %v601_v27 = vld [vmem:[#allocation8 + $0x2e0] sm:$0xff]  ;;  %v610_v37 = vld [vmem:[#allocation8 + $0x328] sm:$0xff] }
 0x12f   : > { %3795 = vmatprep.subr.bf16.mxu0 %v9456_v53  ;;  %4087 = vmatprep.subr.bf16.mxu1 %v9458_v56  ;;  %v9496_v32 = vcombine.high %v597_v26, %v601_v27  ;;  %v605_v34 = vld [vmem:[#allocation8 + $0x300] sm:$0xff]  ;;  %v9495_v38 = vcombine.low %v597_v26, %v601_v27  ;;  %v9506_v41 = vcombine.high %v606_v36, %v610_v37  ;;  %v614_v44 = vld [vmem:[#allocation8 + $0x348] sm:$0xff] }
 0x130   : > { %v609_v35 = vld [vmem:[#allocation8 + $0x320] sm:$0xff]  ;;  %v618_v45 = vld [vmem:[#allocation8 + $0x368] sm:$0xff]  ;;  %v9505_v47 = vcombine.low %v606_v36, %v610_v37 }
 0x131   : > { %v9504_v40 = vcombine.high %v605_v34, %v609_v35  ;;  %v613_v42 = vld [vmem:[#allocation8 + $0x340] sm:$0xff]  ;;  %v9503_v46 = vcombine.low %v605_v34, %v609_v35  ;;  %v9514_v49 = vcombine.high %v614_v44, %v618_v45  ;;  %v622_v52 = vld [vmem:[#allocation8 + $0x388] sm:$0xff]  ;;  %v9513_v57 = vcombine.low %v614_v44, %v618_v45 }
 0x132   : > { %3796 = vmatpush1.bf16.msra.mxu0 %v9455_v62  ;;  %4088 = vmatpush1.bf16.msra.mxu1 %v9457_v63  ;;  %v617_v43 = vld [vmem:[#allocation8 + $0x360] sm:$0xff]  ;;  %v626_v53 = vld [vmem:[#allocation8 + $0x3a8] sm:$0xff] }
 0x133   : > { %3797 = vmatprep.subr.bf16.mxu0 %v9464_v0  ;;  %4089 = vmatprep.subr.bf16.mxu1 %v9466_v1  ;;  %v9512_v48 = vcombine.high %v613_v42, %v617_v43  ;;  %v621_v50 = vld [vmem:[#allocation8 + $0x380] sm:$0xff]  ;;  %v9511_v56 = vcombine.low %v613_v42, %v617_v43  ;;  %v9522_v60 = vcombine.high %v622_v52, %v626_v53  ;;  %v630_v63 = vld [vmem:[#allocation8 + $0x3c8] sm:$0xff] }
 0x134   : > { %v625_v51 = vld [vmem:[#allocation8 + $0x3a0] sm:$0xff]  ;;  %v634_v0 = vld [vmem:[#allocation8 + $0x3e8] sm:$0xff]  ;;  %v9521_v2 = vcombine.low %v622_v52, %v626_v53 }
 0x135   : > { %v9520_v58 = vcombine.high %v621_v50, %v625_v51  ;;  %v629_v61 = vld [vmem:[#allocation8 + $0x3c0] sm:$0xff]  ;;  %v9519_v1 = vcombine.low %v621_v50, %v625_v51  ;;  %v9530_v4 = vcombine.high %v630_v63, %v634_v0  ;;  %v9529_v10 = vcombine.low %v630_v63, %v634_v0  ;;  %v654_v27 = vld [vmem:[#allocation8 + $0x488] sm:$0xff] }
 0x136   : > { %3798 = vmatpush1.bf16.msra.mxu0 %v9463_v6  ;;  %4090 = vmatpush1.bf16.msra.mxu1 %v9465_v7  ;;  %v633_v62 = vld [vmem:[#allocation8 + $0x3e0] sm:$0xff]  ;;  %v638_v7 = vld [vmem:[#allocation8 + $0x408] sm:$0xff] }
 0x137   : > { %3799 = vmatprep.subr.bf16.mxu0 %v9472_v8  ;;  %4091 = vmatprep.subr.bf16.mxu1 %v9474_v9  ;;  %v9528_v3 = vcombine.high %v629_v61, %v633_v62  ;;  %v637_v5 = vld [vmem:[#allocation8 + $0x400] sm:$0xff]  ;;  %v642_v8 = vld [vmem:[#allocation8 + $0x428] sm:$0xff]  ;;  %v9527_v9 = vcombine.low %v629_v61, %v633_v62 }
 0x138   : > { %v641_v6 = vld [vmem:[#allocation8 + $0x420] sm:$0xff]  ;;  %v9538_v12 = vcombine.high %v638_v7, %v642_v8  ;;  %v9537_v21 = vcombine.low %v638_v7, %v642_v8  ;;  %v666_v34 = vld [vmem:[#allocation8 + $0x4e8] sm:$0xff] }
 0x139   : > { %v9536_v11 = vcombine.high %v637_v5, %v641_v6  ;;  %v645_v13 = vld [vmem:[#allocation8 + $0x440] sm:$0xff]  ;;  %v9535_v20 = vcombine.low %v637_v5, %v641_v6  ;;  %v670_v43 = vld [vmem:[#allocation8 + $0x508] sm:$0xff] }
 0x13a   : > { %3800 = vmatpush1.bf16.msra.mxu0 %v9471_v14  ;;  %4092 = vmatpush1.bf16.msra.mxu1 %v9473_v15  ;;  %v649_v14 = vld [vmem:[#allocation8 + $0x460] sm:$0xff]  ;;  %v646_v15 = vld [vmem:[#allocation8 + $0x448] sm:$0xff] }
 0x13b   : > { %3801 = vmatprep.subr.bf16.mxu0 %v9480_v16  ;;  %4093 = vmatprep.subr.bf16.mxu1 %v9482_v17  ;;  %v11997_v16 = vcombine.low %v11984_v54, %v11987_v55  ;;  %v650_v17 = vld [vmem:[#allocation8 + $0x468] sm:$0xff]  ;;  %v482_v18 = vld [vmem:[%s11953_s21 + $0x40] sm:$0xff]  ;;  %v9543_v55 = vcombine.low %v645_v13, %v649_v14 }
 0x13c   : > { %v486_v19 = vld [vmem:[%s11953_s21 + $0x60] sm:$0xff]  ;;  %v658_v54 = vld [vmem:[#allocation8 + $0x4a8] sm:$0xff]  ;;  %v9545_v28 = vcombine.low %v646_v15, %v650_v17 }
 0x13d   : > { %v12001_v26 = vcombine.high %v482_v18, %v486_v19  ;;  %v12007_v35 = vcombine.low %v482_v18, %v486_v19  ;;  %v490_v36 = vld [vmem:[%s11953_s21 + $0x80] sm:$0xff]  ;;  %v674_v45 = vld [vmem:[#allocation8 + $0x528] sm:$0xff] }
 0x13e   : > { %3802 = vmatpush1.bf16.msra.mxu0 %v9479_v22  ;;  %4094 = vmatpush1.bf16.msra.mxu1 %v9481_v23  ;;  %v9544_v22 = vcombine.high %v645_v13, %v649_v14  ;;  %v9546_v23 = vcombine.high %v646_v15, %v650_v17  ;;  %v494_v37 = vld [vmem:[%s11953_s21 + $0xa0] sm:$0xff]  ;;  %v678_v52 = vld [vmem:[#allocation8 + $0x548] sm:$0xff]  ;;  %v9569_v62 = vcombine.low %v670_v43, %v674_v45 }
 0x13f   : > { %3803 = vmatprep.subr.bf16.mxu0 %v9488_v24  ;;  %4095 = vmatprep.subr.bf16.mxu1 %v9490_v25  ;;  %v653_v24 = vld [vmem:[#allocation8 + $0x480] sm:$0xff]  ;;  %v682_v53 = vld [vmem:[#allocation8 + $0x568] sm:$0xff] }
 0x140   : > { %v657_v25 = vld [vmem:[#allocation8 + $0x4a0] sm:$0xff]  ;;  %v12026_v13 = vld [vmem:[%s11953_s21 + $0x8] sm:$0xff] }
 0x141   : > { %v9552_v29 = vcombine.high %v653_v24, %v657_v25  ;;  %v673_v42 = vld [vmem:[#allocation8 + $0x520] sm:$0xff]  ;;  %v12030_v15 = vld [vmem:[%s11953_s21 + $0x28] sm:$0xff] }
 0x142   : > { %3804 = vmatpush1.bf16.msra.mxu0 %v9487_v30  ;;  %4096 = vmatpush1.bf16.msra.mxu1 %v9489_v31  ;;  %v9554_v30 = vcombine.high %v654_v27, %v658_v54  ;;  %v661_v31 = vld [vmem:[#allocation8 + $0x4c0] sm:$0xff] }
 0x143   : > { %3805 = vmatprep.subr.bf16.mxu0 %v9496_v32  ;;  %4097 = vmatprep.subr.bf16.mxu1 %v9498_v33  ;;  %v665_v32 = vld [vmem:[#allocation8 + $0x4e0] sm:$0xff]  ;;  %v662_v33 = vld [vmem:[#allocation8 + $0x4c8] sm:$0xff] }
 0x144   : > { %v9562_v44 = vcombine.high %v662_v33, %v666_v34  ;;  %v9561_v50 = vcombine.low %v662_v33, %v666_v34  ;;  %v685_v0 = vld [vmem:[#allocation8 + $0x580] sm:$0xff]  ;;  %v714_v33 = vld [vmem:[#allocation8 + $0x668] sm:$0xff] }
 0x145   : > { %v693_v7 = vld [vmem:[#allocation8 + $0x5c0] sm:$0xff] }
 0x146   : > { %3806 = vmatpush1.bf16.msra.mxu0 %v9495_v38  ;;  %4098 = vmatpush1.bf16.msra.mxu1 %v9497_v39  ;;  %v9551_v38 = vcombine.low %v653_v24, %v657_v25  ;;  %v9553_v39 = vcombine.low %v654_v27, %v658_v54  ;;  %v697_v8 = vld [vmem:[#allocation8 + $0x5e0] sm:$0xff]  ;;  %v706_v25 = vld [vmem:[#allocation8 + $0x628] sm:$0xff]  ;;  %v12037_v27 = vcombine.high %v12026_v13, %v12030_v15 }
 0x147   : > { %3807 = vmatprep.subr.bf16.mxu0 %v9504_v40  ;;  %4099 = vmatprep.subr.bf16.mxu1 %v9506_v41  ;;  %v9560_v40 = vcombine.high %v661_v31, %v665_v32  ;;  %v669_v41 = vld [vmem:[#allocation8 + $0x500] sm:$0xff]  ;;  %v9591_v54 = vcombine.low %v693_v7, %v697_v8 }
 0x148   : > { %v9568_v51 = vcombine.high %v669_v41, %v673_v42  ;;  %v9567_v61 = vcombine.low %v669_v41, %v673_v42  ;;  %v722_v42 = vld [vmem:[#allocation8 + $0x6a8] sm:$0xff] }
 0x14a   : > { %3808 = vmatpush1.bf16.msra.mxu0 %v9503_v46  ;;  %4100 = vmatpush1.bf16.msra.mxu1 %v9505_v47  ;;  %v12011_v46 = vcombine.high %v490_v36, %v494_v37  ;;  %v9559_v47 = vcombine.low %v661_v31, %v665_v32  ;;  %v710_v31 = vld [vmem:[#allocation8 + $0x648] sm:$0xff] }
 0x14b   : > { %3809 = vmatprep.subr.bf16.mxu0 %v9512_v48  ;;  %4101 = vmatprep.subr.bf16.mxu1 %v9514_v49  ;;  %v677_v48 = vld [vmem:[#allocation8 + $0x540] sm:$0xff]  ;;  %v9610_v41 = vcombine.high %v710_v31, %v714_v33 }
 0x14c   : > { %v681_v49 = vld [vmem:[#allocation8 + $0x560] sm:$0xff] }
 0x14d   : > { %v9576_v63 = vcombine.high %v677_v48, %v681_v49  ;;  %v9575_v6 = vcombine.low %v677_v48, %v681_v49  ;;  %v729_v48 = vld [vmem:[#allocation8 + $0x6e0] sm:$0xff]  ;;  %v726_v49 = vld [vmem:[#allocation8 + $0x6c8] sm:$0xff] }
 0x14e   : > { %3810 = vmatpush1.bf16.msra.mxu0 %v9511_v56  ;;  %4102 = vmatpush1.bf16.msra.mxu1 %v9513_v57  ;;  %v498_v56 = vld [vmem:[%s11953_s21 + $0xc0] sm:$0xff]  ;;  %v9570_v57 = vcombine.high %v670_v43, %v674_v45 }
 0x14f   : > { %3811 = vmatprep.subr.bf16.mxu0 %v9520_v58  ;;  %4103 = vmatprep.subr.bf16.mxu1 %v9522_v60  ;;  %v502_v58 = vld [vmem:[%s11953_s21 + $0xe0] sm:$0xff]  ;;  %v12019_v60 = vcombine.low %v490_v36, %v494_v37 }
 0x150   : > { %v12021_v5 = vcombine.high %v498_v56, %v502_v58  ;;  %v12033_v17 = vcombine.low %v498_v56, %v502_v58  ;;  %v737_v58 = vld [vmem:[#allocation8 + $0x720] sm:$0xff] }
 0x152   : > { %3812 = vmatpush1.bf16.msra.mxu0 %v9519_v1  ;;  %4104 = vmatpush1.bf16.msra.mxu1 %v9521_v2  ;;  %v689_v1 = vld [vmem:[#allocation8 + $0x5a0] sm:$0xff]  ;;  %v686_v2 = vld [vmem:[#allocation8 + $0x588] sm:$0xff] }
 0x153   : > { %3813 = vmatprep.subr.bf16.mxu0 %v9528_v3  ;;  %4105 = vmatprep.subr.bf16.mxu1 %v9530_v4  ;;  %v9578_v3 = vcombine.high %v678_v52, %v682_v53  ;;  %v690_v4 = vld [vmem:[#allocation8 + $0x5a8] sm:$0xff]  ;;  %v9583_v18 = vcombine.low %v685_v0, %v689_v1 }
 0x154   : > { %v9586_v14 = vcombine.high %v686_v2, %v690_v4  ;;  %v9585_v19 = vcombine.low %v686_v2, %v690_v4  ;;  %v745_v4 = vld [vmem:[#allocation8 + $0x760] sm:$0xff] }
 0x156   : > { %3814 = vmatpush1.bf16.msra.mxu0 %v9527_v9  ;;  %4106 = vmatpush1.bf16.msra.mxu1 %v9529_v10  ;;  %v9577_v9 = vcombine.low %v678_v52, %v682_v53  ;;  %v9584_v10 = vcombine.high %v685_v0, %v689_v1 }
 0x157   : > { %3856 = vmatprep.subr.bf16.mxu0 %v9536_v11  ;;  %4148 = vmatprep.subr.bf16.mxu1 %v9538_v12  ;;  %v694_v11 = vld [vmem:[#allocation8 + $0x5c8] sm:$0xff] }
 0x158   : > { %v698_v12 = vld [vmem:[#allocation8 + $0x5e8] sm:$0xff] }
 0x159   : > { %3816 = vmatmul.mubr.bf16.vlgmr.msra.gmra.mrb[0].mxu0 %v11997_v16  ;;  %4108 = vmatmul.mubr.bf16.vlgmr.msra.gmra.mrb[0].mxu1 %v11997_v16  ;;  %v9594_v24 = vcombine.high %v694_v11, %v698_v12 }
 0x15a   : > { %3857 = vmatpush1.bf16.msra.mxu0 %v9535_v20  ;;  %4149 = vmatpush1.bf16.msra.mxu1 %v9537_v21  ;;  %v9592_v20 = vcombine.high %v693_v7, %v697_v8  ;;  %v701_v21 = vld [vmem:[#allocation8 + $0x600] sm:$0xff]  ;;  %v746_v8 = vld [vmem:[#allocation8 + $0x768] sm:$0xff] }
 0x15b   : > { %3858 = vmatprep.subr.bf16.mxu0 %v9544_v22  ;;  %4150 = vmatprep.subr.bf16.mxu1 %v9546_v23  ;;  %v705_v22 = vld [vmem:[#allocation8 + $0x620] sm:$0xff]  ;;  %v702_v23 = vld [vmem:[#allocation8 + $0x608] sm:$0xff] }
 0x15c   : > { %3825 = vmatprep.mubr.bf16.mxu0 %v12001_v26  ;;  %4117 = vmatprep.mubr.bf16.mxu1 %v12001_v26  ;;  %v9602_v32 = vcombine.high %v702_v23, %v706_v25  ;;  %v9599_v34 = vcombine.low %v701_v21, %v705_v22  ;;  %v9601_v36 = vcombine.low %v702_v23, %v706_v25  ;;  %v761_v25 = vld [vmem:[#allocation8 + $0x7e0] sm:$0xff] }
 0x15e   : > { %3859 = vmatpush1.bf16.msra.mxu0 %v9543_v55  ;;  %4151 = vmatpush1.bf16.msra.mxu1 %v9545_v28  ;;  %v9593_v55 = vcombine.low %v694_v11, %v698_v12  ;;  %v9600_v28 = vcombine.high %v701_v21, %v705_v22  ;;  %v749_v12 = vld [vmem:[#allocation8 + $0x780] sm:$0xff] }
 0x15f   : > { %3860 = vmatprep.subr.bf16.mxu0 %v9552_v29  ;;  %4152 = vmatprep.subr.bf16.mxu1 %v9554_v30  ;;  %v709_v29 = vld [vmem:[#allocation8 + $0x640] sm:$0xff] }
 0x160   : > { %v713_v30 = vld [vmem:[#allocation8 + $0x660] sm:$0xff] }
 0x161   : > { %3826 = vmatmul.mubr.bf16.gmra.mrb[4].mxu0 %v12007_v35  ;;  %4118 = vmatmul.mubr.bf16.gmra.mrb[4].mxu1 %v12007_v35  ;;  %v9608_v37 = vcombine.high %v709_v29, %v713_v30  ;;  %v9607_v43 = vcombine.low %v709_v29, %v713_v30 }
 0x162   : > { %3861 = vmatpush1.bf16.msra.mxu0 %v9551_v38  ;;  %4153 = vmatpush1.bf16.msra.mxu1 %v9553_v39  ;;  %v717_v38 = vld [vmem:[#allocation8 + $0x680] sm:$0xff] }
 0x163   : > { %3862 = vmatprep.subr.bf16.mxu0 %v9560_v40  ;;  %4154 = vmatprep.subr.bf16.mxu1 %v9562_v44  ;;  %v721_v39 = vld [vmem:[#allocation8 + $0x6a0] sm:$0xff]  ;;  %v718_v40 = vld [vmem:[#allocation8 + $0x688] sm:$0xff]  ;;  %v9609_v44 = vcombine.low %v710_v31, %v714_v33 }
 0x164   : > { %3835 = vmatprep.mubr.bf16.mxu0 %v12011_v46  ;;  %4127 = vmatprep.mubr.bf16.mxu1 %v12011_v46  ;;  %v9616_v45 = vcombine.high %v717_v38, %v721_v39  ;;  %v9615_v52 = vcombine.low %v717_v38, %v721_v39  ;;  %v9617_v53 = vcombine.low %v718_v40, %v722_v42  ;;  %v769_v33 = vld [vmem:[#allocation8 + $0x820] sm:$0xff] }
 0x165   : > { %v773_v39 = vld [vmem:[#allocation8 + $0x840] sm:$0xff] }
 0x166   : > { %3863 = vmatpush1.bf16.msra.mxu0 %v9559_v47  ;;  %4155 = vmatpush1.bf16.msra.mxu1 %v9561_v50  ;;  %v725_v47 = vld [vmem:[#allocation8 + $0x6c0] sm:$0xff]  ;;  %v9618_v50 = vcombine.high %v718_v40, %v722_v42 }
 0x167   : > { %3864 = vmatprep.subr.bf16.mxu0 %v9568_v51  ;;  %4156 = vmatprep.subr.bf16.mxu1 %v9570_v57  ;;  %v730_v51 = vld [vmem:[#allocation8 + $0x6e8] sm:$0xff]  ;;  %v9624_v56 = vcombine.high %v725_v47, %v729_v48  ;;  %v733_v57 = vld [vmem:[#allocation8 + $0x700] sm:$0xff]  ;;  %v9623_v0 = vcombine.low %v725_v47, %v729_v48 }
 0x168   : > { %v9625_v1 = vcombine.low %v726_v49, %v730_v51  ;;  %v9632_v2 = vcombine.high %v733_v57, %v737_v58  ;;  %v777_v40 = vld [vmem:[#allocation8 + $0x860] sm:$0xff]  ;;  %v487_v48 = vld [vmem:[%s11953_s21 + $0x68] sm:$0xff] }
 0x169   : > { %3836 = vmatmul.mubr.bf16.gmra.mrb[8].mxu0 %v12019_v60  ;;  %4128 = vmatmul.mubr.bf16.gmra.mrb[8].mxu1 %v12019_v60 }
 0x16a   : > { %3865 = vmatpush1.bf16.msra.mxu0 %v9567_v61  ;;  %4157 = vmatpush1.bf16.msra.mxu1 %v9569_v62  ;;  %v734_v61 = vld [vmem:[#allocation8 + $0x708] sm:$0xff]  ;;  %v9626_v62 = vcombine.high %v726_v49, %v730_v51  ;;  %v12047_v49 = vcombine.low %v12026_v13, %v12030_v15  ;;  %v9671_v13 = vcombine.low %v773_v39, %v777_v40  ;;  %v789_v15 = vld [vmem:[#allocation8 + $0x8c0] sm:$0xff] }
 0x16b   : > { %3866 = vmatprep.subr.bf16.mxu0 %v9576_v63  ;;  %4158 = vmatprep.subr.bf16.mxu1 %v9578_v3  ;;  %v738_v63 = vld [vmem:[#allocation8 + $0x728] sm:$0xff]  ;;  %v741_v3 = vld [vmem:[#allocation8 + $0x740] sm:$0xff] }
 0x16c   : > { %3845 = vmatprep.mubr.bf16.mxu0 %v12021_v5  ;;  %4137 = vmatprep.mubr.bf16.mxu1 %v12021_v5  ;;  %v9634_v7 = vcombine.high %v734_v61, %v738_v63  ;;  %v9640_v11 = vcombine.high %v741_v3, %v745_v4  ;;  %v9639_v21 = vcombine.low %v741_v3, %v745_v4  ;;  %v794_v3 = vld [vmem:[#allocation8 + $0x8e8] sm:$0xff] }
 0x16d   : > { %v491_v4 = vld [vmem:[%s11953_s21 + $0x88] sm:$0xff] }
 0x16e   : > { %3867 = vmatpush1.bf16.msra.mxu0 %v9575_v6  ;;  %4159 = vmatpush1.bf16.msra.mxu1 %v9577_v9  ;;  %v742_v6 = vld [vmem:[#allocation8 + $0x748] sm:$0xff]  ;;  %v9631_v9 = vcombine.low %v733_v57, %v737_v58 }
 0x16f   : > { %3868 = vmatprep.subr.bf16.mxu0 %v9584_v10  ;;  %4160 = vmatprep.subr.bf16.mxu1 %v9586_v14  ;;  %v9633_v10 = vcombine.low %v734_v61, %v738_v63  ;;  %v753_v14 = vld [vmem:[#allocation8 + $0x7a0] sm:$0xff]  ;;  %v9641_v22 = vcombine.low %v742_v6, %v746_v8  ;;  %v782_v57 = vld [vmem:[#allocation8 + $0x888] sm:$0xff] }
 0x170   : > { %v9648_v23 = vcombine.high %v749_v12, %v753_v14  ;;  %v9647_v29 = vcombine.low %v749_v12, %v753_v14  ;;  %v786_v61 = vld [vmem:[#allocation8 + $0x8a8] sm:$0xff]  ;;  %v793_v63 = vld [vmem:[#allocation8 + $0x8e0] sm:$0xff] }
 0x171   : > { %3846 = vmatmul.mubr.bf16.gmra.mrb[12].mxu0 %v12033_v17  ;;  %4138 = vmatmul.mubr.bf16.gmra.mrb[12].mxu1 %v12033_v17  ;;  %v797_v12 = vld [vmem:[#allocation8 + $0x900] sm:$0xff] }
 0x172   : > { %3869 = vmatpush1.bf16.msra.mxu0 %v9583_v18  ;;  %4161 = vmatpush1.bf16.msra.mxu1 %v9585_v19  ;;  %v750_v18 = vld [vmem:[#allocation8 + $0x788] sm:$0xff]  ;;  %v9642_v19 = vcombine.high %v742_v6, %v746_v8  ;;  %v9682_v6 = vcombine.high %v782_v57, %v786_v61  ;;  %v801_v14 = vld [vmem:[#allocation8 + $0x920] sm:$0xff] }
 0x173   : > { %3870 = vmatprep.subr.bf16.mxu0 %v9592_v20  ;;  %4162 = vmatprep.subr.bf16.mxu1 %v9594_v24  ;;  %v754_v20 = vld [vmem:[#allocation8 + $0x7a8] sm:$0xff]  ;;  %v757_v24 = vld [vmem:[#allocation8 + $0x7c0] sm:$0xff] }
 0x174   : > { %3888 = vmatprep.mubr.bf16.mxu0 %v12037_v27  ;;  %4180 = vmatprep.mubr.bf16.mxu1 %v12037_v27  ;;  %v9649_v30 = vcombine.low %v750_v18, %v754_v20  ;;  %v9656_v31 = vcombine.high %v757_v24, %v761_v25  ;;  %v9655_v38 = vcombine.low %v757_v24, %v761_v25  ;;  %v805_v25 = vld [vmem:[#allocation8 + $0x940] sm:$0xff] }
 0x175   : > { %v9696_v24 = vcombine.high %v797_v12, %v801_v14 }
 0x176   : > { %3871 = vmatpush1.bf16.msra.mxu0 %v9591_v54  ;;  %4163 = vmatpush1.bf16.msra.mxu1 %v9593_v55  ;;  %v758_v54 = vld [vmem:[#allocation8 + $0x7c8] sm:$0xff]  ;;  %v9650_v55 = vcombine.high %v750_v18, %v754_v20 }
 0x177   : > { %3872 = vmatprep.subr.bf16.mxu0 %v9600_v28  ;;  %4164 = vmatprep.subr.bf16.mxu1 %v9602_v32  ;;  %v762_v28 = vld [vmem:[#allocation8 + $0x7e8] sm:$0xff]  ;;  %v765_v32 = vld [vmem:[#allocation8 + $0x800] sm:$0xff] }
 0x178   : > { %v9664_v42 = vcombine.high %v765_v32, %v769_v33  ;;  %v798_v18 = vld [vmem:[#allocation8 + $0x908] sm:$0xff] }
 0x179   : > { %v802_v20 = vld [vmem:[#allocation8 + $0x928] sm:$0xff] }
 0x17a   : > { %3873 = vmatpush1.bf16.msra.mxu0 %v9599_v34  ;;  %4165 = vmatpush1.bf16.msra.mxu1 %v9601_v36  ;;  %v766_v34 = vld [vmem:[#allocation8 + $0x808] sm:$0xff]  ;;  %v9658_v36 = vcombine.high %v758_v54, %v762_v28 }
 0x17b   : > { %3874 = vmatprep.subr.bf16.mxu0 %v9608_v37  ;;  %4166 = vmatprep.subr.bf16.mxu1 %v9610_v41  ;;  %v770_v37 = vld [vmem:[#allocation8 + $0x828] sm:$0xff]  ;;  %v9657_v41 = vcombine.low %v758_v54, %v762_v28  ;;  %v9698_v54 = vcombine.high %v798_v18, %v802_v20 }
 0x17c   : > { %v9666_v47 = vcombine.high %v766_v34, %v770_v37  ;;  %v9665_v51 = vcombine.low %v766_v34, %v770_v37  ;;  %v806_v28 = vld [vmem:[#allocation8 + $0x948] sm:$0xff]  ;;  %v9697_v34 = vcombine.low %v798_v18, %v802_v20 }
 0x17e   : > { %3875 = vmatpush1.bf16.msra.mxu0 %v9607_v43  ;;  %4167 = vmatpush1.bf16.msra.mxu1 %v9609_v44  ;;  %v774_v43 = vld [vmem:[#allocation8 + $0x848] sm:$0xff] }
 0x17f   : > { %3876 = vmatprep.subr.bf16.mxu0 %v9616_v45  ;;  %4168 = vmatprep.subr.bf16.mxu1 %v9618_v50  ;;  %v778_v44 = vld [vmem:[#allocation8 + $0x868] sm:$0xff]  ;;  %v9663_v50 = vcombine.low %v765_v32, %v769_v33  ;;  %v9695_v33 = vcombine.low %v797_v12, %v801_v14 }
 0x180   : > { %v483_v45 = vld [vmem:[%s11953_s21 + $0x48] sm:$0xff]  ;;  %v9674_v58 = vcombine.high %v774_v43, %v778_v44 }
 0x181   : > { %v12057_v8 = vcombine.low %v483_v45, %v487_v48  ;;  %v503_v32 = vld [vmem:[%s11953_s21 + $0xe8] sm:$0xff] }
 0x182   : > { %3877 = vmatpush1.bf16.msra.mxu0 %v9615_v52  ;;  %4169 = vmatpush1.bf16.msra.mxu1 %v9617_v53  ;;  %v9672_v52 = vcombine.high %v773_v39, %v777_v40  ;;  %v781_v53 = vld [vmem:[#allocation8 + $0x880] sm:$0xff]  ;;  %v838_v12 = vld [vmem:[#allocation8 + $0xa48] sm:$0xff] }
 0x183   : > { %3878 = vmatprep.subr.bf16.mxu0 %v9624_v56  ;;  %4170 = vmatprep.subr.bf16.mxu1 %v9626_v62  ;;  %v785_v56 = vld [vmem:[#allocation8 + $0x8a0] sm:$0xff]  ;;  %v12049_v62 = vcombine.high %v483_v45, %v487_v48  ;;  %v842_v14 = vld [vmem:[#allocation8 + $0xa68] sm:$0xff] }
 0x184   : > { %v817_v39 = vld [vmem:[#allocation8 + $0x9a0] sm:$0xff] }
 0x185   : > { %v821_v48 = vld [vmem:[#allocation8 + $0x9c0] sm:$0xff] }
 0x186   : > { %3879 = vmatpush1.bf16.msra.mxu0 %v9623_v0  ;;  %4171 = vmatpush1.bf16.msra.mxu1 %v9625_v1  ;;  %v9673_v0 = vcombine.low %v774_v43, %v778_v44  ;;  %v9680_v1 = vcombine.high %v781_v53, %v785_v56 }
 0x187   : > { %3880 = vmatprep.subr.bf16.mxu0 %v9632_v2  ;;  %4172 = vmatprep.subr.bf16.mxu1 %v9634_v7  ;;  %v790_v2 = vld [vmem:[#allocation8 + $0x8c8] sm:$0xff] }
 0x188   : > { %v495_v7 = vld [vmem:[%s11953_s21 + $0xa8] sm:$0xff] }
 0x18a   : > { %3881 = vmatpush1.bf16.msra.mxu0 %v9631_v9  ;;  %4173 = vmatpush1.bf16.msra.mxu1 %v9633_v10  ;;  %v9679_v9 = vcombine.low %v781_v53, %v785_v56  ;;  %v9681_v10 = vcombine.low %v782_v57, %v786_v61  ;;  %v12078_v56 = vld [vmem:[%s11953_s21 + $0x10] sm:$0xff] }
 0x18b   : > { %3882 = vmatprep.subr.bf16.mxu0 %v9640_v11  ;;  %4174 = vmatprep.subr.bf16.mxu1 %v9642_v19  ;;  %v9688_v11 = vcombine.high %v789_v15, %v793_v63  ;;  %v9690_v19 = vcombine.high %v790_v2, %v794_v3  ;;  %v12081_v57 = vld [vmem:[%s11953_s21 + $0x30] sm:$0xff] }
 0x18e   : > { %3883 = vmatpush1.bf16.msra.mxu0 %v9639_v21  ;;  %4175 = vmatpush1.bf16.msra.mxu1 %v9641_v22  ;;  %v12059_v21 = vcombine.high %v491_v4, %v495_v7  ;;  %v9687_v22 = vcombine.low %v789_v15, %v793_v63  ;;  %v829_v63 = vld [vmem:[#allocation8 + $0xa00] sm:$0xff] }
 0x18f   : > { %3884 = vmatprep.subr.bf16.mxu0 %v9648_v23  ;;  %4176 = vmatprep.subr.bf16.mxu1 %v9650_v55  ;;  %v9689_v23 = vcombine.low %v790_v2, %v794_v3  ;;  %v809_v55 = vld [vmem:[#allocation8 + $0x960] sm:$0xff]  ;;  %v830_v2 = vld [vmem:[#allocation8 + $0xa08] sm:$0xff] }
 0x190   : > { %v9703_v43 = vcombine.low %v805_v25, %v809_v55  ;;  %v834_v3 = vld [vmem:[#allocation8 + $0xa28] sm:$0xff] }
 0x192   : > { %3885 = vmatpush1.bf16.msra.mxu0 %v9647_v29  ;;  %4177 = vmatpush1.bf16.msra.mxu1 %v9649_v30  ;;  %v810_v29 = vld [vmem:[#allocation8 + $0x968] sm:$0xff]  ;;  %v12065_v30 = vcombine.low %v491_v4, %v495_v7 }
 0x193   : > { %3886 = vmatprep.subr.bf16.mxu0 %v9656_v31  ;;  %4178 = vmatprep.subr.bf16.mxu1 %v9658_v36  ;;  %v499_v31 = vld [vmem:[%s11953_s21 + $0xc8] sm:$0xff]  ;;  %v9704_v36 = vcombine.high %v805_v25, %v809_v55  ;;  %v9706_v37 = vcombine.high %v806_v28, %v810_v29  ;;  %v9705_v44 = vcombine.low %v806_v28, %v810_v29 }
 0x194   : > { %v12069_v40 = vcombine.high %v499_v31, %v503_v32  ;;  %v12075_v53 = vcombine.low %v499_v31, %v503_v32  ;;  %v846_v25 = vld [vmem:[#allocation8 + $0xa88] sm:$0xff]  ;;  %v9737_v28 = vcombine.low %v838_v12, %v842_v14  ;;  %v853_v32 = vld [vmem:[#allocation8 + $0xac0] sm:$0xff] }
 0x196   : > { %3887 = vmatpush1.bf16.msra.mxu0 %v9655_v38  ;;  %4179 = vmatpush1.bf16.msra.mxu1 %v9657_v41  ;;  %v813_v38 = vld [vmem:[#allocation8 + $0x980] sm:$0xff]  ;;  %v814_v41 = vld [vmem:[#allocation8 + $0x988] sm:$0xff] }
 0x197   : > { %3929 = vmatprep.subr.bf16.mxu0 %v9664_v42  ;;  %4221 = vmatprep.subr.bf16.mxu1 %v9666_v47  ;;  %v818_v42 = vld [vmem:[#allocation8 + $0x9a8] sm:$0xff]  ;;  %v9712_v45 = vcombine.high %v813_v38, %v817_v39 }
 0x198   : > { %v9714_v47 = vcombine.high %v814_v41, %v818_v42  ;;  %v9713_v61 = vcombine.low %v814_v41, %v818_v42  ;;  %v861_v42 = vld [vmem:[#allocation8 + $0xb00] sm:$0xff] }
 0x199   : > { %3889 = vmatmul.mubr.bf16.vlgmr.msra.gmra.mrb[0].mxu0 %v12047_v49  ;;  %4181 = vmatmul.mubr.bf16.vlgmr.msra.gmra.mrb[0].mxu1 %v12047_v49 }
 0x19a   : > { %3930 = vmatpush1.bf16.msra.mxu0 %v9663_v50  ;;  %4222 = vmatpush1.bf16.msra.mxu1 %v9665_v51  ;;  %v825_v50 = vld [vmem:[#allocation8 + $0x9e0] sm:$0xff]  ;;  %v822_v51 = vld [vmem:[#allocation8 + $0x9c8] sm:$0xff] }
 0x19b   : > { %3931 = vmatprep.subr.bf16.mxu0 %v9672_v52  ;;  %4223 = vmatprep.subr.bf16.mxu1 %v9674_v58  ;;  %v826_v52 = vld [vmem:[#allocation8 + $0x9e8] sm:$0xff]  ;;  %v9711_v58 = vcombine.low %v813_v38, %v817_v39  ;;  %v9719_v4 = vcombine.low %v821_v48, %v825_v50 }
 0x19c   : > { %3898 = vmatprep.mubr.bf16.mxu0 %v12049_v62  ;;  %4190 = vmatprep.mubr.bf16.mxu1 %v12049_v62  ;;  %v9722_v15 = vcombine.high %v822_v51, %v826_v52 }
 0x19e   : > { %3932 = vmatpush1.bf16.msra.mxu0 %v9671_v13  ;;  %4224 = vmatpush1.bf16.msra.mxu1 %v9673_v0  ;;  %v9720_v13 = vcombine.high %v821_v48, %v825_v50  ;;  %v833_v0 = vld [vmem:[#allocation8 + $0xa20] sm:$0xff] }
 0x19f   : > { %3933 = vmatprep.subr.bf16.mxu0 %v9680_v1  ;;  %4225 = vmatprep.subr.bf16.mxu1 %v9682_v6  ;;  %v12085_v1 = vcombine.high %v12078_v56, %v12081_v57  ;;  %v9721_v6 = vcombine.low %v822_v51, %v826_v52  ;;  %v9728_v7 = vcombine.high %v829_v63, %v833_v0  ;;  %v869_v52 = vld [vmem:[#allocation8 + $0xb40] sm:$0xff] }
 0x1a0   : > { %v9727_v18 = vcombine.low %v829_v63, %v833_v0 }
 0x1a1   : > { %3899 = vmatmul.mubr.bf16.gmra.mrb[4].mxu0 %v12057_v8  ;;  %4191 = vmatmul.mubr.bf16.gmra.mrb[4].mxu1 %v12057_v8 }
 0x1a2   : > { %3934 = vmatpush1.bf16.msra.mxu0 %v9679_v9  ;;  %4226 = vmatpush1.bf16.msra.mxu1 %v9681_v10  ;;  %v9730_v9 = vcombine.high %v830_v2, %v834_v3  ;;  %v837_v10 = vld [vmem:[#allocation8 + $0xa40] sm:$0xff] }
 0x1a3   : > { %3935 = vmatprep.subr.bf16.mxu0 %v9688_v11  ;;  %4227 = vmatprep.subr.bf16.mxu1 %v9690_v19  ;;  %v841_v11 = vld [vmem:[#allocation8 + $0xa60] sm:$0xff]  ;;  %v9729_v19 = vcombine.low %v830_v2, %v834_v3 }
 0x1a4   : > { %3908 = vmatprep.mubr.bf16.mxu0 %v12059_v21  ;;  %4200 = vmatprep.mubr.bf16.mxu1 %v12059_v21  ;;  %v9736_v20 = vcombine.high %v837_v10, %v841_v11  ;;  %v9735_v55 = vcombine.low %v837_v10, %v841_v11  ;;  %v877_v3 = vld [vmem:[#allocation8 + $0xb80] sm:$0xff] }
 0x1a6   : > { %3936 = vmatpush1.bf16.msra.mxu0 %v9687_v22  ;;  %4228 = vmatpush1.bf16.msra.mxu1 %v9689_v23  ;;  %v9738_v22 = vcombine.high %v838_v12, %v842_v14  ;;  %v845_v23 = vld [vmem:[#allocation8 + $0xa80] sm:$0xff] }
 0x1a7   : > { %3937 = vmatprep.subr.bf16.mxu0 %v9696_v24  ;;  %4229 = vmatprep.subr.bf16.mxu1 %v9698_v54  ;;  %v849_v24 = vld [vmem:[#allocation8 + $0xaa0] sm:$0xff]  ;;  %v850_v54 = vld [vmem:[#allocation8 + $0xaa8] sm:$0xff] }
 0x1a8   : > { %v9744_v29 = vcombine.high %v845_v23, %v849_v24  ;;  %v9746_v31 = vcombine.high %v846_v25, %v850_v54  ;;  %v9745_v38 = vcombine.low %v846_v25, %v850_v54  ;;  %v885_v14 = vld [vmem:[#allocation8 + $0xbc0] sm:$0xff] }
 0x1a9   : > { %3909 = vmatmul.mubr.bf16.gmra.mrb[8].mxu0 %v12065_v30  ;;  %4201 = vmatmul.mubr.bf16.gmra.mrb[8].mxu1 %v12065_v30  ;;  %v893_v54 = vld [vmem:[#allocation8 + $0xc00] sm:$0xff] }
 0x1aa   : > { %3938 = vmatpush1.bf16.msra.mxu0 %v9695_v33  ;;  %4230 = vmatpush1.bf16.msra.mxu1 %v9697_v34  ;;  %v857_v33 = vld [vmem:[#allocation8 + $0xae0] sm:$0xff]  ;;  %v854_v34 = vld [vmem:[#allocation8 + $0xac8] sm:$0xff] }
 0x1ab   : > { %3939 = vmatprep.subr.bf16.mxu0 %v9704_v36  ;;  %4231 = vmatprep.subr.bf16.mxu1 %v9706_v37  ;;  %v858_v36 = vld [vmem:[#allocation8 + $0xae8] sm:$0xff]  ;;  %v9743_v37 = vcombine.low %v845_v23, %v849_v24  ;;  %v9752_v39 = vcombine.high %v853_v32, %v857_v33 }
 0x1ac   : > { %3918 = vmatprep.mubr.bf16.mxu0 %v12069_v40  ;;  %4210 = vmatprep.mubr.bf16.mxu1 %v12069_v40  ;;  %v9754_v41 = vcombine.high %v854_v34, %v858_v36  ;;  %v9753_v48 = vcombine.low %v854_v34, %v858_v36  ;;  %v901_v36 = vld [vmem:[#allocation8 + $0xc40] sm:$0xff] }
 0x1ae   : > { %3940 = vmatpush1.bf16.msra.mxu0 %v9703_v43  ;;  %4232 = vmatpush1.bf16.msra.mxu1 %v9705_v44  ;;  %v865_v43 = vld [vmem:[#allocation8 + $0xb20] sm:$0xff]  ;;  %v862_v44 = vld [vmem:[#allocation8 + $0xb08] sm:$0xff] }
 0x1af   : > { %3941 = vmatprep.subr.bf16.mxu0 %v9712_v45  ;;  %4233 = vmatprep.subr.bf16.mxu1 %v9714_v47  ;;  %v866_v45 = vld [vmem:[#allocation8 + $0xb28] sm:$0xff]  ;;  %v9751_v47 = vcombine.low %v853_v32, %v857_v33  ;;  %v9760_v50 = vcombine.high %v861_v42, %v865_v43 }
 0x1b0   : > { %v9762_v51 = vcombine.high %v862_v44, %v866_v45  ;;  %v9761_v63 = vcombine.low %v862_v44, %v866_v45 }
 0x1b1   : > { %3919 = vmatmul.mubr.bf16.gmra.mrb[12].mxu0 %v12075_v53  ;;  %4211 = vmatmul.mubr.bf16.gmra.mrb[12].mxu1 %v12075_v53 }
 0x1b2   : > { %3942 = vmatpush1.bf16.msra.mxu0 %v9711_v58  ;;  %4234 = vmatpush1.bf16.msra.mxu1 %v9713_v61  ;;  %v873_v58 = vld [vmem:[#allocation8 + $0xb60] sm:$0xff]  ;;  %v870_v61 = vld [vmem:[#allocation8 + $0xb48] sm:$0xff] }
 0x1b3   : > { %3943 = vmatprep.subr.bf16.mxu0 %v9720_v13  ;;  %4235 = vmatprep.subr.bf16.mxu1 %v9722_v15  ;;  %v874_v13 = vld [vmem:[#allocation8 + $0xb68] sm:$0xff]  ;;  %v9759_v15 = vcombine.low %v861_v42, %v865_v43  ;;  %v9768_v0 = vcombine.high %v869_v52, %v873_v58  ;;  %v484_v42 = vld [vmem:[%s11953_s21 + $0x50] sm:$0xff] }
 0x1b4   : > { %3961 = vmatprep.mubr.bf16.mxu0 %v12085_v1  ;;  %4253 = vmatprep.mubr.bf16.mxu1 %v12085_v1  ;;  %v9770_v2 = vcombine.high %v870_v61, %v874_v13  ;;  %v9769_v10 = vcombine.low %v870_v61, %v874_v13  ;;  %v488_v43 = vld [vmem:[%s11953_s21 + $0x70] sm:$0xff] }
 0x1b6   : > { %3944 = vmatpush1.bf16.msra.mxu0 %v9719_v4  ;;  %4236 = vmatpush1.bf16.msra.mxu1 %v9721_v6  ;;  %v881_v4 = vld [vmem:[#allocation8 + $0xba0] sm:$0xff]  ;;  %v878_v6 = vld [vmem:[#allocation8 + $0xb88] sm:$0xff] }
 0x1b7   : > { %3945 = vmatprep.subr.bf16.mxu0 %v9728_v7  ;;  %4237 = vmatprep.subr.bf16.mxu1 %v9730_v9  ;;  %v882_v7 = vld [vmem:[#allocation8 + $0xba8] sm:$0xff]  ;;  %v9767_v9 = vcombine.low %v869_v52, %v873_v58  ;;  %v9776_v11 = vcombine.high %v877_v3, %v881_v4  ;;  %v12097_v52 = vcombine.high %v484_v42, %v488_v43 }
 0x1b8   : > { %v9778_v12 = vcombine.high %v878_v6, %v882_v7  ;;  %v9777_v23 = vcombine.low %v878_v6, %v882_v7  ;;  %v910_v58 = vld [vmem:[#allocation8 + $0xc88] sm:$0xff]  ;;  %v492_v6 = vld [vmem:[%s11953_s21 + $0x90] sm:$0xff] }
 0x1b9   : > { %v496_v7 = vld [vmem:[%s11953_s21 + $0xb0] sm:$0xff] }
 0x1ba   : > { %3946 = vmatpush1.bf16.msra.mxu0 %v9727_v18  ;;  %4238 = vmatpush1.bf16.msra.mxu1 %v9729_v19  ;;  %v889_v18 = vld [vmem:[#allocation8 + $0xbe0] sm:$0xff]  ;;  %v886_v19 = vld [vmem:[#allocation8 + $0xbc8] sm:$0xff] }
 0x1bb   : > { %3947 = vmatprep.subr.bf16.mxu0 %v9736_v20  ;;  %4239 = vmatprep.subr.bf16.mxu1 %v9738_v22  ;;  %v890_v20 = vld [vmem:[#allocation8 + $0xbe8] sm:$0xff]  ;;  %v9775_v22 = vcombine.low %v877_v3, %v881_v4  ;;  %v9784_v24 = vcombine.high %v885_v14, %v889_v18  ;;  %v12103_v4 = vcombine.low %v484_v42, %v488_v43  ;;  %v941_v42 = vld [vmem:[#allocation8 + $0xd80] sm:$0xff] }
 0x1bc   : > { %v9786_v25 = vcombine.high %v886_v19, %v890_v20  ;;  %v9785_v32 = vcombine.low %v886_v19, %v890_v20  ;;  %v922_v3 = vld [vmem:[#allocation8 + $0xce8] sm:$0xff]  ;;  %v12107_v19 = vcombine.high %v492_v6, %v496_v7  ;;  %v945_v43 = vld [vmem:[#allocation8 + $0xda0] sm:$0xff] }
 0x1bd   : > { %13053 = vst [vmem:[#allocation25_spill] sm:$0xff] %v12103_v4  ;;  %v926_v20 = vld [vmem:[#allocation8 + $0xd08] sm:$0xff] }
 0x1be   : > { %3948 = vmatpush1.bf16.msra.mxu0 %v9735_v55  ;;  %4240 = vmatpush1.bf16.msra.mxu1 %v9737_v28  ;;  %v897_v55 = vld [vmem:[#allocation8 + $0xc20] sm:$0xff]  ;;  %v894_v28 = vld [vmem:[#allocation8 + $0xc08] sm:$0xff]  ;;  %13054 = vst [vmem:[#allocation26_spill] sm:$0xff] %v12107_v19 }
 0x1bf   : > { %3949 = vmatprep.subr.bf16.mxu0 %v9744_v29  ;;  %4241 = vmatprep.subr.bf16.mxu1 %v9746_v31  ;;  %v898_v29 = vld [vmem:[#allocation8 + $0xc28] sm:$0xff]  ;;  %v9783_v31 = vcombine.low %v885_v14, %v889_v18  ;;  %v9792_v33 = vcombine.high %v893_v54, %v897_v55  ;;  %v9791_v44 = vcombine.low %v893_v54, %v897_v55  ;;  %v925_v14 = vld [vmem:[#allocation8 + $0xd00] sm:$0xff] }
 0x1c0   : > { %v9794_v34 = vcombine.high %v894_v28, %v898_v29  ;;  %v9793_v45 = vcombine.low %v894_v28, %v898_v29  ;;  %v929_v18 = vld [vmem:[#allocation8 + $0xd20] sm:$0xff]  ;;  %v934_v29 = vld [vmem:[#allocation8 + $0xd48] sm:$0xff] }
 0x1c1   : > { %v933_v55 = vld [vmem:[#allocation8 + $0xd40] sm:$0xff] }
 0x1c2   : > { %3950 = vmatpush1.bf16.msra.mxu0 %v9743_v37  ;;  %4242 = vmatpush1.bf16.msra.mxu1 %v9745_v38  ;;  %v905_v37 = vld [vmem:[#allocation8 + $0xc60] sm:$0xff]  ;;  %v902_v38 = vld [vmem:[#allocation8 + $0xc48] sm:$0xff] }
 0x1c3   : > { %3951 = vmatprep.subr.bf16.mxu0 %v9752_v39  ;;  %4243 = vmatprep.subr.bf16.mxu1 %v9754_v41  ;;  %v12093_v39 = vcombine.low %v12078_v56, %v12081_v57  ;;  %v906_v41 = vld [vmem:[#allocation8 + $0xc68] sm:$0xff]  ;;  %v9799_v57 = vcombine.low %v901_v36, %v905_v37  ;;  %v937_v28 = vld [vmem:[#allocation8 + $0xd60] sm:$0xff] }
 0x1c4   : > { %v914_v56 = vld [vmem:[#allocation8 + $0xca8] sm:$0xff]  ;;  %v9801_v61 = vcombine.low %v902_v38, %v906_v41 }
 0x1c6   : > { %3952 = vmatpush1.bf16.msra.mxu0 %v9751_v47  ;;  %4244 = vmatpush1.bf16.msra.mxu1 %v9753_v48  ;;  %v9800_v47 = vcombine.high %v901_v36, %v905_v37  ;;  %v9802_v48 = vcombine.high %v902_v38, %v906_v41  ;;  %v9823_v36 = vcombine.low %v925_v14, %v929_v18 }
 0x1c7   : > { %3953 = vmatprep.subr.bf16.mxu0 %v9760_v50  ;;  %4245 = vmatprep.subr.bf16.mxu1 %v9762_v51  ;;  %v909_v50 = vld [vmem:[#allocation8 + $0xc80] sm:$0xff]  ;;  %v9832_v38 = vcombine.high %v933_v55, %v937_v28 }
 0x1c8   : > { %v913_v51 = vld [vmem:[#allocation8 + $0xca0] sm:$0xff] }
 0x1c9   : > { %v9808_v13 = vcombine.high %v909_v50, %v913_v51 }
 0x1ca   : > { %3954 = vmatpush1.bf16.msra.mxu0 %v9759_v15  ;;  %4246 = vmatpush1.bf16.msra.mxu1 %v9761_v63  ;;  %v9810_v15 = vcombine.high %v910_v58, %v914_v56  ;;  %v917_v63 = vld [vmem:[#allocation8 + $0xcc0] sm:$0xff] }
 0x1cb   : > { %3955 = vmatprep.subr.bf16.mxu0 %v9768_v0  ;;  %4247 = vmatprep.subr.bf16.mxu1 %v9770_v2  ;;  %v921_v0 = vld [vmem:[#allocation8 + $0xce0] sm:$0xff]  ;;  %v918_v2 = vld [vmem:[#allocation8 + $0xcc8] sm:$0xff] }
 0x1ce   : > { %3956 = vmatpush1.bf16.msra.mxu0 %v9767_v9  ;;  %4248 = vmatpush1.bf16.msra.mxu1 %v9769_v10  ;;  %v9807_v9 = vcombine.low %v909_v50, %v913_v51  ;;  %v9809_v10 = vcombine.low %v910_v58, %v914_v56  ;;  %v9840_v51 = vcombine.high %v941_v42, %v945_v43  ;;  %v949_v56 = vld [vmem:[#allocation8 + $0xdc0] sm:$0xff] }
 0x1cf   : > { %3957 = vmatprep.subr.bf16.mxu0 %v9776_v11  ;;  %4249 = vmatprep.subr.bf16.mxu1 %v9778_v12  ;;  %v9816_v11 = vcombine.high %v917_v63, %v921_v0  ;;  %v9818_v12 = vcombine.high %v918_v2, %v922_v3 }
 0x1d2   : > { %3958 = vmatpush1.bf16.msra.mxu0 %v9775_v22  ;;  %4250 = vmatpush1.bf16.msra.mxu1 %v9777_v23  ;;  %v930_v22 = vld [vmem:[#allocation8 + $0xd28] sm:$0xff]  ;;  %v9815_v23 = vcombine.low %v917_v63, %v921_v0  ;;  %v12126_v63 = vld [vmem:[%s11953_s21 + $0x18] sm:$0xff] }
 0x1d3   : > { %3959 = vmatprep.subr.bf16.mxu0 %v9784_v24  ;;  %4251 = vmatprep.subr.bf16.mxu1 %v9786_v25  ;;  %v9817_v24 = vcombine.low %v918_v2, %v922_v3  ;;  %v9824_v25 = vcombine.high %v925_v14, %v929_v18  ;;  %v9826_v54 = vcombine.high %v926_v20, %v930_v22  ;;  %v12129_v0 = vld [vmem:[%s11953_s21 + $0x38] sm:$0xff]  ;;  %v962_v14 = vld [vmem:[#allocation8 + $0xe28] sm:$0xff] }
 0x1d4   : > { %v9825_v37 = vcombine.low %v926_v20, %v930_v22  ;;  %v9839_v2 = vcombine.low %v941_v42, %v945_v43 }
 0x1d6   : > { %3960 = vmatpush1.bf16.msra.mxu0 %v9783_v31  ;;  %4252 = vmatpush1.bf16.msra.mxu1 %v9785_v32  ;;  %v938_v31 = vld [vmem:[#allocation8 + $0xd68] sm:$0xff]  ;;  %v12113_v32 = vcombine.low %v492_v6, %v496_v7 }
 0x1d7   : > { %4002 = vmatprep.subr.bf16.mxu0 %v9792_v33  ;;  %4294 = vmatprep.subr.bf16.mxu1 %v9794_v34  ;;  %v500_v33 = vld [vmem:[%s11953_s21 + $0xd0] sm:$0xff]  ;;  %v9834_v41 = vcombine.high %v934_v29, %v938_v31  ;;  %v9833_v50 = vcombine.low %v934_v29, %v938_v31 }
 0x1d8   : > { %13055 = vst [vmem:[#allocation27_spill] sm:$0xff] %v12113_v32  ;;  %v504_v34 = vld [vmem:[%s11953_s21 + $0xf0] sm:$0xff] }
 0x1d9   : > { %3962 = vmatmul.mubr.bf16.vlgmr.msra.gmra.mrb[0].mxu0 %v12093_v39  ;;  %4254 = vmatmul.mubr.bf16.vlgmr.msra.gmra.mrb[0].mxu1 %v12093_v39 }
 0x1da   : > { %4003 = vmatpush1.bf16.msra.mxu0 %v9791_v44  ;;  %4295 = vmatpush1.bf16.msra.mxu1 %v9793_v45  ;;  %v12117_v44 = vcombine.high %v500_v33, %v504_v34  ;;  %v942_v45 = vld [vmem:[#allocation8 + $0xd88] sm:$0xff] }
 0x1db   : > { %4004 = vmatprep.subr.bf16.mxu0 %v9800_v47  ;;  %4296 = vmatprep.subr.bf16.mxu1 %v9802_v48  ;;  %v946_v47 = vld [vmem:[#allocation8 + $0xda8] sm:$0xff]  ;;  %v9831_v48 = vcombine.low %v933_v55, %v937_v28 }
 0x1dc   : > { %3971 = vmatprep.mubr.bf16.mxu0 %v12097_v52  ;;  %4263 = vmatprep.mubr.bf16.mxu1 %v12097_v52  ;;  %13056 = vst [vmem:[#allocation28_spill] sm:$0xff] %v12117_v44  ;;  %v9842_v58 = vcombine.high %v942_v45, %v946_v47  ;;  %v9841_v3 = vcombine.low %v942_v45, %v946_v47  ;;  %v970_v55 = vld [vmem:[#allocation8 + $0xe68] sm:$0xff]  ;;  %v981_v47 = vld [vmem:[#allocation8 + $0xec0] sm:$0xff] }
 0x1de   : > { %4005 = vmatpush1.bf16.msra.mxu0 %v9799_v57  ;;  %4297 = vmatpush1.bf16.msra.mxu1 %v9801_v61  ;;  %v953_v57 = vld [vmem:[#allocation8 + $0xde0] sm:$0xff]  ;;  %v950_v61 = vld [vmem:[#allocation8 + $0xdc8] sm:$0xff] }
 0x1df   : > { %4006 = vmatprep.subr.bf16.mxu0 %v9808_v13  ;;  %4298 = vmatprep.subr.bf16.mxu1 %v9810_v15  ;;  %v954_v13 = vld [vmem:[#allocation8 + $0xde8] sm:$0xff]  ;;  %v12123_v15 = vcombine.low %v500_v33, %v504_v34  ;;  %v9848_v6 = vcombine.high %v949_v56, %v953_v57  ;;  %v9847_v18 = vcombine.low %v949_v56, %v953_v57  ;;  %v973_v34 = vld [vmem:[#allocation8 + $0xe80] sm:$0xff] }
 0x1e0   : > { %v9850_v7 = vcombine.high %v950_v61, %v954_v13  ;;  %v9849_v20 = vcombine.low %v950_v61, %v954_v13  ;;  %v989_v13 = vld [vmem:[#allocation8 + $0xf00] sm:$0xff] }
 0x1e1   : > { %3972 = vmatmul.mubr.bf16.gmra.mrb[4].mxu0 %v12103_v4  ;;  %4264 = vmatmul.mubr.bf16.gmra.mrb[4].mxu1 %v12103_v4  ;;  %13057 = vst [vmem:[#allocation29_spill] sm:$0xff] %v12123_v15 }
 0x1e2   : > { %4007 = vmatpush1.bf16.msra.mxu0 %v9807_v9  ;;  %4299 = vmatpush1.bf16.msra.mxu1 %v9809_v10  ;;  %v957_v9 = vld [vmem:[#allocation8 + $0xe00] sm:$0xff] }
 0x1e3   : > { %4008 = vmatprep.subr.bf16.mxu0 %v9816_v11  ;;  %4300 = vmatprep.subr.bf16.mxu1 %v9818_v12  ;;  %v961_v10 = vld [vmem:[#allocation8 + $0xe20] sm:$0xff]  ;;  %v12133_v11 = vcombine.high %v12126_v63, %v12129_v0  ;;  %v958_v12 = vld [vmem:[#allocation8 + $0xe08] sm:$0xff] }
 0x1e4   : > { %3981 = vmatprep.mubr.bf16.mxu0 %v12107_v19  ;;  %4273 = vmatprep.mubr.bf16.mxu1 %v12107_v19  ;;  %v9856_v22 = vcombine.high %v957_v9, %v961_v10  ;;  %v9855_v28 = vcombine.low %v957_v9, %v961_v10  ;;  %v9857_v29 = vcombine.low %v958_v12, %v962_v14 }
 0x1e6   : > { %4009 = vmatpush1.bf16.msra.mxu0 %v9815_v23  ;;  %4301 = vmatpush1.bf16.msra.mxu1 %v9817_v24  ;;  %v9858_v23 = vcombine.high %v958_v12, %v962_v14  ;;  %v965_v24 = vld [vmem:[#allocation8 + $0xe40] sm:$0xff] }
 0x1e7   : > { %4010 = vmatprep.subr.bf16.mxu0 %v9824_v25  ;;  %4302 = vmatprep.subr.bf16.mxu1 %v9826_v54  ;;  %v969_v25 = vld [vmem:[#allocation8 + $0xe60] sm:$0xff]  ;;  %v966_v54 = vld [vmem:[#allocation8 + $0xe48] sm:$0xff] }
 0x1e8   : > { %v9864_v31 = vcombine.high %v965_v24, %v969_v25  ;;  %v9866_v33 = vcombine.high %v966_v54, %v970_v55  ;;  %v9865_v42 = vcombine.low %v966_v54, %v970_v55  ;;  %v997_v14 = vld [vmem:[#allocation8 + $0xf40] sm:$0xff] }
 0x1e9   : > { %3982 = vmatmul.mubr.bf16.gmra.mrb[8].mxu0 %v12113_v32  ;;  %4274 = vmatmul.mubr.bf16.gmra.mrb[8].mxu1 %v12113_v32  ;;  %v1005_v55 = vld [vmem:[#allocation8 + $0xf80] sm:$0xff] }
 0x1ea   : > { %4011 = vmatpush1.bf16.msra.mxu0 %v9823_v36  ;;  %4303 = vmatpush1.bf16.msra.mxu1 %v9825_v37  ;;  %v977_v36 = vld [vmem:[#allocation8 + $0xea0] sm:$0xff]  ;;  %v974_v37 = vld [vmem:[#allocation8 + $0xe88] sm:$0xff] }
 0x1eb   : > { %4012 = vmatprep.subr.bf16.mxu0 %v9832_v38  ;;  %4304 = vmatprep.subr.bf16.mxu1 %v9834_v41  ;;  %v978_v38 = vld [vmem:[#allocation8 + $0xea8] sm:$0xff]  ;;  %v9863_v41 = vcombine.low %v965_v24, %v969_v25  ;;  %v9872_v43 = vcombine.high %v973_v34, %v977_v36 }
 0x1ec   : > { %3991 = vmatprep.mubr.bf16.mxu0 %v12117_v44  ;;  %4283 = vmatprep.mubr.bf16.mxu1 %v12117_v44  ;;  %v9874_v45 = vcombine.high %v974_v37, %v978_v38  ;;  %v9873_v56 = vcombine.low %v974_v37, %v978_v38  ;;  %v1013_v38 = vld [vmem:[#allocation8 + $0xfc0] sm:$0xff] }
 0x1ee   : > { %4013 = vmatpush1.bf16.msra.mxu0 %v9831_v48  ;;  %4305 = vmatpush1.bf16.msra.mxu1 %v9833_v50  ;;  %v985_v48 = vld [vmem:[#allocation8 + $0xee0] sm:$0xff]  ;;  %v982_v50 = vld [vmem:[#allocation8 + $0xec8] sm:$0xff] }
 0x1ef   : > { %4014 = vmatprep.subr.bf16.mxu0 %v9840_v51  ;;  %4306 = vmatprep.subr.bf16.mxu1 %v9842_v58  ;;  %v986_v51 = vld [vmem:[#allocation8 + $0xee8] sm:$0xff]  ;;  %v9871_v58 = vcombine.low %v973_v34, %v977_v36  ;;  %v9880_v57 = vcombine.high %v981_v47, %v985_v48 }
 0x1f0   : > { %v9882_v61 = vcombine.high %v982_v50, %v986_v51  ;;  %v9881_v9 = vcombine.low %v982_v50, %v986_v51  ;;  %v511_v51 = vld [vmem:[#allocation8 + $0x10] sm:$0xff] }
 0x1f1   : > { %3992 = vmatmul.mubr.bf16.gmra.mrb[12].mxu0 %v12123_v15  ;;  %4284 = vmatmul.mubr.bf16.gmra.mrb[12].mxu1 %v12123_v15 }
 0x1f2   : > { %4015 = vmatpush1.bf16.msra.mxu0 %v9839_v2  ;;  %4307 = vmatpush1.bf16.msra.mxu1 %v9841_v3  ;;  %v993_v2 = vld [vmem:[#allocation8 + $0xf20] sm:$0xff]  ;;  %v990_v3 = vld [vmem:[#allocation8 + $0xf08] sm:$0xff] }
 0x1f3   : > { %4016 = vmatprep.subr.bf16.mxu0 %v9848_v6  ;;  %4308 = vmatprep.subr.bf16.mxu1 %v9850_v7  ;;  %v994_v6 = vld [vmem:[#allocation8 + $0xf28] sm:$0xff]  ;;  %v9879_v7 = vcombine.low %v981_v47, %v985_v48  ;;  %v9888_v10 = vcombine.high %v989_v13, %v993_v2 }
 0x1f4   : > { %4034 = vmatprep.mubr.bf16.mxu0 %v12133_v11  ;;  %4326 = vmatprep.mubr.bf16.mxu1 %v12133_v11  ;;  %v9890_v12 = vcombine.high %v990_v3, %v994_v6  ;;  %v9889_v24 = vcombine.low %v990_v3, %v994_v6  ;;  %v519_v6 = vld [vmem:[#allocation8 + $0x50] sm:$0xff] }
 0x1f6   : > { %4017 = vmatpush1.bf16.msra.mxu0 %v9847_v18  ;;  %4309 = vmatpush1.bf16.msra.mxu1 %v9849_v20  ;;  %v1001_v18 = vld [vmem:[#allocation8 + $0xf60] sm:$0xff]  ;;  %v998_v20 = vld [vmem:[#allocation8 + $0xf48] sm:$0xff] }
 0x1f7   : > { %4018 = vmatprep.subr.bf16.mxu0 %v9856_v22  ;;  %4310 = vmatprep.subr.bf16.mxu1 %v9858_v23  ;;  %v1002_v22 = vld [vmem:[#allocation8 + $0xf68] sm:$0xff]  ;;  %v9887_v23 = vcombine.low %v989_v13, %v993_v2  ;;  %v9896_v25 = vcombine.high %v997_v14, %v1001_v18 }
 0x1f8   : > { %v9898_v54 = vcombine.high %v998_v20, %v1002_v22  ;;  %v9897_v34 = vcombine.low %v998_v20, %v1002_v22 }
 0x1fa   : > { %4019 = vmatpush1.bf16.msra.mxu0 %v9855_v28  ;;  %4311 = vmatpush1.bf16.msra.mxu1 %v9857_v29  ;;  %v1009_v28 = vld [vmem:[#allocation8 + $0xfa0] sm:$0xff]  ;;  %v1006_v29 = vld [vmem:[#allocation8 + $0xf88] sm:$0xff] }
 0x1fb   : > { %4020 = vmatprep.subr.bf16.mxu0 %v9864_v31  ;;  %4312 = vmatprep.subr.bf16.mxu1 %v9866_v33  ;;  %v1010_v31 = vld [vmem:[#allocation8 + $0xfa8] sm:$0xff]  ;;  %v9895_v33 = vcombine.low %v997_v14, %v1001_v18  ;;  %v9904_v36 = vcombine.high %v1005_v55, %v1009_v28  ;;  %v485_v14 = vld [vmem:[%s11953_s21 + $0x58] sm:$0xff] }
 0x1fc   : > { %v9906_v37 = vcombine.high %v1006_v29, %v1010_v31  ;;  %v9905_v47 = vcombine.low %v1006_v29, %v1010_v31  ;;  %v489_v18 = vld [vmem:[%s11953_s21 + $0x78] sm:$0xff] }
 0x1fe   : > { %4021 = vmatpush1.bf16.msra.mxu0 %v9863_v41  ;;  %4313 = vmatpush1.bf16.msra.mxu1 %v9865_v42  ;;  %v1017_v41 = vld [vmem:[#allocation8 + $0xfe0] sm:$0xff]  ;;  %v1014_v42 = vld [vmem:[#allocation8 + $0xfc8] sm:$0xff] }
 0x1ff   : > { %4022 = vmatprep.subr.bf16.mxu0 %v9872_v43  ;;  %4314 = vmatprep.subr.bf16.mxu1 %v9874_v45  ;;  %v1018_v43 = vld [vmem:[#allocation8 + $0xfe8] sm:$0xff]  ;;  %v9903_v45 = vcombine.low %v1005_v55, %v1009_v28  ;;  %v9912_v48 = vcombine.high %v1013_v38, %v1017_v41  ;;  %v531_v55 = vld [vmem:[#allocation8 + $0xb0] sm:$0xff]  ;;  %v528_v28 = vld [vmem:[#allocation8 + $0x98] sm:$0xff] }
 0x200   : > { %v9914_v50 = vcombine.high %v1014_v42, %v1018_v43  ;;  %v9913_v13 = vcombine.low %v1014_v42, %v1018_v43  ;;  %v493_v42 = vld [vmem:[%s11953_s21 + $0x98] sm:$0xff] }
 0x201   : > { %v497_v43 = vld [vmem:[%s11953_s21 + $0xb8] sm:$0xff] }
 0x202   : > { %4023 = vmatpush1.bf16.msra.mxu0 %v9871_v58  ;;  %4315 = vmatpush1.bf16.msra.mxu1 %v9873_v56  ;;  %v515_v58 = vld [vmem:[#allocation8 + $0x30] sm:$0xff]  ;;  %v512_v56 = vld [vmem:[#allocation8 + $0x18] sm:$0xff] }
 0x203   : > { %4024 = vmatprep.subr.bf16.mxu0 %v9880_v57  ;;  %4316 = vmatprep.subr.bf16.mxu1 %v9882_v61  ;;  %v516_v57 = vld [vmem:[#allocation8 + $0x38] sm:$0xff]  ;;  %v9911_v61 = vcombine.low %v1013_v38, %v1017_v41  ;;  %v9412_v2 = vcombine.high %v511_v51, %v515_v58  ;;  %v9411_v20 = vcombine.low %v511_v51, %v515_v58  ;;  %v543_v58 = vld [vmem:[#allocation8 + $0x110] sm:$0xff] }
 0x204   : > { %v9414_v3 = vcombine.high %v512_v56, %v516_v57  ;;  %v9413_v22 = vcombine.low %v512_v56, %v516_v57  ;;  %v12151_v38 = vcombine.low %v485_v14, %v489_v18  ;;  %v540_v41 = vld [vmem:[#allocation8 + $0xf8] sm:$0xff]  ;;  %v12155_v51 = vcombine.high %v493_v42, %v497_v43  ;;  %v547_v56 = vld [vmem:[#allocation8 + $0x130] sm:$0xff] }
 0x205   : > { %v544_v57 = vld [vmem:[#allocation8 + $0x118] sm:$0xff] }
 0x206   : > { %4025 = vmatpush1.bf16.msra.mxu0 %v9879_v7  ;;  %4317 = vmatpush1.bf16.msra.mxu1 %v9881_v9  ;;  %v523_v7 = vld [vmem:[#allocation8 + $0x70] sm:$0xff]  ;;  %v520_v9 = vld [vmem:[#allocation8 + $0x58] sm:$0xff]  ;;  %13058 = vst [vmem:[#allocation30_spill] sm:$0xff] %v12155_v51 }
 0x207   : > { %4026 = vmatprep.subr.bf16.mxu0 %v9888_v10  ;;  %4318 = vmatprep.subr.bf16.mxu1 %v9890_v12  ;;  %v12141_v10 = vcombine.low %v12126_v63, %v12129_v0  ;;  %v524_v12 = vld [vmem:[#allocation8 + $0x78] sm:$0xff]  ;;  %v9419_v0 = vcombine.low %v519_v6, %v523_v7 }
 0x208   : > { %v532_v63 = vld [vmem:[#allocation8 + $0xb8] sm:$0xff]  ;;  %v9421_v29 = vcombine.low %v520_v9, %v524_v12 }
 0x20a   : > { %4027 = vmatpush1.bf16.msra.mxu0 %v9887_v23  ;;  %4319 = vmatpush1.bf16.msra.mxu1 %v9889_v24  ;;  %v9420_v23 = vcombine.high %v519_v6, %v523_v7  ;;  %v9422_v24 = vcombine.high %v520_v9, %v524_v12  ;;  %v551_v7 = vld [vmem:[#allocation8 + $0x150] sm:$0xff]  ;;  %v552_v12 = vld [vmem:[#allocation8 + $0x158] sm:$0xff] }
 0x20b   : > { %4028 = vmatprep.subr.bf16.mxu0 %v9896_v25  ;;  %4320 = vmatprep.subr.bf16.mxu1 %v9898_v54  ;;  %v12145_v25 = vcombine.high %v485_v14, %v489_v18  ;;  %v527_v54 = vld [vmem:[#allocation8 + $0x90] sm:$0xff]  ;;  %v12161_v14 = vcombine.low %v493_v42, %v497_v43  ;;  %v556_v18 = vld [vmem:[#allocation8 + $0x178] sm:$0xff] }
 0x20c   : > { %v9428_v31 = vcombine.high %v527_v54, %v531_v55  ;;  %v555_v9 = vld [vmem:[#allocation8 + $0x170] sm:$0xff] }
 0x20d   : > { %13059 = vst [vmem:[#allocation31_spill] sm:$0xff] %v12161_v14  ;;  %v571_v42 = vld [vmem:[#allocation8 + $0x1f0] sm:$0xff] }
 0x20e   : > { %4029 = vmatpush1.bf16.msra.mxu0 %v9895_v33  ;;  %4321 = vmatpush1.bf16.msra.mxu1 %v9897_v34  ;;  %v9430_v33 = vcombine.high %v528_v28, %v532_v63  ;;  %v535_v34 = vld [vmem:[#allocation8 + $0xd0] sm:$0xff] }
 0x20f   : > { %4030 = vmatprep.subr.bf16.mxu0 %v9904_v36  ;;  %4322 = vmatprep.subr.bf16.mxu1 %v9906_v37  ;;  %v539_v36 = vld [vmem:[#allocation8 + $0xf0] sm:$0xff]  ;;  %v536_v37 = vld [vmem:[#allocation8 + $0xd8] sm:$0xff] }
 0x212   : > { %4031 = vmatpush1.bf16.msra.mxu0 %v9903_v45  ;;  %4323 = vmatpush1.bf16.msra.mxu1 %v9905_v47  ;;  %v9427_v45 = vcombine.low %v527_v54, %v531_v55  ;;  %v9429_v47 = vcombine.low %v528_v28, %v532_v63  ;;  %v9452_v54 = vcombine.high %v551_v7, %v555_v9  ;;  %v559_v63 = vld [vmem:[#allocation8 + $0x190] sm:$0xff] }
 0x213   : > { %4032 = vmatprep.subr.bf16.mxu0 %v9912_v48  ;;  %4324 = vmatprep.subr.bf16.mxu1 %v9914_v50  ;;  %v9436_v48 = vcombine.high %v535_v34, %v539_v36  ;;  %v9438_v50 = vcombine.high %v536_v37, %v540_v41  ;;  %v9454_v55 = vcombine.high %v552_v12, %v556_v18 }
 0x216   : > { %4033 = vmatpush1.bf16.msra.mxu0 %v9911_v61  ;;  %4325 = vmatpush1.bf16.msra.mxu1 %v9913_v13  ;;  %v548_v61 = vld [vmem:[#allocation8 + $0x138] sm:$0xff]  ;;  %v9435_v13 = vcombine.low %v535_v34, %v539_v36  ;;  %v9453_v34 = vcombine.low %v552_v12, %v556_v18  ;;  %v583_v12 = vld [vmem:[#allocation8 + $0x250] sm:$0xff] }
 0x217   : > { %4367 = vmatprep.subr.bf16.mxu0 %v9412_v2  ;;  %4659 = vmatprep.subr.bf16.mxu1 %v9414_v3  ;;  %v9437_v2 = vcombine.low %v536_v37, %v540_v41  ;;  %v9444_v3 = vcombine.high %v543_v58, %v547_v56  ;;  %v9446_v6 = vcombine.high %v544_v57, %v548_v61  ;;  %v567_v41 = vld [vmem:[#allocation8 + $0x1d0] sm:$0xff] }
 0x218   : > { %v587_v18 = vld [vmem:[#allocation8 + $0x270] sm:$0xff] }
 0x219   : > { %4035 = vmatmul.mubr.bf16.vlgmr.msra.gmra.mrb[0].mxu0 %v12141_v10  ;;  %4327 = vmatmul.mubr.bf16.vlgmr.msra.gmra.mrb[0].mxu1 %v12141_v10 }
 0x21a   : > { %4368 = vmatpush1.bf16.msra.mxu0 %v9411_v20  ;;  %4660 = vmatpush1.bf16.msra.mxu1 %v9413_v22  ;;  %v501_v20 = vld [vmem:[%s11953_s21 + $0xd8] sm:$0xff] }
 0x21b   : > { %4369 = vmatprep.subr.bf16.mxu0 %v9420_v23  ;;  %4661 = vmatprep.subr.bf16.mxu1 %v9422_v24  ;;  %v505_v22 = vld [vmem:[%s11953_s21 + $0xf8] sm:$0xff]  ;;  %v9443_v23 = vcombine.low %v543_v58, %v547_v56  ;;  %v9445_v24 = vcombine.low %v544_v57, %v548_v61  ;;  %v9468_v58 = vcombine.high %v567_v41, %v571_v42  ;;  %v575_v57 = vld [vmem:[#allocation8 + $0x210] sm:$0xff] }
 0x21c   : > { %4044 = vmatprep.mubr.bf16.mxu0 %v12145_v25  ;;  %4336 = vmatprep.mubr.bf16.mxu1 %v12145_v25  ;;  %v12165_v28 = vcombine.high %v501_v20, %v505_v22  ;;  %v12171_v43 = vcombine.low %v501_v20, %v505_v22  ;;  %v579_v61 = vld [vmem:[#allocation8 + $0x230] sm:$0xff]  ;;  %v584_v20 = vld [vmem:[#allocation8 + $0x258] sm:$0xff] }
 0x21d   : > { %v588_v22 = vld [vmem:[#allocation8 + $0x278] sm:$0xff] }
 0x21e   : > { %4370 = vmatpush1.bf16.msra.mxu0 %v9419_v0  ;;  %4662 = vmatpush1.bf16.msra.mxu1 %v9421_v29  ;;  %13060 = vst [vmem:[#allocation32_spill] sm:$0xff] %v12165_v28  ;;  %v563_v0 = vld [vmem:[#allocation8 + $0x1b0] sm:$0xff]  ;;  %v560_v29 = vld [vmem:[#allocation8 + $0x198] sm:$0xff]  ;;  %13061 = vst [vmem:[#allocation33_spill] sm:$0xff] %v12171_v43 }
 0x21f   : > { %4371 = vmatprep.subr.bf16.mxu0 %v9428_v31  ;;  %4663 = vmatprep.subr.bf16.mxu1 %v9430_v33  ;;  %v564_v31 = vld [vmem:[#allocation8 + $0x1b8] sm:$0xff]  ;;  %v9451_v33 = vcombine.low %v551_v7, %v555_v9  ;;  %v9460_v36 = vcombine.high %v559_v63, %v563_v0  ;;  %v9476_v7 = vcombine.high %v575_v57, %v579_v61 }
 0x220   : > { %v9462_v37 = vcombine.high %v560_v29, %v564_v31 }
 0x221   : > { %4045 = vmatmul.mubr.bf16.gmra.mrb[4].mxu0 %v12151_v38  ;;  %4337 = vmatmul.mubr.bf16.gmra.mrb[4].mxu1 %v12151_v38 }
 0x222   : > { %4372 = vmatpush1.bf16.msra.mxu0 %v9427_v45  ;;  %4664 = vmatpush1.bf16.msra.mxu1 %v9429_v47  ;;  %v568_v45 = vld [vmem:[#allocation8 + $0x1d8] sm:$0xff] }
 0x223   : > { %4373 = vmatprep.subr.bf16.mxu0 %v9436_v48  ;;  %4665 = vmatprep.subr.bf16.mxu1 %v9438_v50  ;;  %v572_v47 = vld [vmem:[#allocation8 + $0x1f8] sm:$0xff]  ;;  %v9459_v48 = vcombine.low %v559_v63, %v563_v0  ;;  %v9461_v50 = vcombine.low %v560_v29, %v564_v31  ;;  %v591_v63 = vld [vmem:[#allocation8 + $0x290] sm:$0xff] }
 0x224   : > { %4054 = vmatprep.mubr.bf16.mxu0 %v12155_v51  ;;  %4346 = vmatprep.mubr.bf16.mxu1 %v12155_v51  ;;  %v9470_v56 = vcombine.high %v568_v45, %v572_v47  ;;  %v595_v0 = vld [vmem:[#allocation8 + $0x2b0] sm:$0xff]  ;;  %v592_v29 = vld [vmem:[#allocation8 + $0x298] sm:$0xff] }
 0x225   : > { %v596_v31 = vld [vmem:[#allocation8 + $0x2b8] sm:$0xff] }
 0x226   : > { %4374 = vmatpush1.bf16.msra.mxu0 %v9435_v13  ;;  %4666 = vmatpush1.bf16.msra.mxu1 %v9437_v2  ;;  %v576_v13 = vld [vmem:[#allocation8 + $0x218] sm:$0xff] }
 0x227   : > { %4375 = vmatprep.subr.bf16.mxu0 %v9444_v3  ;;  %4667 = vmatprep.subr.bf16.mxu1 %v9446_v6  ;;  %v580_v2 = vld [vmem:[#allocation8 + $0x238] sm:$0xff]  ;;  %v9467_v3 = vcombine.low %v567_v41, %v571_v42  ;;  %v9469_v6 = vcombine.low %v568_v45, %v572_v47  ;;  %v599_v41 = vld [vmem:[#allocation8 + $0x2d0] sm:$0xff] }
 0x228   : > { %v9478_v9 = vcombine.high %v576_v13, %v580_v2  ;;  %v603_v42 = vld [vmem:[#allocation8 + $0x2f0] sm:$0xff]  ;;  %v600_v45 = vld [vmem:[#allocation8 + $0x2d8] sm:$0xff] }
 0x229   : > { %4055 = vmatmul.mubr.bf16.gmra.mrb[8].mxu0 %v12161_v14  ;;  %4347 = vmatmul.mubr.bf16.gmra.mrb[8].mxu1 %v12161_v14  ;;  %v604_v47 = vld [vmem:[#allocation8 + $0x2f8] sm:$0xff] }
 0x22a   : > { %4376 = vmatpush1.bf16.msra.mxu0 %v9443_v23  ;;  %4668 = vmatpush1.bf16.msra.mxu1 %v9445_v24  ;;  %v9475_v23 = vcombine.low %v575_v57, %v579_v61  ;;  %v9477_v24 = vcombine.low %v576_v13, %v580_v2  ;;  %v607_v57 = vld [vmem:[#allocation8 + $0x310] sm:$0xff]  ;;  %v608_v13 = vld [vmem:[#allocation8 + $0x318] sm:$0xff] }
 0x22b   : > { %4377 = vmatprep.subr.bf16.mxu0 %v9452_v54  ;;  %4669 = vmatprep.subr.bf16.mxu1 %v9454_v55  ;;  %v9484_v54 = vcombine.high %v583_v12, %v587_v18  ;;  %v9486_v55 = vcombine.high %v584_v20, %v588_v22  ;;  %v611_v61 = vld [vmem:[#allocation8 + $0x330] sm:$0xff]  ;;  %v612_v2 = vld [vmem:[#allocation8 + $0x338] sm:$0xff] }
 0x22c   : > { %4064 = vmatprep.mubr.bf16.mxu0 %v12165_v28  ;;  %4356 = vmatprep.mubr.bf16.mxu1 %v12165_v28 }
 0x22e   : > { %4378 = vmatpush1.bf16.msra.mxu0 %v9451_v33  ;;  %4670 = vmatpush1.bf16.msra.mxu1 %v9453_v34  ;;  %v9483_v33 = vcombine.low %v583_v12, %v587_v18  ;;  %v9485_v34 = vcombine.low %v584_v20, %v588_v22  ;;  %v615_v12 = vld [vmem:[#allocation8 + $0x350] sm:$0xff]  ;;  %v616_v20 = vld [vmem:[#allocation8 + $0x358] sm:$0xff] }
 0x22f   : > { %4379 = vmatprep.subr.bf16.mxu0 %v9460_v36  ;;  %4671 = vmatprep.subr.bf16.mxu1 %v9462_v37  ;;  %v9492_v36 = vcombine.high %v591_v63, %v595_v0  ;;  %v9494_v37 = vcombine.high %v592_v29, %v596_v31  ;;  %v619_v18 = vld [vmem:[#allocation8 + $0x370] sm:$0xff]  ;;  %v620_v22 = vld [vmem:[#allocation8 + $0x378] sm:$0xff] }
 0x231   : > { %4065 = vmatmul.mubr.bf16.gmra.mrb[12].mxu0 %v12171_v43  ;;  %4357 = vmatmul.mubr.bf16.gmra.mrb[12].mxu1 %v12171_v43 }
 0x232   : > { %4380 = vmatpush1.bf16.msra.mxu0 %v9459_v48  ;;  %4672 = vmatpush1.bf16.msra.mxu1 %v9461_v50  ;;  %v9491_v48 = vcombine.low %v591_v63, %v595_v0  ;;  %v9493_v50 = vcombine.low %v592_v29, %v596_v31  ;;  %v623_v63 = vld [vmem:[#allocation8 + $0x390] sm:$0xff]  ;;  %v624_v29 = vld [vmem:[#allocation8 + $0x398] sm:$0xff] }
 0x233   : > { %4381 = vmatprep.subr.bf16.mxu0 %v9468_v58  ;;  %4673 = vmatprep.subr.bf16.mxu1 %v9470_v56  ;;  %v9500_v58 = vcombine.high %v599_v41, %v603_v42  ;;  %v9502_v56 = vcombine.high %v600_v45, %v604_v47  ;;  %v627_v0 = vld [vmem:[#allocation8 + $0x3b0] sm:$0xff]  ;;  %v628_v31 = vld [vmem:[#allocation8 + $0x3b8] sm:$0xff] }
 0x234   : > { %4399 = vmatprep.mubr.bf16.mxu0 %v11991_v59  ;;  %4691 = vmatprep.mubr.bf16.mxu1 %v11991_v59 }
 0x236   : > { %4382 = vmatpush1.bf16.msra.mxu0 %v9467_v3  ;;  %4674 = vmatpush1.bf16.msra.mxu1 %v9469_v6  ;;  %v9499_v3 = vcombine.low %v599_v41, %v603_v42  ;;  %v9501_v6 = vcombine.low %v600_v45, %v604_v47  ;;  %v631_v41 = vld [vmem:[#allocation8 + $0x3d0] sm:$0xff]  ;;  %v632_v45 = vld [vmem:[#allocation8 + $0x3d8] sm:$0xff] }
 0x237   : > { %4383 = vmatprep.subr.bf16.mxu0 %v9476_v7  ;;  %4675 = vmatprep.subr.bf16.mxu1 %v9478_v9  ;;  %v9508_v7 = vcombine.high %v607_v57, %v611_v61  ;;  %v9510_v9 = vcombine.high %v608_v13, %v612_v2  ;;  %v635_v42 = vld [vmem:[#allocation8 + $0x3f0] sm:$0xff]  ;;  %v636_v47 = vld [vmem:[#allocation8 + $0x3f8] sm:$0xff] }
 0x23a   : > { %4384 = vmatpush1.bf16.msra.mxu0 %v9475_v23  ;;  %4676 = vmatpush1.bf16.msra.mxu1 %v9477_v24  ;;  %v9507_v23 = vcombine.low %v607_v57, %v611_v61  ;;  %v9509_v24 = vcombine.low %v608_v13, %v612_v2  ;;  %v639_v57 = vld [vmem:[#allocation8 + $0x410] sm:$0xff]  ;;  %v640_v13 = vld [vmem:[#allocation8 + $0x418] sm:$0xff] }
 0x23b   : > { %4385 = vmatprep.subr.bf16.mxu0 %v9484_v54  ;;  %4677 = vmatprep.subr.bf16.mxu1 %v9486_v55  ;;  %v9516_v54 = vcombine.high %v615_v12, %v619_v18  ;;  %v9518_v55 = vcombine.high %v616_v20, %v620_v22  ;;  %v643_v61 = vld [vmem:[#allocation8 + $0x430] sm:$0xff]  ;;  %v644_v2 = vld [vmem:[#allocation8 + $0x438] sm:$0xff] }
 0x23e   : > { %4386 = vmatpush1.bf16.msra.mxu0 %v9483_v33  ;;  %4678 = vmatpush1.bf16.msra.mxu1 %v9485_v34  ;;  %v9515_v33 = vcombine.low %v615_v12, %v619_v18  ;;  %v9517_v34 = vcombine.low %v616_v20, %v620_v22  ;;  %v647_v12 = vld [vmem:[#allocation8 + $0x450] sm:$0xff]  ;;  %v648_v20 = vld [vmem:[#allocation8 + $0x458] sm:$0xff] }
 0x23f   : > { %4387 = vmatprep.subr.bf16.mxu0 %v9492_v36  ;;  %4679 = vmatprep.subr.bf16.mxu1 %v9494_v37  ;;  %v9524_v36 = vcombine.high %v623_v63, %v627_v0  ;;  %v9526_v37 = vcombine.high %v624_v29, %v628_v31  ;;  %v651_v18 = vld [vmem:[#allocation8 + $0x470] sm:$0xff]  ;;  %v652_v22 = vld [vmem:[#allocation8 + $0x478] sm:$0xff] }
 0x242   : > { %4388 = vmatpush1.bf16.msra.mxu0 %v9491_v48  ;;  %4680 = vmatpush1.bf16.msra.mxu1 %v9493_v50  ;;  %v9523_v48 = vcombine.low %v623_v63, %v627_v0  ;;  %v9525_v50 = vcombine.low %v624_v29, %v628_v31  ;;  %v655_v63 = vld [vmem:[#allocation8 + $0x490] sm:$0xff]  ;;  %v656_v29 = vld [vmem:[#allocation8 + $0x498] sm:$0xff] }
 0x243   : > { %4389 = vmatprep.subr.bf16.mxu0 %v9500_v58  ;;  %4681 = vmatprep.subr.bf16.mxu1 %v9502_v56  ;;  %v9532_v58 = vcombine.high %v631_v41, %v635_v42  ;;  %v9534_v56 = vcombine.high %v632_v45, %v636_v47  ;;  %v659_v0 = vld [vmem:[#allocation8 + $0x4b0] sm:$0xff]  ;;  %v660_v31 = vld [vmem:[#allocation8 + $0x4b8] sm:$0xff] }
 0x246   : > { %4390 = vmatpush1.bf16.msra.mxu0 %v9499_v3  ;;  %4682 = vmatpush1.bf16.msra.mxu1 %v9501_v6  ;;  %v9531_v3 = vcombine.low %v631_v41, %v635_v42  ;;  %v9533_v6 = vcombine.low %v632_v45, %v636_v47  ;;  %v663_v41 = vld [vmem:[#allocation8 + $0x4d0] sm:$0xff]  ;;  %v664_v45 = vld [vmem:[#allocation8 + $0x4d8] sm:$0xff] }
 0x247   : > { %4391 = vmatprep.subr.bf16.mxu0 %v9508_v7  ;;  %4683 = vmatprep.subr.bf16.mxu1 %v9510_v9  ;;  %v9540_v7 = vcombine.high %v639_v57, %v643_v61  ;;  %v9542_v9 = vcombine.high %v640_v13, %v644_v2  ;;  %v667_v42 = vld [vmem:[#allocation8 + $0x4f0] sm:$0xff]  ;;  %v668_v47 = vld [vmem:[#allocation8 + $0x4f8] sm:$0xff] }
 0x24a   : > { %4392 = vmatpush1.bf16.msra.mxu0 %v9507_v23  ;;  %4684 = vmatpush1.bf16.msra.mxu1 %v9509_v24  ;;  %v9539_v23 = vcombine.low %v639_v57, %v643_v61  ;;  %v9541_v24 = vcombine.low %v640_v13, %v644_v2  ;;  %v671_v57 = vld [vmem:[#allocation8 + $0x510] sm:$0xff]  ;;  %v672_v13 = vld [vmem:[#allocation8 + $0x518] sm:$0xff] }
 0x24b   : > { %4393 = vmatprep.subr.bf16.mxu0 %v9516_v54  ;;  %4685 = vmatprep.subr.bf16.mxu1 %v9518_v55  ;;  %v9548_v54 = vcombine.high %v647_v12, %v651_v18  ;;  %v9550_v55 = vcombine.high %v648_v20, %v652_v22  ;;  %v675_v61 = vld [vmem:[#allocation8 + $0x530] sm:$0xff]  ;;  %v676_v2 = vld [vmem:[#allocation8 + $0x538] sm:$0xff] }
 0x24e   : > { %4394 = vmatpush1.bf16.msra.mxu0 %v9515_v33  ;;  %4686 = vmatpush1.bf16.msra.mxu1 %v9517_v34  ;;  %v9547_v33 = vcombine.low %v647_v12, %v651_v18  ;;  %v9549_v34 = vcombine.low %v648_v20, %v652_v22  ;;  %v679_v12 = vld [vmem:[#allocation8 + $0x550] sm:$0xff]  ;;  %v680_v20 = vld [vmem:[#allocation8 + $0x558] sm:$0xff] }
 0x24f   : > { %4395 = vmatprep.subr.bf16.mxu0 %v9524_v36  ;;  %4687 = vmatprep.subr.bf16.mxu1 %v9526_v37  ;;  %v9556_v36 = vcombine.high %v655_v63, %v659_v0  ;;  %v9558_v37 = vcombine.high %v656_v29, %v660_v31  ;;  %v683_v18 = vld [vmem:[#allocation8 + $0x570] sm:$0xff]  ;;  %v684_v22 = vld [vmem:[#allocation8 + $0x578] sm:$0xff] }
 0x252   : > { %4396 = vmatpush1.bf16.msra.mxu0 %v9523_v48  ;;  %4688 = vmatpush1.bf16.msra.mxu1 %v9525_v50  ;;  %v9555_v48 = vcombine.low %v655_v63, %v659_v0  ;;  %v9557_v50 = vcombine.low %v656_v29, %v660_v31  ;;  %v687_v63 = vld [vmem:[#allocation8 + $0x590] sm:$0xff]  ;;  %v688_v29 = vld [vmem:[#allocation8 + $0x598] sm:$0xff] }
 0x253   : > { %4397 = vmatprep.subr.bf16.mxu0 %v9532_v58  ;;  %4689 = vmatprep.subr.bf16.mxu1 %v9534_v56  ;;  %v9564_v58 = vcombine.high %v663_v41, %v667_v42  ;;  %v9566_v56 = vcombine.high %v664_v45, %v668_v47  ;;  %v691_v0 = vld [vmem:[#allocation8 + $0x5b0] sm:$0xff]  ;;  %v692_v31 = vld [vmem:[#allocation8 + $0x5b8] sm:$0xff] }
 0x256   : > { %4398 = vmatpush1.bf16.msra.mxu0 %v9531_v3  ;;  %4690 = vmatpush1.bf16.msra.mxu1 %v9533_v6  ;;  %v9563_v3 = vcombine.low %v663_v41, %v667_v42  ;;  %v9565_v6 = vcombine.low %v664_v45, %v668_v47  ;;  %v695_v41 = vld [vmem:[#allocation8 + $0x5d0] sm:$0xff]  ;;  %v696_v45 = vld [vmem:[#allocation8 + $0x5d8] sm:$0xff] }
 0x257   : > { %4440 = vmatprep.subr.bf16.mxu0 %v9540_v7  ;;  %4732 = vmatprep.subr.bf16.mxu1 %v9542_v9  ;;  %v9572_v7 = vcombine.high %v671_v57, %v675_v61  ;;  %v9574_v9 = vcombine.high %v672_v13, %v676_v2  ;;  %v699_v42 = vld [vmem:[#allocation8 + $0x5f0] sm:$0xff]  ;;  %v700_v47 = vld [vmem:[#allocation8 + $0x5f8] sm:$0xff] }
 0x259   : > { %4400 = vmatmul.mubr.bf16.vlgmr.msra.gmra.mrb[16].mxu0 %v11997_v16  ;;  %4692 = vmatmul.mubr.bf16.vlgmr.msra.gmra.mrb[16].mxu1 %v11997_v16 }
 0x25a   : > { %4441 = vmatpush1.bf16.msra.mxu0 %v9539_v23  ;;  %4733 = vmatpush1.bf16.msra.mxu1 %v9541_v24  ;;  %v9571_v23 = vcombine.low %v671_v57, %v675_v61  ;;  %v9573_v24 = vcombine.low %v672_v13, %v676_v2  ;;  %v703_v57 = vld [vmem:[#allocation8 + $0x610] sm:$0xff]  ;;  %v704_v13 = vld [vmem:[#allocation8 + $0x618] sm:$0xff] }
 0x25b   : > { %4442 = vmatprep.subr.bf16.mxu0 %v9548_v54  ;;  %4734 = vmatprep.subr.bf16.mxu1 %v9550_v55  ;;  %v9580_v54 = vcombine.high %v679_v12, %v683_v18  ;;  %v9582_v55 = vcombine.high %v680_v20, %v684_v22  ;;  %v707_v61 = vld [vmem:[#allocation8 + $0x630] sm:$0xff]  ;;  %v708_v2 = vld [vmem:[#allocation8 + $0x638] sm:$0xff] }
 0x25c   : > { %4409 = vmatprep.mubr.bf16.mxu0 %v12001_v26  ;;  %4701 = vmatprep.mubr.bf16.mxu1 %v12001_v26 }
 0x25e   : > { %4443 = vmatpush1.bf16.msra.mxu0 %v9547_v33  ;;  %4735 = vmatpush1.bf16.msra.mxu1 %v9549_v34  ;;  %v9579_v33 = vcombine.low %v679_v12, %v683_v18  ;;  %v9581_v34 = vcombine.low %v680_v20, %v684_v22  ;;  %v711_v12 = vld [vmem:[#allocation8 + $0x650] sm:$0xff]  ;;  %v712_v20 = vld [vmem:[#allocation8 + $0x658] sm:$0xff] }
 0x25f   : > { %4444 = vmatprep.subr.bf16.mxu0 %v9556_v36  ;;  %4736 = vmatprep.subr.bf16.mxu1 %v9558_v37  ;;  %v9588_v36 = vcombine.high %v687_v63, %v691_v0  ;;  %v9590_v37 = vcombine.high %v688_v29, %v692_v31  ;;  %v715_v18 = vld [vmem:[#allocation8 + $0x670] sm:$0xff]  ;;  %v716_v22 = vld [vmem:[#allocation8 + $0x678] sm:$0xff] }
 0x261   : > { %4410 = vmatmul.mubr.bf16.gmra.mrb[20].mxu0 %v12007_v35  ;;  %4702 = vmatmul.mubr.bf16.gmra.mrb[20].mxu1 %v12007_v35 }
 0x262   : > { %4445 = vmatpush1.bf16.msra.mxu0 %v9555_v48  ;;  %4737 = vmatpush1.bf16.msra.mxu1 %v9557_v50  ;;  %v9587_v48 = vcombine.low %v687_v63, %v691_v0  ;;  %v9589_v50 = vcombine.low %v688_v29, %v692_v31  ;;  %v719_v63 = vld [vmem:[#allocation8 + $0x690] sm:$0xff]  ;;  %v720_v29 = vld [vmem:[#allocation8 + $0x698] sm:$0xff] }
 0x263   : > { %4446 = vmatprep.subr.bf16.mxu0 %v9564_v58  ;;  %4738 = vmatprep.subr.bf16.mxu1 %v9566_v56  ;;  %v9596_v58 = vcombine.high %v695_v41, %v699_v42  ;;  %v9598_v56 = vcombine.high %v696_v45, %v700_v47  ;;  %v723_v0 = vld [vmem:[#allocation8 + $0x6b0] sm:$0xff]  ;;  %v724_v31 = vld [vmem:[#allocation8 + $0x6b8] sm:$0xff] }
 0x264   : > { %4419 = vmatprep.mubr.bf16.mxu0 %v12011_v46  ;;  %4711 = vmatprep.mubr.bf16.mxu1 %v12011_v46 }
 0x266   : > { %4447 = vmatpush1.bf16.msra.mxu0 %v9563_v3  ;;  %4739 = vmatpush1.bf16.msra.mxu1 %v9565_v6  ;;  %v9595_v3 = vcombine.low %v695_v41, %v699_v42  ;;  %v9597_v6 = vcombine.low %v696_v45, %v700_v47  ;;  %v727_v41 = vld [vmem:[#allocation8 + $0x6d0] sm:$0xff]  ;;  %v728_v45 = vld [vmem:[#allocation8 + $0x6d8] sm:$0xff] }
 0x267   : > { %4448 = vmatprep.subr.bf16.mxu0 %v9572_v7  ;;  %4740 = vmatprep.subr.bf16.mxu1 %v9574_v9  ;;  %v9604_v7 = vcombine.high %v703_v57, %v707_v61  ;;  %v9606_v9 = vcombine.high %v704_v13, %v708_v2  ;;  %v731_v42 = vld [vmem:[#allocation8 + $0x6f0] sm:$0xff]  ;;  %v732_v47 = vld [vmem:[#allocation8 + $0x6f8] sm:$0xff] }
 0x269   : > { %4420 = vmatmul.mubr.bf16.gmra.mrb[24].mxu0 %v12019_v60  ;;  %4712 = vmatmul.mubr.bf16.gmra.mrb[24].mxu1 %v12019_v60 }
 0x26a   : > { %4449 = vmatpush1.bf16.msra.mxu0 %v9571_v23  ;;  %4741 = vmatpush1.bf16.msra.mxu1 %v9573_v24  ;;  %v9603_v23 = vcombine.low %v703_v57, %v707_v61  ;;  %v9605_v24 = vcombine.low %v704_v13, %v708_v2  ;;  %v735_v57 = vld [vmem:[#allocation8 + $0x710] sm:$0xff]  ;;  %v736_v13 = vld [vmem:[#allocation8 + $0x718] sm:$0xff] }
 0x26b   : > { %4450 = vmatprep.subr.bf16.mxu0 %v9580_v54  ;;  %4742 = vmatprep.subr.bf16.mxu1 %v9582_v55  ;;  %v9612_v54 = vcombine.high %v711_v12, %v715_v18  ;;  %v9614_v55 = vcombine.high %v712_v20, %v716_v22  ;;  %v739_v61 = vld [vmem:[#allocation8 + $0x730] sm:$0xff]  ;;  %v740_v2 = vld [vmem:[#allocation8 + $0x738] sm:$0xff] }
 0x26c   : > { %4429 = vmatprep.mubr.bf16.mxu0 %v12021_v5  ;;  %4721 = vmatprep.mubr.bf16.mxu1 %v12021_v5 }
 0x26e   : > { %4451 = vmatpush1.bf16.msra.mxu0 %v9579_v33  ;;  %4743 = vmatpush1.bf16.msra.mxu1 %v9581_v34  ;;  %v9611_v33 = vcombine.low %v711_v12, %v715_v18  ;;  %v9613_v34 = vcombine.low %v712_v20, %v716_v22  ;;  %v743_v12 = vld [vmem:[#allocation8 + $0x750] sm:$0xff]  ;;  %v744_v20 = vld [vmem:[#allocation8 + $0x758] sm:$0xff] }
 0x26f   : > { %4452 = vmatprep.subr.bf16.mxu0 %v9588_v36  ;;  %4744 = vmatprep.subr.bf16.mxu1 %v9590_v37  ;;  %v9620_v36 = vcombine.high %v719_v63, %v723_v0  ;;  %v9622_v37 = vcombine.high %v720_v29, %v724_v31  ;;  %v747_v18 = vld [vmem:[#allocation8 + $0x770] sm:$0xff]  ;;  %v748_v22 = vld [vmem:[#allocation8 + $0x778] sm:$0xff] }
 0x271   : > { %4430 = vmatmul.mubr.bf16.gmra.mrb[28].mxu0 %v12033_v17  ;;  %4722 = vmatmul.mubr.bf16.gmra.mrb[28].mxu1 %v12033_v17 }
 0x272   : > { %4453 = vmatpush1.bf16.msra.mxu0 %v9587_v48  ;;  %4745 = vmatpush1.bf16.msra.mxu1 %v9589_v50  ;;  %v9619_v48 = vcombine.low %v719_v63, %v723_v0  ;;  %v9621_v50 = vcombine.low %v720_v29, %v724_v31  ;;  %v751_v63 = vld [vmem:[#allocation8 + $0x790] sm:$0xff]  ;;  %v752_v29 = vld [vmem:[#allocation8 + $0x798] sm:$0xff] }
 0x273   : > { %4454 = vmatprep.subr.bf16.mxu0 %v9596_v58  ;;  %4746 = vmatprep.subr.bf16.mxu1 %v9598_v56  ;;  %v9628_v58 = vcombine.high %v727_v41, %v731_v42  ;;  %v9630_v56 = vcombine.high %v728_v45, %v732_v47  ;;  %v755_v0 = vld [vmem:[#allocation8 + $0x7b0] sm:$0xff]  ;;  %v756_v31 = vld [vmem:[#allocation8 + $0x7b8] sm:$0xff] }
 0x274   : > { %4472 = vmatprep.mubr.bf16.mxu0 %v12037_v27  ;;  %4764 = vmatprep.mubr.bf16.mxu1 %v12037_v27 }
 0x276   : > { %4455 = vmatpush1.bf16.msra.mxu0 %v9595_v3  ;;  %4747 = vmatpush1.bf16.msra.mxu1 %v9597_v6  ;;  %v9627_v3 = vcombine.low %v727_v41, %v731_v42  ;;  %v9629_v6 = vcombine.low %v728_v45, %v732_v47  ;;  %v759_v41 = vld [vmem:[#allocation8 + $0x7d0] sm:$0xff]  ;;  %v760_v45 = vld [vmem:[#allocation8 + $0x7d8] sm:$0xff] }
 0x277   : > { %4456 = vmatprep.subr.bf16.mxu0 %v9604_v7  ;;  %4748 = vmatprep.subr.bf16.mxu1 %v9606_v9  ;;  %v9636_v7 = vcombine.high %v735_v57, %v739_v61  ;;  %v9638_v9 = vcombine.high %v736_v13, %v740_v2  ;;  %v763_v42 = vld [vmem:[#allocation8 + $0x7f0] sm:$0xff]  ;;  %v764_v47 = vld [vmem:[#allocation8 + $0x7f8] sm:$0xff] }
 0x27a   : > { %4457 = vmatpush1.bf16.msra.mxu0 %v9603_v23  ;;  %4749 = vmatpush1.bf16.msra.mxu1 %v9605_v24  ;;  %v9635_v23 = vcombine.low %v735_v57, %v739_v61  ;;  %v9637_v24 = vcombine.low %v736_v13, %v740_v2  ;;  %v767_v57 = vld [vmem:[#allocation8 + $0x810] sm:$0xff]  ;;  %v768_v13 = vld [vmem:[#allocation8 + $0x818] sm:$0xff] }
 0x27b   : > { %4458 = vmatprep.subr.bf16.mxu0 %v9612_v54  ;;  %4750 = vmatprep.subr.bf16.mxu1 %v9614_v55  ;;  %v9644_v54 = vcombine.high %v743_v12, %v747_v18  ;;  %v9646_v55 = vcombine.high %v744_v20, %v748_v22  ;;  %v771_v61 = vld [vmem:[#allocation8 + $0x830] sm:$0xff]  ;;  %v772_v2 = vld [vmem:[#allocation8 + $0x838] sm:$0xff] }
 0x27e   : > { %4459 = vmatpush1.bf16.msra.mxu0 %v9611_v33  ;;  %4751 = vmatpush1.bf16.msra.mxu1 %v9613_v34  ;;  %v9643_v33 = vcombine.low %v743_v12, %v747_v18  ;;  %v9645_v34 = vcombine.low %v744_v20, %v748_v22  ;;  %v775_v12 = vld [vmem:[#allocation8 + $0x850] sm:$0xff]  ;;  %v776_v20 = vld [vmem:[#allocation8 + $0x858] sm:$0xff] }
 0x27f   : > { %4460 = vmatprep.subr.bf16.mxu0 %v9620_v36  ;;  %4752 = vmatprep.subr.bf16.mxu1 %v9622_v37  ;;  %v9652_v36 = vcombine.high %v751_v63, %v755_v0  ;;  %v9654_v37 = vcombine.high %v752_v29, %v756_v31  ;;  %v779_v18 = vld [vmem:[#allocation8 + $0x870] sm:$0xff]  ;;  %v780_v22 = vld [vmem:[#allocation8 + $0x878] sm:$0xff] }
 0x282   : > { %4461 = vmatpush1.bf16.msra.mxu0 %v9619_v48  ;;  %4753 = vmatpush1.bf16.msra.mxu1 %v9621_v50  ;;  %v9651_v48 = vcombine.low %v751_v63, %v755_v0  ;;  %v9653_v50 = vcombine.low %v752_v29, %v756_v31  ;;  %v783_v63 = vld [vmem:[#allocation8 + $0x890] sm:$0xff]  ;;  %v784_v29 = vld [vmem:[#allocation8 + $0x898] sm:$0xff] }
 0x283   : > { %4462 = vmatprep.subr.bf16.mxu0 %v9628_v58  ;;  %4754 = vmatprep.subr.bf16.mxu1 %v9630_v56  ;;  %v9660_v58 = vcombine.high %v759_v41, %v763_v42  ;;  %v9662_v56 = vcombine.high %v760_v45, %v764_v47  ;;  %v787_v0 = vld [vmem:[#allocation8 + $0x8b0] sm:$0xff]  ;;  %v788_v31 = vld [vmem:[#allocation8 + $0x8b8] sm:$0xff] }
 0x286   : > { %4463 = vmatpush1.bf16.msra.mxu0 %v9627_v3  ;;  %4755 = vmatpush1.bf16.msra.mxu1 %v9629_v6  ;;  %v9659_v3 = vcombine.low %v759_v41, %v763_v42  ;;  %v9661_v6 = vcombine.low %v760_v45, %v764_v47  ;;  %v791_v41 = vld [vmem:[#allocation8 + $0x8d0] sm:$0xff]  ;;  %v792_v45 = vld [vmem:[#allocation8 + $0x8d8] sm:$0xff] }
 0x287   : > { %4464 = vmatprep.subr.bf16.mxu0 %v9636_v7  ;;  %4756 = vmatprep.subr.bf16.mxu1 %v9638_v9  ;;  %v9668_v7 = vcombine.high %v767_v57, %v771_v61  ;;  %v9670_v9 = vcombine.high %v768_v13, %v772_v2  ;;  %v795_v42 = vld [vmem:[#allocation8 + $0x8f0] sm:$0xff]  ;;  %v796_v47 = vld [vmem:[#allocation8 + $0x8f8] sm:$0xff] }
 0x28a   : > { %4465 = vmatpush1.bf16.msra.mxu0 %v9635_v23  ;;  %4757 = vmatpush1.bf16.msra.mxu1 %v9637_v24  ;;  %v9667_v23 = vcombine.low %v767_v57, %v771_v61  ;;  %v9669_v24 = vcombine.low %v768_v13, %v772_v2  ;;  %v799_v57 = vld [vmem:[#allocation8 + $0x910] sm:$0xff]  ;;  %v800_v13 = vld [vmem:[#allocation8 + $0x918] sm:$0xff] }
 0x28b   : > { %4466 = vmatprep.subr.bf16.mxu0 %v9644_v54  ;;  %4758 = vmatprep.subr.bf16.mxu1 %v9646_v55  ;;  %v9676_v54 = vcombine.high %v775_v12, %v779_v18  ;;  %v9678_v55 = vcombine.high %v776_v20, %v780_v22  ;;  %v803_v61 = vld [vmem:[#allocation8 + $0x930] sm:$0xff]  ;;  %v804_v2 = vld [vmem:[#allocation8 + $0x938] sm:$0xff] }
 0x28e   : > { %4467 = vmatpush1.bf16.msra.mxu0 %v9643_v33  ;;  %4759 = vmatpush1.bf16.msra.mxu1 %v9645_v34  ;;  %v9675_v33 = vcombine.low %v775_v12, %v779_v18  ;;  %v9677_v34 = vcombine.low %v776_v20, %v780_v22  ;;  %v807_v12 = vld [vmem:[#allocation8 + $0x950] sm:$0xff]  ;;  %v808_v20 = vld [vmem:[#allocation8 + $0x958] sm:$0xff] }
 0x28f   : > { %4468 = vmatprep.subr.bf16.mxu0 %v9652_v36  ;;  %4760 = vmatprep.subr.bf16.mxu1 %v9654_v37  ;;  %v9684_v36 = vcombine.high %v783_v63, %v787_v0  ;;  %v9686_v37 = vcombine.high %v784_v29, %v788_v31  ;;  %v811_v18 = vld [vmem:[#allocation8 + $0x970] sm:$0xff]  ;;  %v812_v22 = vld [vmem:[#allocation8 + $0x978] sm:$0xff] }
 0x292   : > { %4469 = vmatpush1.bf16.msra.mxu0 %v9651_v48  ;;  %4761 = vmatpush1.bf16.msra.mxu1 %v9653_v50  ;;  %v9683_v48 = vcombine.low %v783_v63, %v787_v0  ;;  %v9685_v50 = vcombine.low %v784_v29, %v788_v31  ;;  %v815_v63 = vld [vmem:[#allocation8 + $0x990] sm:$0xff]  ;;  %v816_v29 = vld [vmem:[#allocation8 + $0x998] sm:$0xff] }
 0x293   : > { %4470 = vmatprep.subr.bf16.mxu0 %v9660_v58  ;;  %4762 = vmatprep.subr.bf16.mxu1 %v9662_v56  ;;  %v9692_v58 = vcombine.high %v791_v41, %v795_v42  ;;  %v9694_v56 = vcombine.high %v792_v45, %v796_v47  ;;  %v819_v0 = vld [vmem:[#allocation8 + $0x9b0] sm:$0xff]  ;;  %v820_v31 = vld [vmem:[#allocation8 + $0x9b8] sm:$0xff] }
 0x296   : > { %4471 = vmatpush1.bf16.msra.mxu0 %v9659_v3  ;;  %4763 = vmatpush1.bf16.msra.mxu1 %v9661_v6  ;;  %v9691_v3 = vcombine.low %v791_v41, %v795_v42  ;;  %v9693_v6 = vcombine.low %v792_v45, %v796_v47  ;;  %v823_v41 = vld [vmem:[#allocation8 + $0x9d0] sm:$0xff]  ;;  %v824_v45 = vld [vmem:[#allocation8 + $0x9d8] sm:$0xff] }
 0x297   : > { %4513 = vmatprep.subr.bf16.mxu0 %v9668_v7  ;;  %4805 = vmatprep.subr.bf16.mxu1 %v9670_v9  ;;  %v9700_v7 = vcombine.high %v799_v57, %v803_v61  ;;  %v9702_v9 = vcombine.high %v800_v13, %v804_v2  ;;  %v827_v42 = vld [vmem:[#allocation8 + $0x9f0] sm:$0xff]  ;;  %v828_v47 = vld [vmem:[#allocation8 + $0x9f8] sm:$0xff] }
 0x299   : > { %4473 = vmatmul.mubr.bf16.vlgmr.msra.gmra.mrb[16].mxu0 %v12047_v49  ;;  %4765 = vmatmul.mubr.bf16.vlgmr.msra.gmra.mrb[16].mxu1 %v12047_v49 }
 0x29a   : > { %4514 = vmatpush1.bf16.msra.mxu0 %v9667_v23  ;;  %4806 = vmatpush1.bf16.msra.mxu1 %v9669_v24  ;;  %v9699_v23 = vcombine.low %v799_v57, %v803_v61  ;;  %v9701_v24 = vcombine.low %v800_v13, %v804_v2  ;;  %v831_v57 = vld [vmem:[#allocation8 + $0xa10] sm:$0xff]  ;;  %v832_v13 = vld [vmem:[#allocation8 + $0xa18] sm:$0xff] }
 0x29b   : > { %4515 = vmatprep.subr.bf16.mxu0 %v9676_v54  ;;  %4807 = vmatprep.subr.bf16.mxu1 %v9678_v55  ;;  %v9708_v54 = vcombine.high %v807_v12, %v811_v18  ;;  %v9710_v55 = vcombine.high %v808_v20, %v812_v22  ;;  %v835_v61 = vld [vmem:[#allocation8 + $0xa30] sm:$0xff]  ;;  %v836_v2 = vld [vmem:[#allocation8 + $0xa38] sm:$0xff] }
 0x29c   : > { %4482 = vmatprep.mubr.bf16.mxu0 %v12049_v62  ;;  %4774 = vmatprep.mubr.bf16.mxu1 %v12049_v62 }
 0x29e   : > { %4516 = vmatpush1.bf16.msra.mxu0 %v9675_v33  ;;  %4808 = vmatpush1.bf16.msra.mxu1 %v9677_v34  ;;  %v9707_v33 = vcombine.low %v807_v12, %v811_v18  ;;  %v9709_v34 = vcombine.low %v808_v20, %v812_v22  ;;  %v839_v12 = vld [vmem:[#allocation8 + $0xa50] sm:$0xff]  ;;  %v840_v20 = vld [vmem:[#allocation8 + $0xa58] sm:$0xff] }
 0x29f   : > { %4517 = vmatprep.subr.bf16.mxu0 %v9684_v36  ;;  %4809 = vmatprep.subr.bf16.mxu1 %v9686_v37  ;;  %v9716_v36 = vcombine.high %v815_v63, %v819_v0  ;;  %v9718_v37 = vcombine.high %v816_v29, %v820_v31  ;;  %v843_v18 = vld [vmem:[#allocation8 + $0xa70] sm:$0xff]  ;;  %v844_v22 = vld [vmem:[#allocation8 + $0xa78] sm:$0xff] }
 0x2a1   : > { %4483 = vmatmul.mubr.bf16.gmra.mrb[20].mxu0 %v12057_v8  ;;  %4775 = vmatmul.mubr.bf16.gmra.mrb[20].mxu1 %v12057_v8 }
 0x2a2   : > { %4518 = vmatpush1.bf16.msra.mxu0 %v9683_v48  ;;  %4810 = vmatpush1.bf16.msra.mxu1 %v9685_v50  ;;  %v9715_v48 = vcombine.low %v815_v63, %v819_v0  ;;  %v9717_v50 = vcombine.low %v816_v29, %v820_v31  ;;  %v847_v63 = vld [vmem:[#allocation8 + $0xa90] sm:$0xff]  ;;  %v848_v29 = vld [vmem:[#allocation8 + $0xa98] sm:$0xff] }
 0x2a3   : > { %4519 = vmatprep.subr.bf16.mxu0 %v9692_v58  ;;  %4811 = vmatprep.subr.bf16.mxu1 %v9694_v56  ;;  %v9724_v58 = vcombine.high %v823_v41, %v827_v42  ;;  %v9726_v56 = vcombine.high %v824_v45, %v828_v47  ;;  %v851_v0 = vld [vmem:[#allocation8 + $0xab0] sm:$0xff]  ;;  %v852_v31 = vld [vmem:[#allocation8 + $0xab8] sm:$0xff] }
 0x2a4   : > { %4492 = vmatprep.mubr.bf16.mxu0 %v12059_v21  ;;  %4784 = vmatprep.mubr.bf16.mxu1 %v12059_v21 }
 0x2a6   : > { %4520 = vmatpush1.bf16.msra.mxu0 %v9691_v3  ;;  %4812 = vmatpush1.bf16.msra.mxu1 %v9693_v6  ;;  %v9723_v3 = vcombine.low %v823_v41, %v827_v42  ;;  %v9725_v6 = vcombine.low %v824_v45, %v828_v47  ;;  %v855_v41 = vld [vmem:[#allocation8 + $0xad0] sm:$0xff]  ;;  %v856_v45 = vld [vmem:[#allocation8 + $0xad8] sm:$0xff] }
 0x2a7   : > { %4521 = vmatprep.subr.bf16.mxu0 %v9700_v7  ;;  %4813 = vmatprep.subr.bf16.mxu1 %v9702_v9  ;;  %v9732_v7 = vcombine.high %v831_v57, %v835_v61  ;;  %v9734_v9 = vcombine.high %v832_v13, %v836_v2  ;;  %v859_v42 = vld [vmem:[#allocation8 + $0xaf0] sm:$0xff]  ;;  %v860_v47 = vld [vmem:[#allocation8 + $0xaf8] sm:$0xff] }
 0x2a9   : > { %4493 = vmatmul.mubr.bf16.gmra.mrb[24].mxu0 %v12065_v30  ;;  %4785 = vmatmul.mubr.bf16.gmra.mrb[24].mxu1 %v12065_v30 }
 0x2aa   : > { %4522 = vmatpush1.bf16.msra.mxu0 %v9699_v23  ;;  %4814 = vmatpush1.bf16.msra.mxu1 %v9701_v24  ;;  %v9731_v23 = vcombine.low %v831_v57, %v835_v61  ;;  %v9733_v24 = vcombine.low %v832_v13, %v836_v2  ;;  %v863_v57 = vld [vmem:[#allocation8 + $0xb10] sm:$0xff]  ;;  %v864_v13 = vld [vmem:[#allocation8 + $0xb18] sm:$0xff] }
 0x2ab   : > { %4523 = vmatprep.subr.bf16.mxu0 %v9708_v54  ;;  %4815 = vmatprep.subr.bf16.mxu1 %v9710_v55  ;;  %v9740_v54 = vcombine.high %v839_v12, %v843_v18  ;;  %v9742_v55 = vcombine.high %v840_v20, %v844_v22  ;;  %v867_v61 = vld [vmem:[#allocation8 + $0xb30] sm:$0xff]  ;;  %v868_v2 = vld [vmem:[#allocation8 + $0xb38] sm:$0xff] }
 0x2ac   : > { %4502 = vmatprep.mubr.bf16.mxu0 %v12069_v40  ;;  %4794 = vmatprep.mubr.bf16.mxu1 %v12069_v40 }
 0x2ae   : > { %4524 = vmatpush1.bf16.msra.mxu0 %v9707_v33  ;;  %4816 = vmatpush1.bf16.msra.mxu1 %v9709_v34  ;;  %v9739_v33 = vcombine.low %v839_v12, %v843_v18  ;;  %v9741_v34 = vcombine.low %v840_v20, %v844_v22  ;;  %v871_v12 = vld [vmem:[#allocation8 + $0xb50] sm:$0xff]  ;;  %v872_v20 = vld [vmem:[#allocation8 + $0xb58] sm:$0xff] }
 0x2af   : > { %4525 = vmatprep.subr.bf16.mxu0 %v9716_v36  ;;  %4817 = vmatprep.subr.bf16.mxu1 %v9718_v37  ;;  %v9748_v36 = vcombine.high %v847_v63, %v851_v0  ;;  %v9750_v37 = vcombine.high %v848_v29, %v852_v31  ;;  %v875_v18 = vld [vmem:[#allocation8 + $0xb70] sm:$0xff]  ;;  %v876_v22 = vld [vmem:[#allocation8 + $0xb78] sm:$0xff] }
 0x2b1   : > { %4503 = vmatmul.mubr.bf16.gmra.mrb[28].mxu0 %v12075_v53  ;;  %4795 = vmatmul.mubr.bf16.gmra.mrb[28].mxu1 %v12075_v53 }
 0x2b2   : > { %4526 = vmatpush1.bf16.msra.mxu0 %v9715_v48  ;;  %4818 = vmatpush1.bf16.msra.mxu1 %v9717_v50  ;;  %v9747_v48 = vcombine.low %v847_v63, %v851_v0  ;;  %v9749_v50 = vcombine.low %v848_v29, %v852_v31  ;;  %v879_v63 = vld [vmem:[#allocation8 + $0xb90] sm:$0xff]  ;;  %v880_v29 = vld [vmem:[#allocation8 + $0xb98] sm:$0xff] }
 0x2b3   : > { %4527 = vmatprep.subr.bf16.mxu0 %v9724_v58  ;;  %4819 = vmatprep.subr.bf16.mxu1 %v9726_v56  ;;  %v9756_v58 = vcombine.high %v855_v41, %v859_v42  ;;  %v9758_v56 = vcombine.high %v856_v45, %v860_v47  ;;  %v883_v0 = vld [vmem:[#allocation8 + $0xbb0] sm:$0xff]  ;;  %v884_v31 = vld [vmem:[#allocation8 + $0xbb8] sm:$0xff] }
 0x2b4   : > { %4545 = vmatprep.mubr.bf16.mxu0 %v12085_v1  ;;  %4837 = vmatprep.mubr.bf16.mxu1 %v12085_v1 }
 0x2b6   : > { %4528 = vmatpush1.bf16.msra.mxu0 %v9723_v3  ;;  %4820 = vmatpush1.bf16.msra.mxu1 %v9725_v6  ;;  %v9755_v3 = vcombine.low %v855_v41, %v859_v42  ;;  %v9757_v6 = vcombine.low %v856_v45, %v860_v47  ;;  %v887_v41 = vld [vmem:[#allocation8 + $0xbd0] sm:$0xff]  ;;  %v888_v45 = vld [vmem:[#allocation8 + $0xbd8] sm:$0xff] }
 0x2b7   : > { %4529 = vmatprep.subr.bf16.mxu0 %v9732_v7  ;;  %4821 = vmatprep.subr.bf16.mxu1 %v9734_v9  ;;  %v9764_v7 = vcombine.high %v863_v57, %v867_v61  ;;  %v9766_v9 = vcombine.high %v864_v13, %v868_v2  ;;  %v891_v42 = vld [vmem:[#allocation8 + $0xbf0] sm:$0xff]  ;;  %v892_v47 = vld [vmem:[#allocation8 + $0xbf8] sm:$0xff] }
 0x2ba   : > { %4530 = vmatpush1.bf16.msra.mxu0 %v9731_v23  ;;  %4822 = vmatpush1.bf16.msra.mxu1 %v9733_v24  ;;  %v9763_v23 = vcombine.low %v863_v57, %v867_v61  ;;  %v9765_v24 = vcombine.low %v864_v13, %v868_v2  ;;  %v895_v57 = vld [vmem:[#allocation8 + $0xc10] sm:$0xff]  ;;  %v896_v13 = vld [vmem:[#allocation8 + $0xc18] sm:$0xff] }
 0x2bb   : > { %4531 = vmatprep.subr.bf16.mxu0 %v9740_v54  ;;  %4823 = vmatprep.subr.bf16.mxu1 %v9742_v55  ;;  %v9772_v54 = vcombine.high %v871_v12, %v875_v18  ;;  %v9774_v55 = vcombine.high %v872_v20, %v876_v22  ;;  %v899_v61 = vld [vmem:[#allocation8 + $0xc30] sm:$0xff]  ;;  %v900_v2 = vld [vmem:[#allocation8 + $0xc38] sm:$0xff] }
 0x2be   : > { %4532 = vmatpush1.bf16.msra.mxu0 %v9739_v33  ;;  %4824 = vmatpush1.bf16.msra.mxu1 %v9741_v34  ;;  %v9771_v33 = vcombine.low %v871_v12, %v875_v18  ;;  %v9773_v34 = vcombine.low %v872_v20, %v876_v22  ;;  %v903_v12 = vld [vmem:[#allocation8 + $0xc50] sm:$0xff]  ;;  %v904_v20 = vld [vmem:[#allocation8 + $0xc58] sm:$0xff] }
 0x2bf   : > { %4533 = vmatprep.subr.bf16.mxu0 %v9748_v36  ;;  %4825 = vmatprep.subr.bf16.mxu1 %v9750_v37  ;;  %v9780_v36 = vcombine.high %v879_v63, %v883_v0  ;;  %v9782_v37 = vcombine.high %v880_v29, %v884_v31  ;;  %v907_v18 = vld [vmem:[#allocation8 + $0xc70] sm:$0xff]  ;;  %v908_v22 = vld [vmem:[#allocation8 + $0xc78] sm:$0xff] }
 0x2c2   : > { %4534 = vmatpush1.bf16.msra.mxu0 %v9747_v48  ;;  %4826 = vmatpush1.bf16.msra.mxu1 %v9749_v50  ;;  %v9779_v48 = vcombine.low %v879_v63, %v883_v0  ;;  %v9781_v50 = vcombine.low %v880_v29, %v884_v31  ;;  %v911_v63 = vld [vmem:[#allocation8 + $0xc90] sm:$0xff]  ;;  %v912_v29 = vld [vmem:[#allocation8 + $0xc98] sm:$0xff] }
 0x2c3   : > { %4535 = vmatprep.subr.bf16.mxu0 %v9756_v58  ;;  %4827 = vmatprep.subr.bf16.mxu1 %v9758_v56  ;;  %v9788_v58 = vcombine.high %v887_v41, %v891_v42  ;;  %v9790_v56 = vcombine.high %v888_v45, %v892_v47  ;;  %v915_v0 = vld [vmem:[#allocation8 + $0xcb0] sm:$0xff]  ;;  %v916_v31 = vld [vmem:[#allocation8 + $0xcb8] sm:$0xff] }
 0x2c6   : > { %4536 = vmatpush1.bf16.msra.mxu0 %v9755_v3  ;;  %4828 = vmatpush1.bf16.msra.mxu1 %v9757_v6  ;;  %v9787_v3 = vcombine.low %v887_v41, %v891_v42  ;;  %v9789_v6 = vcombine.low %v888_v45, %v892_v47  ;;  %v919_v41 = vld [vmem:[#allocation8 + $0xcd0] sm:$0xff]  ;;  %v920_v45 = vld [vmem:[#allocation8 + $0xcd8] sm:$0xff] }
 0x2c7   : > { %4537 = vmatprep.subr.bf16.mxu0 %v9764_v7  ;;  %4829 = vmatprep.subr.bf16.mxu1 %v9766_v9  ;;  %v9796_v7 = vcombine.high %v895_v57, %v899_v61  ;;  %v9798_v9 = vcombine.high %v896_v13, %v900_v2  ;;  %v923_v42 = vld [vmem:[#allocation8 + $0xcf0] sm:$0xff]  ;;  %v924_v47 = vld [vmem:[#allocation8 + $0xcf8] sm:$0xff] }
 0x2ca   : > { %4538 = vmatpush1.bf16.msra.mxu0 %v9763_v23  ;;  %4830 = vmatpush1.bf16.msra.mxu1 %v9765_v24  ;;  %v9795_v23 = vcombine.low %v895_v57, %v899_v61  ;;  %v9797_v24 = vcombine.low %v896_v13, %v900_v2  ;;  %v9822_v57 = vcombine.high %v920_v45, %v924_v47  ;;  %v927_v61 = vld [vmem:[#allocation8 + $0xd10] sm:$0xff]  ;;  %v928_v2 = vld [vmem:[#allocation8 + $0xd18] sm:$0xff] }
 0x2cb   : > { %4539 = vmatprep.subr.bf16.mxu0 %v9772_v54  ;;  %4831 = vmatprep.subr.bf16.mxu1 %v9774_v55  ;;  %v9804_v54 = vcombine.high %v903_v12, %v907_v18  ;;  %v9806_v55 = vcombine.high %v904_v20, %v908_v22  ;;  %v931_v13 = vld [vmem:[#allocation8 + $0xd30] sm:$0xff] }
 0x2ce   : > { %4540 = vmatpush1.bf16.msra.mxu0 %v9771_v33  ;;  %4832 = vmatpush1.bf16.msra.mxu1 %v9773_v34  ;;  %v9803_v33 = vcombine.low %v903_v12, %v907_v18  ;;  %v9805_v34 = vcombine.low %v904_v20, %v908_v22  ;;  %v935_v20 = vld [vmem:[#allocation8 + $0xd50] sm:$0xff] }
 0x2cf   : > { %4541 = vmatprep.subr.bf16.mxu0 %v9780_v36  ;;  %4833 = vmatprep.subr.bf16.mxu1 %v9782_v37  ;;  %v9812_v36 = vcombine.high %v911_v63, %v915_v0  ;;  %v9814_v37 = vcombine.high %v912_v29, %v916_v31  ;;  %v939_v22 = vld [vmem:[#allocation8 + $0xd70] sm:$0xff] }
 0x2d2   : > { %4542 = vmatpush1.bf16.msra.mxu0 %v9779_v48  ;;  %4834 = vmatpush1.bf16.msra.mxu1 %v9781_v50  ;;  %v9811_v48 = vcombine.low %v911_v63, %v915_v0  ;;  %v9813_v50 = vcombine.low %v912_v29, %v916_v31  ;;  %v9836_v0 = vcombine.high %v935_v20, %v939_v22  ;;  %v1021_v29 = vld [vmem:[#allocation9] sm:$0xff] }
 0x2d3   : > { %4543 = vmatprep.subr.bf16.mxu0 %v9788_v58  ;;  %4835 = vmatprep.subr.bf16.mxu1 %v9790_v56  ;;  %v9820_v58 = vcombine.high %v919_v41, %v923_v42  ;;  %v12948_v56 = vlaneseq }
 0x2d5   : > { %v12216_v12 = vshrl.u32 %v12948_v56, 7 }
 0x2d6   : > { %4544 = vmatpush1.bf16.msra.mxu0 %v9787_v3  ;;  %4836 = vmatpush1.bf16.msra.mxu1 %v9789_v6  ;;  %v932_v3 = vld [vmem:[#allocation8 + $0xd38] sm:$0xff]  ;;  %v9819_v6 = vcombine.low %v919_v41, %v923_v42 }
 0x2d7   : > { %4586 = vmatprep.subr.bf16.mxu0 %v9796_v7  ;;  %4878 = vmatprep.subr.bf16.mxu1 %v9798_v9  ;;  %v9821_v7 = vcombine.low %v920_v45, %v924_v47  ;;  %v9828_v9 = vcombine.high %v927_v61, %v931_v13  ;;  %13062 = vst [vmem:[#allocation34_spill] sm:$0xff] %v12216_v12  ;;  %v12221_v63 = vsub.s32 0, %v12216_v12  ;;  %v12949_v31 = vsub.s32 2, %v12216_v12  ;;  %v944_v42 = vld [vmem:[#allocation8 + $0xd98] sm:$0xff] }
 0x2d8   : > { %v9830_v18 = vcombine.high %v928_v2, %v932_v3  ;;  %v12950_v41 = vsub.s32 3, %v12216_v12  ;;  %v948_v45 = vld [vmem:[#allocation8 + $0xdb8] sm:$0xff]  ;;  %v9835_v47 = vcombine.low %v935_v20, %v939_v22 }
 0x2d9   : > { %4546 = vmatmul.mubr.bf16.vlgmr.msra.gmra.mrb[16].mxu0 %v12093_v39  ;;  %4838 = vmatmul.mubr.bf16.vlgmr.msra.gmra.mrb[16].mxu1 %v12093_v39  ;;  %13063 = vst [vmem:[#allocation35_spill] sm:$0xff] %v12221_v63 }
 0x2da   : > { %4587 = vmatpush1.bf16.msra.mxu0 %v9795_v23  ;;  %4879 = vmatpush1.bf16.msra.mxu1 %v9797_v24  ;;  %v936_v23 = vld [vmem:[#allocation8 + $0xd58] sm:$0xff]  ;;  %v12250_v22 = vrot.slane %v1021_v29, %v12950_v41 }
 0x2db   : > { %4588 = vmatprep.subr.bf16.mxu0 %v9804_v54  ;;  %4880 = vmatprep.subr.bf16.mxu1 %v9806_v55  ;;  %v940_v24 = vld [vmem:[#allocation8 + $0xd78] sm:$0xff]  ;;  %v9827_v54 = vcombine.low %v927_v61, %v931_v13  ;;  %v9829_v55 = vcombine.low %v928_v2, %v932_v3  ;;  %v12233_v61 = vld [vmem:[#allocation8 + $0xdf0] sm:$0xff]  ;;  %v12237_v2 = vrot.slane %v1021_v29, %v12949_v31 }
 0x2dc   : > { %4555 = vmatprep.mubr.bf16.mxu0 %v12097_v52  ;;  %4847 = vmatprep.mubr.bf16.mxu1 %v12097_v52 }
 0x2de   : > { %4589 = vmatpush1.bf16.msra.mxu0 %v9803_v33  ;;  %4881 = vmatpush1.bf16.msra.mxu1 %v9805_v34  ;;  %v12951_v33 = vsub.s32 1, %v12216_v12  ;;  %v9838_v34 = vcombine.high %v936_v23, %v940_v24 }
 0x2df   : > { %4590 = vmatprep.subr.bf16.mxu0 %v9812_v36  ;;  %4882 = vmatprep.subr.bf16.mxu1 %v9814_v37  ;;  %v943_v36 = vld [vmem:[#allocation8 + $0xd90] sm:$0xff] }
 0x2e0   : > { %v947_v37 = vld [vmem:[#allocation8 + $0xdb0] sm:$0xff]  ;;  %v12241_v3 = vrot.slane %v1021_v29, %v12951_v33  ;;  %v964_v33 = vld [vmem:[#allocation8 + $0xe38] sm:$0xff] }
 0x2e1   : > { %4556 = vmatmul.mubr.bf16.gmra.mrb[20].mxu0 %v12103_v4  ;;  %4848 = vmatmul.mubr.bf16.gmra.mrb[20].mxu1 %v12103_v4 }
 0x2e2   : > { %4591 = vmatpush1.bf16.msra.mxu0 %v9811_v48  ;;  %4883 = vmatpush1.bf16.msra.mxu1 %v9813_v50  ;;  %v12229_v48 = vrot.slane %v1021_v29, %v12221_v63  ;;  %v9837_v50 = vcombine.low %v936_v23, %v940_v24  ;;  %v967_v63 = vld [vmem:[#allocation8 + $0xe50] sm:$0xff] }
 0x2e3   : > { %4592 = vmatprep.subr.bf16.mxu0 %v9820_v58  ;;  %4884 = vmatprep.subr.bf16.mxu1 %v9822_v57  ;;  %v9844_v58 = vcombine.high %v943_v36, %v947_v37  ;;  %v12231_v57 = vld [vmem:[#allocation8 + $0xdd0] sm:$0xff] }
 0x2e4   : > { %4565 = vmatprep.mubr.bf16.mxu0 %v12107_v19  ;;  %4857 = vmatprep.mubr.bf16.mxu1 %v12107_v19 }
 0x2e6   : > { %4593 = vmatpush1.bf16.msra.mxu0 %v9819_v6  ;;  %4885 = vmatpush1.bf16.msra.mxu1 %v9821_v7  ;;  %v9846_v6 = vcombine.high %v944_v42, %v948_v45  ;;  %v12243_v7 = vld [vmem:[#allocation8 + $0xdd8] sm:$0xff] }
 0x2e7   : > { %4594 = vmatprep.subr.bf16.mxu0 %v9828_v9  ;;  %4886 = vmatprep.subr.bf16.mxu1 %v9830_v18  ;;  %v12245_v9 = vld [vmem:[#allocation8 + $0xdf8] sm:$0xff] }
 0x2e8   : > { %v9854_v41 = vcombine.high %v12243_v7, %v12245_v9 }
 0x2e9   : > { %4566 = vmatmul.mubr.bf16.gmra.mrb[24].mxu0 %v12113_v32  ;;  %4858 = vmatmul.mubr.bf16.gmra.mrb[24].mxu1 %v12113_v32 }
 0x2ea   : > { %4595 = vmatpush1.bf16.msra.mxu0 %v9827_v54  ;;  %4887 = vmatpush1.bf16.msra.mxu1 %v9829_v55  ;;  %v9843_v54 = vcombine.low %v943_v36, %v947_v37  ;;  %v9845_v55 = vcombine.low %v944_v42, %v948_v45 }
 0x2eb   : > { %4596 = vmatprep.subr.bf16.mxu0 %v9836_v0  ;;  %4888 = vmatprep.subr.bf16.mxu1 %v9838_v34  ;;  %v9852_v0 = vcombine.high %v12231_v57, %v12233_v61 }
 0x2ec   : > { %v4036_v13 = vpop.f32.mrb[0].mxu0  ;;  %4575 = vmatprep.mubr.bf16.mxu0 %v12117_v44  ;;  %v4328_v18 = vpop.f32.mrb[0].mxu1  ;;  %4867 = vmatprep.mubr.bf16.mxu1 %v12117_v44 }
 0x2ed   : > { %v4038_v20 = vpop.f32.mrb[1].mxu0  ;;  %v4330_v23 = vpop.f32.mrb[1].mxu1  ;;  %v12256_v34 = vadd.f32 %v4036_v13, %v12229_v48  ;;  %v963_v13 = vld [vmem:[#allocation8 + $0xe30] sm:$0xff] }
 0x2ee   : > { %v4040_v24 = vpop.f32.mrb[2].mxu0  ;;  %4597 = vmatpush1.bf16.msra.mxu0 %v9835_v47  ;;  %v4332_v31 = vpop.f32.mrb[2].mxu1  ;;  %4889 = vmatpush1.bf16.msra.mxu1 %v9837_v50  ;;  %v12264_v47 = vadd.f32 %v4328_v18, %v12237_v2  ;;  %v12267_v36 = vadd.f32 %v4038_v20, %v12241_v3  ;;  %v959_v50 = vld [vmem:[#allocation8 + $0xe10] sm:$0xff]  ;;  %v960_v20 = vld [vmem:[#allocation8 + $0xe18] sm:$0xff] }
 0x2ef   : > { %v12259_v56 = vadd.f32 %v4040_v24, %v12229_v48  ;;  %v4042_v29 = vpop.f32.mrb[3].mxu0  ;;  %4598 = vmatprep.subr.bf16.mxu0 %v9844_v58  ;;  %v12270_v37 = vadd.f32 %v4332_v31, %v12237_v2  ;;  %v4334_v45 = vpop.f32.mrb[3].mxu1  ;;  %4890 = vmatprep.subr.bf16.mxu1 %v9846_v6  ;;  %v12276_v58 = vadd.f32 %v4330_v23, %v12250_v22  ;;  %v971_v31 = vld [vmem:[#allocation8 + $0xe70] sm:$0xff] }
 0x2f0   : > { %13064 = vst [vmem:[#allocation36_spill] sm:$0xff] %v12264_v47  ;;  %13065 = vst [vmem:[#allocation37_spill] sm:$0xff] %v12267_v36  ;;  %v12273_v42 = vadd.f32 %v4042_v29, %v12241_v3  ;;  %v12281_v24 = vadd.f32 %v4334_v45, %v12250_v22  ;;  %v9851_v23 = vcombine.low %v12231_v57, %v12233_v61  ;;  %v984_v36 = vld [vmem:[#allocation8 + $0xed8] sm:$0xff] }
 0x2f1   : > { %13066 = vst [vmem:[#allocation38_spill] sm:$0xff] %v12270_v37  ;;  %13068 = vst [vmem:[#allocation40_spill] sm:$0xff] %v12276_v58  ;;  %4576 = vmatmul.mubr.bf16.gmra.mrb[28].mxu0 %v12123_v15  ;;  %4868 = vmatmul.mubr.bf16.gmra.mrb[28].mxu1 %v12123_v15  ;;  %v9853_v45 = vcombine.low %v12243_v7, %v12245_v9  ;;  %v9860_v18 = vcombine.high %v959_v50, %v963_v13  ;;  %v972_v37 = vld [vmem:[#allocation8 + $0xe78] sm:$0xff] }
 0x2f2   : > { %13067 = vst [vmem:[#allocation39_spill] sm:$0xff] %v12273_v42  ;;  %13069 = vst [vmem:[#allocation41_spill] sm:$0xff] %v12281_v24  ;;  %4599 = vmatpush1.bf16.msra.mxu0 %v9843_v54  ;;  %4891 = vmatpush1.bf16.msra.mxu1 %v9845_v55  ;;  %v9862_v6 = vcombine.high %v960_v20, %v964_v33  ;;  %v968_v54 = vld [vmem:[#allocation8 + $0xe58] sm:$0xff]  ;;  %v9861_v58 = vcombine.low %v960_v20, %v964_v33  ;;  %v979_v20 = vld [vmem:[#allocation8 + $0xeb0] sm:$0xff] }
 0x2f3   : > { %4600 = vmatprep.subr.bf16.mxu0 %v9852_v0  ;;  %4892 = vmatprep.subr.bf16.mxu1 %v9854_v41  ;;  %v9859_v0 = vcombine.low %v959_v50, %v963_v13  ;;  %v9868_v7 = vcombine.high %v967_v63, %v971_v31  ;;  %v9870_v44 = vcombine.high %v968_v54, %v972_v37  ;;  %v975_v13 = vld [vmem:[#allocation8 + $0xe90] sm:$0xff]  ;;  %v988_v42 = vld [vmem:[#allocation8 + $0xef8] sm:$0xff] }
 0x2f4   : > { %v4046_v47 = vpop.f32.mrb[4].mxu0  ;;  %4618 = vmatprep.mubr.bf16.mxu0 %v12133_v11  ;;  %v4338_v57 = vpop.f32.mrb[4].mxu1  ;;  %4910 = vmatprep.mubr.bf16.mxu1 %v12133_v11 }
 0x2f5   : > { %v4048_v61 = vpop.f32.mrb[5].mxu0  ;;  %v4340_v29 = vpop.f32.mrb[5].mxu1  ;;  %v12298_v9 = vadd.f32 %v4046_v47, %v12229_v48  ;;  %v12304_v32 = vadd.f32 %v4338_v57, %v12237_v2  ;;  %v976_v57 = vld [vmem:[#allocation8 + $0xe98] sm:$0xff] }
 0x2f6   : > { %v4050_v55 = vpop.f32.mrb[6].mxu0  ;;  %4601 = vmatpush1.bf16.msra.mxu0 %v9851_v23  ;;  %v4342_v24 = vpop.f32.mrb[6].mxu1  ;;  %4893 = vmatpush1.bf16.msra.mxu1 %v9853_v45  ;;  %v12307_v19 = vadd.f32 %v4048_v61, %v12241_v3  ;;  %v12316_v23 = vadd.f32 %v4340_v29, %v12250_v22  ;;  %v980_v61 = vld [vmem:[#allocation8 + $0xeb8] sm:$0xff] }
 0x2f7   : > { %13070 = vst [vmem:[#allocation42_spill] sm:$0xff] %v12298_v9  ;;  %v12301_v41 = vadd.f32 %v4050_v55, %v12229_v48  ;;  %v4052_v15 = vpop.f32.mrb[7].mxu0  ;;  %4602 = vmatprep.subr.bf16.mxu0 %v9860_v18  ;;  %13072 = vst [vmem:[#allocation44_spill] sm:$0xff] %v12304_v32  ;;  %v12310_v33 = vadd.f32 %v4342_v24, %v12237_v2  ;;  %v4344_v50 = vpop.f32.mrb[7].mxu1  ;;  %4894 = vmatprep.subr.bf16.mxu1 %v9862_v6  ;;  %v983_v9 = vld [vmem:[#allocation8 + $0xed0] sm:$0xff] }
 0x2f8   : > { %13073 = vst [vmem:[#allocation45_spill] sm:$0xff] %v12307_v19  ;;  %v12313_v47 = vadd.f32 %v4052_v15, %v12241_v3  ;;  %13076 = vst [vmem:[#allocation48_spill] sm:$0xff] %v12316_v23  ;;  %v12321_v45 = vadd.f32 %v4344_v50, %v12250_v22  ;;  %v9867_v6 = vcombine.low %v967_v63, %v971_v31  ;;  %v987_v50 = vld [vmem:[#allocation8 + $0xef0] sm:$0xff]  ;;  %v1000_v19 = vld [vmem:[#allocation8 + $0xf58] sm:$0xff] }
 0x2f9   : > { %13071 = vst [vmem:[#allocation43_spill] sm:$0xff] %v12301_v41  ;;  %13074 = vst [vmem:[#allocation46_spill] sm:$0xff] %v12310_v33  ;;  %v9869_v55 = vcombine.low %v968_v54, %v972_v37  ;;  %v9876_v18 = vcombine.high %v975_v13, %v979_v20  ;;  %v9878_v4 = vcombine.high %v976_v57, %v980_v61 }
 0x2fa   : > { %13075 = vst [vmem:[#allocation47_spill] sm:$0xff] %v12313_v47  ;;  %13077 = vst [vmem:[#allocation49_spill] sm:$0xff] %v12321_v45  ;;  %4603 = vmatpush1.bf16.msra.mxu0 %v9859_v0  ;;  %4895 = vmatpush1.bf16.msra.mxu1 %v9861_v58  ;;  %v9875_v63 = vcombine.low %v975_v13, %v979_v20  ;;  %v9877_v31 = vcombine.low %v976_v57, %v980_v61  ;;  %v991_v57 = vld [vmem:[#allocation8 + $0xf10] sm:$0xff]  ;;  %v1004_v47 = vld [vmem:[#allocation8 + $0xf78] sm:$0xff] }
 0x2fb   : > { %4604 = vmatprep.subr.bf16.mxu0 %v9868_v7  ;;  %4896 = vmatprep.subr.bf16.mxu1 %v9870_v44  ;;  %v9884_v0 = vcombine.high %v983_v9, %v987_v50  ;;  %v9886_v7 = vcombine.high %v984_v36, %v988_v42  ;;  %v995_v61 = vld [vmem:[#allocation8 + $0xf30] sm:$0xff] }
 0x2fc   : > { %v4056_v41 = vpop.f32.mrb[8].mxu0  ;;  %v4348_v24 = vpop.f32.mrb[8].mxu1  ;;  %v999_v45 = vld [vmem:[#allocation8 + $0xf50] sm:$0xff] }
 0x2fd   : > { %v4058_v32 = vpop.f32.mrb[9].mxu0  ;;  %v4350_v33 = vpop.f32.mrb[9].mxu1  ;;  %v12330_v58 = vadd.f32 %v4056_v41, %v12229_v48  ;;  %v12336_v29 = vadd.f32 %v4348_v24, %v12237_v2 }
 0x2fe   : > { %v4060_v15 = vpop.f32.mrb[10].mxu0  ;;  %4605 = vmatpush1.bf16.msra.mxu0 %v9867_v6  ;;  %v4352_v54 = vpop.f32.mrb[10].mxu1  ;;  %4897 = vmatpush1.bf16.msra.mxu1 %v9869_v55  ;;  %v12339_v23 = vadd.f32 %v4058_v32, %v12241_v3  ;;  %v992_v32 = vld [vmem:[#allocation8 + $0xf18] sm:$0xff] }
 0x2ff   : > { %13078 = vst [vmem:[#allocation50_spill] sm:$0xff] %v12330_v58  ;;  %v12333_v37 = vadd.f32 %v4060_v15, %v12229_v48  ;;  %v4062_v44 = vpop.f32.mrb[11].mxu0  ;;  %4606 = vmatprep.subr.bf16.mxu0 %v9876_v18  ;;  %13080 = vst [vmem:[#allocation52_spill] sm:$0xff] %v12336_v29  ;;  %v12342_v13 = vadd.f32 %v4352_v54, %v12237_v2  ;;  %v4354_v20 = vpop.f32.mrb[11].mxu1  ;;  %4898 = vmatprep.subr.bf16.mxu1 %v9878_v4  ;;  %v996_v6 = vld [vmem:[#allocation8 + $0xf38] sm:$0xff] }
 0x300   : > { %13081 = vst [vmem:[#allocation53_spill] sm:$0xff] %v12339_v23  ;;  %v12345_v41 = vadd.f32 %v4062_v44, %v12241_v3  ;;  %v12348_v15 = vadd.f32 %v4350_v33, %v12250_v22  ;;  %v12353_v24 = vadd.f32 %v4354_v20, %v12250_v22  ;;  %v9883_v4 = vcombine.low %v983_v9, %v987_v50  ;;  %v1003_v20 = vld [vmem:[#allocation8 + $0xf70] sm:$0xff] }
 0x301   : > { %13079 = vst [vmem:[#allocation51_spill] sm:$0xff] %v12333_v37  ;;  %13082 = vst [vmem:[#allocation54_spill] sm:$0xff] %v12342_v13  ;;  %v9885_v44 = vcombine.low %v984_v36, %v988_v42  ;;  %v9892_v18 = vcombine.high %v991_v57, %v995_v61  ;;  %v9894_v37 = vcombine.high %v992_v32, %v996_v6 }
 0x302   : > { %13083 = vst [vmem:[#allocation55_spill] sm:$0xff] %v12345_v41  ;;  %13084 = vst [vmem:[#allocation56_spill] sm:$0xff] %v12348_v15  ;;  %4607 = vmatpush1.bf16.msra.mxu0 %v9875_v63  ;;  %4899 = vmatpush1.bf16.msra.mxu1 %v9877_v31  ;;  %v9891_v9 = vcombine.low %v991_v57, %v995_v61  ;;  %v9893_v50 = vcombine.low %v992_v32, %v996_v6  ;;  %v1011_v32 = vld [vmem:[#allocation8 + $0xfb0] sm:$0xff] }
 0x303   : > { %13085 = vst [vmem:[#allocation57_spill] sm:$0xff] %v12353_v24  ;;  %4608 = vmatprep.subr.bf16.mxu0 %v9884_v0  ;;  %4900 = vmatprep.subr.bf16.mxu1 %v9886_v7  ;;  %v9900_v63 = vcombine.high %v999_v45, %v1003_v20  ;;  %v9902_v7 = vcombine.high %v1000_v19, %v1004_v47 }
 0x304   : > { %v4066_v58 = vpop.f32.mrb[12].mxu0  ;;  %v4358_v55 = vpop.f32.mrb[12].mxu1 }
 0x305   : > { %v4068_v29 = vpop.f32.mrb[13].mxu0  ;;  %v4360_v13 = vpop.f32.mrb[13].mxu1  ;;  %v12362_v31 = vadd.f32 %v4066_v58, %v12229_v48  ;;  %v12368_v33 = vadd.f32 %v4358_v55, %v12237_v2 }
 0x306   : > { %v4070_v54 = vpop.f32.mrb[14].mxu0  ;;  %4609 = vmatpush1.bf16.msra.mxu0 %v9883_v4  ;;  %v4362_v42 = vpop.f32.mrb[14].mxu1  ;;  %4901 = vmatpush1.bf16.msra.mxu1 %v9885_v44  ;;  %v12371_v15 = vadd.f32 %v4068_v29, %v12241_v3  ;;  %v12380_v6 = vadd.f32 %v4360_v13, %v12250_v22  ;;  %v1008_v29 = vld [vmem:[#allocation8 + $0xf98] sm:$0xff]  ;;  %v9901_v4 = vcombine.low %v1000_v19, %v1004_v47  ;;  %v4987_v13 = vld [vmem:[#allocation11 + $0x20] sm:$0xff] }
 0x307   : > { %13086 = vst [vmem:[#allocation58_spill] sm:$0xff] %v12362_v31  ;;  %v12365_v36 = vadd.f32 %v4070_v54, %v12229_v48  ;;  %v4072_v0 = vpop.f32.mrb[15].mxu0  ;;  %4610 = vmatprep.subr.bf16.mxu0 %v9892_v18  ;;  %13088 = vst [vmem:[#allocation60_spill] sm:$0xff] %v12368_v33  ;;  %v12374_v57 = vadd.f32 %v4362_v42, %v12237_v2  ;;  %v4364_v61 = vpop.f32.mrb[15].mxu1  ;;  %4902 = vmatprep.subr.bf16.mxu1 %v9894_v37  ;;  %v1007_v48 = vld [vmem:[#allocation8 + $0xf90] sm:$0xff]  ;;  %v1012_v54 = vld [vmem:[#allocation8 + $0xfb8] sm:$0xff] }
 0x308   : > { %13089 = vst [vmem:[#allocation61_spill] sm:$0xff] %v12371_v15  ;;  %v12377_v58 = vadd.f32 %v4072_v0, %v12241_v3  ;;  %13092 = vst [vmem:[#allocation64_spill] sm:$0xff] %v12380_v6  ;;  %v12385_v55 = vadd.f32 %v4364_v61, %v12250_v22  ;;  %v9899_v37 = vcombine.low %v999_v45, %v1003_v20  ;;  %v1015_v42 = vld [vmem:[#allocation8 + $0xfd0] sm:$0xff]  ;;  %v1016_v61 = vld [vmem:[#allocation8 + $0xfd8] sm:$0xff] }
 0x309   : > { %13087 = vst [vmem:[#allocation59_spill] sm:$0xff] %v12365_v36  ;;  %13090 = vst [vmem:[#allocation62_spill] sm:$0xff] %v12374_v57  ;;  %v9908_v44 = vcombine.high %v1007_v48, %v1011_v32  ;;  %v9910_v22 = vcombine.high %v1008_v29, %v1012_v54  ;;  %v1019_v0 = vld [vmem:[#allocation8 + $0xff0] sm:$0xff]  ;;  %v1020_v18 = vld [vmem:[#allocation8 + $0xff8] sm:$0xff]  ;;  %v9907_v2 = vcombine.low %v1007_v48, %v1011_v32 }
 0x30a   : > { %13091 = vst [vmem:[#allocation63_spill] sm:$0xff] %v12377_v58  ;;  %13093 = vst [vmem:[#allocation65_spill] sm:$0xff] %v12385_v55  ;;  %4611 = vmatpush1.bf16.msra.mxu0 %v9891_v9  ;;  %4903 = vmatpush1.bf16.msra.mxu1 %v9893_v50  ;;  %v9909_v3 = vcombine.low %v1008_v29, %v1012_v54  ;;  %v9916_v9 = vcombine.high %v1015_v42, %v1019_v0  ;;  %v4983_v20 = vld [vmem:[#allocation11] sm:$0xff]  ;;  %v4984_v50 = vld [vmem:[#allocation11 + $0x8] sm:$0xff] }
 0x30b   : > { %4612 = vmatprep.subr.bf16.mxu0 %v9900_v63  ;;  %4904 = vmatprep.subr.bf16.mxu1 %v9902_v7  ;;  %v9918_v45 = vcombine.high %v1016_v61, %v1020_v18  ;;  %v4988_v63 = vld [vmem:[#allocation11 + $0x28] sm:$0xff]  ;;  %v9915_v19 = vcombine.low %v1015_v42, %v1019_v0  ;;  %v9917_v47 = vcombine.low %v1016_v61, %v1020_v18  ;;  %v4995_v48 = vld [vmem:[#allocation11 + $0x60] sm:$0xff] }
 0x30c   : > { %v9926_v7 = vcombine.high %v4983_v20, %v4987_v13  ;;  %v9928_v6 = vcombine.high %v4984_v50, %v4988_v63  ;;  %v4992_v32 = vld [vmem:[#allocation11 + $0x48] sm:$0xff]  ;;  %v9925_v29 = vcombine.low %v4983_v20, %v4987_v13  ;;  %v9927_v54 = vcombine.low %v4984_v50, %v4988_v63  ;;  %v5003_v42 = vld [vmem:[#allocation11 + $0xa0] sm:$0xff] }
 0x30d   : > { %v5000_v18 = vld [vmem:[#allocation11 + $0x88] sm:$0xff] }
 0x30e   : > { %4613 = vmatpush1.bf16.msra.mxu0 %v9899_v37  ;;  %4905 = vmatpush1.bf16.msra.mxu1 %v9901_v4  ;;  %v4991_v37 = vld [vmem:[#allocation11 + $0x40] sm:$0xff]  ;;  %v4996_v4 = vld [vmem:[#allocation11 + $0x68] sm:$0xff] }
 0x30f   : > { %4614 = vmatprep.subr.bf16.mxu0 %v9908_v44  ;;  %4906 = vmatprep.subr.bf16.mxu1 %v9910_v22  ;;  %v9934_v44 = vcombine.high %v4991_v37, %v4995_v48  ;;  %v9936_v22 = vcombine.high %v4992_v32, %v4996_v4  ;;  %v9933_v0 = vcombine.low %v4991_v37, %v4995_v48  ;;  %v5008_v20 = vld [vmem:[#allocation11 + $0xc8] sm:$0xff]  ;;  %v5015_v37 = vld [vmem:[#allocation11 + $0x100] sm:$0xff] }
 0x310   : > { %v9935_v61 = vcombine.low %v4992_v32, %v4996_v4  ;;  %v5012_v50 = vld [vmem:[#allocation11 + $0xe8] sm:$0xff]  ;;  %v5019_v48 = vld [vmem:[#allocation11 + $0x120] sm:$0xff] }
 0x311   : > { %v5016_v32 = vld [vmem:[#allocation11 + $0x108] sm:$0xff] }
 0x312   : > { %4615 = vmatpush1.bf16.msra.mxu0 %v9907_v2  ;;  %4907 = vmatpush1.bf16.msra.mxu1 %v9909_v3  ;;  %v4999_v2 = vld [vmem:[#allocation11 + $0x80] sm:$0xff]  ;;  %v5004_v3 = vld [vmem:[#allocation11 + $0xa8] sm:$0xff] }
 0x313   : > { %4616 = vmatprep.subr.bf16.mxu0 %v9916_v9  ;;  %4908 = vmatprep.subr.bf16.mxu1 %v9918_v45  ;;  %v9942_v13 = vcombine.high %v4999_v2, %v5003_v42  ;;  %v9944_v9 = vcombine.high %v5000_v18, %v5004_v3  ;;  %v5011_v45 = vld [vmem:[#allocation11 + $0xe0] sm:$0xff]  ;;  %v9941_v63 = vcombine.low %v4999_v2, %v5003_v42  ;;  %v5020_v4 = vld [vmem:[#allocation11 + $0x128] sm:$0xff] }
 0x314   : > { %v5023_v2 = vld [vmem:[#allocation11 + $0x140] sm:$0xff] }
 0x315   : > { %v5027_v42 = vld [vmem:[#allocation11 + $0x160] sm:$0xff] }
 0x316   : > { %4617 = vmatpush1.bf16.msra.mxu0 %v9915_v19  ;;  %4909 = vmatpush1.bf16.msra.mxu1 %v9917_v47  ;;  %v9943_v19 = vcombine.low %v5000_v18, %v5004_v3  ;;  %v5024_v18 = vld [vmem:[#allocation11 + $0x148] sm:$0xff] }
 0x317   : > { %7350 = vmatprep.subr.bf16.mxu0 %v9926_v7  ;;  %7473 = vmatprep.subr.bf16.mxu1 %v9928_v6  ;;  %v5007_v6 = vld [vmem:[#allocation11 + $0xc0] sm:$0xff]  ;;  %v9952_v7 = vcombine.high %v5008_v20, %v5012_v50  ;;  %v5028_v3 = vld [vmem:[#allocation11 + $0x168] sm:$0xff] }
 0x318   : > { %v9950_v47 = vcombine.high %v5007_v6, %v5011_v45 }
 0x319   : > { %4619 = vmatmul.mubr.bf16.vlgmr.msra.gmra.mrb[16].mxu0 %v12141_v10  ;;  %4911 = vmatmul.mubr.bf16.vlgmr.msra.gmra.mrb[16].mxu1 %v12141_v10 }
 0x31a   : > { %7351 = vmatpush1.bf16.msra.mxu0 %v9925_v29  ;;  %7474 = vmatpush1.bf16.msra.mxu1 %v9927_v54  ;;  %v9949_v29 = vcombine.low %v5007_v6, %v5011_v45  ;;  %v9951_v54 = vcombine.low %v5008_v20, %v5012_v50  ;;  %v5031_v6 = vld [vmem:[#allocation11 + $0x180] sm:$0xff]  ;;  %v5032_v20 = vld [vmem:[#allocation11 + $0x188] sm:$0xff] }
 0x31b   : > { %7352 = vmatprep.subr.bf16.mxu0 %v9934_v44  ;;  %7475 = vmatprep.subr.bf16.mxu1 %v9936_v22  ;;  %v9958_v44 = vcombine.high %v5015_v37, %v5019_v48  ;;  %v9960_v22 = vcombine.high %v5016_v32, %v5020_v4  ;;  %v5035_v45 = vld [vmem:[#allocation11 + $0x1a0] sm:$0xff]  ;;  %v5036_v50 = vld [vmem:[#allocation11 + $0x1a8] sm:$0xff] }
 0x31c   : > { %4628 = vmatprep.mubr.bf16.mxu0 %v12145_v25  ;;  %4920 = vmatprep.mubr.bf16.mxu1 %v12145_v25 }
 0x31e   : > { %7353 = vmatpush1.bf16.msra.mxu0 %v9933_v0  ;;  %7476 = vmatpush1.bf16.msra.mxu1 %v9935_v61  ;;  %v9957_v0 = vcombine.low %v5015_v37, %v5019_v48  ;;  %v9959_v61 = vcombine.low %v5016_v32, %v5020_v4  ;;  %v5039_v37 = vld [vmem:[#allocation11 + $0x1c0] sm:$0xff]  ;;  %v5040_v32 = vld [vmem:[#allocation11 + $0x1c8] sm:$0xff] }
 0x31f   : > { %7354 = vmatprep.subr.bf16.mxu0 %v9942_v13  ;;  %7477 = vmatprep.subr.bf16.mxu1 %v9944_v9  ;;  %v9966_v13 = vcombine.high %v5023_v2, %v5027_v42  ;;  %v9968_v9 = vcombine.high %v5024_v18, %v5028_v3  ;;  %v5043_v48 = vld [vmem:[#allocation11 + $0x1e0] sm:$0xff]  ;;  %v5044_v4 = vld [vmem:[#allocation11 + $0x1e8] sm:$0xff] }
 0x321   : > { %4629 = vmatmul.mubr.bf16.gmra.mrb[20].mxu0 %v12151_v38  ;;  %4921 = vmatmul.mubr.bf16.gmra.mrb[20].mxu1 %v12151_v38 }
 0x322   : > { %7355 = vmatpush1.bf16.msra.mxu0 %v9941_v63  ;;  %7478 = vmatpush1.bf16.msra.mxu1 %v9943_v19  ;;  %v9965_v63 = vcombine.low %v5023_v2, %v5027_v42  ;;  %v9967_v19 = vcombine.low %v5024_v18, %v5028_v3  ;;  %v9984_v2 = vcombine.high %v5040_v32, %v5044_v4  ;;  %v5047_v42 = vld [vmem:[#allocation11 + $0x200] sm:$0xff] }
 0x323   : > { %7356 = vmatprep.subr.bf16.mxu0 %v9950_v47  ;;  %7479 = vmatprep.subr.bf16.mxu1 %v9952_v7  ;;  %v9974_v47 = vcombine.high %v5031_v6, %v5035_v45  ;;  %v9976_v7 = vcombine.high %v5032_v20, %v5036_v50  ;;  %v5051_v18 = vld [vmem:[#allocation11 + $0x220] sm:$0xff] }
 0x324   : > { %4638 = vmatprep.mubr.bf16.mxu0 %v12155_v51  ;;  %4930 = vmatprep.mubr.bf16.mxu1 %v12155_v51  ;;  %v5062_v51 = vld [vmem:[#allocation11 + $0x278] sm:$0xff] }
 0x326   : > { %7357 = vmatpush1.bf16.msra.mxu0 %v9949_v29  ;;  %7480 = vmatpush1.bf16.msra.mxu1 %v9951_v54  ;;  %v12406_v29 = vld [vmem:[%s11961_s23] sm:$0xff]  ;;  %v9973_v54 = vcombine.low %v5031_v6, %v5035_v45  ;;  %v9990_v6 = vcombine.high %v5047_v42, %v5051_v18 }
 0x327   : > { %7358 = vmatprep.subr.bf16.mxu0 %v9958_v44  ;;  %7481 = vmatprep.subr.bf16.mxu1 %v9960_v22  ;;  %v9975_v44 = vcombine.low %v5032_v20, %v5036_v50  ;;  %v9982_v22 = vcombine.high %v5039_v37, %v5043_v48  ;;  %v12410_v3 = vcombine.high %v12406_v29, %v12406_v29  ;;  %v5055_v20 = vld [vmem:[#allocation11 + $0x240] sm:$0xff] }
 0x328   : > { %v5059_v50 = vld [vmem:[#allocation11 + $0x260] sm:$0xff] }
 0x329   : > { %4639 = vmatmul.mubr.bf16.gmra.mrb[24].mxu0 %v12161_v14  ;;  %4931 = vmatmul.mubr.bf16.gmra.mrb[24].mxu1 %v12161_v14  ;;  %v5058_v14 = vld [vmem:[#allocation11 + $0x258] sm:$0xff] }
 0x32a   : > { %7359 = vmatpush1.bf16.msra.mxu0 %v9957_v0  ;;  %7482 = vmatpush1.bf16.msra.mxu1 %v9959_v61  ;;  %v5048_v0 = vld [vmem:[#allocation11 + $0x208] sm:$0xff] }
 0x32b   : > { %7360 = vmatprep.subr.bf16.mxu0 %v9966_v13  ;;  %7483 = vmatprep.subr.bf16.mxu1 %v9968_v9  ;;  %v5052_v61 = vld [vmem:[#allocation11 + $0x228] sm:$0xff]  ;;  %v9981_v13 = vcombine.low %v5039_v37, %v5043_v48  ;;  %v9983_v9 = vcombine.low %v5040_v32, %v5044_v4  ;;  %v9998_v37 = vcombine.high %v5055_v20, %v5059_v50  ;;  %v5063_v32 = vld [vmem:[#allocation11 + $0x280] sm:$0xff] }
 0x32c   : > { %4648 = vmatprep.mubr.bf16.mxu0 %v12165_v28  ;;  %4940 = vmatprep.mubr.bf16.mxu1 %v12165_v28  ;;  %v9992_v45 = vcombine.high %v5048_v0, %v5052_v61  ;;  %v5067_v4 = vld [vmem:[#allocation11 + $0x2a0] sm:$0xff] }
 0x32d   : > { %v10006_v55 = vcombine.high %v5063_v32, %v5067_v4 }
 0x32e   : > { %7361 = vmatpush1.bf16.msra.mxu0 %v9965_v63  ;;  %7484 = vmatpush1.bf16.msra.mxu1 %v9967_v19  ;;  %v5056_v63 = vld [vmem:[#allocation11 + $0x248] sm:$0xff] }
 0x32f   : > { %7362 = vmatprep.subr.bf16.mxu0 %v9974_v47  ;;  %7485 = vmatprep.subr.bf16.mxu1 %v9976_v7  ;;  %v5060_v19 = vld [vmem:[#allocation11 + $0x268] sm:$0xff]  ;;  %v9989_v47 = vcombine.low %v5047_v42, %v5051_v18  ;;  %v9991_v7 = vcombine.low %v5048_v0, %v5052_v61  ;;  %v5075_v42 = vld [vmem:[#allocation11 + $0x2e0] sm:$0xff]  ;;  %v10005_v0 = vcombine.low %v5063_v32, %v5067_v4 }
 0x330   : > { %v10000_v48 = vcombine.high %v5056_v63, %v5060_v19  ;;  %v5072_v18 = vld [vmem:[#allocation11 + $0x2c8] sm:$0xff]  ;;  %v5091_v32 = vld [vmem:[#allocation11 + $0x360] sm:$0xff] }
 0x331   : > { %4649 = vmatmul.mubr.bf16.gmra.mrb[28].mxu0 %v12171_v43  ;;  %4941 = vmatmul.mubr.bf16.gmra.mrb[28].mxu1 %v12171_v43  ;;  %v5088_v4 = vld [vmem:[#allocation11 + $0x348] sm:$0xff] }
 0x332   : > { %7363 = vmatpush1.bf16.msra.mxu0 %v9973_v54  ;;  %7486 = vmatpush1.bf16.msra.mxu1 %v9975_v44  ;;  %v5064_v54 = vld [vmem:[#allocation11 + $0x288] sm:$0xff] }
 0x333   : > { %7364 = vmatprep.subr.bf16.mxu0 %v9982_v22  ;;  %7487 = vmatprep.subr.bf16.mxu1 %v9984_v2  ;;  %v5068_v44 = vld [vmem:[#allocation11 + $0x2a8] sm:$0xff]  ;;  %v9997_v22 = vcombine.low %v5055_v20, %v5059_v50  ;;  %v9999_v2 = vcombine.low %v5056_v63, %v5060_v19  ;;  %v5083_v20 = vld [vmem:[#allocation11 + $0x320] sm:$0xff] }
 0x334   : > { %7382 = vmatprep.mubr.bf16.mxu0 %v12410_v3  ;;  %7505 = vmatprep.mubr.bf16.mxu1 %v12410_v3  ;;  %v10008_v33 = vcombine.high %v5064_v54, %v5068_v44  ;;  %v10007_v61 = vcombine.low %v5064_v54, %v5068_v44  ;;  %v5080_v50 = vld [vmem:[#allocation11 + $0x308] sm:$0xff] }
 0x336   : > { %7365 = vmatpush1.bf16.msra.mxu0 %v9981_v13  ;;  %7488 = vmatpush1.bf16.msra.mxu1 %v9983_v9  ;;  %v5071_v13 = vld [vmem:[#allocation11 + $0x2c0] sm:$0xff]  ;;  %v5076_v9 = vld [vmem:[#allocation11 + $0x2e8] sm:$0xff] }
 0x337   : > { %7366 = vmatprep.subr.bf16.mxu0 %v9990_v6  ;;  %7489 = vmatprep.subr.bf16.mxu1 %v9992_v45  ;;  %v10014_v6 = vcombine.high %v5071_v13, %v5075_v42  ;;  %v10016_v45 = vcombine.high %v5072_v18, %v5076_v9  ;;  %v10013_v63 = vcombine.low %v5071_v13, %v5075_v42  ;;  %v5099_v13 = vld [vmem:[#allocation11 + $0x3a0] sm:$0xff]  ;;  %v5096_v42 = vld [vmem:[#allocation11 + $0x388] sm:$0xff] }
 0x338   : > { %v10015_v19 = vcombine.low %v5072_v18, %v5076_v9 }
 0x33a   : > { %7367 = vmatpush1.bf16.msra.mxu0 %v9989_v47  ;;  %7490 = vmatpush1.bf16.msra.mxu1 %v9991_v7  ;;  %v5079_v47 = vld [vmem:[#allocation11 + $0x300] sm:$0xff]  ;;  %v5084_v7 = vld [vmem:[#allocation11 + $0x328] sm:$0xff] }
 0x33b   : > { %7368 = vmatprep.subr.bf16.mxu0 %v9998_v37  ;;  %7491 = vmatprep.subr.bf16.mxu1 %v10000_v48  ;;  %v10022_v37 = vcombine.high %v5079_v47, %v5083_v20  ;;  %v10024_v48 = vcombine.high %v5080_v50, %v5084_v7  ;;  %v10021_v54 = vcombine.low %v5079_v47, %v5083_v20  ;;  %v5107_v47 = vld [vmem:[#allocation11 + $0x3e0] sm:$0xff]  ;;  %v5104_v20 = vld [vmem:[#allocation11 + $0x3c8] sm:$0xff] }
 0x33e   : > { %7369 = vmatpush1.bf16.msra.mxu0 %v9997_v22  ;;  %7492 = vmatpush1.bf16.msra.mxu1 %v9999_v2  ;;  %v5087_v22 = vld [vmem:[#allocation11 + $0x340] sm:$0xff] }
 0x33f   : > { %7370 = vmatprep.subr.bf16.mxu0 %v10006_v55  ;;  %7493 = vmatprep.subr.bf16.mxu1 %v10008_v33  ;;  %v5092_v55 = vld [vmem:[#allocation11 + $0x368] sm:$0xff]  ;;  %v10023_v33 = vcombine.low %v5080_v50, %v5084_v7  ;;  %v10030_v44 = vcombine.high %v5087_v22, %v5091_v32  ;;  %v10029_v18 = vcombine.low %v5087_v22, %v5091_v32  ;;  %v5115_v22 = vld [vmem:[#allocation11 + $0x420] sm:$0xff] }
 0x340   : > { %v10032_v2 = vcombine.high %v5088_v4, %v5092_v55  ;;  %v10031_v9 = vcombine.low %v5088_v4, %v5092_v55  ;;  %v5112_v32 = vld [vmem:[#allocation11 + $0x408] sm:$0xff] }
 0x341   : > { %v5116_v4 = vld [vmem:[#allocation11 + $0x428] sm:$0xff] }
 0x342   : > { %7371 = vmatpush1.bf16.msra.mxu0 %v10005_v0  ;;  %7494 = vmatpush1.bf16.msra.mxu1 %v10007_v61  ;;  %v5095_v0 = vld [vmem:[#allocation11 + $0x380] sm:$0xff]  ;;  %v5100_v61 = vld [vmem:[#allocation11 + $0x3a8] sm:$0xff] }
 0x343   : > { %7372 = vmatprep.subr.bf16.mxu0 %v10014_v6  ;;  %7495 = vmatprep.subr.bf16.mxu1 %v10016_v45  ;;  %v10038_v6 = vcombine.high %v5095_v0, %v5099_v13  ;;  %v10040_v45 = vcombine.high %v5096_v42, %v5100_v61  ;;  %v10037_v50 = vcombine.low %v5095_v0, %v5099_v13  ;;  %v5119_v0 = vld [vmem:[#allocation11 + $0x440] sm:$0xff] }
 0x344   : > { %v10039_v7 = vcombine.low %v5096_v42, %v5100_v61  ;;  %v5123_v13 = vld [vmem:[#allocation11 + $0x460] sm:$0xff]  ;;  %v12418_v42 = vcombine.low %v12406_v29, %v12406_v29  ;;  %v5120_v61 = vld [vmem:[#allocation11 + $0x448] sm:$0xff] }
 0x345   : > { %v5128_v29 = vld [vmem:[#allocation11 + $0x488] sm:$0xff] }
 0x346   : > { %7373 = vmatpush1.bf16.msra.mxu0 %v10013_v63  ;;  %7496 = vmatpush1.bf16.msra.mxu1 %v10015_v19  ;;  %v5103_v63 = vld [vmem:[#allocation11 + $0x3c0] sm:$0xff]  ;;  %v5108_v19 = vld [vmem:[#allocation11 + $0x3e8] sm:$0xff] }
 0x347   : > { %7374 = vmatprep.subr.bf16.mxu0 %v10022_v37  ;;  %7497 = vmatprep.subr.bf16.mxu1 %v10024_v48  ;;  %v10046_v37 = vcombine.high %v5103_v63, %v5107_v47  ;;  %v10048_v48 = vcombine.high %v5104_v20, %v5108_v19  ;;  %v10045_v55 = vcombine.low %v5103_v63, %v5107_v47 }
 0x348   : > { %v10062_v63 = vcombine.high %v5119_v0, %v5123_v13 }
 0x34a   : > { %7375 = vmatpush1.bf16.msra.mxu0 %v10021_v54  ;;  %7498 = vmatpush1.bf16.msra.mxu1 %v10023_v33  ;;  %v5111_v54 = vld [vmem:[#allocation11 + $0x400] sm:$0xff]  ;;  %v10047_v33 = vcombine.low %v5104_v20, %v5108_v19 }
 0x34b   : > { %7376 = vmatprep.subr.bf16.mxu0 %v10030_v44  ;;  %7499 = vmatprep.subr.bf16.mxu1 %v10032_v2  ;;  %v10054_v44 = vcombine.high %v5111_v54, %v5115_v22  ;;  %v10056_v2 = vcombine.high %v5112_v32, %v5116_v4  ;;  %v5127_v20 = vld [vmem:[#allocation11 + $0x480] sm:$0xff] }
 0x34c   : > { %v5131_v19 = vld [vmem:[#allocation11 + $0x4a0] sm:$0xff] }
 0x34e   : > { %7377 = vmatpush1.bf16.msra.mxu0 %v10029_v18  ;;  %7500 = vmatpush1.bf16.msra.mxu1 %v10031_v9  ;;  %v5124_v18 = vld [vmem:[#allocation11 + $0x468] sm:$0xff]  ;;  %v12421_v9 = vld [vmem:[%s11961_s23 + $0x8] sm:$0xff] }
 0x34f   : > { %7378 = vmatprep.subr.bf16.mxu0 %v10038_v6  ;;  %7501 = vmatprep.subr.bf16.mxu1 %v10040_v45  ;;  %v10053_v6 = vcombine.low %v5111_v54, %v5115_v22  ;;  %v10055_v45 = vcombine.low %v5112_v32, %v5116_v4  ;;  %v10064_v47 = vcombine.high %v5120_v61, %v5124_v18  ;;  %v5135_v32 = vld [vmem:[#allocation11 + $0x4c0] sm:$0xff] }
 0x350   : > { %v10070_v54 = vcombine.high %v5127_v20, %v5131_v19  ;;  %v5139_v4 = vld [vmem:[#allocation11 + $0x4e0] sm:$0xff] }
 0x352   : > { %7379 = vmatpush1.bf16.msra.mxu0 %v10037_v50  ;;  %7502 = vmatpush1.bf16.msra.mxu1 %v10039_v7  ;;  %v12425_v50 = vcombine.high %v12421_v9, %v12421_v9  ;;  %v5132_v7 = vld [vmem:[#allocation11 + $0x4a8] sm:$0xff] }
 0x353   : > { %7380 = vmatprep.subr.bf16.mxu0 %v10046_v37  ;;  %7503 = vmatprep.subr.bf16.mxu1 %v10048_v48  ;;  %v10061_v37 = vcombine.low %v5119_v0, %v5123_v13  ;;  %v10063_v48 = vcombine.low %v5120_v61, %v5124_v18  ;;  %v10072_v22 = vcombine.high %v5128_v29, %v5132_v7  ;;  %v5143_v61 = vld [vmem:[#allocation11 + $0x500] sm:$0xff] }
 0x354   : > { %v10078_v0 = vcombine.high %v5135_v32, %v5139_v4  ;;  %v5147_v18 = vld [vmem:[#allocation11 + $0x520] sm:$0xff] }
 0x355   : > { %v10086_v57 = vcombine.high %v5143_v61, %v5147_v18 }
 0x356   : > { %7381 = vmatpush1.bf16.msra.mxu0 %v10045_v55  ;;  %7504 = vmatpush1.bf16.msra.mxu1 %v10047_v33  ;;  %v5136_v55 = vld [vmem:[#allocation11 + $0x4c8] sm:$0xff] }
 0x357   : > { %7391 = vmatprep.subr.bf16.mxu0 %v10054_v44  ;;  %7514 = vmatprep.subr.bf16.mxu1 %v10056_v2  ;;  %v5140_v33 = vld [vmem:[#allocation11 + $0x4e8] sm:$0xff]  ;;  %v10069_v44 = vcombine.low %v5127_v20, %v5131_v19  ;;  %v10071_v2 = vcombine.low %v5128_v29, %v5132_v7  ;;  %v5155_v20 = vld [vmem:[#allocation11 + $0x560] sm:$0xff]  ;;  %v10085_v29 = vcombine.low %v5143_v61, %v5147_v18 }
 0x358   : > { %v10080_v13 = vcombine.high %v5136_v55, %v5140_v33  ;;  %v5152_v19 = vld [vmem:[#allocation11 + $0x548] sm:$0xff]  ;;  %v5171_v61 = vld [vmem:[#allocation11 + $0x5e0] sm:$0xff] }
 0x359   : > { %7383 = vmatmul.mubr.bf16.vlgmr.msra.gmra.mrb[32].mxu0 %v12418_v42  ;;  %7506 = vmatmul.mubr.bf16.vlgmr.msra.gmra.mrb[32].mxu1 %v12418_v42  ;;  %v5168_v18 = vld [vmem:[#allocation11 + $0x5c8] sm:$0xff] }
 0x35a   : > { %7392 = vmatpush1.bf16.msra.mxu0 %v10053_v6  ;;  %7515 = vmatpush1.bf16.msra.mxu1 %v10055_v45  ;;  %v5144_v6 = vld [vmem:[#allocation11 + $0x508] sm:$0xff] }
 0x35b   : > { %7393 = vmatprep.subr.bf16.mxu0 %v10062_v63  ;;  %7516 = vmatprep.subr.bf16.mxu1 %v10064_v47  ;;  %v5148_v45 = vld [vmem:[#allocation11 + $0x528] sm:$0xff]  ;;  %v10077_v63 = vcombine.low %v5135_v32, %v5139_v4  ;;  %v10079_v47 = vcombine.low %v5136_v55, %v5140_v33  ;;  %v5163_v32 = vld [vmem:[#allocation11 + $0x5a0] sm:$0xff] }
 0x35c   : > { %7423 = vmatprep.mubr.bf16.mxu0 %v12425_v50  ;;  %7546 = vmatprep.mubr.bf16.mxu1 %v12425_v50  ;;  %v10088_v24 = vcombine.high %v5144_v6, %v5148_v45  ;;  %v10087_v7 = vcombine.low %v5144_v6, %v5148_v45  ;;  %v5160_v4 = vld [vmem:[#allocation11 + $0x588] sm:$0xff] }
 0x35e   : > { %7394 = vmatpush1.bf16.msra.mxu0 %v10061_v37  ;;  %7517 = vmatpush1.bf16.msra.mxu1 %v10063_v48  ;;  %v5151_v37 = vld [vmem:[#allocation11 + $0x540] sm:$0xff]  ;;  %v5156_v48 = vld [vmem:[#allocation11 + $0x568] sm:$0xff] }
 0x35f   : > { %7395 = vmatprep.subr.bf16.mxu0 %v10070_v54  ;;  %7518 = vmatprep.subr.bf16.mxu1 %v10072_v22  ;;  %v10094_v54 = vcombine.high %v5151_v37, %v5155_v20  ;;  %v10096_v22 = vcombine.high %v5152_v19, %v5156_v48  ;;  %v10093_v55 = vcombine.low %v5151_v37, %v5155_v20  ;;  %v5179_v37 = vld [vmem:[#allocation11 + $0x620] sm:$0xff]  ;;  %v5176_v20 = vld [vmem:[#allocation11 + $0x608] sm:$0xff] }
 0x360   : > { %v10095_v33 = vcombine.low %v5152_v19, %v5156_v48 }
 0x362   : > { %7396 = vmatpush1.bf16.msra.mxu0 %v10069_v44  ;;  %7519 = vmatpush1.bf16.msra.mxu1 %v10071_v2  ;;  %v5159_v44 = vld [vmem:[#allocation11 + $0x580] sm:$0xff]  ;;  %v5164_v2 = vld [vmem:[#allocation11 + $0x5a8] sm:$0xff] }
 0x363   : > { %7397 = vmatprep.subr.bf16.mxu0 %v10078_v0  ;;  %7520 = vmatprep.subr.bf16.mxu1 %v10080_v13  ;;  %v10102_v0 = vcombine.high %v5159_v44, %v5163_v32  ;;  %v10104_v13 = vcombine.high %v5160_v4, %v5164_v2  ;;  %v10101_v6 = vcombine.low %v5159_v44, %v5163_v32  ;;  %v5187_v44 = vld [vmem:[#allocation11 + $0x660] sm:$0xff]  ;;  %v5184_v32 = vld [vmem:[#allocation11 + $0x648] sm:$0xff] }
 0x366   : > { %7398 = vmatpush1.bf16.msra.mxu0 %v10077_v63  ;;  %7521 = vmatpush1.bf16.msra.mxu1 %v10079_v47  ;;  %v5167_v63 = vld [vmem:[#allocation11 + $0x5c0] sm:$0xff] }
 0x367   : > { %7399 = vmatprep.subr.bf16.mxu0 %v10086_v57  ;;  %7522 = vmatprep.subr.bf16.mxu1 %v10088_v24  ;;  %v5172_v57 = vld [vmem:[#allocation11 + $0x5e8] sm:$0xff]  ;;  %v10103_v24 = vcombine.low %v5160_v4, %v5164_v2  ;;  %v10110_v45 = vcombine.high %v5167_v63, %v5171_v61  ;;  %v10109_v19 = vcombine.low %v5167_v63, %v5171_v61  ;;  %v5195_v63 = vld [vmem:[#allocation11 + $0x6a0] sm:$0xff] }
 0x368   : > { %v10112_v47 = vcombine.high %v5168_v18, %v5172_v57  ;;  %v10111_v48 = vcombine.low %v5168_v18, %v5172_v57  ;;  %v5192_v61 = vld [vmem:[#allocation11 + $0x688] sm:$0xff] }
 0x36a   : > { %7400 = vmatpush1.bf16.msra.mxu0 %v10085_v29  ;;  %7523 = vmatpush1.bf16.msra.mxu1 %v10087_v7  ;;  %v5175_v29 = vld [vmem:[#allocation11 + $0x600] sm:$0xff]  ;;  %v5180_v7 = vld [vmem:[#allocation11 + $0x628] sm:$0xff] }
 0x36b   : > { %7401 = vmatprep.subr.bf16.mxu0 %v10094_v54  ;;  %7524 = vmatprep.subr.bf16.mxu1 %v10096_v22  ;;  %v10118_v54 = vcombine.high %v5175_v29, %v5179_v37  ;;  %v10120_v22 = vcombine.high %v5176_v20, %v5180_v7  ;;  %v10117_v4 = vcombine.low %v5175_v29, %v5179_v37  ;;  %v5203_v29 = vld [vmem:[#allocation11 + $0x6e0] sm:$0xff]  ;;  %v5200_v37 = vld [vmem:[#allocation11 + $0x6c8] sm:$0xff] }
 0x36c   : > { %v10119_v2 = vcombine.low %v5176_v20, %v5180_v7 }
 0x36e   : > { %7402 = vmatpush1.bf16.msra.mxu0 %v10093_v55  ;;  %7525 = vmatpush1.bf16.msra.mxu1 %v10095_v33  ;;  %v5183_v55 = vld [vmem:[#allocation11 + $0x640] sm:$0xff]  ;;  %v5188_v33 = vld [vmem:[#allocation11 + $0x668] sm:$0xff] }
 0x36f   : > { %7403 = vmatprep.subr.bf16.mxu0 %v10102_v0  ;;  %7526 = vmatprep.subr.bf16.mxu1 %v10104_v13  ;;  %v10126_v0 = vcombine.high %v5183_v55, %v5187_v44  ;;  %v10128_v13 = vcombine.high %v5184_v32, %v5188_v33  ;;  %v10125_v18 = vcombine.low %v5183_v55, %v5187_v44  ;;  %v5211_v55 = vld [vmem:[#allocation11 + $0x720] sm:$0xff]  ;;  %v5208_v44 = vld [vmem:[#allocation11 + $0x708] sm:$0xff] }
 0x370   : > { %v10127_v57 = vcombine.low %v5184_v32, %v5188_v33 }
 0x372   : > { %7404 = vmatpush1.bf16.msra.mxu0 %v10101_v6  ;;  %7527 = vmatpush1.bf16.msra.mxu1 %v10103_v24  ;;  %v5191_v6 = vld [vmem:[#allocation11 + $0x680] sm:$0xff]  ;;  %v5196_v24 = vld [vmem:[#allocation11 + $0x6a8] sm:$0xff] }
 0x373   : > { %7405 = vmatprep.subr.bf16.mxu0 %v10110_v45  ;;  %7528 = vmatprep.subr.bf16.mxu1 %v10112_v47  ;;  %v10134_v45 = vcombine.high %v5191_v6, %v5195_v63  ;;  %v10136_v47 = vcombine.high %v5192_v61, %v5196_v24  ;;  %v10133_v20 = vcombine.low %v5191_v6, %v5195_v63  ;;  %v5219_v6 = vld [vmem:[#allocation11 + $0x760] sm:$0xff]  ;;  %v5216_v63 = vld [vmem:[#allocation11 + $0x748] sm:$0xff] }
 0x374   : > { %v10135_v7 = vcombine.low %v5192_v61, %v5196_v24 }
 0x376   : > { %7406 = vmatpush1.bf16.msra.mxu0 %v10109_v19  ;;  %7529 = vmatpush1.bf16.msra.mxu1 %v10111_v48  ;;  %v5199_v19 = vld [vmem:[#allocation11 + $0x6c0] sm:$0xff]  ;;  %v5204_v48 = vld [vmem:[#allocation11 + $0x6e8] sm:$0xff] }
 0x377   : > { %7407 = vmatprep.subr.bf16.mxu0 %v10118_v54  ;;  %7530 = vmatprep.subr.bf16.mxu1 %v10120_v22  ;;  %v10142_v54 = vcombine.high %v5199_v19, %v5203_v29  ;;  %v10144_v22 = vcombine.high %v5200_v37, %v5204_v48  ;;  %v10141_v32 = vcombine.low %v5199_v19, %v5203_v29  ;;  %v5227_v19 = vld [vmem:[#allocation11 + $0x7a0] sm:$0xff]  ;;  %v5224_v29 = vld [vmem:[#allocation11 + $0x788] sm:$0xff] }
 0x378   : > { %v10143_v33 = vcombine.low %v5200_v37, %v5204_v48 }
 0x37a   : > { %7408 = vmatpush1.bf16.msra.mxu0 %v10117_v4  ;;  %7531 = vmatpush1.bf16.msra.mxu1 %v10119_v2  ;;  %v5207_v4 = vld [vmem:[#allocation11 + $0x700] sm:$0xff]  ;;  %v5212_v2 = vld [vmem:[#allocation11 + $0x728] sm:$0xff] }
 0x37b   : > { %7409 = vmatprep.subr.bf16.mxu0 %v10126_v0  ;;  %7532 = vmatprep.subr.bf16.mxu1 %v10128_v13  ;;  %v10150_v0 = vcombine.high %v5207_v4, %v5211_v55  ;;  %v10152_v13 = vcombine.high %v5208_v44, %v5212_v2  ;;  %v10149_v61 = vcombine.low %v5207_v4, %v5211_v55  ;;  %v5235_v4 = vld [vmem:[#allocation11 + $0x7e0] sm:$0xff]  ;;  %v5232_v55 = vld [vmem:[#allocation11 + $0x7c8] sm:$0xff] }
 0x37c   : > { %v10151_v24 = vcombine.low %v5208_v44, %v5212_v2 }
 0x37e   : > { %7410 = vmatpush1.bf16.msra.mxu0 %v10125_v18  ;;  %7533 = vmatpush1.bf16.msra.mxu1 %v10127_v57  ;;  %v5215_v18 = vld [vmem:[#allocation11 + $0x740] sm:$0xff]  ;;  %v5220_v57 = vld [vmem:[#allocation11 + $0x768] sm:$0xff] }
 0x37f   : > { %7411 = vmatprep.subr.bf16.mxu0 %v10134_v45  ;;  %7534 = vmatprep.subr.bf16.mxu1 %v10136_v47  ;;  %v10158_v45 = vcombine.high %v5215_v18, %v5219_v6  ;;  %v10160_v47 = vcombine.high %v5216_v63, %v5220_v57  ;;  %v10157_v37 = vcombine.low %v5215_v18, %v5219_v6  ;;  %v5243_v18 = vld [vmem:[#allocation11 + $0x820] sm:$0xff]  ;;  %v5240_v6 = vld [vmem:[#allocation11 + $0x808] sm:$0xff] }
 0x380   : > { %v10159_v48 = vcombine.low %v5216_v63, %v5220_v57  ;;  %v5244_v63 = vld [vmem:[#allocation11 + $0x828] sm:$0xff] }
 0x382   : > { %7412 = vmatpush1.bf16.msra.mxu0 %v10133_v20  ;;  %7535 = vmatpush1.bf16.msra.mxu1 %v10135_v7  ;;  %v5223_v20 = vld [vmem:[#allocation11 + $0x780] sm:$0xff]  ;;  %v5228_v7 = vld [vmem:[#allocation11 + $0x7a8] sm:$0xff] }
 0x383   : > { %7413 = vmatprep.subr.bf16.mxu0 %v10142_v54  ;;  %7536 = vmatprep.subr.bf16.mxu1 %v10144_v22  ;;  %v10166_v54 = vcombine.high %v5223_v20, %v5227_v19  ;;  %v10168_v22 = vcombine.high %v5224_v29, %v5228_v7  ;;  %v10165_v44 = vcombine.low %v5223_v20, %v5227_v19  ;;  %v5247_v20 = vld [vmem:[#allocation11 + $0x840] sm:$0xff] }
 0x384   : > { %v10167_v2 = vcombine.low %v5224_v29, %v5228_v7  ;;  %v5251_v19 = vld [vmem:[#allocation11 + $0x860] sm:$0xff]  ;;  %v12433_v29 = vcombine.low %v12421_v9, %v12421_v9  ;;  %v5248_v7 = vld [vmem:[#allocation11 + $0x848] sm:$0xff] }
 0x385   : > { %v5256_v9 = vld [vmem:[#allocation11 + $0x888] sm:$0xff] }
 0x386   : > { %7414 = vmatpush1.bf16.msra.mxu0 %v10141_v32  ;;  %7537 = vmatpush1.bf16.msra.mxu1 %v10143_v33  ;;  %v5231_v32 = vld [vmem:[#allocation11 + $0x7c0] sm:$0xff]  ;;  %v5236_v33 = vld [vmem:[#allocation11 + $0x7e8] sm:$0xff] }
 0x387   : > { %7415 = vmatprep.subr.bf16.mxu0 %v10150_v0  ;;  %7538 = vmatprep.subr.bf16.mxu1 %v10152_v13  ;;  %v10174_v0 = vcombine.high %v5231_v32, %v5235_v4  ;;  %v10176_v13 = vcombine.high %v5232_v55, %v5236_v33  ;;  %v10173_v57 = vcombine.low %v5231_v32, %v5235_v4 }
 0x388   : > { %v10190_v32 = vcombine.high %v5247_v20, %v5251_v19 }
 0x38a   : > { %7416 = vmatpush1.bf16.msra.mxu0 %v10149_v61  ;;  %7539 = vmatpush1.bf16.msra.mxu1 %v10151_v24  ;;  %v5239_v61 = vld [vmem:[#allocation11 + $0x800] sm:$0xff]  ;;  %v10175_v24 = vcombine.low %v5232_v55, %v5236_v33 }
 0x38b   : > { %7417 = vmatprep.subr.bf16.mxu0 %v10158_v45  ;;  %7540 = vmatprep.subr.bf16.mxu1 %v10160_v47  ;;  %v10182_v45 = vcombine.high %v5239_v61, %v5243_v18  ;;  %v10184_v47 = vcombine.high %v5240_v6, %v5244_v63  ;;  %v5255_v55 = vld [vmem:[#allocation11 + $0x880] sm:$0xff] }
 0x38c   : > { %v5259_v33 = vld [vmem:[#allocation11 + $0x8a0] sm:$0xff] }
 0x38e   : > { %7418 = vmatpush1.bf16.msra.mxu0 %v10157_v37  ;;  %7541 = vmatpush1.bf16.msra.mxu1 %v10159_v48  ;;  %v5252_v37 = vld [vmem:[#allocation11 + $0x868] sm:$0xff] }
 0x38f   : > { %7419 = vmatprep.subr.bf16.mxu0 %v10166_v54  ;;  %7542 = vmatprep.subr.bf16.mxu1 %v10168_v22  ;;  %v12436_v48 = vld [vmem:[%s11961_s23 + $0x10] sm:$0xff]  ;;  %v10181_v54 = vcombine.low %v5239_v61, %v5243_v18  ;;  %v10183_v22 = vcombine.low %v5240_v6, %v5244_v63  ;;  %v10192_v4 = vcombine.high %v5248_v7, %v5252_v37  ;;  %v5263_v6 = vld [vmem:[#allocation11 + $0x8c0] sm:$0xff] }
 0x390   : > { %v10198_v61 = vcombine.high %v5255_v55, %v5259_v33  ;;  %v5267_v63 = vld [vmem:[#allocation11 + $0x8e0] sm:$0xff] }
 0x392   : > { %7420 = vmatpush1.bf16.msra.mxu0 %v10165_v44  ;;  %7543 = vmatpush1.bf16.msra.mxu1 %v10167_v2  ;;  %v12440_v44 = vcombine.high %v12436_v48, %v12436_v48  ;;  %v5260_v2 = vld [vmem:[#allocation11 + $0x8a8] sm:$0xff] }
 0x393   : > { %7421 = vmatprep.subr.bf16.mxu0 %v10174_v0  ;;  %7544 = vmatprep.subr.bf16.mxu1 %v10176_v13  ;;  %v10189_v0 = vcombine.low %v5247_v20, %v5251_v19  ;;  %v10191_v13 = vcombine.low %v5248_v7, %v5252_v37  ;;  %v10200_v18 = vcombine.high %v5256_v9, %v5260_v2  ;;  %v5271_v7 = vld [vmem:[#allocation11 + $0x900] sm:$0xff] }
 0x394   : > { %v10206_v20 = vcombine.high %v5263_v6, %v5267_v63  ;;  %v5275_v37 = vld [vmem:[#allocation11 + $0x920] sm:$0xff] }
 0x395   : > { %v10214_v15 = vcombine.high %v5271_v7, %v5275_v37 }
 0x396   : > { %7422 = vmatpush1.bf16.msra.mxu0 %v10173_v57  ;;  %7545 = vmatpush1.bf16.msra.mxu1 %v10175_v24  ;;  %v5264_v57 = vld [vmem:[#allocation11 + $0x8c8] sm:$0xff] }
 0x397   : > { %7432 = vmatprep.subr.bf16.mxu0 %v10182_v45  ;;  %7555 = vmatprep.subr.bf16.mxu1 %v10184_v47  ;;  %v5268_v24 = vld [vmem:[#allocation11 + $0x8e8] sm:$0xff]  ;;  %v10197_v45 = vcombine.low %v5255_v55, %v5259_v33  ;;  %v10199_v47 = vcombine.low %v5256_v9, %v5260_v2  ;;  %v5283_v55 = vld [vmem:[#allocation11 + $0x960] sm:$0xff]  ;;  %v10213_v9 = vcombine.low %v5271_v7, %v5275_v37 }
 0x398   : > { %v10208_v19 = vcombine.high %v5264_v57, %v5268_v24  ;;  %v5280_v33 = vld [vmem:[#allocation11 + $0x948] sm:$0xff]  ;;  %v5299_v7 = vld [vmem:[#allocation11 + $0x9e0] sm:$0xff] }
 0x399   : > { %7424 = vmatmul.mubr.bf16.vlgmr.msra.gmra.mrb[32].mxu0 %v12433_v29  ;;  %7547 = vmatmul.mubr.bf16.vlgmr.msra.gmra.mrb[32].mxu1 %v12433_v29  ;;  %v5296_v37 = vld [vmem:[#allocation11 + $0x9c8] sm:$0xff] }
 0x39a   : > { %7433 = vmatpush1.bf16.msra.mxu0 %v10181_v54  ;;  %7556 = vmatpush1.bf16.msra.mxu1 %v10183_v22  ;;  %v5272_v54 = vld [vmem:[#allocation11 + $0x908] sm:$0xff] }
 0x39b   : > { %7434 = vmatprep.subr.bf16.mxu0 %v10190_v32  ;;  %7557 = vmatprep.subr.bf16.mxu1 %v10192_v4  ;;  %v5276_v22 = vld [vmem:[#allocation11 + $0x928] sm:$0xff]  ;;  %v10205_v32 = vcombine.low %v5263_v6, %v5267_v63  ;;  %v10207_v4 = vcombine.low %v5264_v57, %v5268_v24  ;;  %v5291_v6 = vld [vmem:[#allocation11 + $0x9a0] sm:$0xff] }
 0x39c   : > { %7464 = vmatprep.mubr.bf16.mxu0 %v12440_v44  ;;  %7587 = vmatprep.mubr.bf16.mxu1 %v12440_v44  ;;  %v10216_v58 = vcombine.high %v5272_v54, %v5276_v22  ;;  %v10215_v2 = vcombine.low %v5272_v54, %v5276_v22  ;;  %v5288_v63 = vld [vmem:[#allocation11 + $0x988] sm:$0xff] }
 0x39e   : > { %7435 = vmatpush1.bf16.msra.mxu0 %v10189_v0  ;;  %7558 = vmatpush1.bf16.msra.mxu1 %v10191_v13  ;;  %v5279_v0 = vld [vmem:[#allocation11 + $0x940] sm:$0xff]  ;;  %v5284_v13 = vld [vmem:[#allocation11 + $0x968] sm:$0xff] }
 0x39f   : > { %7436 = vmatprep.subr.bf16.mxu0 %v10198_v61  ;;  %7559 = vmatprep.subr.bf16.mxu1 %v10200_v18  ;;  %v10222_v61 = vcombine.high %v5279_v0, %v5283_v55  ;;  %v10224_v18 = vcombine.high %v5280_v33, %v5284_v13  ;;  %v10221_v57 = vcombine.low %v5279_v0, %v5283_v55  ;;  %v5307_v0 = vld [vmem:[#allocation11 + $0xa20] sm:$0xff]  ;;  %v5304_v55 = vld [vmem:[#allocation11 + $0xa08] sm:$0xff] }
 0x3a0   : > { %v10223_v24 = vcombine.low %v5280_v33, %v5284_v13 }
 0x3a2   : > { %7437 = vmatpush1.bf16.msra.mxu0 %v10197_v45  ;;  %7560 = vmatpush1.bf16.msra.mxu1 %v10199_v47  ;;  %v5287_v45 = vld [vmem:[#allocation11 + $0x980] sm:$0xff]  ;;  %v5292_v47 = vld [vmem:[#allocation11 + $0x9a8] sm:$0xff] }
 0x3a3   : > { %7438 = vmatprep.subr.bf16.mxu0 %v10206_v20  ;;  %7561 = vmatprep.subr.bf16.mxu1 %v10208_v19  ;;  %v10230_v20 = vcombine.high %v5287_v45, %v5291_v6  ;;  %v10232_v19 = vcombine.high %v5288_v63, %v5292_v47  ;;  %v10229_v54 = vcombine.low %v5287_v45, %v5291_v6  ;;  %v5315_v45 = vld [vmem:[#allocation11 + $0xa60] sm:$0xff]  ;;  %v5312_v6 = vld [vmem:[#allocation11 + $0xa48] sm:$0xff] }
 0x3a6   : > { %7439 = vmatpush1.bf16.msra.mxu0 %v10205_v32  ;;  %7562 = vmatpush1.bf16.msra.mxu1 %v10207_v4  ;;  %v5295_v32 = vld [vmem:[#allocation11 + $0x9c0] sm:$0xff] }
 0x3a7   : > { %7440 = vmatprep.subr.bf16.mxu0 %v10214_v15  ;;  %7563 = vmatprep.subr.bf16.mxu1 %v10216_v58  ;;  %v5300_v15 = vld [vmem:[#allocation11 + $0x9e8] sm:$0xff]  ;;  %v10231_v58 = vcombine.low %v5288_v63, %v5292_v47  ;;  %v10238_v22 = vcombine.high %v5295_v32, %v5299_v7  ;;  %v10237_v33 = vcombine.low %v5295_v32, %v5299_v7  ;;  %v5323_v32 = vld [vmem:[#allocation11 + $0xaa0] sm:$0xff] }
 0x3a8   : > { %v10240_v4 = vcombine.high %v5296_v37, %v5300_v15  ;;  %v10239_v13 = vcombine.low %v5296_v37, %v5300_v15  ;;  %v5320_v7 = vld [vmem:[#allocation11 + $0xa88] sm:$0xff] }
 0x3aa   : > { %7441 = vmatpush1.bf16.msra.mxu0 %v10213_v9  ;;  %7564 = vmatpush1.bf16.msra.mxu1 %v10215_v2  ;;  %v5303_v9 = vld [vmem:[#allocation11 + $0xa00] sm:$0xff]  ;;  %v5308_v2 = vld [vmem:[#allocation11 + $0xa28] sm:$0xff] }
 0x3ab   : > { %7442 = vmatprep.subr.bf16.mxu0 %v10222_v61  ;;  %7565 = vmatprep.subr.bf16.mxu1 %v10224_v18  ;;  %v10246_v61 = vcombine.high %v5303_v9, %v5307_v0  ;;  %v10248_v18 = vcombine.high %v5304_v55, %v5308_v2  ;;  %v10245_v63 = vcombine.low %v5303_v9, %v5307_v0  ;;  %v5331_v9 = vld [vmem:[#allocation11 + $0xae0] sm:$0xff]  ;;  %v5328_v0 = vld [vmem:[#allocation11 + $0xac8] sm:$0xff] }
 0x3ac   : > { %v10247_v47 = vcombine.low %v5304_v55, %v5308_v2 }
 0x3ae   : > { %7443 = vmatpush1.bf16.msra.mxu0 %v10221_v57  ;;  %7566 = vmatpush1.bf16.msra.mxu1 %v10223_v24  ;;  %v5311_v57 = vld [vmem:[#allocation11 + $0xa40] sm:$0xff]  ;;  %v5316_v24 = vld [vmem:[#allocation11 + $0xa68] sm:$0xff] }
 0x3af   : > { %7444 = vmatprep.subr.bf16.mxu0 %v10230_v20  ;;  %7567 = vmatprep.subr.bf16.mxu1 %v10232_v19  ;;  %v10254_v20 = vcombine.high %v5311_v57, %v5315_v45  ;;  %v10256_v19 = vcombine.high %v5312_v6, %v5316_v24  ;;  %v10253_v37 = vcombine.low %v5311_v57, %v5315_v45  ;;  %v5339_v57 = vld [vmem:[#allocation11 + $0xb20] sm:$0xff]  ;;  %v5336_v45 = vld [vmem:[#allocation11 + $0xb08] sm:$0xff] }
 0x3b0   : > { %v10255_v15 = vcombine.low %v5312_v6, %v5316_v24 }
 0x3b2   : > { %7445 = vmatpush1.bf16.msra.mxu0 %v10229_v54  ;;  %7568 = vmatpush1.bf16.msra.mxu1 %v10231_v58  ;;  %v5319_v54 = vld [vmem:[#allocation11 + $0xa80] sm:$0xff]  ;;  %v5324_v58 = vld [vmem:[#allocation11 + $0xaa8] sm:$0xff] }
 0x3b3   : > { %7446 = vmatprep.subr.bf16.mxu0 %v10238_v22  ;;  %7569 = vmatprep.subr.bf16.mxu1 %v10240_v4  ;;  %v10262_v22 = vcombine.high %v5319_v54, %v5323_v32  ;;  %v10264_v4 = vcombine.high %v5320_v7, %v5324_v58  ;;  %v10261_v55 = vcombine.low %v5319_v54, %v5323_v32  ;;  %v5347_v54 = vld [vmem:[#allocation11 + $0xb60] sm:$0xff]  ;;  %v5344_v32 = vld [vmem:[#allocation11 + $0xb48] sm:$0xff] }
 0x3b4   : > { %v10263_v2 = vcombine.low %v5320_v7, %v5324_v58 }
 0x3b6   : > { %7447 = vmatpush1.bf16.msra.mxu0 %v10237_v33  ;;  %7570 = vmatpush1.bf16.msra.mxu1 %v10239_v13  ;;  %v5327_v33 = vld [vmem:[#allocation11 + $0xac0] sm:$0xff]  ;;  %v5332_v13 = vld [vmem:[#allocation11 + $0xae8] sm:$0xff] }
 0x3b7   : > { %7448 = vmatprep.subr.bf16.mxu0 %v10246_v61  ;;  %7571 = vmatprep.subr.bf16.mxu1 %v10248_v18  ;;  %v10270_v61 = vcombine.high %v5327_v33, %v5331_v9  ;;  %v10272_v18 = vcombine.high %v5328_v0, %v5332_v13  ;;  %v10269_v6 = vcombine.low %v5327_v33, %v5331_v9  ;;  %v5355_v33 = vld [vmem:[#allocation11 + $0xba0] sm:$0xff]  ;;  %v5352_v9 = vld [vmem:[#allocation11 + $0xb88] sm:$0xff] }
 0x3b8   : > { %v10271_v24 = vcombine.low %v5328_v0, %v5332_v13 }
 0x3ba   : > { %7449 = vmatpush1.bf16.msra.mxu0 %v10245_v63  ;;  %7572 = vmatpush1.bf16.msra.mxu1 %v10247_v47  ;;  %v5335_v63 = vld [vmem:[#allocation11 + $0xb00] sm:$0xff]  ;;  %v5340_v47 = vld [vmem:[#allocation11 + $0xb28] sm:$0xff] }
 0x3bb   : > { %7450 = vmatprep.subr.bf16.mxu0 %v10254_v20  ;;  %7573 = vmatprep.subr.bf16.mxu1 %v10256_v19  ;;  %v10278_v20 = vcombine.high %v5335_v63, %v5339_v57  ;;  %v10280_v19 = vcombine.high %v5336_v45, %v5340_v47  ;;  %v10277_v7 = vcombine.low %v5335_v63, %v5339_v57  ;;  %v5363_v63 = vld [vmem:[#allocation11 + $0xbe0] sm:$0xff]  ;;  %v5360_v57 = vld [vmem:[#allocation11 + $0xbc8] sm:$0xff] }
 0x3bc   : > { %v10279_v58 = vcombine.low %v5336_v45, %v5340_v47 }
 0x3be   : > { %7451 = vmatpush1.bf16.msra.mxu0 %v10253_v37  ;;  %7574 = vmatpush1.bf16.msra.mxu1 %v10255_v15  ;;  %v5343_v37 = vld [vmem:[#allocation11 + $0xb40] sm:$0xff]  ;;  %v5348_v15 = vld [vmem:[#allocation11 + $0xb68] sm:$0xff] }
 0x3bf   : > { %7452 = vmatprep.subr.bf16.mxu0 %v10262_v22  ;;  %7575 = vmatprep.subr.bf16.mxu1 %v10264_v4  ;;  %v10286_v22 = vcombine.high %v5343_v37, %v5347_v54  ;;  %v10288_v4 = vcombine.high %v5344_v32, %v5348_v15  ;;  %v10285_v0 = vcombine.low %v5343_v37, %v5347_v54  ;;  %v4989_v37 = vld [vmem:[#allocation11 + $0x30] sm:$0xff]  ;;  %v4986_v54 = vld [vmem:[#allocation11 + $0x18] sm:$0xff] }
 0x3c0   : > { %v10287_v13 = vcombine.low %v5344_v32, %v5348_v15 }
 0x3c2   : > { %7453 = vmatpush1.bf16.msra.mxu0 %v10261_v55  ;;  %7576 = vmatpush1.bf16.msra.mxu1 %v10263_v2  ;;  %v5351_v55 = vld [vmem:[#allocation11 + $0xb80] sm:$0xff]  ;;  %v5356_v2 = vld [vmem:[#allocation11 + $0xba8] sm:$0xff] }
 0x3c3   : > { %7454 = vmatprep.subr.bf16.mxu0 %v10270_v61  ;;  %7577 = vmatprep.subr.bf16.mxu1 %v10272_v18  ;;  %v10294_v61 = vcombine.high %v5351_v55, %v5355_v33  ;;  %v10296_v18 = vcombine.high %v5352_v9, %v5356_v2  ;;  %v10293_v45 = vcombine.low %v5351_v55, %v5355_v33  ;;  %v4997_v55 = vld [vmem:[#allocation11 + $0x70] sm:$0xff] }
 0x3c4   : > { %v10295_v47 = vcombine.low %v5352_v9, %v5356_v2  ;;  %v12448_v33 = vcombine.low %v12436_v48, %v12436_v48  ;;  %v4994_v9 = vld [vmem:[#allocation11 + $0x58] sm:$0xff] }
 0x3c5   : > { %v4998_v2 = vld [vmem:[#allocation11 + $0x78] sm:$0xff] }
 0x3c6   : > { %7455 = vmatpush1.bf16.msra.mxu0 %v10269_v6  ;;  %7578 = vmatpush1.bf16.msra.mxu1 %v10271_v24  ;;  %v5359_v6 = vld [vmem:[#allocation11 + $0xbc0] sm:$0xff]  ;;  %v5364_v24 = vld [vmem:[#allocation11 + $0xbe8] sm:$0xff] }
 0x3c7   : > { %7456 = vmatprep.subr.bf16.mxu0 %v10278_v20  ;;  %7579 = vmatprep.subr.bf16.mxu1 %v10280_v19  ;;  %v10302_v20 = vcombine.high %v5359_v6, %v5363_v63  ;;  %v10304_v19 = vcombine.high %v5360_v57, %v5364_v24  ;;  %v10301_v32 = vcombine.low %v5359_v6, %v5363_v63  ;;  %v5001_v63 = vld [vmem:[#allocation11 + $0x90] sm:$0xff] }
 0x3c8   : > { %v10303_v15 = vcombine.low %v5360_v57, %v5364_v24  ;;  %v9940_v6 = vcombine.high %v4994_v9, %v4998_v2  ;;  %v5005_v57 = vld [vmem:[#allocation11 + $0xb0] sm:$0xff]  ;;  %v5002_v24 = vld [vmem:[#allocation11 + $0x98] sm:$0xff] }
 0x3ca   : > { %7457 = vmatpush1.bf16.msra.mxu0 %v10277_v7  ;;  %7580 = vmatpush1.bf16.msra.mxu1 %v10279_v58  ;;  %v4985_v7 = vld [vmem:[#allocation11 + $0x10] sm:$0xff]  ;;  %v4990_v58 = vld [vmem:[#allocation11 + $0x38] sm:$0xff] }
 0x3cb   : > { %7458 = vmatprep.subr.bf16.mxu0 %v10286_v22  ;;  %7581 = vmatprep.subr.bf16.mxu1 %v10288_v4  ;;  %v9930_v22 = vcombine.high %v4985_v7, %v4989_v37  ;;  %v9932_v4 = vcombine.high %v4986_v54, %v4990_v58 }
 0x3ce   : > { %7459 = vmatpush1.bf16.msra.mxu0 %v10285_v0  ;;  %7582 = vmatpush1.bf16.msra.mxu1 %v10287_v13  ;;  %v4993_v0 = vld [vmem:[#allocation11 + $0x50] sm:$0xff]  ;;  %v9929_v13 = vcombine.low %v4985_v7, %v4989_v37 }
 0x3cf   : > { %7460 = vmatprep.subr.bf16.mxu0 %v10294_v61  ;;  %7583 = vmatprep.subr.bf16.mxu1 %v10296_v18  ;;  %v9931_v61 = vcombine.low %v4986_v54, %v4990_v58  ;;  %v9938_v18 = vcombine.high %v4993_v0, %v4997_v55  ;;  %v9937_v48 = vcombine.low %v4993_v0, %v4997_v55  ;;  %v5009_v7 = vld [vmem:[#allocation11 + $0xd0] sm:$0xff]  ;;  %v5010_v54 = vld [vmem:[#allocation11 + $0xd8] sm:$0xff] }
 0x3d0   : > { %v5013_v37 = vld [vmem:[#allocation11 + $0xf0] sm:$0xff]  ;;  %v5014_v58 = vld [vmem:[#allocation11 + $0xf8] sm:$0xff] }
 0x3d1   : > { %v5017_v0 = vld [vmem:[#allocation11 + $0x110] sm:$0xff] }
 0x3d2   : > { %7461 = vmatpush1.bf16.msra.mxu0 %v10293_v45  ;;  %7584 = vmatpush1.bf16.msra.mxu1 %v10295_v47  ;;  %v5006_v45 = vld [vmem:[#allocation11 + $0xb8] sm:$0xff]  ;;  %v9939_v47 = vcombine.low %v4994_v9, %v4998_v2  ;;  %v5021_v55 = vld [vmem:[#allocation11 + $0x130] sm:$0xff] }
 0x3d3   : > { %7462 = vmatprep.subr.bf16.mxu0 %v10302_v20  ;;  %7585 = vmatprep.subr.bf16.mxu1 %v10304_v19  ;;  %v9946_v20 = vcombine.high %v5001_v63, %v5005_v57  ;;  %v9948_v19 = vcombine.high %v5002_v24, %v5006_v45  ;;  %v5018_v9 = vld [vmem:[#allocation11 + $0x118] sm:$0xff] }
 0x3d4   : > { %v5022_v2 = vld [vmem:[#allocation11 + $0x138] sm:$0xff] }
 0x3d6   : > { %7463 = vmatpush1.bf16.msra.mxu0 %v10301_v32  ;;  %7586 = vmatpush1.bf16.msra.mxu1 %v10303_v15  ;;  %v9945_v32 = vcombine.low %v5001_v63, %v5005_v57  ;;  %v9947_v15 = vcombine.low %v5002_v24, %v5006_v45  ;;  %v5029_v63 = vld [vmem:[#allocation11 + $0x170] sm:$0xff]  ;;  %v5026_v57 = vld [vmem:[#allocation11 + $0x158] sm:$0xff]  ;;  %v9961_v24 = vcombine.low %v5017_v0, %v5021_v55 }
 0x3d7   : > { %7596 = vmatprep.subr.bf16.mxu0 %v9930_v22  ;;  %7719 = vmatprep.subr.bf16.mxu1 %v9932_v4  ;;  %v9954_v22 = vcombine.high %v5009_v7, %v5013_v37  ;;  %v9956_v4 = vcombine.high %v5010_v54, %v5014_v58  ;;  %v9963_v45 = vcombine.low %v5018_v9, %v5022_v2 }
 0x3d9   : > { %7465 = vmatmul.mubr.bf16.vlgmr.msra.gmra.mrb[32].mxu0 %v12448_v33  ;;  %7588 = vmatmul.mubr.bf16.vlgmr.msra.gmra.mrb[32].mxu1 %v12448_v33 }
 0x3da   : > { %7597 = vmatpush1.bf16.msra.mxu0 %v9929_v13  ;;  %7720 = vmatpush1.bf16.msra.mxu1 %v9931_v61  ;;  %v9953_v13 = vcombine.low %v5009_v7, %v5013_v37  ;;  %v9955_v61 = vcombine.low %v5010_v54, %v5014_v58  ;;  %v12991_v7 = vsub.s32 5, %v12216_v12  ;;  %v5033_v54 = vld [vmem:[#allocation11 + $0x190] sm:$0xff] }
 0x3db   : > { %7598 = vmatprep.subr.bf16.mxu0 %v9938_v18  ;;  %7721 = vmatprep.subr.bf16.mxu1 %v9940_v6  ;;  %v9962_v18 = vcombine.high %v5017_v0, %v5021_v55  ;;  %v5025_v6 = vld [vmem:[#allocation11 + $0x150] sm:$0xff]  ;;  %v11253_v0 = vld [vmem:[#allocation9] sm:$0xff] }
 0x3dc   : > { %7628 = vmatprep.mubr.bf16.mxu0 %v12410_v3  ;;  %7751 = vmatprep.mubr.bf16.mxu1 %v12410_v3  ;;  %v9964_v3 = vcombine.high %v5018_v9, %v5022_v2  ;;  %v5037_v58 = vld [vmem:[#allocation11 + $0x1b0] sm:$0xff] }
 0x3dd   : > { %v9978_v2 = vcombine.high %v5033_v54, %v5037_v58  ;;  %v9977_v36 = vcombine.low %v5033_v54, %v5037_v58 }
 0x3de   : > { %7599 = vmatpush1.bf16.msra.mxu0 %v9937_v48  ;;  %7722 = vmatpush1.bf16.msra.mxu1 %v9939_v47  ;;  %v5030_v48 = vld [vmem:[#allocation11 + $0x178] sm:$0xff]  ;;  %v12985_v47 = vsub.s32 4, %v12216_v12 }
 0x3df   : > { %7600 = vmatprep.subr.bf16.mxu0 %v9946_v20  ;;  %7723 = vmatprep.subr.bf16.mxu1 %v9948_v19  ;;  %v9970_v20 = vcombine.high %v5025_v6, %v5029_v63  ;;  %v12988_v19 = vsub.s32 6, %v12216_v12  ;;  %v9972_v37 = vcombine.high %v5026_v57, %v5030_v48  ;;  %v9971_v9 = vcombine.low %v5026_v57, %v5030_v48 }
 0x3e0   : > { %v12460_v55 = vrot.slane %v11253_v0, %v12985_v47  ;;  %v13094_v57 = vsub.s32 7, %v12216_v12 }
 0x3e2   : > { %7601 = vmatpush1.bf16.msra.mxu0 %v9945_v32  ;;  %7724 = vmatpush1.bf16.msra.mxu1 %v9947_v15  ;;  %v5034_v15 = vld [vmem:[#allocation11 + $0x198] sm:$0xff]  ;;  %v12472_v48 = vrot.slane %v11253_v0, %v13094_v57 }
 0x3e3   : > { %7602 = vmatprep.subr.bf16.mxu0 %v9954_v22  ;;  %7725 = vmatprep.subr.bf16.mxu1 %v9956_v4  ;;  %v5038_v22 = vld [vmem:[#allocation11 + $0x1b8] sm:$0xff]  ;;  %v9969_v4 = vcombine.low %v5025_v6, %v5029_v63 }
 0x3e4   : > { %v9980_v6 = vcombine.high %v5034_v15, %v5038_v22  ;;  %v5042_v63 = vld [vmem:[#allocation11 + $0x1d8] sm:$0xff] }
 0x3e6   : > { %7603 = vmatpush1.bf16.msra.mxu0 %v9953_v13  ;;  %7726 = vmatpush1.bf16.msra.mxu1 %v9955_v61  ;;  %v5041_v13 = vld [vmem:[#allocation11 + $0x1d0] sm:$0xff] }
 0x3e7   : > { %7604 = vmatprep.subr.bf16.mxu0 %v9962_v18  ;;  %7727 = vmatprep.subr.bf16.mxu1 %v9964_v3  ;;  %v5045_v61 = vld [vmem:[#allocation11 + $0x1f0] sm:$0xff]  ;;  %v12464_v3 = vrot.slane %v11253_v0, %v12988_v19  ;;  %v9979_v19 = vcombine.low %v5034_v15, %v5038_v22 }
 0x3e8   : > { %v9986_v43 = vcombine.high %v5041_v13, %v5045_v61  ;;  %v5053_v22 = vld [vmem:[#allocation11 + $0x230] sm:$0xff] }
 0x3ea   : > { %7605 = vmatpush1.bf16.msra.mxu0 %v9961_v24  ;;  %7728 = vmatpush1.bf16.msra.mxu1 %v9963_v45  ;;  %v12468_v24 = vrot.slane %v11253_v0, %v12991_v7  ;;  %v5046_v45 = vld [vmem:[#allocation11 + $0x1f8] sm:$0xff] }
 0x3eb   : > { %7606 = vmatprep.subr.bf16.mxu0 %v9970_v20  ;;  %7729 = vmatprep.subr.bf16.mxu1 %v9972_v37  ;;  %v9988_v28 = vcombine.high %v5042_v63, %v5046_v45 }
 0x3ec   : > { %v4620_v18 = vpop.f32.mrb[16].mxu0  ;;  %v4912_v47 = vpop.f32.mrb[16].mxu1 }
 0x3ed   : > { %v4622_v32 = vpop.f32.mrb[17].mxu0  ;;  %v4914_v20 = vpop.f32.mrb[17].mxu1  ;;  %v12475_v23 = vadd.f32 %v4620_v18, %v12460_v55  ;;  %v12481_v0 = vadd.f32 %v4912_v47, %v12464_v3  ;;  %v9985_v18 = vcombine.low %v5041_v13, %v5045_v61 }
 0x3ee   : > { %v4624_v31 = vpop.f32.mrb[18].mxu0  ;;  %7607 = vmatpush1.bf16.msra.mxu0 %v9969_v4  ;;  %v4916_v7 = vpop.f32.mrb[18].mxu1  ;;  %7730 = vmatpush1.bf16.msra.mxu1 %v9971_v9  ;;  %v12484_v57 = vadd.f32 %v4622_v32, %v12468_v24  ;;  %v12493_v4 = vadd.f32 %v4914_v20, %v12472_v48  ;;  %v5050_v32 = vld [vmem:[#allocation11 + $0x218] sm:$0xff]  ;;  %v9987_v20 = vcombine.low %v5042_v63, %v5046_v45 }
 0x3ef   : > { %13095 = vst [vmem:[#allocation66_spill] sm:$0xff] %v12475_v23  ;;  %v12478_v37 = vadd.f32 %v4624_v31, %v12460_v55  ;;  %v4626_v41 = vpop.f32.mrb[19].mxu0  ;;  %7608 = vmatprep.subr.bf16.mxu0 %v9978_v2  ;;  %13097 = vst [vmem:[#allocation68_spill] sm:$0xff] %v12481_v0  ;;  %v12487_v54 = vadd.f32 %v4916_v7, %v12464_v3  ;;  %v4918_v15 = vpop.f32.mrb[19].mxu1  ;;  %7731 = vmatprep.subr.bf16.mxu1 %v9980_v6  ;;  %v5049_v31 = vld [vmem:[#allocation11 + $0x210] sm:$0xff]  ;;  %v5054_v2 = vld [vmem:[#allocation11 + $0x238] sm:$0xff] }
 0x3f0   : > { %13098 = vst [vmem:[#allocation69_spill] sm:$0xff] %v12484_v57  ;;  %v12490_v58 = vadd.f32 %v4626_v41, %v12468_v24  ;;  %13101 = vst [vmem:[#allocation72_spill] sm:$0xff] %v12493_v4  ;;  %v12498_v9 = vadd.f32 %v4918_v15, %v12472_v48  ;;  %v9994_v47 = vcombine.high %v5049_v31, %v5053_v22  ;;  %v5057_v23 = vld [vmem:[#allocation11 + $0x250] sm:$0xff]  ;;  %v5074_v57 = vld [vmem:[#allocation11 + $0x2d8] sm:$0xff] }
 0x3f1   : > { %13096 = vst [vmem:[#allocation67_spill] sm:$0xff] %v12478_v37  ;;  %13099 = vst [vmem:[#allocation70_spill] sm:$0xff] %v12487_v54  ;;  %v5061_v15 = vld [vmem:[#allocation11 + $0x270] sm:$0xff]  ;;  %v9996_v12 = vcombine.high %v5050_v32, %v5054_v2  ;;  %v9995_v13 = vcombine.low %v5050_v32, %v5054_v2  ;;  %v10004_v45 = vcombine.high %v5058_v14, %v5062_v51 }
 0x3f2   : > { %13100 = vst [vmem:[#allocation71_spill] sm:$0xff] %v12490_v58  ;;  %13102 = vst [vmem:[#allocation73_spill] sm:$0xff] %v12498_v9  ;;  %7609 = vmatpush1.bf16.msra.mxu0 %v9977_v36  ;;  %7732 = vmatpush1.bf16.msra.mxu1 %v9979_v19  ;;  %v9993_v36 = vcombine.low %v5049_v31, %v5053_v22  ;;  %v10002_v61 = vcombine.high %v5057_v23, %v5061_v15  ;;  %v5065_v32 = vld [vmem:[#allocation11 + $0x290] sm:$0xff]  ;;  %v5078_v58 = vld [vmem:[#allocation11 + $0x2f8] sm:$0xff] }
 0x3f3   : > { %7610 = vmatprep.subr.bf16.mxu0 %v9986_v43  ;;  %7733 = vmatprep.subr.bf16.mxu1 %v9988_v28  ;;  %v5069_v2 = vld [vmem:[#allocation11 + $0x2b0] sm:$0xff] }
 0x3f4   : > { %v4630_v37 = vpop.f32.mrb[20].mxu0  ;;  %v4922_v7 = vpop.f32.mrb[20].mxu1  ;;  %v5073_v9 = vld [vmem:[#allocation11 + $0x2d0] sm:$0xff] }
 0x3f5   : > { %v4632_v0 = vpop.f32.mrb[21].mxu0  ;;  %v4924_v54 = vpop.f32.mrb[21].mxu1  ;;  %v12507_v19 = vadd.f32 %v4630_v37, %v12460_v55  ;;  %v12513_v6 = vadd.f32 %v4922_v7, %v12464_v3 }
 0x3f6   : > { %v4634_v41 = vpop.f32.mrb[22].mxu0  ;;  %7611 = vmatpush1.bf16.msra.mxu0 %v9985_v18  ;;  %v4926_v63 = vpop.f32.mrb[22].mxu1  ;;  %7734 = vmatpush1.bf16.msra.mxu1 %v9987_v20  ;;  %v12516_v4 = vadd.f32 %v4632_v0, %v12468_v24  ;;  %v5066_v0 = vld [vmem:[#allocation11 + $0x298] sm:$0xff] }
 0x3f7   : > { %13103 = vst [vmem:[#allocation74_spill] sm:$0xff] %v12507_v19  ;;  %v12510_v43 = vadd.f32 %v4634_v41, %v12460_v55  ;;  %v4636_v28 = vpop.f32.mrb[23].mxu0  ;;  %7612 = vmatprep.subr.bf16.mxu0 %v9994_v47  ;;  %13105 = vst [vmem:[#allocation76_spill] sm:$0xff] %v12513_v6  ;;  %v12519_v31 = vadd.f32 %v4926_v63, %v12464_v3  ;;  %v4928_v22 = vpop.f32.mrb[23].mxu1  ;;  %7735 = vmatprep.subr.bf16.mxu1 %v9996_v12  ;;  %v5070_v18 = vld [vmem:[#allocation11 + $0x2b8] sm:$0xff] }
 0x3f8   : > { %13106 = vst [vmem:[#allocation77_spill] sm:$0xff] %v12516_v4  ;;  %v12522_v37 = vadd.f32 %v4636_v28, %v12468_v24  ;;  %v12525_v41 = vadd.f32 %v4924_v54, %v12472_v48  ;;  %v12530_v7 = vadd.f32 %v4928_v22, %v12472_v48  ;;  %v10001_v12 = vcombine.low %v5057_v23, %v5061_v15  ;;  %v5077_v22 = vld [vmem:[#allocation11 + $0x2f0] sm:$0xff]  ;;  %v5090_v4 = vld [vmem:[#allocation11 + $0x358] sm:$0xff] }
 0x3f9   : > { %13104 = vst [vmem:[#allocation75_spill] sm:$0xff] %v12510_v43  ;;  %13107 = vst [vmem:[#allocation78_spill] sm:$0xff] %v12519_v31  ;;  %v10003_v28 = vcombine.low %v5058_v14, %v5062_v51  ;;  %v10010_v47 = vcombine.high %v5065_v32, %v5069_v2  ;;  %v10012_v43 = vcombine.high %v5066_v0, %v5070_v18 }
 0x3fa   : > { %13108 = vst [vmem:[#allocation79_spill] sm:$0xff] %v12522_v37  ;;  %13109 = vst [vmem:[#allocation80_spill] sm:$0xff] %v12525_v41  ;;  %7613 = vmatpush1.bf16.msra.mxu0 %v9993_v36  ;;  %7736 = vmatpush1.bf16.msra.mxu1 %v9995_v13  ;;  %v10009_v23 = vcombine.low %v5065_v32, %v5069_v2  ;;  %v10011_v15 = vcombine.low %v5066_v0, %v5070_v18  ;;  %v5081_v0 = vld [vmem:[#allocation11 + $0x310] sm:$0xff]  ;;  %v5094_v37 = vld [vmem:[#allocation11 + $0x378] sm:$0xff] }
 0x3fb   : > { %13110 = vst [vmem:[#allocation81_spill] sm:$0xff] %v12530_v7  ;;  %7614 = vmatprep.subr.bf16.mxu0 %v10002_v61  ;;  %7737 = vmatprep.subr.bf16.mxu1 %v10004_v45  ;;  %v10018_v36 = vcombine.high %v5073_v9, %v5077_v22  ;;  %v10020_v45 = vcombine.high %v5074_v57, %v5078_v58  ;;  %v5085_v18 = vld [vmem:[#allocation11 + $0x330] sm:$0xff] }
 0x3fc   : > { %v4640_v19 = vpop.f32.mrb[24].mxu0  ;;  %v4932_v20 = vpop.f32.mrb[24].mxu1  ;;  %v5089_v7 = vld [vmem:[#allocation11 + $0x350] sm:$0xff] }
 0x3fd   : > { %v4642_v6 = vpop.f32.mrb[25].mxu0  ;;  %v4934_v31 = vpop.f32.mrb[25].mxu1  ;;  %v12539_v13 = vadd.f32 %v4640_v19, %v12460_v55  ;;  %v12545_v54 = vadd.f32 %v4932_v20, %v12464_v3 }
 0x3fe   : > { %v4644_v63 = vpop.f32.mrb[26].mxu0  ;;  %7615 = vmatpush1.bf16.msra.mxu0 %v10001_v12  ;;  %v4936_v14 = vpop.f32.mrb[26].mxu1  ;;  %7738 = vmatpush1.bf16.msra.mxu1 %v10003_v28  ;;  %v12548_v41 = vadd.f32 %v4642_v6, %v12468_v24  ;;  %v5082_v6 = vld [vmem:[#allocation11 + $0x318] sm:$0xff] }
 0x3ff   : > { %13111 = vst [vmem:[#allocation82_spill] sm:$0xff] %v12539_v13  ;;  %v12542_v51 = vadd.f32 %v4644_v63, %v12460_v55  ;;  %v4646_v61 = vpop.f32.mrb[27].mxu0  ;;  %7616 = vmatprep.subr.bf16.mxu0 %v10010_v47  ;;  %13113 = vst [vmem:[#allocation84_spill] sm:$0xff] %v12545_v54  ;;  %v12551_v32 = vadd.f32 %v4936_v14, %v12464_v3  ;;  %v4938_v2 = vpop.f32.mrb[27].mxu1  ;;  %7739 = vmatprep.subr.bf16.mxu1 %v10012_v43  ;;  %v5086_v12 = vld [vmem:[#allocation11 + $0x338] sm:$0xff] }
 0x400   : > { %v12554_v19 = vadd.f32 %v4646_v61, %v12468_v24  ;;  %v12557_v63 = vadd.f32 %v4934_v31, %v12472_v48  ;;  %v12562_v20 = vadd.f32 %v4938_v2, %v12472_v48  ;;  %v10017_v43 = vcombine.low %v5073_v9, %v5077_v22  ;;  %v5093_v2 = vld [vmem:[#allocation11 + $0x370] sm:$0xff] }
 0x401   : > { %13112 = vst [vmem:[#allocation83_spill] sm:$0xff] %v12542_v51  ;;  %13114 = vst [vmem:[#allocation85_spill] sm:$0xff] %v12551_v32  ;;  %v10019_v61 = vcombine.low %v5074_v57, %v5078_v58  ;;  %v10026_v47 = vcombine.high %v5081_v0, %v5085_v18  ;;  %v10028_v51 = vcombine.high %v5082_v6, %v5086_v12 }
 0x402   : > { %13115 = vst [vmem:[#allocation86_spill] sm:$0xff] %v12557_v63  ;;  %7617 = vmatpush1.bf16.msra.mxu0 %v10009_v23  ;;  %7740 = vmatpush1.bf16.msra.mxu1 %v10011_v15  ;;  %v10025_v9 = vcombine.low %v5081_v0, %v5085_v18  ;;  %v10027_v22 = vcombine.low %v5082_v6, %v5086_v12  ;;  %v5101_v6 = vld [vmem:[#allocation11 + $0x3b0] sm:$0xff] }
 0x403   : > { %7618 = vmatprep.subr.bf16.mxu0 %v10018_v36  ;;  %7741 = vmatprep.subr.bf16.mxu1 %v10020_v45  ;;  %v10034_v23 = vcombine.high %v5089_v7, %v5093_v2  ;;  %v10036_v45 = vcombine.high %v5090_v4, %v5094_v37 }
 0x404   : > { %v4650_v13 = vpop.f32.mrb[28].mxu0  ;;  %v4942_v28 = vpop.f32.mrb[28].mxu1 }
 0x405   : > { %v4652_v54 = vpop.f32.mrb[29].mxu0  ;;  %v4944_v32 = vpop.f32.mrb[29].mxu1  ;;  %v12571_v15 = vadd.f32 %v4650_v13, %v12460_v55  ;;  %v12577_v31 = vadd.f32 %v4942_v28, %v12464_v3 }
 0x406   : > { %v4654_v14 = vpop.f32.mrb[30].mxu0  ;;  %7619 = vmatpush1.bf16.msra.mxu0 %v10017_v43  ;;  %v4946_v58 = vpop.f32.mrb[30].mxu1  ;;  %7742 = vmatpush1.bf16.msra.mxu1 %v10019_v61  ;;  %v12580_v63 = vadd.f32 %v4652_v54, %v12468_v24  ;;  %v12589_v12 = vadd.f32 %v4944_v32, %v12472_v48  ;;  %v5098_v54 = vld [vmem:[#allocation11 + $0x398] sm:$0xff]  ;;  %v10035_v43 = vcombine.low %v5090_v4, %v5094_v37  ;;  %v5117_v32 = vld [vmem:[#allocation11 + $0x430] sm:$0xff] }
 0x407   : > { %v12574_v57 = vadd.f32 %v4654_v14, %v12460_v55  ;;  %v4656_v36 = vpop.f32.mrb[31].mxu0  ;;  %7620 = vmatprep.subr.bf16.mxu0 %v10026_v47  ;;  %v12583_v0 = vadd.f32 %v4946_v58, %v12464_v3  ;;  %v4948_v18 = vpop.f32.mrb[31].mxu1  ;;  %7743 = vmatprep.subr.bf16.mxu1 %v10028_v51  ;;  %v5097_v55 = vld [vmem:[#allocation11 + $0x390] sm:$0xff]  ;;  %v5102_v14 = vld [vmem:[#allocation11 + $0x3b8] sm:$0xff]  ;;  %v10033_v51 = vcombine.low %v5089_v7, %v5093_v2 }
 0x408   : > { %v12586_v13 = vadd.f32 %v4656_v36, %v12468_v24  ;;  %13116 = vst [vmem:[#allocation87_spill] sm:$0xff] %v12589_v12  ;;  %v12594_v28 = vadd.f32 %v4948_v18, %v12472_v48  ;;  %v10042_v61 = vcombine.high %v5097_v55, %v5101_v6  ;;  %v10044_v48 = vcombine.high %v5098_v54, %v5102_v14  ;;  %v5105_v58 = vld [vmem:[#allocation11 + $0x3d0] sm:$0xff]  ;;  %v5106_v18 = vld [vmem:[#allocation11 + $0x3d8] sm:$0xff] }
 0x409   : > { %v5109_v36 = vld [vmem:[#allocation11 + $0x3f0] sm:$0xff]  ;;  %v5110_v47 = vld [vmem:[#allocation11 + $0x3f8] sm:$0xff]  ;;  %v10041_v3 = vcombine.low %v5097_v55, %v5101_v6  ;;  %v10043_v24 = vcombine.low %v5098_v54, %v5102_v14 }
 0x40a   : > { %7621 = vmatpush1.bf16.msra.mxu0 %v10025_v9  ;;  %7744 = vmatpush1.bf16.msra.mxu1 %v10027_v22  ;;  %v10050_v9 = vcombine.high %v5105_v58, %v5109_v36  ;;  %v10052_v7 = vcombine.high %v5106_v18, %v5110_v47  ;;  %v5113_v2 = vld [vmem:[#allocation11 + $0x410] sm:$0xff]  ;;  %v5114_v22 = vld [vmem:[#allocation11 + $0x418] sm:$0xff]  ;;  %v10049_v4 = vcombine.low %v5105_v58, %v5109_v36 }
 0x40b   : > { %7622 = vmatprep.subr.bf16.mxu0 %v10034_v23  ;;  %7745 = vmatprep.subr.bf16.mxu1 %v10036_v45  ;;  %v5118_v23 = vld [vmem:[#allocation11 + $0x438] sm:$0xff]  ;;  %v10051_v37 = vcombine.low %v5106_v18, %v5110_v47  ;;  %v10058_v45 = vcombine.high %v5113_v2, %v5117_v32  ;;  %v5125_v55 = vld [vmem:[#allocation11 + $0x470] sm:$0xff]  ;;  %v10057_v54 = vcombine.low %v5113_v2, %v5117_v32 }
 0x40c   : > { %v10060_v12 = vcombine.high %v5114_v22, %v5118_v23  ;;  %v5122_v6 = vld [vmem:[#allocation11 + $0x458] sm:$0xff]  ;;  %v10059_v14 = vcombine.low %v5114_v22, %v5118_v23  ;;  %v5133_v58 = vld [vmem:[#allocation11 + $0x4b0] sm:$0xff] }
 0x40d   : > { %v5130_v47 = vld [vmem:[#allocation11 + $0x498] sm:$0xff]  ;;  %v5141_v2 = vld [vmem:[#allocation11 + $0x4f0] sm:$0xff] }
 0x40e   : > { %7623 = vmatpush1.bf16.msra.mxu0 %v10033_v51  ;;  %7746 = vmatpush1.bf16.msra.mxu1 %v10035_v43  ;;  %v5121_v51 = vld [vmem:[#allocation11 + $0x450] sm:$0xff]  ;;  %v5126_v43 = vld [vmem:[#allocation11 + $0x478] sm:$0xff] }
 0x40f   : > { %7624 = vmatprep.subr.bf16.mxu0 %v10042_v61  ;;  %7747 = vmatprep.subr.bf16.mxu1 %v10044_v48  ;;  %v10066_v61 = vcombine.high %v5121_v51, %v5125_v55  ;;  %v10068_v48 = vcombine.high %v5122_v6, %v5126_v43  ;;  %v10065_v36 = vcombine.low %v5121_v51, %v5125_v55  ;;  %v5142_v22 = vld [vmem:[#allocation11 + $0x4f8] sm:$0xff]  ;;  %v5149_v51 = vld [vmem:[#allocation11 + $0x530] sm:$0xff] }
 0x410   : > { %v10067_v18 = vcombine.low %v5122_v6, %v5126_v43  ;;  %v5146_v55 = vld [vmem:[#allocation11 + $0x518] sm:$0xff] }
 0x411   : > { %v5150_v6 = vld [vmem:[#allocation11 + $0x538] sm:$0xff] }
 0x412   : > { %7625 = vmatpush1.bf16.msra.mxu0 %v10041_v3  ;;  %7748 = vmatpush1.bf16.msra.mxu1 %v10043_v24  ;;  %v5129_v3 = vld [vmem:[#allocation11 + $0x490] sm:$0xff]  ;;  %v5134_v24 = vld [vmem:[#allocation11 + $0x4b8] sm:$0xff] }
 0x413   : > { %7626 = vmatprep.subr.bf16.mxu0 %v10050_v9  ;;  %7749 = vmatprep.subr.bf16.mxu1 %v10052_v7  ;;  %v10074_v32 = vcombine.high %v5129_v3, %v5133_v58  ;;  %v10076_v9 = vcombine.high %v5130_v47, %v5134_v24  ;;  %v5137_v7 = vld [vmem:[#allocation11 + $0x4d0] sm:$0xff]  ;;  %v10073_v23 = vcombine.low %v5129_v3, %v5133_v58  ;;  %v5154_v3 = vld [vmem:[#allocation11 + $0x558] sm:$0xff] }
 0x414   : > { %v10081_v43 = vcombine.low %v5137_v7, %v5141_v2  ;;  %v5158_v58 = vld [vmem:[#allocation11 + $0x578] sm:$0xff] }
 0x416   : > { %7627 = vmatpush1.bf16.msra.mxu0 %v10049_v4  ;;  %7750 = vmatpush1.bf16.msra.mxu1 %v10051_v37  ;;  %v10082_v4 = vcombine.high %v5137_v7, %v5141_v2  ;;  %v5162_v7 = vld [vmem:[#allocation11 + $0x598] sm:$0xff] }
 0x417   : > { %7637 = vmatprep.subr.bf16.mxu0 %v10058_v45  ;;  %7760 = vmatprep.subr.bf16.mxu1 %v10060_v12  ;;  %v5138_v12 = vld [vmem:[#allocation11 + $0x4d8] sm:$0xff]  ;;  %v5145_v45 = vld [vmem:[#allocation11 + $0x510] sm:$0xff] }
 0x418   : > { %v10084_v37 = vcombine.high %v5138_v12, %v5142_v22  ;;  %v5166_v2 = vld [vmem:[#allocation11 + $0x5b8] sm:$0xff] }
 0x419   : > { %7629 = vmatmul.mubr.bf16.vlgmr.msra.gmra.mrb[36].mxu0 %v12418_v42  ;;  %7752 = vmatmul.mubr.bf16.vlgmr.msra.gmra.mrb[36].mxu1 %v12418_v42  ;;  %v10075_v42 = vcombine.low %v5130_v47, %v5134_v24  ;;  %v10089_v47 = vcombine.low %v5145_v45, %v5149_v51  ;;  %v10091_v24 = vcombine.low %v5146_v55, %v5150_v6 }
 0x41a   : > { %7638 = vmatpush1.bf16.msra.mxu0 %v10057_v54  ;;  %7761 = vmatpush1.bf16.msra.mxu1 %v10059_v14  ;;  %v10083_v54 = vcombine.low %v5138_v12, %v5142_v22  ;;  %v10090_v14 = vcombine.high %v5145_v45, %v5149_v51  ;;  %v10099_v22 = vcombine.low %v5154_v3, %v5158_v58  ;;  %v5170_v45 = vld [vmem:[#allocation11 + $0x5d8] sm:$0xff] }
 0x41b   : > { %7639 = vmatprep.subr.bf16.mxu0 %v10066_v61  ;;  %7762 = vmatprep.subr.bf16.mxu1 %v10068_v48  ;;  %v5153_v61 = vld [vmem:[#allocation11 + $0x550] sm:$0xff]  ;;  %v5174_v51 = vld [vmem:[#allocation11 + $0x5f8] sm:$0xff] }
 0x41c   : > { %7669 = vmatprep.mubr.bf16.mxu0 %v12425_v50  ;;  %7792 = vmatprep.mubr.bf16.mxu1 %v12425_v50  ;;  %v10092_v50 = vcombine.high %v5146_v55, %v5150_v6  ;;  %v5157_v48 = vld [vmem:[#allocation11 + $0x570] sm:$0xff]  ;;  %v10107_v6 = vcombine.low %v5162_v7, %v5166_v2 }
 0x41d   : > { %v10097_v12 = vcombine.low %v5153_v61, %v5157_v48 }
 0x41e   : > { %7640 = vmatpush1.bf16.msra.mxu0 %v10065_v36  ;;  %7763 = vmatpush1.bf16.msra.mxu1 %v10067_v18  ;;  %v10098_v36 = vcombine.high %v5153_v61, %v5157_v48  ;;  %v10100_v18 = vcombine.high %v5154_v3, %v5158_v58  ;;  %v5178_v61 = vld [vmem:[#allocation11 + $0x618] sm:$0xff]  ;;  %v10115_v58 = vcombine.low %v5170_v45, %v5174_v51 }
 0x41f   : > { %7641 = vmatprep.subr.bf16.mxu0 %v10074_v32  ;;  %7764 = vmatprep.subr.bf16.mxu1 %v10076_v9  ;;  %v5161_v32 = vld [vmem:[#allocation11 + $0x590] sm:$0xff]  ;;  %v5182_v48 = vld [vmem:[#allocation11 + $0x638] sm:$0xff] }
 0x420   : > { %v5165_v9 = vld [vmem:[#allocation11 + $0x5b0] sm:$0xff] }
 0x421   : > { %v10105_v55 = vcombine.low %v5161_v32, %v5165_v9 }
 0x422   : > { %7642 = vmatpush1.bf16.msra.mxu0 %v10073_v23  ;;  %7765 = vmatpush1.bf16.msra.mxu1 %v10075_v42  ;;  %v10106_v23 = vcombine.high %v5161_v32, %v5165_v9  ;;  %v10108_v42 = vcombine.high %v5162_v7, %v5166_v2  ;;  %v5186_v32 = vld [vmem:[#allocation11 + $0x658] sm:$0xff]  ;;  %v10123_v2 = vcombine.low %v5178_v61, %v5182_v48 }
 0x423   : > { %7643 = vmatprep.subr.bf16.mxu0 %v10082_v4  ;;  %7766 = vmatprep.subr.bf16.mxu1 %v10084_v37  ;;  %v5169_v4 = vld [vmem:[#allocation11 + $0x5d0] sm:$0xff]  ;;  %v5190_v9 = vld [vmem:[#allocation11 + $0x678] sm:$0xff] }
 0x424   : > { %v5173_v37 = vld [vmem:[#allocation11 + $0x5f0] sm:$0xff] }
 0x425   : > { %v10113_v3 = vcombine.low %v5169_v4, %v5173_v37 }
 0x426   : > { %7644 = vmatpush1.bf16.msra.mxu0 %v10081_v43  ;;  %7767 = vmatpush1.bf16.msra.mxu1 %v10083_v54  ;;  %v10114_v43 = vcombine.high %v5169_v4, %v5173_v37  ;;  %v10116_v54 = vcombine.high %v5170_v45, %v5174_v51  ;;  %v5194_v4 = vld [vmem:[#allocation11 + $0x698] sm:$0xff]  ;;  %v10131_v51 = vcombine.low %v5186_v32, %v5190_v9 }
 0x427   : > { %7645 = vmatprep.subr.bf16.mxu0 %v10090_v14  ;;  %7768 = vmatprep.subr.bf16.mxu1 %v10092_v50  ;;  %v5177_v14 = vld [vmem:[#allocation11 + $0x610] sm:$0xff]  ;;  %v5198_v37 = vld [vmem:[#allocation11 + $0x6b8] sm:$0xff] }
 0x428   : > { %v5181_v50 = vld [vmem:[#allocation11 + $0x630] sm:$0xff] }
 0x429   : > { %v10121_v7 = vcombine.low %v5177_v14, %v5181_v50 }
 0x42a   : > { %7646 = vmatpush1.bf16.msra.mxu0 %v10089_v47  ;;  %7769 = vmatpush1.bf16.msra.mxu1 %v10091_v24  ;;  %v10122_v47 = vcombine.high %v5177_v14, %v5181_v50  ;;  %v10124_v24 = vcombine.high %v5178_v61, %v5182_v48  ;;  %v5202_v14 = vld [vmem:[#allocation11 + $0x6d8] sm:$0xff]  ;;  %v10139_v48 = vcombine.low %v5194_v4, %v5198_v37 }
 0x42b   : > { %7647 = vmatprep.subr.bf16.mxu0 %v10098_v36  ;;  %7770 = vmatprep.subr.bf16.mxu1 %v10100_v18  ;;  %v5185_v36 = vld [vmem:[#allocation11 + $0x650] sm:$0xff]  ;;  %v5206_v50 = vld [vmem:[#allocation11 + $0x6f8] sm:$0xff] }
 0x42c   : > { %v5189_v18 = vld [vmem:[#allocation11 + $0x670] sm:$0xff] }
 0x42d   : > { %v10129_v45 = vcombine.low %v5185_v36, %v5189_v18 }
 0x42e   : > { %7648 = vmatpush1.bf16.msra.mxu0 %v10097_v12  ;;  %7771 = vmatpush1.bf16.msra.mxu1 %v10099_v22  ;;  %v10130_v12 = vcombine.high %v5185_v36, %v5189_v18  ;;  %v10132_v22 = vcombine.high %v5186_v32, %v5190_v9  ;;  %v5210_v36 = vld [vmem:[#allocation11 + $0x718] sm:$0xff]  ;;  %v10147_v9 = vcombine.low %v5202_v14, %v5206_v50 }
 0x42f   : > { %7649 = vmatprep.subr.bf16.mxu0 %v10106_v23  ;;  %7772 = vmatprep.subr.bf16.mxu1 %v10108_v42  ;;  %v5193_v23 = vld [vmem:[#allocation11 + $0x690] sm:$0xff]  ;;  %v5214_v18 = vld [vmem:[#allocation11 + $0x738] sm:$0xff] }
 0x430   : > { %v5197_v42 = vld [vmem:[#allocation11 + $0x6b0] sm:$0xff] }
 0x431   : > { %v10137_v61 = vcombine.low %v5193_v23, %v5197_v42 }
 0x432   : > { %7650 = vmatpush1.bf16.msra.mxu0 %v10105_v55  ;;  %7773 = vmatpush1.bf16.msra.mxu1 %v10107_v6  ;;  %v10138_v55 = vcombine.high %v5193_v23, %v5197_v42  ;;  %v10140_v6 = vcombine.high %v5194_v4, %v5198_v37  ;;  %v5218_v23 = vld [vmem:[#allocation11 + $0x758] sm:$0xff]  ;;  %v10155_v37 = vcombine.low %v5210_v36, %v5214_v18 }
 0x433   : > { %7651 = vmatprep.subr.bf16.mxu0 %v10114_v43  ;;  %7774 = vmatprep.subr.bf16.mxu1 %v10116_v54  ;;  %v5201_v43 = vld [vmem:[#allocation11 + $0x6d0] sm:$0xff]  ;;  %v5222_v42 = vld [vmem:[#allocation11 + $0x778] sm:$0xff] }
 0x434   : > { %v5205_v54 = vld [vmem:[#allocation11 + $0x6f0] sm:$0xff] }
 0x435   : > { %v10145_v32 = vcombine.low %v5201_v43, %v5205_v54 }
 0x436   : > { %7652 = vmatpush1.bf16.msra.mxu0 %v10113_v3  ;;  %7775 = vmatpush1.bf16.msra.mxu1 %v10115_v58  ;;  %v10146_v3 = vcombine.high %v5201_v43, %v5205_v54  ;;  %v10148_v58 = vcombine.high %v5202_v14, %v5206_v50  ;;  %v5226_v43 = vld [vmem:[#allocation11 + $0x798] sm:$0xff]  ;;  %v10163_v50 = vcombine.low %v5218_v23, %v5222_v42 }
 0x437   : > { %7653 = vmatprep.subr.bf16.mxu0 %v10122_v47  ;;  %7776 = vmatprep.subr.bf16.mxu1 %v10124_v24  ;;  %v5209_v47 = vld [vmem:[#allocation11 + $0x710] sm:$0xff]  ;;  %v5230_v54 = vld [vmem:[#allocation11 + $0x7b8] sm:$0xff] }
 0x438   : > { %v5213_v24 = vld [vmem:[#allocation11 + $0x730] sm:$0xff] }
 0x439   : > { %v10153_v4 = vcombine.low %v5209_v47, %v5213_v24 }
 0x43a   : > { %7654 = vmatpush1.bf16.msra.mxu0 %v10121_v7  ;;  %7777 = vmatpush1.bf16.msra.mxu1 %v10123_v2  ;;  %v10154_v7 = vcombine.high %v5209_v47, %v5213_v24  ;;  %v10156_v2 = vcombine.high %v5210_v36, %v5214_v18  ;;  %v5234_v47 = vld [vmem:[#allocation11 + $0x7d8] sm:$0xff]  ;;  %v10171_v18 = vcombine.low %v5226_v43, %v5230_v54 }
 0x43b   : > { %7655 = vmatprep.subr.bf16.mxu0 %v10130_v12  ;;  %7778 = vmatprep.subr.bf16.mxu1 %v10132_v22  ;;  %v5217_v12 = vld [vmem:[#allocation11 + $0x750] sm:$0xff]  ;;  %v5238_v24 = vld [vmem:[#allocation11 + $0x7f8] sm:$0xff] }
 0x43c   : > { %v5221_v22 = vld [vmem:[#allocation11 + $0x770] sm:$0xff] }
 0x43d   : > { %v10161_v14 = vcombine.low %v5217_v12, %v5221_v22 }
 0x43e   : > { %7656 = vmatpush1.bf16.msra.mxu0 %v10129_v45  ;;  %7779 = vmatpush1.bf16.msra.mxu1 %v10131_v51  ;;  %v10162_v45 = vcombine.high %v5217_v12, %v5221_v22  ;;  %v10164_v51 = vcombine.high %v5218_v23, %v5222_v42  ;;  %v5242_v12 = vld [vmem:[#allocation11 + $0x818] sm:$0xff]  ;;  %v10179_v42 = vcombine.low %v5234_v47, %v5238_v24 }
 0x43f   : > { %7657 = vmatprep.subr.bf16.mxu0 %v10138_v55  ;;  %7780 = vmatprep.subr.bf16.mxu1 %v10140_v6  ;;  %v5225_v55 = vld [vmem:[#allocation11 + $0x790] sm:$0xff]  ;;  %v5246_v22 = vld [vmem:[#allocation11 + $0x838] sm:$0xff] }
 0x440   : > { %v5229_v6 = vld [vmem:[#allocation11 + $0x7b0] sm:$0xff] }
 0x441   : > { %v10169_v36 = vcombine.low %v5225_v55, %v5229_v6 }
 0x442   : > { %7658 = vmatpush1.bf16.msra.mxu0 %v10137_v61  ;;  %7781 = vmatpush1.bf16.msra.mxu1 %v10139_v48  ;;  %v10170_v61 = vcombine.high %v5225_v55, %v5229_v6  ;;  %v10172_v48 = vcombine.high %v5226_v43, %v5230_v54  ;;  %v5250_v55 = vld [vmem:[#allocation11 + $0x858] sm:$0xff]  ;;  %v10187_v54 = vcombine.low %v5242_v12, %v5246_v22 }
 0x443   : > { %7659 = vmatprep.subr.bf16.mxu0 %v10146_v3  ;;  %7782 = vmatprep.subr.bf16.mxu1 %v10148_v58  ;;  %v5233_v3 = vld [vmem:[#allocation11 + $0x7d0] sm:$0xff]  ;;  %v5254_v6 = vld [vmem:[#allocation11 + $0x878] sm:$0xff] }
 0x444   : > { %v5237_v58 = vld [vmem:[#allocation11 + $0x7f0] sm:$0xff] }
 0x445   : > { %v10177_v23 = vcombine.low %v5233_v3, %v5237_v58 }
 0x446   : > { %7660 = vmatpush1.bf16.msra.mxu0 %v10145_v32  ;;  %7783 = vmatpush1.bf16.msra.mxu1 %v10147_v9  ;;  %v10178_v32 = vcombine.high %v5233_v3, %v5237_v58  ;;  %v10180_v9 = vcombine.high %v5234_v47, %v5238_v24  ;;  %v5258_v3 = vld [vmem:[#allocation11 + $0x898] sm:$0xff]  ;;  %v10195_v24 = vcombine.low %v5250_v55, %v5254_v6 }
 0x447   : > { %7661 = vmatprep.subr.bf16.mxu0 %v10154_v7  ;;  %7784 = vmatprep.subr.bf16.mxu1 %v10156_v2  ;;  %v5241_v7 = vld [vmem:[#allocation11 + $0x810] sm:$0xff]  ;;  %v5262_v58 = vld [vmem:[#allocation11 + $0x8b8] sm:$0xff] }
 0x448   : > { %v5245_v2 = vld [vmem:[#allocation11 + $0x830] sm:$0xff] }
 0x449   : > { %v10185_v43 = vcombine.low %v5241_v7, %v5245_v2 }
 0x44a   : > { %7662 = vmatpush1.bf16.msra.mxu0 %v10153_v4  ;;  %7785 = vmatpush1.bf16.msra.mxu1 %v10155_v37  ;;  %v10186_v4 = vcombine.high %v5241_v7, %v5245_v2  ;;  %v10188_v37 = vcombine.high %v5242_v12, %v5246_v22  ;;  %v5266_v7 = vld [vmem:[#allocation11 + $0x8d8] sm:$0xff] }
 0x44b   : > { %7663 = vmatprep.subr.bf16.mxu0 %v10162_v45  ;;  %7786 = vmatprep.subr.bf16.mxu1 %v10164_v51  ;;  %v5249_v45 = vld [vmem:[#allocation11 + $0x850] sm:$0xff]  ;;  %v5270_v2 = vld [vmem:[#allocation11 + $0x8f8] sm:$0xff] }
 0x44c   : > { %v5253_v51 = vld [vmem:[#allocation11 + $0x870] sm:$0xff] }
 0x44d   : > { %v10193_v47 = vcombine.low %v5249_v45, %v5253_v51 }
 0x44e   : > { %7664 = vmatpush1.bf16.msra.mxu0 %v10161_v14  ;;  %7787 = vmatpush1.bf16.msra.mxu1 %v10163_v50  ;;  %v10194_v14 = vcombine.high %v5249_v45, %v5253_v51  ;;  %v10196_v50 = vcombine.high %v5250_v55, %v5254_v6  ;;  %v5278_v45 = vld [vmem:[#allocation11 + $0x938] sm:$0xff]  ;;  %v10211_v55 = vcombine.low %v5266_v7, %v5270_v2 }
 0x44f   : > { %7665 = vmatprep.subr.bf16.mxu0 %v10170_v61  ;;  %7788 = vmatprep.subr.bf16.mxu1 %v10172_v48  ;;  %v5257_v61 = vld [vmem:[#allocation11 + $0x890] sm:$0xff] }
 0x450   : > { %v5261_v48 = vld [vmem:[#allocation11 + $0x8b0] sm:$0xff] }
 0x451   : > { %v10201_v12 = vcombine.low %v5257_v61, %v5261_v48 }
 0x452   : > { %7666 = vmatpush1.bf16.msra.mxu0 %v10169_v36  ;;  %7789 = vmatpush1.bf16.msra.mxu1 %v10171_v18  ;;  %v10202_v36 = vcombine.high %v5257_v61, %v5261_v48  ;;  %v10204_v18 = vcombine.high %v5258_v3, %v5262_v58 }
 0x453   : > { %7667 = vmatprep.subr.bf16.mxu0 %v10178_v32  ;;  %7790 = vmatprep.subr.bf16.mxu1 %v10180_v9  ;;  %v5265_v32 = vld [vmem:[#allocation11 + $0x8d0] sm:$0xff] }
 0x454   : > { %v5269_v9 = vld [vmem:[#allocation11 + $0x8f0] sm:$0xff] }
 0x455   : > { %v10210_v22 = vcombine.high %v5265_v32, %v5269_v9  ;;  %v10209_v51 = vcombine.low %v5265_v32, %v5269_v9 }
 0x456   : > { %7668 = vmatpush1.bf16.msra.mxu0 %v10177_v23  ;;  %7791 = vmatpush1.bf16.msra.mxu1 %v10179_v42  ;;  %v10212_v23 = vcombine.high %v5266_v7, %v5270_v2  ;;  %v5273_v42 = vld [vmem:[#allocation11 + $0x910] sm:$0xff] }
 0x457   : > { %7678 = vmatprep.subr.bf16.mxu0 %v10186_v4  ;;  %7801 = vmatprep.subr.bf16.mxu1 %v10188_v37  ;;  %v5277_v4 = vld [vmem:[#allocation11 + $0x930] sm:$0xff]  ;;  %v5274_v37 = vld [vmem:[#allocation11 + $0x918] sm:$0xff] }
 0x458   : > { %v10218_v6 = vcombine.high %v5273_v42, %v5277_v4  ;;  %v10217_v61 = vcombine.low %v5273_v42, %v5277_v4  ;;  %v10219_v48 = vcombine.low %v5274_v37, %v5278_v45 }
 0x459   : > { %7670 = vmatmul.mubr.bf16.vlgmr.msra.gmra.mrb[36].mxu0 %v12433_v29  ;;  %7793 = vmatmul.mubr.bf16.vlgmr.msra.gmra.mrb[36].mxu1 %v12433_v29  ;;  %v10203_v29 = vcombine.low %v5258_v3, %v5262_v58 }
 0x45a   : > { %7679 = vmatpush1.bf16.msra.mxu0 %v10185_v43  ;;  %7802 = vmatpush1.bf16.msra.mxu1 %v10187_v54  ;;  %v5281_v43 = vld [vmem:[#allocation11 + $0x950] sm:$0xff] }
 0x45b   : > { %7680 = vmatprep.subr.bf16.mxu0 %v10194_v14  ;;  %7803 = vmatprep.subr.bf16.mxu1 %v10196_v50  ;;  %v5285_v54 = vld [vmem:[#allocation11 + $0x970] sm:$0xff]  ;;  %v5282_v14 = vld [vmem:[#allocation11 + $0x958] sm:$0xff] }
 0x45c   : > { %7710 = vmatprep.mubr.bf16.mxu0 %v12440_v44  ;;  %7833 = vmatprep.mubr.bf16.mxu1 %v12440_v44  ;;  %v10220_v44 = vcombine.high %v5274_v37, %v5278_v45  ;;  %v5286_v50 = vld [vmem:[#allocation11 + $0x978] sm:$0xff]  ;;  %v10226_v3 = vcombine.high %v5281_v43, %v5285_v54  ;;  %v10225_v32 = vcombine.low %v5281_v43, %v5285_v54 }
 0x45d   : > { %v10228_v58 = vcombine.high %v5282_v14, %v5286_v50  ;;  %v10227_v9 = vcombine.low %v5282_v14, %v5286_v50 }
 0x45e   : > { %7681 = vmatpush1.bf16.msra.mxu0 %v10193_v47  ;;  %7804 = vmatpush1.bf16.msra.mxu1 %v10195_v24  ;;  %v5289_v47 = vld [vmem:[#allocation11 + $0x990] sm:$0xff] }
 0x45f   : > { %7682 = vmatprep.subr.bf16.mxu0 %v10202_v36  ;;  %7805 = vmatprep.subr.bf16.mxu1 %v10204_v18  ;;  %v5293_v24 = vld [vmem:[#allocation11 + $0x9b0] sm:$0xff]  ;;  %v5290_v36 = vld [vmem:[#allocation11 + $0x998] sm:$0xff] }
 0x460   : > { %v5294_v18 = vld [vmem:[#allocation11 + $0x9b8] sm:$0xff]  ;;  %v10234_v7 = vcombine.high %v5289_v47, %v5293_v24  ;;  %v10233_v42 = vcombine.low %v5289_v47, %v5293_v24 }
 0x461   : > { %v10236_v2 = vcombine.high %v5290_v36, %v5294_v18  ;;  %v10235_v4 = vcombine.low %v5290_v36, %v5294_v18 }
 0x462   : > { %7683 = vmatpush1.bf16.msra.mxu0 %v10201_v12  ;;  %7806 = vmatpush1.bf16.msra.mxu1 %v10203_v29  ;;  %v5297_v12 = vld [vmem:[#allocation11 + $0x9d0] sm:$0xff] }
 0x463   : > { %7684 = vmatprep.subr.bf16.mxu0 %v10210_v22  ;;  %7807 = vmatprep.subr.bf16.mxu1 %v10212_v23  ;;  %v5301_v29 = vld [vmem:[#allocation11 + $0x9f0] sm:$0xff]  ;;  %v5298_v22 = vld [vmem:[#allocation11 + $0x9d8] sm:$0xff] }
 0x464   : > { %v5302_v23 = vld [vmem:[#allocation11 + $0x9f8] sm:$0xff]  ;;  %v10242_v37 = vcombine.high %v5297_v12, %v5301_v29  ;;  %v10241_v43 = vcombine.low %v5297_v12, %v5301_v29 }
 0x465   : > { %v10244_v45 = vcombine.high %v5298_v22, %v5302_v23  ;;  %v10243_v54 = vcombine.low %v5298_v22, %v5302_v23 }
 0x466   : > { %7685 = vmatpush1.bf16.msra.mxu0 %v10209_v51  ;;  %7808 = vmatpush1.bf16.msra.mxu1 %v10211_v55  ;;  %v5305_v51 = vld [vmem:[#allocation11 + $0xa10] sm:$0xff] }
 0x467   : > { %7686 = vmatprep.subr.bf16.mxu0 %v10218_v6  ;;  %7809 = vmatprep.subr.bf16.mxu1 %v10220_v44  ;;  %v5309_v55 = vld [vmem:[#allocation11 + $0xa30] sm:$0xff]  ;;  %v5306_v6 = vld [vmem:[#allocation11 + $0xa18] sm:$0xff] }
 0x468   : > { %v5310_v44 = vld [vmem:[#allocation11 + $0xa38] sm:$0xff]  ;;  %v10250_v14 = vcombine.high %v5305_v51, %v5309_v55  ;;  %v10249_v47 = vcombine.low %v5305_v51, %v5309_v55 }
 0x469   : > { %v10252_v50 = vcombine.high %v5306_v6, %v5310_v44  ;;  %v10251_v24 = vcombine.low %v5306_v6, %v5310_v44 }
 0x46a   : > { %7687 = vmatpush1.bf16.msra.mxu0 %v10217_v61  ;;  %7810 = vmatpush1.bf16.msra.mxu1 %v10219_v48  ;;  %v5313_v61 = vld [vmem:[#allocation11 + $0xa50] sm:$0xff] }
 0x46b   : > { %7688 = vmatprep.subr.bf16.mxu0 %v10226_v3  ;;  %7811 = vmatprep.subr.bf16.mxu1 %v10228_v58  ;;  %v5317_v48 = vld [vmem:[#allocation11 + $0xa70] sm:$0xff]  ;;  %v5314_v3 = vld [vmem:[#allocation11 + $0xa58] sm:$0xff] }
 0x46c   : > { %v5318_v58 = vld [vmem:[#allocation11 + $0xa78] sm:$0xff]  ;;  %v10258_v36 = vcombine.high %v5313_v61, %v5317_v48  ;;  %v10257_v12 = vcombine.low %v5313_v61, %v5317_v48 }
 0x46d   : > { %v10260_v18 = vcombine.high %v5314_v3, %v5318_v58  ;;  %v10259_v29 = vcombine.low %v5314_v3, %v5318_v58 }
 0x46e   : > { %7689 = vmatpush1.bf16.msra.mxu0 %v10225_v32  ;;  %7812 = vmatpush1.bf16.msra.mxu1 %v10227_v9  ;;  %v5321_v32 = vld [vmem:[#allocation11 + $0xa90] sm:$0xff] }
 0x46f   : > { %7690 = vmatprep.subr.bf16.mxu0 %v10234_v7  ;;  %7813 = vmatprep.subr.bf16.mxu1 %v10236_v2  ;;  %v5325_v9 = vld [vmem:[#allocation11 + $0xab0] sm:$0xff]  ;;  %v5322_v7 = vld [vmem:[#allocation11 + $0xa98] sm:$0xff] }
 0x470   : > { %v5326_v2 = vld [vmem:[#allocation11 + $0xab8] sm:$0xff]  ;;  %v10266_v22 = vcombine.high %v5321_v32, %v5325_v9  ;;  %v10265_v51 = vcombine.low %v5321_v32, %v5325_v9 }
 0x471   : > { %v10268_v23 = vcombine.high %v5322_v7, %v5326_v2  ;;  %v10267_v55 = vcombine.low %v5322_v7, %v5326_v2 }
 0x472   : > { %7691 = vmatpush1.bf16.msra.mxu0 %v10233_v42  ;;  %7814 = vmatpush1.bf16.msra.mxu1 %v10235_v4  ;;  %v5329_v42 = vld [vmem:[#allocation11 + $0xad0] sm:$0xff] }
 0x473   : > { %7692 = vmatprep.subr.bf16.mxu0 %v10242_v37  ;;  %7815 = vmatprep.subr.bf16.mxu1 %v10244_v45  ;;  %v5333_v4 = vld [vmem:[#allocation11 + $0xaf0] sm:$0xff]  ;;  %v5330_v37 = vld [vmem:[#allocation11 + $0xad8] sm:$0xff] }
 0x474   : > { %v5334_v45 = vld [vmem:[#allocation11 + $0xaf8] sm:$0xff]  ;;  %v10274_v6 = vcombine.high %v5329_v42, %v5333_v4  ;;  %v10273_v61 = vcombine.low %v5329_v42, %v5333_v4 }
 0x475   : > { %v10276_v44 = vcombine.high %v5330_v37, %v5334_v45  ;;  %v10275_v48 = vcombine.low %v5330_v37, %v5334_v45 }
 0x476   : > { %7693 = vmatpush1.bf16.msra.mxu0 %v10241_v43  ;;  %7816 = vmatpush1.bf16.msra.mxu1 %v10243_v54  ;;  %v5337_v43 = vld [vmem:[#allocation11 + $0xb10] sm:$0xff] }
 0x477   : > { %7694 = vmatprep.subr.bf16.mxu0 %v10250_v14  ;;  %7817 = vmatprep.subr.bf16.mxu1 %v10252_v50  ;;  %v5341_v54 = vld [vmem:[#allocation11 + $0xb30] sm:$0xff]  ;;  %v5338_v14 = vld [vmem:[#allocation11 + $0xb18] sm:$0xff] }
 0x478   : > { %v5342_v50 = vld [vmem:[#allocation11 + $0xb38] sm:$0xff]  ;;  %v10282_v3 = vcombine.high %v5337_v43, %v5341_v54  ;;  %v10281_v32 = vcombine.low %v5337_v43, %v5341_v54 }
 0x479   : > { %v10284_v58 = vcombine.high %v5338_v14, %v5342_v50  ;;  %v10283_v9 = vcombine.low %v5338_v14, %v5342_v50 }
 0x47a   : > { %7695 = vmatpush1.bf16.msra.mxu0 %v10249_v47  ;;  %7818 = vmatpush1.bf16.msra.mxu1 %v10251_v24  ;;  %v5345_v47 = vld [vmem:[#allocation11 + $0xb50] sm:$0xff] }
 0x47b   : > { %7696 = vmatprep.subr.bf16.mxu0 %v10258_v36  ;;  %7819 = vmatprep.subr.bf16.mxu1 %v10260_v18  ;;  %v5349_v24 = vld [vmem:[#allocation11 + $0xb70] sm:$0xff]  ;;  %v5346_v36 = vld [vmem:[#allocation11 + $0xb58] sm:$0xff] }
 0x47c   : > { %v5350_v18 = vld [vmem:[#allocation11 + $0xb78] sm:$0xff]  ;;  %v10290_v7 = vcombine.high %v5345_v47, %v5349_v24  ;;  %v10289_v42 = vcombine.low %v5345_v47, %v5349_v24  ;;  %v11155_v47 = vld [vmem:[#allocation14] sm:$0xff]  }
 0x47d   : > { %v10292_v2 = vcombine.high %v5346_v36, %v5350_v18  ;;  %v10291_v4 = vcombine.low %v5346_v36, %v5350_v18  ;;  %v11156_v24 = vld [vmem:[#allocation14 + $0x80] sm:$0xff]   ;;  %v11157_v36 = vld [vmem:[#allocation14 + $0x48] sm:$0xff]  }
 0x47e   : > { %7697 = vmatpush1.bf16.msra.mxu0 %v10257_v12  ;;  %7820 = vmatpush1.bf16.msra.mxu1 %v10259_v29  ;;  %v5353_v12 = vld [vmem:[#allocation11 + $0xb90] sm:$0xff] }
 0x47f   : > { %7698 = vmatprep.subr.bf16.mxu0 %v10266_v22  ;;  %7821 = vmatprep.subr.bf16.mxu1 %v10268_v23  ;;  %v5357_v29 = vld [vmem:[#allocation11 + $0xbb0] sm:$0xff]  ;;  %v5354_v22 = vld [vmem:[#allocation11 + $0xb98] sm:$0xff] }
 0x480   : > { %v5358_v23 = vld [vmem:[#allocation11 + $0xbb8] sm:$0xff]  ;;  %v10298_v37 = vcombine.high %v5353_v12, %v5357_v29  ;;  %v10297_v43 = vcombine.low %v5353_v12, %v5357_v29  ;;  %v11158_v18 = vld [vmem:[#allocation14 + $0xc8] sm:$0xff]  }
 0x481   : > { %v10300_v45 = vcombine.high %v5354_v22, %v5358_v23  ;;  %v10299_v54 = vcombine.low %v5354_v22, %v5358_v23  ;;  %v11163_v12 = vld [vmem:[#allocation14 + $0x10] sm:$0xff]   ;;  %v11165_v22 = vld [vmem:[#allocation14 + $0x58] sm:$0xff]  }
 0x482   : > { %7699 = vmatpush1.bf16.msra.mxu0 %v10265_v51  ;;  %7822 = vmatpush1.bf16.msra.mxu1 %v10267_v55  ;;  %v5361_v51 = vld [vmem:[#allocation11 + $0xbd0] sm:$0xff]  ;;  %v11164_v29 = vld [vmem:[#allocation14 + $0x90] sm:$0xff]   ;;  %v11167_v23 = vld [vmem:[#allocation14 + $0x18] sm:$0xff]  }
 0x483   : > { %7700 = vmatprep.subr.bf16.mxu0 %v10274_v6  ;;  %7823 = vmatprep.subr.bf16.mxu1 %v10276_v44  ;;  %v5365_v55 = vld [vmem:[#allocation11 + $0xbf0] sm:$0xff]  ;;  %v5362_v6 = vld [vmem:[#allocation11 + $0xbd8] sm:$0xff] }
 0x484   : > { %v5366_v44 = vld [vmem:[#allocation11 + $0xbf8] sm:$0xff]  ;;  %v10306_v14 = vcombine.high %v5361_v51, %v5365_v55 }
 0x485   : > { %v10308_v50 = vcombine.high %v5362_v6, %v5366_v44 }
 0x486   : > { %7701 = vmatpush1.bf16.msra.mxu0 %v10273_v61  ;;  %7824 = vmatpush1.bf16.msra.mxu1 %v10275_v48  ;;  %v10305_v61 = vcombine.low %v5361_v51, %v5365_v55  ;;  %v10307_v48 = vcombine.low %v5362_v6, %v5366_v44  ;;  %v11174_v51 = vld [vmem:[#allocation14 + $0xe8] sm:$0xff]   ;;  %v11177_v44 = vld [vmem:[#allocation14 + $0x70] sm:$0xff]  }
 0x487   : > { %7702 = vmatprep.subr.bf16.mxu0 %v10282_v3  ;;  %7825 = vmatprep.subr.bf16.mxu1 %v10284_v58  ;;  %v11153_v3 = vld [vmem:[#allocation14 + $0x40] sm:$0xff]   ;;  %v11175_v55 = vld [vmem:[#allocation14 + $0x28] sm:$0xff]  }
 0x488   : > { %v11154_v58 = vld [vmem:[#allocation14 + $0xc0] sm:$0xff]   ;;  %v11176_v6 = vld [vmem:[#allocation14 + $0xa8] sm:$0xff]  }
 0x48a   : > { %7703 = vmatpush1.bf16.msra.mxu0 %v10281_v32  ;;  %7826 = vmatpush1.bf16.msra.mxu1 %v10283_v9  ;;  %v11159_v32 = vld [vmem:[#allocation14 + $0x8] sm:$0xff]  }
 0x48b   : > { %7704 = vmatprep.subr.bf16.mxu0 %v10290_v7  ;;  %7827 = vmatprep.subr.bf16.mxu1 %v10292_v2  ;;  %v11160_v9 = vld [vmem:[#allocation14 + $0x88] sm:$0xff]   ;;  %v11161_v7 = vld [vmem:[#allocation14 + $0x50] sm:$0xff]  }
 0x48c   : > { %v11162_v2 = vld [vmem:[#allocation14 + $0xd0] sm:$0xff]  }
 0x48e   : > { %7705 = vmatpush1.bf16.msra.mxu0 %v10289_v42  ;;  %7828 = vmatpush1.bf16.msra.mxu1 %v10291_v4  ;;  %v11168_v42 = vld [vmem:[#allocation14 + $0x98] sm:$0xff]   ;;  %v11169_v4 = vld [vmem:[#allocation14 + $0x60] sm:$0xff]  }
 0x48f   : > { %7706 = vmatprep.subr.bf16.mxu0 %v10298_v37  ;;  %7829 = vmatprep.subr.bf16.mxu1 %v10300_v45  ;;  %v11170_v37 = vld [vmem:[#allocation14 + $0xe0] sm:$0xff]   ;;  %v11173_v45 = vld [vmem:[#allocation14 + $0x68] sm:$0xff]  }
 0x492   : > { %7707 = vmatpush1.bf16.msra.mxu0 %v10297_v43  ;;  %7830 = vmatpush1.bf16.msra.mxu1 %v10299_v54  ;;  %v11178_v54 = vld [vmem:[#allocation14 + $0xf0] sm:$0xff]  }
 0x493   : > { %7708 = vmatprep.subr.bf16.mxu0 %v10306_v14  ;;  %7831 = vmatprep.subr.bf16.mxu1 %v10308_v50 }
 0x496   : > { %7709 = vmatpush1.bf16.msra.mxu0 %v10305_v61  ;;  %7832 = vmatpush1.bf16.msra.mxu1 %v10307_v48 }
 0x497   : > { %10388 = vmatprep.subr.bf16.mxu0 %v11153_v3  ;;  %10428 = vmatprep.subr.bf16.mxu1 %v11154_v58  ;;  %v11179_v3 = vld [vmem:[#allocation14 + $0x30] sm:$0xff]  }
 0x499   : > { %7711 = vmatmul.mubr.bf16.vlgmr.msra.gmra.mrb[36].mxu0 %v12448_v33  ;;  %7834 = vmatmul.mubr.bf16.vlgmr.msra.gmra.mrb[36].mxu1 %v12448_v33  ;;  %v11166_v33 = vld [vmem:[#allocation14 + $0xd8] sm:$0xff]  }
 0x49a   : > { %10389 = vmatpush3.bf16.msra.mxu0 %v11155_v47  ;;  %10429 = vmatpush3.bf16.msra.mxu1 %v11156_v24  ;;  %v11180_v24 = vld [vmem:[#allocation14 + $0xb0] sm:$0xff]  }
 0x49b   : > { %10390 = vmatprep.subr.bf16.mxu0 %v11157_v36  ;;  %10430 = vmatprep.subr.bf16.mxu1 %v11158_v18  ;;  %v11181_v36 = vld [vmem:[#allocation14 + $0x78] sm:$0xff]  }
 0x49c   : > { %8401 = vmatprep.mubr.bf16.mxu0 %v11991_v59  ;;  %8466 = vmatprep.mubr.bf16.mxu1 %v12037_v27  ;;  %v11171_v59 = vld [vmem:[#allocation14 + $0x20] sm:$0xff]  }
 0x49d   : > { %v11172_v27 = vld [vmem:[#allocation14 + $0xa0] sm:$0xff]  }
 0x49e   : > { %10391 = vmatpush3.bf16.msra.mxu0 %v11159_v32  ;;  %10431 = vmatpush3.bf16.msra.mxu1 %v11160_v9  ;;  %v11182_v32 = vld [vmem:[#allocation14 + $0xf8] sm:$0xff]  }
 0x49f   : > { %10392 = vmatprep.subr.bf16.mxu0 %v11161_v7  ;;  %10432 = vmatprep.subr.bf16.mxu1 %v11162_v2  ;;  %v11183_v9 = vld [vmem:[#allocation14 + $0x38] sm:$0xff]   ;;  %v11185_v2 = vld [vmem:[#allocation14 + $0x140] sm:$0xff]  }
 0x4a0   : > { %v11184_v7 = vld [vmem:[#allocation14 + $0xb8] sm:$0xff]  }
 0x4a2   : > { %10393 = vmatpush3.bf16.msra.mxu0 %v11163_v12  ;;  %10433 = vmatpush3.bf16.msra.mxu1 %v11164_v29  ;;  %v11186_v12 = vld [vmem:[#allocation14 + $0x1c0] sm:$0xff]  }
 0x4a3   : > { %10394 = vmatprep.subr.bf16.mxu0 %v11165_v22  ;;  %10434 = vmatprep.subr.bf16.mxu1 %v11166_v33  ;;  %v11187_v29 = vld [vmem:[#allocation14 + $0x100] sm:$0xff]   ;;  %v11189_v33 = vld [vmem:[#allocation14 + $0x148] sm:$0xff]  }
 0x4a4   : > { %v11188_v22 = vld [vmem:[#allocation14 + $0x180] sm:$0xff]  }
 0x4a6   : > { %10395 = vmatpush3.bf16.msra.mxu0 %v11167_v23  ;;  %10435 = vmatpush3.bf16.msra.mxu1 %v11168_v42  ;;  %v11190_v23 = vld [vmem:[#allocation14 + $0x1c8] sm:$0xff]  }
 0x4a7   : > { %10396 = vmatprep.subr.bf16.mxu0 %v11169_v4  ;;  %10436 = vmatprep.subr.bf16.mxu1 %v11170_v37  ;;  %v11191_v42 = vld [vmem:[#allocation14 + $0x108] sm:$0xff]   ;;  %v11193_v37 = vld [vmem:[#allocation14 + $0x150] sm:$0xff]  }
 0x4a8   : > { %v11192_v4 = vld [vmem:[#allocation14 + $0x188] sm:$0xff]  }
 0x4aa   : > { %10397 = vmatpush3.bf16.msra.mxu0 %v11171_v59  ;;  %10437 = vmatpush3.bf16.msra.mxu1 %v11172_v27  ;;  %v11194_v59 = vld [vmem:[#allocation14 + $0x1d0] sm:$0xff]  }
 0x4ab   : > { %10398 = vmatprep.subr.bf16.mxu0 %v11173_v45  ;;  %10438 = vmatprep.subr.bf16.mxu1 %v11174_v51  ;;  %v11195_v27 = vld [vmem:[#allocation14 + $0x110] sm:$0xff]   ;;  %v11199_v51 = vld [vmem:[#allocation14 + $0x118] sm:$0xff]  }
 0x4ac   : > { %v12614_v43 = vpop.f32.mrb[32].mxu0  ;;  %v12616_v14 = vpop.f32.mrb[32].mxu1  ;;  %v11196_v45 = vld [vmem:[#allocation14 + $0x190] sm:$0xff]  }
 0x4ad   : > { %v12618_v50 = vpop.f32.mrb[33].mxu0  ;;  %v12620_v61 = vpop.f32.mrb[33].mxu1 }
 0x4ae   : > { %v7470_v48 = vpop.f32.mrb[34].mxu0  ;;  %10399 = vmatpush3.bf16.msra.mxu0 %v11175_v55  ;;  %v7593_v58 = vpop.f32.mrb[34].mxu1  ;;  %10439 = vmatpush3.bf16.msra.mxu1 %v11176_v6  ;;  %v11200_v55 = vld [vmem:[#allocation14 + $0x198] sm:$0xff]   ;;  %v11203_v6 = vld [vmem:[#allocation14 + $0x120] sm:$0xff]  }
 0x4af   : > { %v7471_v47 = vpop.f32.mrb[35].mxu0  ;;  %10400 = vmatprep.subr.bf16.mxu0 %v11177_v44  ;;  %v7594_v18 = vpop.f32.mrb[35].mxu1  ;;  %10440 = vmatprep.subr.bf16.mxu1 %v11178_v54  ;;  %v11204_v44 = vld [vmem:[#allocation14 + $0x1a0] sm:$0xff]   ;;  %v11206_v54 = vld [vmem:[#allocation14 + $0x1e8] sm:$0xff]   ;;  %v11212_v58 = vld [vmem:[#allocation14 + $0x1b0] sm:$0xff]  }
 0x4b0   : > { %v11208_v48 = vld [vmem:[#allocation14 + $0x1a8] sm:$0xff]   ;;  %v11214_v47 = vld [vmem:[#allocation14 + $0x1f8] sm:$0xff]  }
 0x4b2   : > { %10401 = vmatpush3.bf16.msra.mxu0 %v11179_v3  ;;  %10441 = vmatpush3.bf16.msra.mxu1 %v11180_v24  ;;  %v11211_v3 = vld [vmem:[#allocation14 + $0x130] sm:$0xff]   ;;  %v11216_v24 = vld [vmem:[#allocation14 + $0x1b8] sm:$0xff]  }
 0x4b3   : > { %10402 = vmatprep.subr.bf16.mxu0 %v11181_v36  ;;  %10442 = vmatprep.subr.bf16.mxu1 %v11182_v32  ;;  %v13128_v36 = vld [vmem:[#allocation45_spill] sm:$0xff]  ;;  %v13130_v32 = vld [vmem:[#allocation27_spill] sm:$0xff] }
 0x4b6   : > { %10403 = vmatpush3.bf16.msra.mxu0 %v11183_v9  ;;  %10443 = vmatpush3.bf16.msra.mxu1 %v11184_v7  ;;  %v13131_v9 = vld [vmem:[#allocation31_spill] sm:$0xff]  ;;  %v13133_v7 = vld [vmem:[#allocation32_spill] sm:$0xff] }
 0x4b7   : > { %10468 = vmatprep.subr.bf16.mxu0 %v11185_v2  ;;  %10508 = vmatprep.subr.bf16.mxu1 %v11186_v12  ;;  %v13134_v2 = vld [vmem:[#allocation51_spill] sm:$0xff]  ;;  %v13135_v12 = vld [vmem:[#allocation50_spill] sm:$0xff] }
 0x4b9   : > { %8402 = vmatmul.mubr.bf16.vlgmr.msra.gmra.mrb[40].mxu0 %v11997_v16  ;;  %8467 = vmatmul.mubr.bf16.vlgmr.msra.gmra.mrb[40].mxu1 %v12047_v49  ;;  %v11197_v16 = vld [vmem:[#allocation14 + $0x158] sm:$0xff]  }
 0x4ba   : > { %10469 = vmatpush3.bf16.msra.mxu0 %v11187_v29  ;;  %10509 = vmatpush3.bf16.msra.mxu1 %v11188_v22  ;;  %v11198_v49 = vld [vmem:[#allocation14 + $0x1d8] sm:$0xff]   ;;  %v13136_v29 = vpack.c.bf16 %v13134_v2, %v13135_v12 }
 0x4bb   : > { %10470 = vmatprep.subr.bf16.mxu0 %v11189_v33  ;;  %10510 = vmatprep.subr.bf16.mxu1 %v11190_v23  ;;  %v13137_v22 = vld [vmem:[#allocation55_spill] sm:$0xff]  ;;  %v13138_v33 = vld [vmem:[#allocation53_spill] sm:$0xff]  ;;  %v13175_v2 = vld [vmem:[#allocation64_spill] sm:$0xff] }
 0x4bc   : > { %8409 = vmatprep.mubr.bf16.mxu0 %v12001_v26  ;;  %8474 = vmatprep.mubr.bf16.mxu1 %v12049_v62  ;;  %v11201_v26 = vld [vmem:[#allocation14 + $0x160] sm:$0xff]   ;;  %v13139_v23 = vpack.c.bf16 %v13137_v22, %v13138_v33 }
 0x4bd   : > { %v11202_v62 = vld [vmem:[#allocation14 + $0x1e0] sm:$0xff]  }
 0x4be   : > { %10471 = vmatpush3.bf16.msra.mxu0 %v11191_v42  ;;  %10511 = vmatpush3.bf16.msra.mxu1 %v11192_v4  ;;  %v12675_v42 = vld [vmem:[#allocation12] sm:$0xff]  ;;  %v13140_v4 = vld [vmem:[#allocation29_spill] sm:$0xff] }
 0x4bf   : > { %10472 = vmatprep.subr.bf16.mxu0 %v11193_v37  ;;  %10512 = vmatprep.subr.bf16.mxu1 %v11194_v59  ;;  %v13141_v37 = vld [vmem:[#allocation33_spill] sm:$0xff]  ;;  %v13142_v59 = vld [vmem:[#allocation35_spill] sm:$0xff] }
 0x4c1   : > { %8410 = vmatmul.mubr.bf16.gmra.mrb[44].mxu0 %v12007_v35  ;;  %8475 = vmatmul.mubr.bf16.gmra.mrb[44].mxu1 %v12057_v8  ;;  %v11205_v35 = vld [vmem:[#allocation14 + $0x168] sm:$0xff]  }
 0x4c2   : > { %10473 = vmatpush3.bf16.msra.mxu0 %v11195_v27  ;;  %10513 = vmatpush3.bf16.msra.mxu1 %v11196_v45  ;;  %v11207_v8 = vld [vmem:[#allocation14 + $0x128] sm:$0xff]   ;;  %v7313_v27 = vrot.slane %v12675_v42, %v13142_v59 }
 0x4c3   : > { %10474 = vmatprep.subr.bf16.mxu0 %v11197_v16  ;;  %10514 = vmatprep.subr.bf16.mxu1 %v11198_v49  ;;  %v13143_v45 = vld [vmem:[#allocation34_spill] sm:$0xff] }
 0x4c4   : > { %8417 = vmatprep.mubr.bf16.mxu0 %v12011_v46  ;;  %8482 = vmatprep.mubr.bf16.mxu1 %v12059_v21  ;;  %v11209_v46 = vld [vmem:[#allocation14 + $0x170] sm:$0xff]   ;;  %v13144_v16 = vsub.s32 1, %v13143_v45 }
 0x4c5   : > { %v11210_v21 = vld [vmem:[#allocation14 + $0x1f0] sm:$0xff]  }
 0x4c6   : > { %10475 = vmatpush3.bf16.msra.mxu0 %v11199_v51  ;;  %10515 = vmatpush3.bf16.msra.mxu1 %v11200_v55  ;;  %v7317_v49 = vrot.slane %v12675_v42, %v13144_v16  ;;  %v13145_v51 = vld [vmem:[#allocation59_spill] sm:$0xff]  ;;  %v13146_v55 = vld [vmem:[#allocation58_spill] sm:$0xff] }
 0x4c7   : > { %10476 = vmatprep.subr.bf16.mxu0 %v11201_v26  ;;  %10516 = vmatprep.subr.bf16.mxu1 %v11202_v62  ;;  %v13147_v26 = vpack.c.bf16 %v13145_v51, %v13146_v55  ;;  %v10788_v62 = vadd.f32 %v12614_v43, %v7313_v27  ;;  %v13155_v43 = vld [vmem:[#allocation40_spill] sm:$0xff]  ;;  %v13180_v27 = vld [vmem:[#allocation71_spill] sm:$0xff] }
 0x4c8   : > { %v13186_v55 = vld [vmem:[#allocation79_spill] sm:$0xff] }
 0x4c9   : > { %8418 = vmatmul.mubr.bf16.gmra.mrb[48].mxu0 %v12019_v60  ;;  %8483 = vmatmul.mubr.bf16.gmra.mrb[48].mxu1 %v12065_v30  ;;  %v11213_v60 = vld [vmem:[#allocation14 + $0x178] sm:$0xff]  }
 0x4ca   : > { %10477 = vmatpush3.bf16.msra.mxu0 %v11203_v6  ;;  %10517 = vmatpush3.bf16.msra.mxu1 %v11204_v44  ;;  %v11215_v30 = vld [vmem:[#allocation14 + $0x138] sm:$0xff]   ;;  %v13149_v44 = vld [vmem:[#allocation61_spill] sm:$0xff] }
 0x4cb   : > { %10478 = vmatprep.subr.bf16.mxu0 %v11205_v35  ;;  %10518 = vmatprep.subr.bf16.mxu1 %v11206_v54  ;;  %v13148_v6 = vld [vmem:[#allocation63_spill] sm:$0xff]  ;;  %v10789_v54 = vadd.f32 %v12618_v50, %v7317_v49  ;;  %v13157_v50 = vld [vmem:[#allocation46_spill] sm:$0xff] }
 0x4cc   : > { %8425 = vmatprep.mubr.bf16.mxu0 %v12021_v5  ;;  %8490 = vmatprep.mubr.bf16.mxu1 %v12069_v40  ;;  %v11584_v5 = vmov 0.0   ;;  %v13118_v40 = vld [vmem:[#allocation39_spill] sm:$0xff]  ;;  %v13150_v35 = vpack.c.bf16 %v13148_v6, %v13149_v44  ;;  %v13184_v49 = vld [vmem:[#allocation74_spill] sm:$0xff] }
 0x4cd   : > { %v13189_v6 = vld [vmem:[#allocation83_spill] sm:$0xff]  ;;  %v13190_v44 = vld [vmem:[#allocation82_spill] sm:$0xff] }
 0x4ce   : > { %10479 = vmatpush3.bf16.msra.mxu0 %v11207_v8  ;;  %10519 = vmatpush3.bf16.msra.mxu1 %v11208_v48  ;;  %v7842_v8 = vpack.c.bf16 %v10788_v62, %v10788_v62  ;;  %v7843_v48 = vpack.c.bf16 %v10789_v54, %v10789_v54  ;;  %v13192_v54 = vpack.c.bf16 %v12554_v19, %v12548_v41  ;;  %v13196_v19 = vsub.s32 5, %v13143_v45 }
 0x4cf   : > { %10480 = vmatprep.subr.bf16.mxu0 %v11209_v46  ;;  %10520 = vmatprep.subr.bf16.mxu1 %v11210_v21  ;;  %v13151_v46 = vld [vmem:[#allocation38_spill] sm:$0xff]  ;;  %v13152_v21 = vld [vmem:[#allocation36_spill] sm:$0xff] }
 0x4d1   : > { %8426 = vmatmul.mubr.bf16.gmra.mrb[52].mxu0 %v12033_v17  ;;  %8491 = vmatmul.mubr.bf16.gmra.mrb[52].mxu1 %v12075_v53  ;;  %v13117_v17 = vpack.c.bf16 %v12259_v56, %v12256_v34  ;;  %v13119_v53 = vld [vmem:[#allocation37_spill] sm:$0xff]  ;;  %v13127_v34 = vld [vmem:[#allocation47_spill] sm:$0xff] }
 0x4d2   : > { %10481 = vmatpush3.bf16.msra.mxu0 %v11211_v3  ;;  %10521 = vmatpush3.bf16.msra.mxu1 %v11212_v58  ;;  %v13129_v18 = vpack.c.bf16 %v13127_v34, %v13128_v36  ;;  %v13153_v3 = vpack.c.bf16 %v13151_v46, %v13152_v21  ;;  %v13154_v58 = vld [vmem:[#allocation41_spill] sm:$0xff]  ;;  %v13170_v34 = vsub.s32 3, %v13143_v45  ;;  %v13195_v46 = vsub.s32 4, %v13143_v45 }
 0x4d3   : > { %10482 = vmatprep.subr.bf16.mxu0 %v11213_v60  ;;  %10522 = vmatprep.subr.bf16.mxu1 %v11214_v47  ;;  %v13156_v60 = vpack.c.bf16 %v13154_v58, %v13155_v43  ;;  %v13158_v47 = vld [vmem:[#allocation44_spill] sm:$0xff]  ;;  %v7333_v21 = vrot.slane %v12675_v42, %v13196_v19 }
 0x4d4   : > { %8531 = vmatprep.mubr.bf16.mxu0 %v12085_v1  ;;  %8596 = vmatprep.mubr.bf16.mxu1 %v12133_v11  ;;  %v13120_v1 = vpack.c.bf16 %v13118_v40, %v13119_v53  ;;  %v13121_v11 = vld [vmem:[#allocation25_spill] sm:$0xff]  ;;  %v13163_v53 = vld [vmem:[#allocation54_spill] sm:$0xff]  ;;  %v7325_v36 = vrot.slane %v12675_v42, %v13170_v34  ;;  %v7329_v41 = vrot.slane %v12675_v42, %v13195_v46  ;;  %v13207_v34 = vld [vmem:[#allocation80_spill] sm:$0xff] }
 0x4d6   : > { %10483 = vmatpush3.bf16.msra.mxu0 %v11215_v30  ;;  %10523 = vmatpush3.bf16.msra.mxu1 %v11216_v24  ;;  %v13159_v30 = vpack.c.bf16 %v13157_v50, %v13158_v47  ;;  %v13160_v24 = vld [vmem:[#allocation49_spill] sm:$0xff] }
 0x4d7   : > { %10597 = vmatprep.subr.bf16.mxu0 %v11584_v5  ;;  %10609 = vmatprep.subr.bf16.mxu1 %v11584_v5 }
 0x4d9   : > { %8532 = vmatmul.mubr.bf16.vlgmr.msra.gmra.mrb[56].mxu0 %v12093_v39  ;;  %8597 = vmatmul.mubr.bf16.vlgmr.msra.gmra.mrb[56].mxu1 %v12141_v10  ;;  %v13122_v39 = vld [vmem:[#allocation26_spill] sm:$0xff]  ;;  %v13124_v10 = vld [vmem:[#allocation43_spill] sm:$0xff] }
 0x4da   : > { %8539 = vmatprep.mubr.bf16.mxu0 %v12097_v52  ;;  %8604 = vmatprep.mubr.bf16.mxu1 %v12145_v25  ;;  %v13123_v52 = vld [vmem:[#allocation30_spill] sm:$0xff] }
 0x4db   : > { %v13125_v25 = vld [vmem:[#allocation42_spill] sm:$0xff] }
 0x4dc   : > { %v13126_v56 = vpack.c.bf16 %v13124_v10, %v13125_v25  ;;  %v13169_v25 = vsub.s32 2, %v13143_v45 }
 0x4df   : > { %10598 = vmatpush3.bf16.xpose.msra.mxu0 %v13117_v17  ;;  %10610 = vmatpush3.bf16.xpose.msra.mxu1 %v13120_v1  ;;  %v13161_v17 = vld [vmem:[#allocation48_spill] sm:$0xff] }
 0x4e0   : > { %10599 = vmatprep.subr.bf16.mxu0 %v11584_v5  ;;  %10611 = vmatprep.subr.bf16.mxu1 %v11584_v5  ;;  %v13162_v40 = vpack.c.bf16 %v13160_v24, %v13161_v17  ;;  %v13164_v1 = vld [vmem:[#allocation52_spill] sm:$0xff]  ;;  %v13197_v17 = vld [vmem:[#allocation70_spill] sm:$0xff] }
 0x4e1   : > { %8540 = vmatmul.mubr.bf16.gmra.mrb[60].mxu0 %v13121_v11  ;;  %8605 = vmatmul.mubr.bf16.gmra.mrb[60].mxu1 %v12151_v38  ;;  %v13132_v38 = vld [vmem:[#allocation28_spill] sm:$0xff]  ;;  %v13165_v11 = vpack.c.bf16 %v13163_v53, %v13164_v1  ;;  %v13200_v1 = vld [vmem:[#allocation73_spill] sm:$0xff] }
 0x4e2   : > { %8547 = vmatprep.mubr.bf16.mxu0 %v13122_v39  ;;  %8612 = vmatprep.mubr.bf16.mxu1 %v13123_v52  ;;  %v13166_v39 = vld [vmem:[#allocation57_spill] sm:$0xff]  ;;  %v13167_v52 = vld [vmem:[#allocation56_spill] sm:$0xff] }
 0x4e3   : > { %v13168_v10 = vpack.c.bf16 %v13166_v39, %v13167_v52  ;;  %v13203_v52 = vld [vmem:[#allocation78_spill] sm:$0xff] }
 0x4e7   : > { %10600 = vmatpush3.bf16.xpose.msra.mxu0 %v13126_v56  ;;  %10612 = vmatpush3.bf16.xpose.msra.mxu1 %v13129_v18  ;;  %v7321_v56 = vrot.slane %v12675_v42, %v13169_v25  ;;  %v13171_v18 = vld [vmem:[#allocation62_spill] sm:$0xff] }
 0x4e8   : > { %10601 = vmatprep.subr.bf16.mxu0 %v11584_v5  ;;  %10613 = vmatprep.subr.bf16.mxu1 %v11584_v5 }
 0x4e9   : > { %8548 = vmatmul.mubr.bf16.gmra.mrb[64].mxu0 %v13130_v32  ;;  %8613 = vmatmul.mubr.bf16.gmra.mrb[64].mxu1 %v13131_v9  ;;  %v13172_v32 = vld [vmem:[#allocation60_spill] sm:$0xff] }
 0x4ea   : > { %8555 = vmatprep.mubr.bf16.mxu0 %v13132_v38  ;;  %8620 = vmatprep.mubr.bf16.mxu1 %v13133_v7  ;;  %v13173_v9 = vpack.c.bf16 %v13171_v18, %v13172_v32  ;;  %v10790_v38 = vadd.f32 %v12616_v14, %v7321_v56  ;;  %v13174_v7 = vld [vmem:[#allocation65_spill] sm:$0xff]  ;;  %v13210_v32 = vld [vmem:[#allocation84_spill] sm:$0xff] }
 0x4eb   : > { %v13176_v12 = vpack.c.bf16 %v13174_v7, %v13175_v2  ;;  %v13181_v14 = vld [vmem:[#allocation69_spill] sm:$0xff]  ;;  %v13214_v2 = vsub.s32 6, %v13143_v45 }
 0x4ec   : > { %v7844_v22 = vpack.c.bf16 %v10790_v38, %v10790_v38  ;;  %v13182_v16 = vpack.c.bf16 %v13180_v27, %v13181_v14  ;;  %v13206_v56 = vld [vmem:[#allocation81_spill] sm:$0xff]  ;;  %v13212_v38 = vld [vmem:[#allocation86_spill] sm:$0xff] }
 0x4ed   : > { %v13209_v18 = vld [vmem:[#allocation85_spill] sm:$0xff]  ;;  %v13213_v7 = vpack.c.bf16 %v12562_v20, %v13212_v38  ;;  %v13217_v20 = vld [vmem:[#allocation87_spill] sm:$0xff] }
 0x4ef   : > { %10602 = vmatpush3.bf16.xpose.msra.mxu0 %v13136_v29  ;;  %10614 = vmatpush3.bf16.xpose.msra.mxu1 %v13139_v23  ;;  %v10791_v29 = vadd.f32 %v12620_v61, %v7325_v36  ;;  %v13177_v23 = vld [vmem:[#allocation67_spill] sm:$0xff]  ;;  %v13208_v36 = vpack.c.bf16 %v13206_v56, %v13207_v34 }
 0x4f0   : > { %10603 = vmatprep.subr.bf16.mxu0 %v11584_v5  ;;  %10615 = vmatprep.subr.bf16.mxu1 %v11584_v5  ;;  %v13183_v61 = vld [vmem:[#allocation75_spill] sm:$0xff] }
 0x4f1   : > { %8556 = vmatmul.mubr.bf16.gmra.mrb[68].mxu0 %v13140_v4  ;;  %8621 = vmatmul.mubr.bf16.gmra.mrb[68].mxu1 %v13141_v37  ;;  %v7845_v33 = vpack.c.bf16 %v10791_v29, %v10791_v29  ;;  %v13178_v4 = vld [vmem:[#allocation66_spill] sm:$0xff]  ;;  %v13185_v51 = vpack.c.bf16 %v13183_v61, %v13184_v49  ;;  %v13215_v29 = vsub.s32 7, %v13143_v45 }
 0x4f2   : > { %10605 = vmatprep.mubr.msk.bf16.mxu0 %vm11585_vm0, %v11584_v5  ;;  %10617 = vmatprep.mubr.msk.bf16.mxu1 %vm11585_vm0, %v11584_v5  ;;  %v13179_v37 = vpack.c.bf16 %v13177_v23, %v13178_v4  ;;  %v13218_v4 = vpack.c.bf16 %v12594_v28, %v13217_v20 }
 0x4f7   : > { %10604 = vmatpush3.bf16.xpose.msra.mxu0 %v13147_v26  ;;  %10616 = vmatpush3.bf16.xpose.msra.mxu1 %v13150_v35  ;;  %v13187_v26 = vld [vmem:[#allocation77_spill] sm:$0xff]  ;;  %v13191_v35 = vpack.c.bf16 %v13189_v6, %v13190_v44 }
 0x4f8   : > { %10621 = vmatprep.subr.bf16.mxu0 %v11584_v5  ;;  %10633 = vmatprep.subr.bf16.mxu1 %v11584_v5  ;;  %v13188_v62 = vpack.c.bf16 %v13186_v55, %v13187_v26 }
 0x4fe   : > { %10606 = vmatmul.mubr.bf16.vlgmr.msra.gmra.mrb[72].mxu0 %v7842_v8  ;;  %10618 = vmatmul.mubr.bf16.vlgmr.msra.gmra.mrb[72].mxu1 %v7843_v48  ;;  %v13193_v8 = vpack.c.bf16 %v12574_v57, %v12571_v15  ;;  %v13194_v48 = vpack.c.bf16 %v12586_v13, %v12580_v63 }
 0x4ff   : > { %10622 = vmatpush3.bf16.xpose.msra.mxu0 %v13153_v3  ;;  %10634 = vmatpush3.bf16.xpose.msra.mxu1 %v13156_v60 }
 0x500   : > { %10623 = vmatprep.subr.bf16.mxu0 %v11584_v5  ;;  %10635 = vmatprep.subr.bf16.mxu1 %v11584_v5 }
 0x501   : > { %10629 = vmatprep.mubr.msk.bf16.mxu0 %vm11585_vm0, %v11584_v5  ;;  %10641 = vmatprep.mubr.msk.bf16.mxu1 %vm11585_vm0, %v11584_v5 }
 0x507   : > { %10624 = vmatpush3.bf16.xpose.msra.mxu0 %v13159_v30  ;;  %10636 = vmatpush3.bf16.xpose.msra.mxu1 %v13162_v40  ;;  %v13198_v40 = vld [vmem:[#allocation68_spill] sm:$0xff] }
 0x508   : > { %10625 = vmatprep.subr.bf16.mxu0 %v11584_v5  ;;  %10637 = vmatprep.subr.bf16.mxu1 %v11584_v5  ;;  %v13199_v53 = vpack.c.bf16 %v13197_v17, %v13198_v40 }
 0x50f   : > { %10626 = vmatpush3.bf16.xpose.msra.mxu0 %v13165_v11  ;;  %10638 = vmatpush3.bf16.xpose.msra.mxu1 %v13168_v10  ;;  %v13201_v11 = vld [vmem:[#allocation72_spill] sm:$0xff] }
 0x510   : > { %10627 = vmatprep.subr.bf16.mxu0 %v11584_v5  ;;  %10639 = vmatprep.subr.bf16.mxu1 %v11584_v5  ;;  %v13202_v39 = vpack.c.bf16 %v13200_v1, %v13201_v11  ;;  %v13204_v10 = vld [vmem:[#allocation76_spill] sm:$0xff] }
 0x511   : > { %v13205_v25 = vpack.c.bf16 %v13203_v52, %v13204_v10 }
 0x517   : > { %10628 = vmatpush3.bf16.xpose.msra.mxu0 %v13173_v9  ;;  %10640 = vmatpush3.bf16.xpose.msra.mxu1 %v13176_v12  ;;  %v13211_v9 = vpack.c.bf16 %v13209_v18, %v13210_v32  ;;  %v7337_v12 = vrot.slane %v12675_v42, %v13214_v2 }
 0x518   : > { %10645 = vmatprep.subr.bf16.mxu0 %v11584_v5  ;;  %10657 = vmatprep.subr.bf16.mxu1 %v11584_v5 }
 0x51e   : > { %10630 = vmatmul.mubr.bf16.vlgmr.msra.gmra.mrb[76].mxu0 %v7844_v22  ;;  %10642 = vmatmul.mubr.bf16.vlgmr.msra.gmra.mrb[76].mxu1 %v7845_v33  ;;  %v7341_v22 = vrot.slane %v12675_v42, %v13215_v29  ;;  %v13216_v33 = vpack.c.bf16 %v12583_v0, %v12577_v31 }
 0x51f   : > { %10646 = vmatpush3.bf16.xpose.msra.mxu0 %v13179_v37  ;;  %10658 = vmatpush3.bf16.xpose.msra.mxu1 %v13182_v16  ;;  %v11586_v37 = vmov 0.0|0.0   ;;  %v12826_v16 = vld [vmem:[#allocation15] ss:$0 sm:$0xff] }
 0x520   : > { %10647 = vmatprep.subr.bf16.mxu0 %v11584_v5  ;;  %10659 = vmatprep.subr.bf16.mxu1 %v11584_v5 }
 0x521   : > { %10653 = vmatprep.mubr.msk.bf16.mxu0 %vm11585_vm0, %v11584_v5  ;;  %10665 = vmatprep.mubr.msk.bf16.mxu1 %vm11585_vm0, %v11584_v5 }
 0x527   : > { %10648 = vmatpush3.bf16.xpose.msra.mxu0 %v13185_v51  ;;  %10660 = vmatpush3.bf16.xpose.msra.mxu1 %v13188_v62 }
 0x528   : > { %10649 = vmatprep.subr.bf16.mxu0 %v11584_v5  ;;  %10661 = vmatprep.subr.bf16.mxu1 %v11584_v5 }
 0x52f   : > { %10650 = vmatpush3.bf16.xpose.msra.mxu0 %v13191_v35  ;;  %10662 = vmatpush3.bf16.xpose.msra.mxu1 %v13192_v54 }
 0x530   : > { %10651 = vmatprep.subr.bf16.mxu0 %v11584_v5  ;;  %10663 = vmatprep.subr.bf16.mxu1 %v11584_v5 }
 0x537   : > { %10652 = vmatpush3.bf16.xpose.msra.mxu0 %v13193_v8  ;;  %10664 = vmatpush3.bf16.xpose.msra.mxu1 %v13194_v48 }
 0x538   : > { %10669 = vmatprep.subr.bf16.mxu0 %v11584_v5  ;;  %10681 = vmatprep.subr.bf16.mxu1 %v11584_v5 }
 0x56c   : > { %v7712_v3 = vpop.f32.mrb[36].mxu0  ;;  %v7835_v15 = vpop.f32.mrb[36].mxu1 }
 0x56d   : > { %v10792_v58 = vadd.f32 %v7712_v3, %v7329_v41  ;;  %v7714_v57 = vpop.f32.mrb[37].mxu0  ;;  %v7837_v60 = vpop.f32.mrb[37].mxu1  ;;  %v10794_v23 = vadd.f32 %v7835_v15, %v7337_v12 }
 0x56e   : > { %v10793_v43 = vadd.f32 %v7714_v57, %v7333_v21  ;;  %v7716_v63 = vpop.f32.mrb[38].mxu0  ;;  %v7839_v50 = vpop.f32.mrb[38].mxu1  ;;  %v10795_v27 = vadd.f32 %v7837_v60, %v7341_v22 }
 0x56f   : > { %v7846_v13 = vpack.c.bf16 %v10792_v58, %v10792_v58  ;;  %v7717_v47 = vpop.f32.mrb[39].mxu0  ;;  %v7840_v24 = vpop.f32.mrb[39].mxu1  ;;  %v7848_v26 = vpack.c.bf16 %v10794_v23, %v10794_v23 }
 0x570   : > { %v7847_v30 = vpack.c.bf16 %v10793_v43, %v10793_v43  ;;  %v7849_v6 = vpack.c.bf16 %v10795_v27, %v10795_v27 }
 0x571   : > { %10654 = vmatmul.mubr.bf16.vlgmr.msra.gmra.mrb[80].mxu0 %v7846_v13 }
 0x572   : > { %10670 = vmatpush3.bf16.xpose.msra.mxu0 %v13199_v53  ;;  %10666 = vmatmul.mubr.bf16.vlgmr.msra.gmra.mrb[80].mxu1 %v7847_v30 }
 0x573   : > { %10682 = vmatpush3.bf16.xpose.msra.mxu1 %v13202_v39  ;;  %10671 = vmatprep.subr.bf16.mxu0 %v11584_v5 }
 0x574   : > { %10683 = vmatprep.subr.bf16.mxu1 %v11584_v5  ;;  %10677 = vmatprep.mubr.msk.bf16.mxu0 %vm11585_vm0, %v11584_v5 }
 0x575   : > { %10689 = vmatprep.mubr.msk.bf16.mxu1 %vm11585_vm0, %v11584_v5 }
 0x57a   : > { %10672 = vmatpush3.bf16.xpose.msra.mxu0 %v13205_v25 }
 0x57b   : > { %10684 = vmatpush3.bf16.xpose.msra.mxu1 %v13208_v36  ;;  %10673 = vmatprep.subr.bf16.mxu0 %v11584_v5 }
 0x57c   : > { %10685 = vmatprep.subr.bf16.mxu1 %v11584_v5 }
 0x582   : > { %10674 = vmatpush3.bf16.xpose.msra.mxu0 %v13211_v9 }
 0x583   : > { %10686 = vmatpush3.bf16.xpose.msra.mxu1 %v13213_v7  ;;  %10675 = vmatprep.subr.bf16.mxu0 %v11584_v5 }
 0x584   : > { %10687 = vmatprep.subr.bf16.mxu1 %v11584_v5 }
 0x58a   : > { %10676 = vmatpush3.bf16.xpose.msra.mxu0 %v13216_v33 }
 0x58b   : > { %10688 = vmatpush3.bf16.xpose.msra.mxu1 %v13218_v4  ;;  %10712 = vmatprep.subr.bf16.mxu0 %v11586_v37 }
 0x58c   : > { %v10404_v14 = vpop.f32.mrb[40].mxu0  ;;  %v10444_v49 = vpop.f32.mrb[40].mxu1 }
 0x58d   : > { %v10405_v61 = vpop.f32.mrb[41].mxu0  ;;  %v10445_v55 = vpop.f32.mrb[41].mxu1 }
 0x58e   : > { %v10406_v51 = vadd.f32 %v10405_v61, %v10404_v14  ;;  %v10407_v42 = vpop.f32.mrb[42].mxu0  ;;  %v10446_v0 = vadd.f32 %v10445_v55, %v10444_v49  ;;  %v10447_v62 = vpop.f32.mrb[42].mxu1 }
 0x58f   : > { %v10408_v31 = vpop.f32.mrb[43].mxu0  ;;  %v10448_v35 = vpop.f32.mrb[43].mxu1 }
 0x590   : > { %v8404_v28 = vadd.f32 %v10406_v51, %v12826_v16  ;;  %v10409_v44 = vadd.f32 %v10408_v31, %v10407_v42  ;;  %v10449_v54 = vadd.f32 %v10448_v35, %v10447_v62 }
 0x591   : > { %10678 = vmatmul.mubr.bf16.vlgmr.msra.gmra.mrb[84].mxu0 %v7848_v26 }
 0x592   : > { %10690 = vmatmul.mubr.bf16.vlgmr.msra.gmra.mrb[84].mxu1 %v7849_v6  ;;  %v8407_v8 = vadd.f32 %v10409_v44, %v12826_v16  ;;  %v8469_v48 = vadd.f32 %v10446_v0, %v8404_v28  ;;  %10709 = vmatprep.mubr.msk.f32.mxu0 %vm11585_vm0, %v11584_v5 }
 0x594   : > { %v10410_v46 = vpop.f32.mrb[44].mxu0  ;;  %v8472_v41 = vadd.f32 %v10449_v54, %v8407_v8  ;;  %v10450_v21 = vpop.f32.mrb[44].mxu1 }
 0x595   : > { %v10411_v19 = vpop.f32.mrb[45].mxu0  ;;  %v10451_v15 = vpop.f32.mrb[45].mxu1 }
 0x596   : > { %v10412_v3 = vadd.f32 %v10411_v19, %v10410_v46  ;;  %v10413_v58 = vpop.f32.mrb[46].mxu0  ;;  %v10452_v43 = vadd.f32 %v10451_v15, %v10450_v21  ;;  %v10453_v60 = vpop.f32.mrb[46].mxu1 }
 0x597   : > { %v10414_v57 = vpop.f32.mrb[47].mxu0  ;;  %v10454_v50 = vpop.f32.mrb[47].mxu1 }
 0x598   : > { %v8412_v63 = vadd.f32 %v10412_v3, %v12826_v16  ;;  %v10415_v13 = vadd.f32 %v10414_v57, %v10413_v58  ;;  %v10455_v47 = vadd.f32 %v10454_v50, %v10453_v60 }
 0x59a   : > { %v8415_v30 = vadd.f32 %v10415_v13, %v12826_v16  ;;  %v8477_v24 = vadd.f32 %v10452_v43, %v8412_v63 }
 0x59c   : > { %v10416_v17 = vpop.f32.mrb[48].mxu0  ;;  %v12834_v5 = vadd.f32 %v10455_v47, %v8415_v30  ;;  %v10456_v53 = vpop.f32.mrb[48].mxu1 }
 0x59d   : > { %v10417_v40 = vpop.f32.mrb[49].mxu0  ;;  %v10457_v39 = vpop.f32.mrb[49].mxu1 }
 0x59e   : > { %v10418_v1 = vadd.f32 %v10417_v40, %v10416_v17  ;;  %v10419_v11 = vpop.f32.mrb[50].mxu0  ;;  %v10458_v10 = vadd.f32 %v10457_v39, %v10456_v53  ;;  %v10459_v25 = vpop.f32.mrb[50].mxu1 }
 0x59f   : > { %v10420_v52 = vpop.f32.mrb[51].mxu0  ;;  %v10460_v36 = vpop.f32.mrb[51].mxu1 }
 0x5a0   : > { %v8420_v56 = vadd.f32 %v10418_v1, %v12826_v16  ;;  %v10421_v34 = vadd.f32 %v10420_v52, %v10419_v11  ;;  %v10461_v18 = vadd.f32 %v10460_v36, %v10459_v25 }
 0x5a2   : > { %v8423_v32 = vadd.f32 %v10421_v34, %v12826_v16  ;;  %v12838_v9 = vadd.f32 %v10458_v10, %v8420_v56 }
 0x5a4   : > { %v10422_v38 = vpop.f32.mrb[52].mxu0  ;;  %v12840_v7 = vadd.f32 %v10461_v18, %v8423_v32  ;;  %v10462_v12 = vpop.f32.mrb[52].mxu1 }
 0x5a5   : > { %v10423_v2 = vpop.f32.mrb[53].mxu0  ;;  %v10463_v33 = vpop.f32.mrb[53].mxu1 }
 0x5a6   : > { %v10424_v29 = vadd.f32 %v10423_v2, %v10422_v38  ;;  %v10425_v22 = vpop.f32.mrb[54].mxu0  ;;  %v10464_v20 = vadd.f32 %v10463_v33, %v10462_v12  ;;  %v10465_v4 = vpop.f32.mrb[54].mxu1 }
 0x5a7   : > { %v10426_v23 = vpop.f32.mrb[55].mxu0  ;;  %v10466_v61 = vpop.f32.mrb[55].mxu1 }
 0x5a8   : > { %v8428_v27 = vadd.f32 %v10424_v29, %v12826_v16  ;;  %v10427_v14 = vadd.f32 %v10426_v23, %v10425_v22  ;;  %v10467_v49 = vadd.f32 %v10466_v61, %v10465_v4 }
 0x5aa   : > { %v8431_v51 = vadd.f32 %v10427_v14, %v12826_v16  ;;  %v12844_v42 = vadd.f32 %v10464_v20, %v8428_v27 }
 0x5ac   : > { %v10484_v55 = vpop.f32.mrb[56].mxu0  ;;  %v12846_v26 = vadd.f32 %v10467_v49, %v8431_v51  ;;  %v10524_v0 = vpop.f32.mrb[56].mxu1 }
 0x5ad   : > { %v10485_v31 = vpop.f32.mrb[57].mxu0  ;;  %v10525_v28 = vpop.f32.mrb[57].mxu1 }
 0x5ae   : > { %v10486_v62 = vadd.f32 %v10485_v31, %v10484_v55  ;;  %v10487_v6 = vpop.f32.mrb[58].mxu0  ;;  %v10526_v35 = vadd.f32 %v10525_v28, %v10524_v0  ;;  %v10527_v54 = vpop.f32.mrb[58].mxu1 }
 0x5af   : > { %v10488_v44 = vpop.f32.mrb[59].mxu0  ;;  %v10528_v19 = vpop.f32.mrb[59].mxu1 }
 0x5b0   : > { %v8534_v8 = vadd.f32 %v10486_v62, %v8469_v48  ;;  %v10489_v46 = vadd.f32 %v10488_v44, %v10487_v6  ;;  %v10529_v21 = vadd.f32 %v10528_v19, %v10527_v54 }
 0x5b2   : > { %v8537_v3 = vadd.f32 %v10489_v46, %v8472_v41  ;;  %v8599_v58 = vadd.f32 %v10526_v35, %v8534_v8 }
 0x5b4   : > { %v8602_v16 = vadd.f32 %v10529_v21, %v8537_v3  ;;  %v10490_v15 = vpop.f32.mrb[60].mxu0  ;;  %v10530_v57 = vpop.f32.mrb[60].mxu1 }
 0x5b5   : > { %v10491_v43 = vpop.f32.mrb[61].mxu0  ;;  %v10531_v13 = vpop.f32.mrb[61].mxu1 }
 0x5b6   : > { %v10713_v60 = vpack.c.bf16 %v8602_v16, %v8599_v58  ;;  %v10492_v63 = vadd.f32 %v10491_v43, %v10490_v15  ;;  %v10493_v50 = vpop.f32.mrb[62].mxu0  ;;  %v10532_v47 = vadd.f32 %v10531_v13, %v10530_v57  ;;  %v10533_v30 = vpop.f32.mrb[62].mxu1 }
 0x5b7   : > { %v10494_v17 = vpop.f32.mrb[63].mxu0  ;;  %v10534_v1 = vpop.f32.mrb[63].mxu1 }
 0x5b8   : > { %v8542_v40 = vadd.f32 %v10492_v63, %v8477_v24  ;;  %v10495_v53 = vadd.f32 %v10494_v17, %v10493_v50  ;;  %10714 = vmatpush3.bf16.msra.mxu0 %v10713_v60  ;;  %v10535_v48 = vadd.f32 %v10534_v1, %v10533_v30 }
 0x5b9   : > { %10715 = vmatprep.subr.bf16.mxu0 %v11586_v37 }
 0x5ba   : > { %v8607_v41 = vadd.f32 %v10532_v47, %v8542_v40  ;;  %v8545_v11 = vadd.f32 %v10495_v53, %v12834_v5 }
 0x5bc   : > { %v8610_v39 = vadd.f32 %v10535_v48, %v8545_v11  ;;  %v10496_v52 = vpop.f32.mrb[64].mxu0  ;;  %v10536_v10 = vpop.f32.mrb[64].mxu1 }
 0x5bd   : > { %v10497_v25 = vpop.f32.mrb[65].mxu0  ;;  %v10537_v36 = vpop.f32.mrb[65].mxu1 }
 0x5be   : > { %v10716_v56 = vpack.c.bf16 %v8610_v39, %v8607_v41  ;;  %v10498_v34 = vadd.f32 %v10497_v25, %v10496_v52  ;;  %v10499_v18 = vpop.f32.mrb[66].mxu0  ;;  %v10538_v32 = vadd.f32 %v10537_v36, %v10536_v10  ;;  %v10539_v38 = vpop.f32.mrb[66].mxu1 }
 0x5bf   : > { %v10500_v24 = vpop.f32.mrb[67].mxu0  ;;  %v10540_v29 = vpop.f32.mrb[67].mxu1 }
 0x5c0   : > { %v8550_v2 = vadd.f32 %v10498_v34, %v12838_v9  ;;  %v10501_v12 = vadd.f32 %v10500_v24, %v10499_v18  ;;  %10717 = vmatpush3.bf16.msra.mxu0 %v10716_v56  ;;  %v10541_v22 = vadd.f32 %v10540_v29, %v10539_v38 }
 0x5c1   : > { %10718 = vmatprep.subr.bf16.mxu0 %v11586_v37 }
 0x5c2   : > { %v8615_v5 = vadd.f32 %v10538_v32, %v8550_v2  ;;  %v8553_v33 = vadd.f32 %v10501_v12, %v12840_v7 }
 0x5c4   : > { %v8618_v23 = vadd.f32 %v10541_v22, %v8553_v33  ;;  %v10502_v20 = vpop.f32.mrb[68].mxu0  ;;  %v10542_v4 = vpop.f32.mrb[68].mxu1 }
 0x5c5   : > { %v10503_v27 = vpop.f32.mrb[69].mxu0  ;;  %v10543_v49 = vpop.f32.mrb[69].mxu1 }
 0x5c6   : > { %v10719_v14 = vpack.c.bf16 %v8618_v23, %v8615_v5  ;;  %v10504_v61 = vadd.f32 %v10503_v27, %v10502_v20  ;;  %v10505_v51 = vpop.f32.mrb[70].mxu0  ;;  %v10544_v55 = vadd.f32 %v10543_v49, %v10542_v4  ;;  %v10545_v31 = vpop.f32.mrb[70].mxu1 }
 0x5c7   : > { %v10506_v9 = vpop.f32.mrb[71].mxu0  ;;  %v10546_v6 = vpop.f32.mrb[71].mxu1 }
 0x5c8   : > { %v8558_v0 = vadd.f32 %v10504_v61, %v12844_v42  ;;  %v10507_v62 = vadd.f32 %v10506_v9, %v10505_v51  ;;  %10720 = vmatpush3.bf16.msra.mxu0 %v10719_v14  ;;  %v10547_v28 = vadd.f32 %v10546_v6, %v10545_v31 }
 0x5c9   : > { %10721 = vmatprep.subr.bf16.mxu0 %v11586_v37 }
 0x5ca   : > { %v8623_v7 = vadd.f32 %v10544_v55, %v8558_v0  ;;  %v8561_v44 = vadd.f32 %v10507_v62, %v12846_v26 }
 0x5cc   : > { %v8626_v35 = vadd.f32 %v10547_v28, %v8561_v44 }
 0x5ce   : > { %v10722_v54 = vpack.c.bf16 %v8626_v35, %v8623_v7 }
 0x5d0   : > { %10723 = vmatpush3.bf16.msra.mxu0 %v10722_v54 }
 0x5d1   : > { %v8663_v8 = vpop.f32.mrb[72].mxu0  ;;  %v8717_v19 = vpop.f32.mrb[72].mxu1 }
 0x5d2   : > { %v10374_v46 = vclamps-f32 %v8663_v8, 50000.0  ;;  %v10607_v21 = vpop.f32.mrb[73].mxu0  ;;  %v10375_v3 = vclamps-f32 %v8717_v19, 50000.0  ;;  %v10619_v58 = vpop.f32.mrb[73].mxu1 }
 0x5d3   : > { %v8666_v42 = vpop.f32.mrb[74].mxu0  ;;  %v8720_v16 = vpop.f32.mrb[74].mxu1 }
 0x5d4   : > { %v10608_v15 = vpop.f32.mrb[75].mxu0  ;;  %v8672_v57 = vsel %vm8671_vm1, %v10374_v46, -inf  ;;  %v10620_v43 = vpop.f32.mrb[75].mxu1  ;;  %v8725_v37 = vsel %vm8671_vm1, %v10375_v3, -inf }
 0x5d5   : > { %8673 = vmax.xlane.f32.xlu1 %v8672_v57  ;;  %8726 = vmax.xlane.f32.xlu0 %v8725_v37 }
 0x5f1   : > { %v8770_v26 = vpop.f32.mrb[76].mxu0  ;;  %v8823_v63 = vpop.f32.mrb[76].mxu1 }
 0x5f2   : > { %v10376_v60 = vclamps-f32 %v8770_v26, 50000.0  ;;  %v10631_v13 = vpop.f32.mrb[77].mxu0  ;;  %v10377_v50 = vclamps-f32 %v8823_v63, 50000.0  ;;  %v10643_v47 = vpop.f32.mrb[77].mxu1 }
 0x5f3   : > { %v8773_v30 = vpop.f32.mrb[78].mxu0  ;;  %v8826_v17 = vpop.f32.mrb[78].mxu1 }
 0x5f4   : > { %v10632_v40 = vpop.f32.mrb[79].mxu0  ;;  %v8778_v53 = vsel %vm8671_vm1, %v10376_v60, -inf  ;;  %v10644_v1 = vpop.f32.mrb[79].mxu1  ;;  %v8831_v48 = vsel %vm8671_vm1, %v10377_v50, -inf }
 0x5f5   : > { %8779 = vmax.xlane.f32.xlu0 %v8778_v53  ;;  %8832 = vmax.xlane.f32.xlu1 %v8831_v48 }
 0x644   : > { %v8876_v41 = vpop.f32.mrb[80].mxu0 }
 0x645   : > { %v10378_v11 = vclamps-f32 %v8876_v41, 50000.0  ;;  %v10655_v39 = vpop.f32.mrb[81].mxu0  ;;  %v8929_v52 = vpop.f32.mrb[80].mxu1 }
 0x646   : > { %v10379_v10 = vclamps-f32 %v8929_v52, 50000.0  ;;  %v8879_v25 = vpop.f32.mrb[82].mxu0  ;;  %v10667_v56 = vpop.f32.mrb[81].mxu1 }
 0x647   : > { %v10656_v34 = vpop.f32.mrb[83].mxu0  ;;  %v8932_v36 = vpop.f32.mrb[82].mxu1  ;;  %v8884_v18 = vsel %vm8671_vm1, %v10378_v11, -inf }
 0x648   : > { %v10668_v32 = vpop.f32.mrb[83].mxu1  ;;  %8885 = vmax.xlane.f32.xlu0 %v8884_v18  ;;  %v8937_v38 = vsel %vm8671_vm1, %v10379_v10, -inf }
 0x649   : > { %8938 = vmax.xlane.f32.xlu1 %v8937_v38 }
 0x662   : > { %v8674_v24 = vpop.xlane.xlu1 %8673  ;;  %v8727_v2 = vpop.xlane.xlu0 %8726 }
 0x663   : > { %v8675_v12 = vsub.f32 %v10374_v46, %v8674_v24  ;;  %v8728_v29 = vsub.f32 %v10375_v3, %v8727_v2 }
 0x664   : > { %v8982_v22 = vpop.f32.mrb[84].mxu0 }
 0x665   : > { %v8676_v5 = vmul.f32 1.442695, %v8675_v12  ;;  %v10380_v33 = vclamps-f32 %v8982_v22, 50000.0  ;;  %v10679_v23 = vpop.f32.mrb[85].mxu0  ;;  %v9035_v20 = vpop.f32.mrb[84].mxu1 }
 0x666   : > { %v8729_v4 = vmul.f32 1.442695, %v8728_v29  ;;  %v10381_v27 = vclamps-f32 %v9035_v20, 50000.0  ;;  %v8985_v14 = vpop.f32.mrb[86].mxu0  ;;  %v10691_v61 = vpop.f32.mrb[85].mxu1 }
 0x667   : > { %v10680_v49 = vpop.f32.mrb[87].mxu0  ;;  %v9038_v51 = vpop.f32.mrb[86].mxu1  ;;  %v8990_v55 = vsel %vm8671_vm1, %v10380_v33, -inf }
 0x668   : > { %11217 = vpow2.f32 %v8729_v4  ;;  %v10692_v31 = vpop.f32.mrb[87].mxu1  ;;  %8991 = vmax.xlane.f32.xlu0 %v8990_v55  ;;  %v9043_v9 = vsel %vm8671_vm1, %v10381_v27, -inf }
 0x669   : > { %9044 = vmax.xlane.f32.xlu1 %v9043_v9  ;;  %11219 = vpow2.f32 %v8676_v5 }
 0x672   : > { %v12864_v0 = vpop.eup %11217 }
 0x673   : > { %v8731_v62 = vsel %vm8671_vm1, %v12864_v0, 0.0  ;;  %v12868_v6 = vpop.eup %11219 }
 0x674   : > { %8732 = vadd.xlane.f32.xlu0 %v8731_v62  ;;  %v8678_v28 = vsel %vm8671_vm1, %v12868_v6, 0.0 }
 0x678   : > { %8679 = vadd.xlane.f32.xlu0 %v8678_v28 }
 0x682   : > { %v8780_v7 = vpop.xlane.xlu0 %8779  ;;  %v8833_v44 = vpop.xlane.xlu1 %8832 }
 0x683   : > { %v8781_v35 = vsub.f32 %v10376_v60, %v8780_v7  ;;  %v8834_v54 = vsub.f32 %v10377_v50, %v8833_v44 }
 0x685   : > { %v8782_v8 = vmul.f32 1.442695, %v8781_v35  ;;  %v8835_v46 = vmul.f32 1.442695, %v8834_v54 }
 0x687   : > { %11221 = vpow2.f32 %v8782_v8 }
 0x688   : > { %11223 = vpow2.f32 %v8835_v46 }
 0x691   : > { %v11222_v19 = vpop.eup %11221 }
 0x692   : > { %v8784_v21 = vsel %vm8671_vm1, %v11222_v19, 0.0  ;;  %v11224_v3 = vpop.eup %11223 }
 0x693   : > { %8785 = vadd.xlane.f32.xlu1 %v8784_v21  ;;  %v8837_v58 = vsel %vm8671_vm1, %v11224_v3, 0.0 }
 0x697   : > { %8838 = vadd.xlane.f32.xlu1 %v8837_v58 }
 0x6d5   : > { %v8886_v42 = vpop.xlane.xlu0 %8885 }
 0x6d6   : > { %v8887_v16 = vsub.f32 %v10378_v11, %v8886_v42  ;;  %v8939_v15 = vpop.xlane.xlu1 %8938 }
 0x6d7   : > { %v8940_v57 = vsub.f32 %v10379_v10, %v8939_v15 }
 0x6d8   : > { %v8888_v43 = vmul.f32 1.442695, %v8887_v16  ;;  %v11587_v16 = vmov 0  }
 0x6d9   : > { %v8941_v37 = vmul.f32 1.442695, %v8940_v57  ;;  %11145 = vset.pattern.permute.xlu1 %v11587_v16  ;;  %11146 = vset.pattern.permute.xlu0 %v11587_v16 }
 0x6da   : > { %11225 = vpow2.f32 %v8888_v43 }
 0x6db   : > { %11227 = vpow2.f32 %v8941_v37 }
 0x6e4   : > { %v11226_v26 = vpop.eup %11225 }
 0x6e5   : > { %v11228_v60 = vpop.eup %11227  ;;  %v8890_v63 = vsel %vm8671_vm1, %v11226_v26, 0.0 }
 0x6e6   : > { %8891 = vadd.xlane.f32.xlu0 %v8890_v63  ;;  %v8943_v13 = vsel %vm8671_vm1, %v11228_v60, 0.0  ;;  %v9177_v63 = vld [vmem:[#allocation2] sm:$0x1] }
 0x6e7   : > { %8944 = vadd.xlane.f32.xlu1 %v8943_v13 }
 0x6f5   : > { %v8992_v50 = vpop.xlane.xlu0 %8991 }
 0x6f6   : > { %v8993_v47 = vsub.f32 %v10380_v33, %v8992_v50  ;;  %v9045_v30 = vpop.xlane.xlu1 %9044 }
 0x6f7   : > { %v9046_v17 = vsub.f32 %v10381_v27, %v9045_v30 }
 0x6f8   : > { %v8994_v40 = vmul.f32 1.442695, %v8993_v47 }
 0x6f9   : > { %v9047_v53 = vmul.f32 1.442695, %v9046_v17 }
 0x6fa   : > { %11229 = vpow2.f32 %v8994_v40 }
 0x6fb   : > { %11231 = vpow2.f32 %v9047_v53 }
 0x701   : > { %v8733_v39 = vpop.xlane.xlu0 %8732 }
 0x702   : > { %11233 = vrcp.f32 %v8733_v39 }
 0x704   : > { %v11230_v1 = vpop.eup %11229 }
 0x705   : > { %v11232_v48 = vpop.eup %11231  ;;  %v8996_v41 = vsel %vm8671_vm1, %v11230_v1, 0.0  ;;  %v8680_v10 = vpop.xlane.xlu0 %8679 }
 0x706   : > { %8997 = vadd.xlane.f32.xlu0 %v8996_v41  ;;  %v9049_v11 = vsel %vm8671_vm1, %v11232_v48, 0.0 }
 0x707   : > { %9050 = vadd.xlane.f32.xlu1 %v9049_v11 }
 0x70c   : > { %v11234_v36 = vpop.eup %11233 }
 0x70d   : > { %v8735_v22 = vmul.f32 %v11234_v36, %v12864_v0 }
 0x70f   : > { %v9055_v27 = vrot.slane %v8735_v22, 7 }
 0x720   : > { %v8786_v52 = vpop.xlane.xlu1 %8785 }
 0x721   : > { %11235 = vrcp.f32 %v8786_v52 }
 0x724   : > { %v8839_v25 = vpop.xlane.xlu1 %8838 }
 0x725   : > { %11237 = vrcp.f32 %v8839_v25 }
 0x72b   : > { %v11236_v18 = vpop.eup %11235 }
 0x72c   : > { %v8788_v29 = vmul.f32 %v11236_v18, %v11222_v19  ;;  %v13219_v19 = vlaneseq }
 0x72e   : > { %v9058_v4 = vrot.slane %v8788_v29, 6  ;;  %v9166_v21 = vand.u32 127, %v13219_v19 }
 0x72f   : > { %v11238_v32 = vpop.eup %11237 }
 0x730   : > { %v8841_v5 = vmul.f32 %v11238_v32, %v11224_v3  ;;  %vm9167_vm10 = vcmp.eq.s32.totalorder %v13143_v45, %v9166_v21 }
 0x732   : > { %v9061_v14 = vrot.slane %v8841_v5, 5 }
 0x773   : > { %v8892_v56 = vpop.xlane.xlu0 %8891 }
 0x774   : > { %11239 = vrcp.f32 %v8892_v56  ;;  %v8945_v34 = vpop.xlane.xlu1 %8944 }
 0x775   : > { %11241 = vrcp.f32 %v8680_v10 }
 0x776   : > { %11243 = vrcp.f32 %v8945_v34 }
 0x77e   : > { %v11240_v24 = vpop.eup %11239 }
 0x77f   : > { %v11242_v12 = vpop.eup %11241  ;;  %v8894_v23 = vmul.f32 %v11240_v24, %v11226_v26 }
 0x780   : > { %v11244_v33 = vpop.eup %11243  ;;  %v8682_v20 = vmul.f32 %v11242_v12, %v12868_v6 }
 0x781   : > { %v8947_v61 = vmul.f32 %v11244_v33, %v11228_v60  ;;  %v9064_v49 = vrot.slane %v8894_v23, 4 }
 0x782   : > { %v9076_v51 = vsel %vm9075_vm2, %v8682_v20, %v9055_v27 }
 0x783   : > { %v9078_v55 = vsel %vm9077_vm3, %v9076_v51, %v9058_v4  ;;  %v9067_v9 = vrot.slane %v8947_v61, 3 }
 0x784   : > { %v9080_v62 = vsel %vm9079_vm4, %v9078_v55, %v9061_v14 }
 0x785   : > { %v9082_v7 = vsel %vm9081_vm5, %v9080_v62, %v9064_v49 }
 0x786   : > { %v9084_v54 = vsel %vm9083_vm6, %v9082_v7, %v9067_v9 }
 0x793   : > { %v8998_v38 = vpop.xlane.xlu0 %8997 }
 0x794   : > { %11245 = vrcp.f32 %v8998_v38  ;;  %v9051_v2 = vpop.xlane.xlu1 %9050 }
 0x795   : > { %11247 = vrcp.f32 %v9051_v2 }
 0x79e   : > { %v11246_v31 = vpop.eup %11245 }
 0x79f   : > { %v11248_v0 = vpop.eup %11247  ;;  %v9000_v28 = vmul.f32 %v11246_v31, %v11230_v1 }
 0x7a0   : > { %v9053_v44 = vmul.f32 %v11248_v0, %v11232_v48 }
 0x7a1   : > { %v9070_v6 = vrot.slane %v9000_v28, 2 }
 0x7a2   : > { %v9073_v35 = vrot.slane %v9053_v44, 1 }
 0x7a3   : > { %v9086_v8 = vsel %vm9085_vm7, %v9084_v54, %v9070_v6 }
 0x7a4   : > { %v9088_v46 = vsel %vm9087_vm8, %v9086_v8, %v9073_v35 }
 0x7a5   : > { %10710 = vmatmul.mubr.msk.f32.vlgmr.msra.gmra.mrb[88].mxu0 %vm9089_vm9, %v9088_v46 }
 0x878   : > { %v9159_v3 = vpop.f32.mrb[88].mxu0 }
 0x879   : > { %v10711_v58 = vpop.f32.mrb[89].mxu0  ;;  %v9168_v42 = vsel %vm9167_vm10, %v9159_v3, 0.0 }
 0x87a   : > { %9169 = vadd.xlane.f32.xlu0 %v9168_v42 }
 0x907   : > { %v9170_v15 = vpop.xlane.xlu0 %9169 }
 0x908   : > { %v9171_v57 = vrot.slane %v9170_v15, 4 }
 0x90a   : > { %v9172_v43 = vadd.f32 %v9171_v57, %v9170_v15 }
 0x90c   : > { %v9173_v37 = vrot.slane %v9172_v43, 2 }
 0x90e   : > { %v9174_v26 = vadd.f32 %v9173_v37, %v9172_v43 }
 0x910   : > { %v9175_v60 = vrot.slane %v9174_v26, 1 }
 0x912   : > { %v9176_v13 = vadd.f32 %v9175_v60, %v9174_v26 }
 0x914   : > { %v9178_v50 = vadd.f32 %v9177_v63, %v9176_v13 }
 0x916   : > { %v10383_v45 = vmul.f32 -1.442695, %v9178_v50 }
 0x918   : > { %11249 = vpow2.f32 %v10383_v45 }
 0x922   : > { %v11250_v47 = vpop.eup %11249 }
 0x923   : > { %v9182_v30 = vadd.f32 1.0, %v11250_v47 }
 0x925   : > { %11251 = vrcp.f32 %v9182_v30 }
 0x92f   : > { %v11252_v17 = vpop.eup %11251 }
 0x930   : > { %9187 = vperm.xlu1 %11145, %v11252_v17  }
 0x9af   : > { %v9188_v40 = vpop.permute.xlu1 %9187 }
 0x9b0   : > { %v9193_v53 = vrot.slane %v9188_v40, %v13142_v59 }
 0x9b2   : > { %9194 = vst [vmem:[%s472_s4] sm:$0x1] %v9193_v53 }
 0x9b3   : > { %11495 = shalt.err (!%p11492_p3)
}
 0x9b4   : > { %s11496_s18 = scalar_lea.hbm %s12888_s0, 16  ;;  %s11500_s3 = scalar_lea.hbm %s12941_s9, 32 }
 0x9b5   : > { %p11497_p12 = scmp.ne.s32.totalorder %s12888_s0, %s11496_s18  ;;  %p11501_p0 = scmp.lt.u32.totalorder %s12888_s0, %s12941_s9 }
 0x9b6   : > { %p11502_p6 = scmp.lt.u32.totalorder %s11500_s3, %s11496_s18  ;;  %p11504_p4 = scmp.lt.u32.totalorder %s11496_s18, %s12888_s0 }
 0x9b7   : > { %p11498_p1 = pnand %p11497_p12, %p13220_p10 }
 0x9b8   : > { %p11503_p2 = por %p11502_p6, %p11501_p0 }
 0x9b9   : > { %p11499_p13 = pneg %p11498_p1 }
 0x9ba   : > { %p11505_p5 = por %p11504_p4, %p11503_p2 }
 0x9bc   : > { %p11506_p7 = pnand %p11505_p5, %p11499_p13 }
 0x9be   : > { %11509 = shalt.err (!%p11506_p7)
}
 0x9bf   : > { %11051 = dma.vmem_to_hbm [thread:$0]  (%p13220_p10), %s12890_s30, 16, %s12888_s0, %s9196_s26  }
 0x9c0 PF: > { %s9220_s17 = sand.u32 1, %s11556_s11   ;;  %p13221_p9 = scmp.ne.s32.totalorder %s13039_s19, 0 }
 0x9c1   : > { %p13222_p8 = scmp.ge.s32.totalorder %s11568_s14, 2  ;;  %s9221_s28 = scalar_lea.sflag [#allocation5], %s9220_s17 }
 0x9c3   : > { %p11080_p11 = pnand %p13222_p8, %p13221_p9 }
 0x9c5   : > { %11551 = dma.done.wait (!%p11080_p11), %s9221_s28, 16  }
 0x9c6   : > { %11553 = vsyncadd (!%p11080_p11), %s9221_s28, 4294967280  ;;  %p30_p3 = scmp.ge.s32.totalorder %s11824_s20, 4   ;;  %s13223_s11 = smov %s11560_s12 }
 0x9c7   : > { %s13224_s12 = smov %s11564_s13  ;;  %s13225_s13 = smov %s11835_s25 }
 0x9c8   : > { %s13226_s14 = smov %s11824_s20  ;;  %32 = sbr.rel (!%p30_p3) target bundleno = 17 (0x11), region = 138 }
 0x9cf   :  { %9225 = vsyncpa [#allocation4], 1 }
 0x9d0   :  { %9227 = vsyncpa [#allocation4 + $0x1], 1 }
 0x9d1   :  { %9228 = vsyncpa [#allocation7], 1 }
 0x9d2   :  { %9230 = vsyncpa [#allocation7 + $0x1], 1 }
 0x9d3   :  { %9231 = vsyncpa [#allocation10], 1 }
 0x9d4   :  { %9232 = vsyncpa [#allocation13], 1 }
 0x9d5   :  { %9233 = vsyncpa [#allocation16], 1 }
 0x9d6   :  { %9234 = vsyncpa [#allocation5], 1 }
 0x9d7   :  { %9236 = vsyncpa [#allocation5 + $0x1], 1 }

</bundles_post_ra>
